<compile_context>
chip_gen: v7x
topology: tpu7x:2x2x1
jax: 0.10.0
libtpu: 0.0.40
codegen_flags: <defaults>
</compile_context>

<pallas_src>
import functools

import jax
import jax.numpy as jnp
from jax.experimental import pallas as pl
from jax.experimental.pallas import tpu as pltpu

# Use per-tap matmul accumulation (instead of im2col) once the input channel
# count alone fills the MXU contraction depth.
_PER_TAP_MIN_CIN = 128

# Above the 16 MiB (v5e) / 32 MiB (v6e, v7x) scoped defaults, below v7x's
# 64 MiB physical VMEM.  Retune per generation at real VGG sizes.
_VMEM_LIMIT_BYTES = 48 * 1024 * 1024


# ----------------------------------------------------------------------------
# Lane-merge helpers (implemented with lane-axis concatenation so they lower
# cleanly; semantically these are reshape(A, B*C) of an (A, B, C) value).
# ----------------------------------------------------------------------------
def _merge_minor_into_lanes(y):
    """(A, B, C) -> (A, B*C), row-major over (B, C)."""
    A, B, C = y.shape
    pieces = [y[:, j:j + 1, :].reshape(A, C) for j in range(B)]
    return pieces[0] if B == 1 else jnp.concatenate(pieces, axis=-1)


def _wpool2_and_merge_lanes(y):
    """(A, W, C) -> (A, (W//2)*C): max over adjacent W pairs, fused with the
    lane merge so no (.., 2, C) minor reshape is ever materialized."""
    A, W, C = y.shape
    Wo = W // 2
    pieces = []
    for j in range(Wo):
        a = y[:, 2 * j:2 * j + 1, :]
        b = y[:, 2 * j + 1:2 * j + 2, :]
        pieces.append(jnp.maximum(a, b).reshape(A, C))
    return pieces[0] if Wo == 1 else jnp.concatenate(pieces, axis=-1)


# ----------------------------------------------------------------------------
# Fused Conv3x3 (stride 1, pad 1) + bias + ReLU (+ optional 2x2 maxpool).
# One grid step = one image; halo-in-scratch padding; lane-dense output block.
# ----------------------------------------------------------------------------
def conv3x3_relu_pool_kernel(x_ref, w_ref, b_ref, o_ref, xp_ref, *,
                             pool, per_tap):
    # x_ref : (H, W, Cin)  bf16      w_ref : (9*Cin, Cout) bf16
    # b_ref : (1, Cout)    f32       o_ref : (Ho, Wo*Cout) bf16
    # xp_ref: (H+2, W+2, Cin) f32 VMEM halo scratch
    H, W, Cin = x_ref.shape
    Cout = w_ref.shape[1]

    # --- halo padding: zero the 4 border strips, store the interior ---------
    zc = jnp.zeros((H + 2, 1, Cin), jnp.float32)
    xp_ref[:, 0:1, :] = zc
    xp_ref[:, W + 1:W + 2, :] = zc
    zr = jnp.zeros((1, W + 2, Cin), jnp.float32)
    xp_ref[0:1, :, :] = zr
    xp_ref[H + 1:H + 2, :, :] = zr
    xp_ref[1:H + 1, 1:W + 1, :] = x_ref[...].astype(jnp.float32)

    # --- 3x3 conv as MXU matmul(s), f32 accumulation -------------------------
    if per_tap:
        # Deep-channel layers: 9 matmul-accumulates, no im2col buffer.
        acc = jnp.zeros((H * W, Cout), jnp.float32)
        for t in range(9):
            kh, kw = divmod(t, 3)
            tap = xp_ref[kh:kh + H, kw:kw + W, :].reshape(H * W, Cin)
            acc = acc + jnp.dot(tap.astype(jnp.bfloat16),
                                w_ref[t * Cin:(t + 1) * Cin, :],
                                preferred_element_type=jnp.float32)
    else:
        # Shallow stem layers: single deep-K im2col matmul.
        cols = []
        for t in range(9):
            kh, kw = divmod(t, 3)
            cols.append(xp_ref[kh:kh + H, kw:kw + W, :]
                        .reshape(H * W, Cin).astype(jnp.bfloat16))
        patches = jnp.concatenate(cols, axis=-1)            # (H*W, 9*Cin)
        acc = jnp.dot(patches, w_ref[...],
                      preferred_element_type=jnp.float32)   # (H*W, Cout)

    # --- bias + ReLU (f32 epilogue) ------------------------------------------
    y = jnp.maximum(acc + b_ref[...], 0.0)
    y = y.reshape(H, W, Cout)                                # leading split: free

    # --- optional 2x2 maxpool + lane-dense store -----------------------------
    if pool:
        y = jnp.max(y.reshape(H // 2, 2, W, Cout), axis=1)   # H-pool, slab max
        out2d = _wpool2_and_merge_lanes(y)                   # (Ho, Wo*Cout)
    else:
        out2d = _merge_minor_into_lanes(y)                   # (H,  W*Cout)
    o_ref[...] = out2d.astype(o_ref.dtype)


def conv3x3_relu_pool(x, w, b, pool):
    # NOTE: at real VGG sizes (224x224) add an H-tiled grid axis with a 2-row
    # halo and raise/lower vmem_limit_bytes per generation (v7x: 64 MiB
    # physical).  Not needed at demo sizes — whole images fit in VMEM.
    N, H, W, Cin = x.shape
    Cout = w.shape[-1]
    if pool:
        assert H % 2 == 0 and W % 2 == 0, (H, W)
    Ho, Wo = (H // 2, W // 2) if pool else (H, W)
    per_tap = Cin >= _PER_TAP_MIN_CIN

    y = pl.pallas_call(
        functools.partial(conv3x3_relu_pool_kernel, pool=pool, per_tap=per_tap),
        out_shape=jax.ShapeDtypeStruct((N, Ho, Wo * Cout), jnp.bfloat16),
        grid=(N,),
        in_specs=[
            pl.BlockSpec((None, H, W, Cin), lambda n: (n, 0, 0, 0)),
            pl.BlockSpec((9 * Cin, Cout), lambda n: (0, 0)),
            pl.BlockSpec((1, Cout), lambda n: (0, 0)),
        ],
        out_specs=pl.BlockSpec((None, Ho, Wo * Cout), lambda n: (n, 0, 0)),
        scratch_shapes=[pltpu.VMEM((H + 2, W + 2, Cin), jnp.float32)],
        compiler_params=pltpu.CompilerParams(
            dimension_semantics=("parallel",),
            vmem_limit_bytes=_VMEM_LIMIT_BYTES),
    )(x, w, b)
    # Free row-major un-merge for the next layer.
    return y.reshape(N, Ho, Wo, Cout)


# ----------------------------------------------------------------------------
# Standalone MaxPool 2x2 stride 2 (only used if an 'M' is not directly after a
# conv — never the case in real VGG configs, where pooling is fused above).
# ----------------------------------------------------------------------------
def maxpool2x2_kernel(x_ref, o_ref):
    H, W, C = x_ref.shape
    y = x_ref[...]
    y = jnp.max(y.reshape(H // 2, 2, W, C), axis=1)          # H-pool, slab max
    o_ref[...] = _wpool2_and_merge_lanes(y)                  # (Ho, Wo*C)


def maxpool2x2(x):
    N, H, W, C = x.shape
    assert H % 2 == 0 and W % 2 == 0, (H, W)
    Ho, Wo = H // 2, W // 2
    y = pl.pallas_call(
        maxpool2x2_kernel,
        out_shape=jax.ShapeDtypeStruct((N, Ho, Wo * C), x.dtype),
        grid=(N,),
        in_specs=[pl.BlockSpec((None, H, W, C), lambda n: (n, 0, 0, 0))],
        out_specs=pl.BlockSpec((None, Ho, Wo * C), lambda n: (n, 0, 0)),
        compiler_params=pltpu.CompilerParams(
            dimension_semantics=("parallel",),
            vmem_limit_bytes=_VMEM_LIMIT_BYTES),
    )(x)
    return y.reshape(N, Ho, Wo, C)


# ----------------------------------------------------------------------------
# Fused, K-tiled classifier:
#   Linear -> ReLU -> [Dropout=id] -> Linear -> ReLU -> [Dropout=id] -> Linear
# Grid = (N_tiles, K_tiles); the big w1 is streamed K-tile by K-tile into an
# f32 VMEM accumulator (pl.when init/finalize); w2/w3/biases stay resident via
# constant index maps; hidden activations never leave VMEM.
# ----------------------------------------------------------------------------
def classifier_kernel(x_ref, w1_ref, b1_ref, w2_ref, b2_ref, w3_ref, b3_ref,
                      o_ref, h1_acc):
    k = pl.program_id(1)

    @pl.when(k == 0)
    def _init():
        h1_acc[...] = jnp.zeros_like(h1_acc)

    h1_acc[...] += jnp.dot(x_ref[...], w1_ref[...],
                           preferred_element_type=jnp.float32)

    @pl.when(k == pl.num_programs(1) - 1)
    def _finalize():
        h1 = jnp.maximum(h1_acc[...] + b1_ref[...], 0.0)
        # TODO(synk): nn.Dropout is identity (eval-mode semantics).
        h2 = jnp.dot(h1.astype(w2_ref.dtype), w2_ref[...],
                     preferred_element_type=jnp.float32) + b2_ref[...]
        h2 = jnp.maximum(h2, 0.0)
        o_ref[...] = (jnp.dot(h2.astype(w3_ref.dtype), w3_ref[...],
                              preferred_element_type=jnp.float32)
                      + b3_ref[...]).astype(o_ref.dtype)


def classifier(x, w1, b1, w2, b2, w3, b3):
    N, K = x.shape
    H1, H2, C = w1.shape[1], w2.shape[1], w3.shape[1]

    tn = N if N < 128 else 128
    assert N % tn == 0
    tk = 128 if K % 128 == 0 else K          # K-tile size (multiple of 128)
    grid = (N // tn, K // tk)

    # NOTE: at real VGG sizes (4096x4096 w2) also tile w2/w3 along Dout/K and
    # consider int8 (v5e/v6e) / fp8 (v7x) weights; not needed at demo sizes.
    return pl.pallas_call(
        classifier_kernel,
        out_shape=jax.ShapeDtypeStruct((N, C), jnp.float32),
        grid=grid,
        in_specs=[
            pl.BlockSpec((tn, tk), lambda n, k: (n, k)),
            pl.BlockSpec((tk, H1), lambda n, k: (k, 0)),
            pl.BlockSpec((1, H1), lambda n, k: (0, 0)),
            pl.BlockSpec((H1, H2), lambda n, k: (0, 0)),
            pl.BlockSpec((1, H2), lambda n, k: (0, 0)),
            pl.BlockSpec((H2, C), lambda n, k: (0, 0)),
            pl.BlockSpec((1, C), lambda n, k: (0, 0)),
        ],
        out_specs=pl.BlockSpec((tn, C), lambda n, k: (n, 0)),
        scratch_shapes=[pltpu.VMEM((tn, H1), jnp.float32)],
        compiler_params=pltpu.CompilerParams(
            dimension_semantics=("parallel", "arbitrary"),
            vmem_limit_bytes=_VMEM_LIMIT_BYTES),
    )(x, w1, b1, w2, b2, w3, b3)


# ----------------------------------------------------------------------------
# Parameter init (deterministic, mirrors VGG._initialize_weights):
#   conv: kaiming_normal(fan_out, relu), bias 0; linear: N(0, 0.01), bias 0.
# NOTE: importing a PyTorch checkpoint requires transposing conv weights from
# (Cout, Cin, 3, 3) to (kh, kw, Cin, Cout) before the (9*Cin, Cout) reshape.
# ----------------------------------------------------------------------------
def init_params(key, cfg, in_ch, in_hw, hidden, num_classes):
    params = {"features": [], "classifier": []}
    c, hw = in_ch, in_hw
    for v in cfg:
        if v == "M":
            hw //= 2
            continue
        key, k1 = jax.random.split(key)
        fan_out = v * 3 * 3                            # kaiming_normal_, fan_out
        w = jax.random.normal(k1, (3, 3, c, v), jnp.float32) * jnp.sqrt(2.0 / fan_out)
        params["features"].append((w.reshape(9 * c, v).astype(jnp.bfloat16),
                                   jnp.zeros((1, v), jnp.float32)))
        c = v

    cf, hf, wf = c, hw, hw
    flat = cf * hf * wf
    for i, (din, dout) in enumerate([(flat, hidden), (hidden, hidden),
                                     (hidden, num_classes)]):
        key, k1 = jax.random.split(key)
        w = jax.random.normal(k1, (din, dout), jnp.float32) * 0.01
        if i == 0:
            # Permute rows from NCHW-flatten order to NHWC-flatten order so the
            # feature map is flattened directly in NHWC (no transpose before
            # the classifier); matches PyTorch's x.view(N, -1) over NCHW.
            perm = jnp.transpose(jnp.arange(flat).reshape(cf, hf, wf),
                                 (1, 2, 0)).reshape(-1)
            w = w[perm]
        params["classifier"].append((w.astype(jnp.bfloat16),
                                     jnp.zeros((1, dout), jnp.float32)))
    return params, flat


# ----------------------------------------------------------------------------
# Full VGG forward.
# ----------------------------------------------------------------------------
def vgg_forward(x_nchw, params, cfg):
    N = x_nchw.shape[0]
    # NCHW -> NHWC (channels in the lane dim), bf16 for the MXU + halved DMA.
    x = jnp.transpose(x_nchw, (0, 2, 3, 1)).astype(jnp.bfloat16)

    ci, i = 0, 0
    while i < len(cfg):                                # self.features(x)
        v = cfg[i]
        if v == "M":
            x = maxpool2x2(x)                          # 'M' not after a conv
            i += 1
        else:
            w, b = params["features"][ci]
            ci += 1
            fuse_pool = (i + 1 < len(cfg)) and (cfg[i + 1] == "M")
            x = conv3x3_relu_pool(x, w, b, pool=fuse_pool)
            i += 2 if fuse_pool else 1

    # NHWC flatten; w1 rows were permuted at init so this matches PyTorch's
    # x.view(x.size(0), -1) over NCHW exactly.
    xf = x.reshape(N, -1)

    (w1, b1), (w2, b2), (w3, b3) = params["classifier"]
    return classifier(xf, w1, b1, w2, b2, w3, b3)


if __name__ == "__main__":
    # Scaled-down VGG-style config: conv8 - pool - conv16 - pool - conv32 - pool
    CFG = (8, "M", 16, "M", 32, "M")
    N, C_IN, HW = 2, 3, 32
    NUM_CLASSES, HIDDEN = 10, 128

    key = jax.random.PRNGKey(0)
    key, kx = jax.random.split(key)
    x = jax.random.normal(kx, (N, C_IN, HW, HW), jnp.float32)

    params, flat_dim = init_params(key, CFG, C_IN, HW, HIDDEN, NUM_CLASSES)
    assert flat_dim == 32 * (HW // 8) * (HW // 8)      # 512 -> 4 classifier K-tiles

    out = vgg_forward(x, params, CFG)
    out = jax.block_until_ready(out)
    assert out.shape == (N, NUM_CLASSES), out.shape
    assert bool(jnp.all(jnp.isfinite(out)))
    print("KERNEL_OK")
</pallas_src>

<mosaic_0001>
module attributes {stable_mosaic.version = 11 : i64} {
  func.func @conv3x3_relu_pool_kernel(%arg0: i32, %arg1: memref<1x32x32x3xbf16, #tpu.memory_space<vmem>>, %arg2: memref<27x8xbf16, #tpu.memory_space<vmem>>, %arg3: memref<1x8xf32, #tpu.memory_space<vmem>>, %arg4: memref<1x16x128xbf16, #tpu.memory_space<vmem>>, %arg5: memref<34x34x3xf32, #tpu.memory_space<vmem>>) attributes {dimension_semantics = [#tpu.dimension_semantics<parallel>], iteration_bounds = array<i64: 2>, scalar_prefetch = 0 : i64, scratch_operands = 1 : i64, tpu.core_type = #tpu.core_type<tc>, window_params = [{transform_indices = @transform_0, window_bounds = array<i64: 1, 32, 32, 3>}, {pipeline_mode = #tpu.pipeline_mode<synchronous>, transform_indices = @transform_1, window_bounds = array<i64: 27, 8>}, {pipeline_mode = #tpu.pipeline_mode<synchronous>, transform_indices = @transform_2, window_bounds = array<i64: 1, 8>}, {transform_indices = @transform_3, window_bounds = array<i64: 1, 16, 128>}]} {
    %cst = arith.constant 0.000000e+00 : f32
    %0 = vector.broadcast %cst : f32 to vector<34x1x3xf32>
    %c0 = arith.constant 0 : index
    %c0_0 = arith.constant 0 : index
    %c0_1 = arith.constant 0 : index
    %1 = vector.load %arg5[%c0, %c0_0, %c0_1] : memref<34x34x3xf32, #tpu.memory_space<vmem>>, vector<34x1x3xf32>
    tpu.vector_store %arg5[%c0, %c0_0, %c0_1], %0 {strides = array<i32>} : memref<34x34x3xf32, #tpu.memory_space<vmem>>, vector<34x1x3xf32>,
    %c0_2 = arith.constant 0 : index
    %c33 = arith.constant 33 : index
    %c0_3 = arith.constant 0 : index
    %2 = vector.load %arg5[%c0_2, %c33, %c0_3] : memref<34x34x3xf32, #tpu.memory_space<vmem>>, vector<34x1x3xf32>
    tpu.vector_store %arg5[%c0_2, %c33, %c0_3], %0 {strides = array<i32>} : memref<34x34x3xf32, #tpu.memory_space<vmem>>, vector<34x1x3xf32>,
    %cst_4 = arith.constant 0.000000e+00 : f32
    %3 = vector.broadcast %cst_4 : f32 to vector<1x34x3xf32>
    %c0_5 = arith.constant 0 : index
    %c0_6 = arith.constant 0 : index
    %c0_7 = arith.constant 0 : index
    %4 = vector.load %arg5[%c0_5, %c0_6, %c0_7] : memref<34x34x3xf32, #tpu.memory_space<vmem>>, vector<1x34x3xf32>
    tpu.vector_store %arg5[%c0_5, %c0_6, %c0_7], %3 {strides = array<i32>} : memref<34x34x3xf32, #tpu.memory_space<vmem>>, vector<1x34x3xf32>,
    %c33_8 = arith.constant 33 : index
    %c0_9 = arith.constant 0 : index
    %c0_10 = arith.constant 0 : index
    %5 = vector.load %arg5[%c33_8, %c0_9, %c0_10] : memref<34x34x3xf32, #tpu.memory_space<vmem>>, vector<1x34x3xf32>
    tpu.vector_store %arg5[%c33_8, %c0_9, %c0_10], %3 {strides = array<i32>} : memref<34x34x3xf32, #tpu.memory_space<vmem>>, vector<1x34x3xf32>,
    %c0_11 = arith.constant 0 : index
    %c0_12 = arith.constant 0 : index
    %c0_13 = arith.constant 0 : index
    %c0_14 = arith.constant 0 : index
    %6 = vector.load %arg1[%c0_11, %c0_12, %c0_13, %c0_14] : memref<1x32x32x3xbf16, #tpu.memory_space<vmem>>, vector<1x32x32x3xbf16>
    %7 = vector.shape_cast %6 : vector<1x32x32x3xbf16> to vector<32x32x3xbf16>
    %8 = arith.extf %7 : vector<32x32x3xbf16> to vector<32x32x3xf32>
    %c1 = arith.constant 1 : index
    %c1_15 = arith.constant 1 : index
    %c0_16 = arith.constant 0 : index
    %9 = vector.load %arg5[%c1, %c1_15, %c0_16] : memref<34x34x3xf32, #tpu.memory_space<vmem>>, vector<32x32x3xf32>
    tpu.vector_store %arg5[%c1, %c1_15, %c0_16], %8 {strides = array<i32>} : memref<34x34x3xf32, #tpu.memory_space<vmem>>, vector<32x32x3xf32>,
    %c0_17 = arith.constant 0 : index
    %c0_18 = arith.constant 0 : index
    %c0_19 = arith.constant 0 : index
    %10 = vector.load %arg5[%c0_17, %c0_18, %c0_19] : memref<34x34x3xf32, #tpu.memory_space<vmem>>, vector<32x32x3xf32>
    %11 = vector.shape_cast %10 : vector<32x32x3xf32> to vector<1024x3xf32>
    %12 = arith.truncf %11 : vector<1024x3xf32> to vector<1024x3xbf16>
    %c0_20 = arith.constant 0 : index
    %c1_21 = arith.constant 1 : index
    %c0_22 = arith.constant 0 : index
    %13 = vector.load %arg5[%c0_20, %c1_21, %c0_22] : memref<34x34x3xf32, #tpu.memory_space<vmem>>, vector<32x32x3xf32>
    %14 = vector.shape_cast %13 : vector<32x32x3xf32> to vector<1024x3xf32>
    %15 = arith.truncf %14 : vector<1024x3xf32> to vector<1024x3xbf16>
    %c0_23 = arith.constant 0 : index
    %c2 = arith.constant 2 : index
    %c0_24 = arith.constant 0 : index
    %16 = vector.load %arg5[%c0_23, %c2, %c0_24] : memref<34x34x3xf32, #tpu.memory_space<vmem>>, vector<32x32x3xf32>
    %17 = vector.shape_cast %16 : vector<32x32x3xf32> to vector<1024x3xf32>
    %18 = arith.truncf %17 : vector<1024x3xf32> to vector<1024x3xbf16>
    %c1_25 = arith.constant 1 : index
    %c0_26 = arith.constant 0 : index
    %c0_27 = arith.constant 0 : index
    %19 = vector.load %arg5[%c1_25, %c0_26, %c0_27] : memref<34x34x3xf32, #tpu.memory_space<vmem>>, vector<32x32x3xf32>
    %20 = vector.shape_cast %19 : vector<32x32x3xf32> to vector<1024x3xf32>
    %21 = arith.truncf %20 : vector<1024x3xf32> to vector<1024x3xbf16>
    %c1_28 = arith.constant 1 : index
    %c1_29 = arith.constant 1 : index
    %c0_30 = arith.constant 0 : index
    %22 = vector.load %arg5[%c1_28, %c1_29, %c0_30] : memref<34x34x3xf32, #tpu.memory_space<vmem>>, vector<32x32x3xf32>
    %23 = vector.shape_cast %22 : vector<32x32x3xf32> to vector<1024x3xf32>
    %24 = arith.truncf %23 : vector<1024x3xf32> to vector<1024x3xbf16>
    %c1_31 = arith.constant 1 : index
    %c2_32 = arith.constant 2 : index
    %c0_33 = arith.constant 0 : index
    %25 = vector.load %arg5[%c1_31, %c2_32, %c0_33] : memref<34x34x3xf32, #tpu.memory_space<vmem>>, vector<32x32x3xf32>
    %26 = vector.shape_cast %25 : vector<32x32x3xf32> to vector<1024x3xf32>
    %27 = arith.truncf %26 : vector<1024x3xf32> to vector<1024x3xbf16>
    %c2_34 = arith.constant 2 : index
    %c0_35 = arith.constant 0 : index
    %c0_36 = arith.constant 0 : index
    %28 = vector.load %arg5[%c2_34, %c0_35, %c0_36] : memref<34x34x3xf32, #tpu.memory_space<vmem>>, vector<32x32x3xf32>
    %29 = vector.shape_cast %28 : vector<32x32x3xf32> to vector<1024x3xf32>
    %30 = arith.truncf %29 : vector<1024x3xf32> to vector<1024x3xbf16>
    %c2_37 = arith.constant 2 : index
    %c1_38 = arith.constant 1 : index
    %c0_39 = arith.constant 0 : index
    %31 = vector.load %arg5[%c2_37, %c1_38, %c0_39] : memref<34x34x3xf32, #tpu.memory_space<vmem>>, vector<32x32x3xf32>
    %32 = vector.shape_cast %31 : vector<32x32x3xf32> to vector<1024x3xf32>
    %33 = arith.truncf %32 : vector<1024x3xf32> to vector<1024x3xbf16>
    %c2_40 = arith.constant 2 : index
    %c2_41 = arith.constant 2 : index
    %c0_42 = arith.constant 0 : index
    %34 = vector.load %arg5[%c2_40, %c2_41, %c0_42] : memref<34x34x3xf32, #tpu.memory_space<vmem>>, vector<32x32x3xf32>
    %35 = vector.shape_cast %34 : vector<32x32x3xf32> to vector<1024x3xf32>
    %36 = arith.truncf %35 : vector<1024x3xf32> to vector<1024x3xbf16>
    %37 = tpu.concatenate %12, %15, %18, %21, %24, %27, %30, %33, %36 in 1 : vector<1024x3xbf16>, vector<1024x3xbf16>, vector<1024x3xbf16>, vector<1024x3xbf16>, vector<1024x3xbf16>, vector<1024x3xbf16>, vector<1024x3xbf16>, vector<1024x3xbf16>, vector<1024x3xbf16> -> vector<1024x27xbf16>
    %c0_43 = arith.constant 0 : index
    %c0_44 = arith.constant 0 : index
    %38 = vector.load %arg2[%c0_43, %c0_44] : memref<27x8xbf16, #tpu.memory_space<vmem>>, vector<27x8xbf16>
    %cst_45 = arith.constant dense<0.000000e+00> : vector<1024x8xf32>
    %39 = tpu.matmul %37, %38, %cst_45 {dimension_numbers = #tpu.dot_dimension_numbers<[1], [0], [0], [1], [0, 0, 1, 1], [], []>} : vector<1024x27xbf16>, vector<27x8xbf16>, vector<1024x8xf32> -> vector<1024x8xf32>
    %c0_46 = arith.constant 0 : index
    %c0_47 = arith.constant 0 : index
    %40 = vector.load %arg3[%c0_46, %c0_47] : memref<1x8xf32, #tpu.memory_space<vmem>>, vector<1x8xf32>
    %41 = vector.broadcast %40 : vector<1x8xf32> to vector<1024x8xf32>
    %42 = arith.addf %39, %41 : vector<1024x8xf32>
    %cst_48 = arith.constant 0.000000e+00 : f32
    %43 = vector.broadcast %cst_48 : f32 to vector<1024x8xf32>
    %44 = arith.maximumf %42, %43 : vector<1024x8xf32>
    %45 = vector.shape_cast %44 : vector<1024x8xf32> to vector<32x32x8xf32>
    %46 = vector.shape_cast %45 : vector<32x32x8xf32> to vector<16x2x32x8xf32>
    %cst_49 = arith.constant dense<0xFF800000> : vector<16x32x8xf32>
    %47 = vector.multi_reduction <maximumf>, %46, %cst_49 [1] : vector<16x2x32x8xf32> to vector<16x32x8xf32>
    %48 = vector.extract_strided_slice %47 {offsets = [0, 0, 0], sizes = [16, 1, 8], strides = [1, 1, 1]} : vector<16x32x8xf32> to vector<16x1x8xf32>
    %49 = vector.extract_strided_slice %47 {offsets = [0, 1, 0], sizes = [16, 1, 8], strides = [1, 1, 1]} : vector<16x32x8xf32> to vector<16x1x8xf32>
    %50 = arith.maximumf %48, %49 : vector<16x1x8xf32>
    %51 = vector.shape_cast %50 : vector<16x1x8xf32> to vector<16x8xf32>
    %52 = vector.extract_strided_slice %47 {offsets = [0, 2, 0], sizes = [16, 1, 8], strides = [1, 1, 1]} : vector<16x32x8xf32> to vector<16x1x8xf32>
    %53 = vector.extract_strided_slice %47 {offsets = [0, 3, 0], sizes = [16, 1, 8], strides = [1, 1, 1]} : vector<16x32x8xf32> to vector<16x1x8xf32>
    %54 = arith.maximumf %52, %53 : vector<16x1x8xf32>
    %55 = vector.shape_cast %54 : vector<16x1x8xf32> to vector<16x8xf32>
    %56 = vector.extract_strided_slice %47 {offsets = [0, 4, 0], sizes = [16, 1, 8], strides = [1, 1, 1]} : vector<16x32x8xf32> to vector<16x1x8xf32>
    %57 = vector.extract_strided_slice %47 {offsets = [0, 5, 0], sizes = [16, 1, 8], strides = [1, 1, 1]} : vector<16x32x8xf32> to vector<16x1x8xf32>
    %58 = arith.maximumf %56, %57 : vector<16x1x8xf32>
    %59 = vector.shape_cast %58 : vector<16x1x8xf32> to vector<16x8xf32>
    %60 = vector.extract_strided_slice %47 {offsets = [0, 6, 0], sizes = [16, 1, 8], strides = [1, 1, 1]} : vector<16x32x8xf32> to vector<16x1x8xf32>
    %61 = vector.extract_strided_slice %47 {offsets = [0, 7, 0], sizes = [16, 1, 8], strides = [1, 1, 1]} : vector<16x32x8xf32> to vector<16x1x8xf32>
    %62 = arith.maximumf %60, %61 : vector<16x1x8xf32>
    %63 = vector.shape_cast %62 : vector<16x1x8xf32> to vector<16x8xf32>
    %64 = vector.extract_strided_slice %47 {offsets = [0, 8, 0], sizes = [16, 1, 8], strides = [1, 1, 1]} : vector<16x32x8xf32> to vector<16x1x8xf32>
    %65 = vector.extract_strided_slice %47 {offsets = [0, 9, 0], sizes = [16, 1, 8], strides = [1, 1, 1]} : vector<16x32x8xf32> to vector<16x1x8xf32>
    %66 = arith.maximumf %64, %65 : vector<16x1x8xf32>
    %67 = vector.shape_cast %66 : vector<16x1x8xf32> to vector<16x8xf32>
    %68 = vector.extract_strided_slice %47 {offsets = [0, 10, 0], sizes = [16, 1, 8], strides = [1, 1, 1]} : vector<16x32x8xf32> to vector<16x1x8xf32>
    %69 = vector.extract_strided_slice %47 {offsets = [0, 11, 0], sizes = [16, 1, 8], strides = [1, 1, 1]} : vector<16x32x8xf32> to vector<16x1x8xf32>
    %70 = arith.maximumf %68, %69 : vector<16x1x8xf32>
    %71 = vector.shape_cast %70 : vector<16x1x8xf32> to vector<16x8xf32>
    %72 = vector.extract_strided_slice %47 {offsets = [0, 12, 0], sizes = [16, 1, 8], strides = [1, 1, 1]} : vector<16x32x8xf32> to vector<16x1x8xf32>
    %73 = vector.extract_strided_slice %47 {offsets = [0, 13, 0], sizes = [16, 1, 8], strides = [1, 1, 1]} : vector<16x32x8xf32> to vector<16x1x8xf32>
    %74 = arith.maximumf %72, %73 : vector<16x1x8xf32>
    %75 = vector.shape_cast %74 : vector<16x1x8xf32> to vector<16x8xf32>
    %76 = vector.extract_strided_slice %47 {offsets = [0, 14, 0], sizes = [16, 1, 8], strides = [1, 1, 1]} : vector<16x32x8xf32> to vector<16x1x8xf32>
    %77 = vector.extract_strided_slice %47 {offsets = [0, 15, 0], sizes = [16, 1, 8], strides = [1, 1, 1]} : vector<16x32x8xf32> to vector<16x1x8xf32>
    %78 = arith.maximumf %76, %77 : vector<16x1x8xf32>
    %79 = vector.shape_cast %78 : vector<16x1x8xf32> to vector<16x8xf32>
    %80 = vector.extract_strided_slice %47 {offsets = [0, 16, 0], sizes = [16, 1, 8], strides = [1, 1, 1]} : vector<16x32x8xf32> to vector<16x1x8xf32>
    %81 = vector.extract_strided_slice %47 {offsets = [0, 17, 0], sizes = [16, 1, 8], strides = [1, 1, 1]} : vector<16x32x8xf32> to vector<16x1x8xf32>
    %82 = arith.maximumf %80, %81 : vector<16x1x8xf32>
    %83 = vector.shape_cast %82 : vector<16x1x8xf32> to vector<16x8xf32>
    %84 = vector.extract_strided_slice %47 {offsets = [0, 18, 0], sizes = [16, 1, 8], strides = [1, 1, 1]} : vector<16x32x8xf32> to vector<16x1x8xf32>
    %85 = vector.extract_strided_slice %47 {offsets = [0, 19, 0], sizes = [16, 1, 8], strides = [1, 1, 1]} : vector<16x32x8xf32> to vector<16x1x8xf32>
    %86 = arith.maximumf %84, %85 : vector<16x1x8xf32>
    %87 = vector.shape_cast %86 : vector<16x1x8xf32> to vector<16x8xf32>
    %88 = vector.extract_strided_slice %47 {offsets = [0, 20, 0], sizes = [16, 1, 8], strides = [1, 1, 1]} : vector<16x32x8xf32> to vector<16x1x8xf32>
    %89 = vector.extract_strided_slice %47 {offsets = [0, 21, 0], sizes = [16, 1, 8], strides = [1, 1, 1]} : vector<16x32x8xf32> to vector<16x1x8xf32>
    %90 = arith.maximumf %88, %89 : vector<16x1x8xf32>
    %91 = vector.shape_cast %90 : vector<16x1x8xf32> to vector<16x8xf32>
    %92 = vector.extract_strided_slice %47 {offsets = [0, 22, 0], sizes = [16, 1, 8], strides = [1, 1, 1]} : vector<16x32x8xf32> to vector<16x1x8xf32>
    %93 = vector.extract_strided_slice %47 {offsets = [0, 23, 0], sizes = [16, 1, 8], strides = [1, 1, 1]} : vector<16x32x8xf32> to vector<16x1x8xf32>
    %94 = arith.maximumf %92, %93 : vector<16x1x8xf32>
    %95 = vector.shape_cast %94 : vector<16x1x8xf32> to vector<16x8xf32>
    %96 = vector.extract_strided_slice %47 {offsets = [0, 24, 0], sizes = [16, 1, 8], strides = [1, 1, 1]} : vector<16x32x8xf32> to vector<16x1x8xf32>
    %97 = vector.extract_strided_slice %47 {offsets = [0, 25, 0], sizes = [16, 1, 8], strides = [1, 1, 1]} : vector<16x32x8xf32> to vector<16x1x8xf32>
    %98 = arith.maximumf %96, %97 : vector<16x1x8xf32>
    %99 = vector.shape_cast %98 : vector<16x1x8xf32> to vector<16x8xf32>
    %100 = vector.extract_strided_slice %47 {offsets = [0, 26, 0], sizes = [16, 1, 8], strides = [1, 1, 1]} : vector<16x32x8xf32> to vector<16x1x8xf32>
    %101 = vector.extract_strided_slice %47 {offsets = [0, 27, 0], sizes = [16, 1, 8], strides = [1, 1, 1]} : vector<16x32x8xf32> to vector<16x1x8xf32>
    %102 = arith.maximumf %100, %101 : vector<16x1x8xf32>
    %103 = vector.shape_cast %102 : vector<16x1x8xf32> to vector<16x8xf32>
    %104 = vector.extract_strided_slice %47 {offsets = [0, 28, 0], sizes = [16, 1, 8], strides = [1, 1, 1]} : vector<16x32x8xf32> to vector<16x1x8xf32>
    %105 = vector.extract_strided_slice %47 {offsets = [0, 29, 0], sizes = [16, 1, 8], strides = [1, 1, 1]} : vector<16x32x8xf32> to vector<16x1x8xf32>
    %106 = arith.maximumf %104, %105 : vector<16x1x8xf32>
    %107 = vector.shape_cast %106 : vector<16x1x8xf32> to vector<16x8xf32>
    %108 = vector.extract_strided_slice %47 {offsets = [0, 30, 0], sizes = [16, 1, 8], strides = [1, 1, 1]} : vector<16x32x8xf32> to vector<16x1x8xf32>
    %109 = vector.extract_strided_slice %47 {offsets = [0, 31, 0], sizes = [16, 1, 8], strides = [1, 1, 1]} : vector<16x32x8xf32> to vector<16x1x8xf32>
    %110 = arith.maximumf %108, %109 : vector<16x1x8xf32>
    %111 = vector.shape_cast %110 : vector<16x1x8xf32> to vector<16x8xf32>
    %112 = tpu.concatenate %51, %55, %59, %63, %67, %71, %75, %79, %83, %87, %91, %95, %99, %103, %107, %111 in 1 : vector<16x8xf32>, vector<16x8xf32>, vector<16x8xf32>, vector<16x8xf32>, vector<16x8xf32>, vector<16x8xf32>, vector<16x8xf32>, vector<16x8xf32>, vector<16x8xf32>, vector<16x8xf32>, vector<16x8xf32>, vector<16x8xf32>, vector<16x8xf32>, vector<16x8xf32>, vector<16x8xf32>, vector<16x8xf32> -> vector<16x128xf32>
    %113 = arith.truncf %112 : vector<16x128xf32> to vector<16x128xbf16>
    %c0_50 = arith.constant 0 : index
    %c0_51 = arith.constant 0 : index
    %c0_52 = arith.constant 0 : index
    %114 = vector.load %arg4[%c0_50, %c0_51, %c0_52] : memref<1x16x128xbf16, #tpu.memory_space<vmem>>, vector<1x16x128xbf16>
    %115 = vector.shape_cast %114 : vector<1x16x128xbf16> to vector<16x128xbf16>
    %116 = vector.shape_cast %113 : vector<16x128xbf16> to vector<1x16x128xbf16>
    tpu.vector_store %arg4[%c0_50, %c0_51, %c0_52], %116 {strides = array<i32>} : memref<1x16x128xbf16, #tpu.memory_space<vmem>>, vector<1x16x128xbf16>,
    return
  }
  func.func @transform_0(%arg0: i32) -> (i32, i32, i32, i32) {
    %c0_i32 = arith.constant 0 : i32
    %c0_i32_0 = arith.constant 0 : i32
    %c0_i32_1 = arith.constant 0 : i32
    %c0_i32_2 = arith.constant 0 : i32
    return %arg0, %c0_i32, %c0_i32_0, %c0_i32_1 : i32, i32, i32, i32
  }
  func.func @transform_1(%arg0: i32) -> (i32, i32) {
    %c0_i32 = arith.constant 0 : i32
    %c0_i32_0 = arith.constant 0 : i32
    %c0_i32_1 = arith.constant 0 : i32
    return %c0_i32, %c0_i32_0 : i32, i32
  }
  func.func @transform_2(%arg0: i32) -> (i32, i32) {
    %c0_i32 = arith.constant 0 : i32
    %c0_i32_0 = arith.constant 0 : i32
    %c0_i32_1 = arith.constant 0 : i32
    return %c0_i32, %c0_i32_0 : i32, i32
  }
  func.func @transform_3(%arg0: i32) -> (i32, i32, i32) {
    %c0_i32 = arith.constant 0 : i32
    %c0_i32_0 = arith.constant 0 : i32
    %c0_i32_1 = arith.constant 0 : i32
    return %arg0, %c0_i32, %c0_i32_0 : i32, i32, i32
  }
}

</mosaic_0001>

<bundles_post_ra>
// kernel: tpu_custom_call.1
= control target key start
LH: loop header
LB: loop body
LE: loop exit
PB: predicated region body
PF: predicated region fallthrough
CT: control target
= control target key end

     0   :  { %8 = vsyncpa [#allocation4], 0  ;;  %s12405_s0 = inlined_call_operand.vmem [shape: bf16[2,32,32,3], index: 0, kind: input, shape index: {}]   ;;  %s12406_s1 = inlined_call_operand.vmem [shape: bf16[27,8], index: 1, kind: input, shape index: {}]   ;;  %s12407_s2 = inlined_call_operand.vmem [shape: f32[1,8], index: 2, kind: input, shape index: {}]   ;;  %s12408_s3 = inlined_call_operand.hbm [shape: bf16[2,16,128], index: 3, kind: output, shape index: {}]  }
   0x1   :  { %10 = vsyncpa [#allocation4 + $0x1], 0  ;;  %s7881_s12 = smov 0   ;;  %s7883_s13 = smov 0  }
   0x2   :  { %s7885_s14 = smov 0   ;;  %s7887_s15 = smov 0  }
   0x3 LB: > { %s7902_s16 = sadd.s32 4294967295, %s7833_s15   ;;  %s7017_s17 = sadd.s32 4294967294, %s7833_s15   ;;  %s7833_s15 = sphi %s7887_s15, %s13085_s15   ;;  %s7829_s14 = sphi %s7885_s14, %s13084_s14   ;;  %s7825_s13 = sphi %s7883_s13, %s13083_s13   ;;  %s7821_s12 = sphi %s7881_s12, %s13082_s12  }
   0x4   : > { %s7906_s18 = sadd.s32 1, %s7833_s15   ;;  %s91_s19 = sadd.s32 1, %s7829_s14 }
   0x5   : > { %s88_s20 = ssub.s32 %s7833_s15, %s7906_s18  ;;  %p101_p0 = scmp.ne.s32.totalorder %s7829_s14, %s7825_s13 }
   0x6   : > { %p89_p1 = scmp.eq.s32.totalorder %s88_s20, 0  ;;  %p102_p2 = scmp.eq.s32.totalorder %s7902_s16, 1 }
   0x7   : > { %p107_p3 = scmp.ne.s32.totalorder %s7825_s13, %s7821_s12  ;;  %p108_p4 = scmp.eq.s32.totalorder %s7017_s17, 1 }
   0x8   : > { %s7917_s21 = scalar_select %p89_p1, %s7829_s14, %s91_s19  }
   0x9   : > { %p7919_p5 = por %p102_p2, %p101_p0  ;;  %p7923_p6 = por %p108_p4, %p107_p3 }
   0xa   : > { %p7020_p7 = scmp.ge.s32.totalorder %s7833_s15, 1  ;;  %p140_p8 = scmp.lt.s32.totalorder %s7833_s15, 3 }
   0xc   : > { %p141_p9 = pnand %p7020_p7, %p140_p8 }
   0xe   : > { %144 = sbr.rel (%p141_p9) target bundleno = 1605 (0x645), region = 32 }
  0x15   : > { %vm170_vm0 = vcmask 16384   ;;  %vm239_vm1 = vcmask 23552   ;;  %vm244_vm2 = vcmask 17408   ;;  %p164_p10 = scmp.lt.s32.totalorder %s7902_s16, 1  ;;  %v7835_v0 = vmov 0.0   ;;  %s7836_s29 = smov 3  }
  0x16   : > { %171 = vst.msk [vmem:[#allocation2] sm:$0x1] %vm170_vm0, %v7835_v0  ;;  %172 = vst.msk [vmem:[#allocation2 + $0x28] sm:$0x1] %vm170_vm0, %v7835_v0  ;;  %s7837_s30 = smov 6   ;;  %s7838_s4 = smov 9  }
  0x17   : > { %241 = vst.msk [vmem:[#allocation2 + $0x8] sm:$0xff] %vm239_vm1, %v7835_v0  ;;  %242 = vst.msk [vmem:[#allocation2 + $0x10] sm:$0xff] %vm239_vm1, %v7835_v0  ;;  %s165_s24 = scalar_select %p164_p10, %s7902_s16, 1  ;;  %vm5148_vm3 = vcmask 1044480   ;;  %vm5149_vm4 = vcmask 1045504   ;;  %vm4094_vm5 = vcmask 48128  }
  0x18   : > { %173 = vst.msk [vmem:[#allocation2 + $0x50] sm:$0x1] %vm170_vm0, %v7835_v0  ;;  %174 = vst.msk [vmem:[#allocation2 + $0x78] sm:$0x1] %vm170_vm0, %v7835_v0  ;;  %s7839_s5 = smov 12   ;;  %s7840_s6 = smov 15  }
  0x19   : > { %175 = vst.msk [vmem:[#allocation2 + $0xa0] sm:$0x1] %vm170_vm0, %v7835_v0  ;;  %176 = vst.msk [vmem:[#allocation2 + $0xc8] sm:$0x1] %vm170_vm0, %v7835_v0  ;;  %s7098_s25 = sshll.u32 %s165_s24, 9  ;;  %s7841_s9 = smov 18  }
  0x1a   : > { %177 = vst.msk [vmem:[#allocation2 + $0xf0] sm:$0x1] %vm170_vm0, %v7835_v0  ;;  %178 = vst.msk [vmem:[#allocation2 + $0x118] sm:$0x1] %vm170_vm0, %v7835_v0  ;;  %s8092_s28 = scalar_lea.vmem %s12405_s0, %s7098_s25  ;;  %s7843_s17 = smov 21   ;;  %vm4223_vm6 = vcmask 72704  }
  0x1b   : > { %179 = vst.msk [vmem:[#allocation2 + $0x140] sm:$0x1] %vm170_vm0, %v7835_v0  ;;  %180 = vst.msk [vmem:[#allocation2 + $0x168] sm:$0x1] %vm170_vm0, %v7835_v0  ;;  %v7103_v1 = vld [vmem:[%s8092_s28] sm:$0xff]   ;;  %v7364_v2 = vld [vmem:[%s8092_s28 + $0x10] sm:$0xff]  }
  0x1c   : > { %181 = vst.msk [vmem:[#allocation2 + $0x190] sm:$0x1] %vm170_vm0, %v7835_v0  ;;  %182 = vst.msk [vmem:[#allocation2 + $0x1b8] sm:$0x1] %vm170_vm0, %v7835_v0  ;;  %v7363_v3 = vld [vmem:[%s8092_s28 + $0x8] sm:$0xff]   ;;  %v7104_v4 = vunpack.c.l.bf16 %v7103_v1  ;;  %v7105_v5 = vunpack.c.h.bf16 %v7103_v1  ;;  %v7112_v6 = vunpack.c.l.bf16 %v7364_v2  ;;  %v7113_v7 = vunpack.c.h.bf16 %v7364_v2  ;;  %v7366_v8 = vld [vmem:[%s8092_s28 + $0x20] sm:$0xff]  }
  0x1d   : > { %183 = vst.msk [vmem:[#allocation2 + $0x1e0] sm:$0x1] %vm170_vm0, %v7835_v0  ;;  %184 = vst.msk [vmem:[#allocation2 + $0x208] sm:$0x1] %vm170_vm0, %v7835_v0  ;;  %v7365_v9 = vld [vmem:[%s8092_s28 + $0x18] sm:$0xff]   ;;  %v7368_v10 = vld [vmem:[%s8092_s28 + $0x30] sm:$0xff]   ;;  %v7108_v13 = vunpack.c.l.bf16 %v7363_v3  ;;  %v7109_v14 = vunpack.c.h.bf16 %v7363_v3  ;;  %v7120_v15 = vunpack.c.l.bf16 %v7366_v8  ;;  %v7121_v16 = vunpack.c.h.bf16 %v7366_v8 }
  0x1e   : > { %185 = vst.msk [vmem:[#allocation2 + $0x230] sm:$0x1] %vm170_vm0, %v7835_v0  ;;  %186 = vst.msk [vmem:[#allocation2 + $0x258] sm:$0x1] %vm170_vm0, %v7835_v0  ;;  %v830_v11 = vld [vmem:[#allocation2 + $0x9] sm:$0xff]  ;;  %v7116_v20 = vunpack.c.l.bf16 %v7365_v9  ;;  %v7117_v21 = vunpack.c.h.bf16 %v7365_v9  ;;  %v7128_v22 = vunpack.c.l.bf16 %v7368_v10  ;;  %v7129_v23 = vunpack.c.h.bf16 %v7368_v10  ;;  %v7370_v24 = vld [vmem:[%s8092_s28 + $0x40] sm:$0xff]  }
  0x1f   : > { %187 = vst.msk [vmem:[#allocation2 + $0x280] sm:$0x1] %vm170_vm0, %v7835_v0  ;;  %188 = vst.msk [vmem:[#allocation2 + $0x2a8] sm:$0x1] %vm170_vm0, %v7835_v0  ;;  %v7367_v17 = vld [vmem:[%s8092_s28 + $0x28] sm:$0xff]   ;;  %v7369_v29 = vld [vmem:[%s8092_s28 + $0x38] sm:$0xff]   ;;  %v7136_v32 = vunpack.c.l.bf16 %v7370_v24  ;;  %v7137_v33 = vunpack.c.h.bf16 %v7370_v24 }
  0x20   : > { %189 = vst.msk [vmem:[#allocation2 + $0x2d0] sm:$0x1] %vm170_vm0, %v7835_v0  ;;  %190 = vst.msk [vmem:[#allocation2 + $0x2f8] sm:$0x1] %vm170_vm0, %v7835_v0  ;;  %v7124_v27 = vunpack.c.l.bf16 %v7367_v17  ;;  %v7125_v28 = vunpack.c.h.bf16 %v7367_v17  ;;  %v7372_v30 = vld [vmem:[%s8092_s28 + $0x50] sm:$0xff]   ;;  %v7371_v31 = vld [vmem:[%s8092_s28 + $0x48] sm:$0xff]   ;;  %v7132_v34 = vunpack.c.l.bf16 %v7369_v29  ;;  %v7133_v35 = vunpack.c.h.bf16 %v7369_v29 }
  0x21   : > { %191 = vst.msk [vmem:[#allocation2 + $0x320] sm:$0x1] %vm170_vm0, %v7835_v0  ;;  %192 = vst.msk [vmem:[#allocation2 + $0x348] sm:$0x1] %vm170_vm0, %v7835_v0  ;;  %v7374_v36 = vld [vmem:[%s8092_s28 + $0x60] sm:$0xff]   ;;  %v7373_v37 = vld [vmem:[%s8092_s28 + $0x58] sm:$0xff]   ;;  %v7144_v39 = vunpack.c.l.bf16 %v7372_v30  ;;  %v7145_v40 = vunpack.c.h.bf16 %v7372_v30  ;;  %v7140_v41 = vunpack.c.l.bf16 %v7371_v31  ;;  %v7141_v42 = vunpack.c.h.bf16 %v7371_v31 }
  0x22   : > { %193 = vst.msk [vmem:[#allocation2 + $0x370] sm:$0x1] %vm170_vm0, %v7835_v0  ;;  %194 = vst.msk [vmem:[#allocation2 + $0x398] sm:$0x1] %vm170_vm0, %v7835_v0  ;;  %v7376_v38 = vld [vmem:[%s8092_s28 + $0x70] sm:$0xff]   ;;  %v7375_v43 = vld [vmem:[%s8092_s28 + $0x68] sm:$0xff]   ;;  %v7152_v46 = vunpack.c.l.bf16 %v7374_v36  ;;  %v7153_v47 = vunpack.c.h.bf16 %v7374_v36  ;;  %v7148_v48 = vunpack.c.l.bf16 %v7373_v37  ;;  %v7149_v49 = vunpack.c.h.bf16 %v7373_v37 }
  0x23   : > { %195 = vst.msk [vmem:[#allocation2 + $0x3c0] sm:$0x1] %vm170_vm0, %v7835_v0  ;;  %196 = vst.msk [vmem:[#allocation2 + $0x3e8] sm:$0x1] %vm170_vm0, %v7835_v0  ;;  %v7378_v44 = vld [vmem:[%s8092_s28 + $0x80] sm:$0xff]   ;;  %v7377_v45 = vld [vmem:[%s8092_s28 + $0x78] sm:$0xff]   ;;  %v7160_v52 = vunpack.c.l.bf16 %v7376_v38  ;;  %v7161_v53 = vunpack.c.h.bf16 %v7376_v38  ;;  %v7156_v54 = vunpack.c.l.bf16 %v7375_v43  ;;  %v7157_v55 = vunpack.c.h.bf16 %v7375_v43 }
  0x24   : > { %197 = vst.msk [vmem:[#allocation2 + $0x410] sm:$0x1] %vm170_vm0, %v7835_v0  ;;  %198 = vst.msk [vmem:[#allocation2 + $0x438] sm:$0x1] %vm170_vm0, %v7835_v0  ;;  %v7380_v50 = vld [vmem:[%s8092_s28 + $0x90] sm:$0xff]   ;;  %v7379_v51 = vld [vmem:[%s8092_s28 + $0x88] sm:$0xff]   ;;  %v7168_v58 = vunpack.c.l.bf16 %v7378_v44  ;;  %v7169_v59 = vunpack.c.h.bf16 %v7378_v44  ;;  %v7164_v60 = vunpack.c.l.bf16 %v7377_v45  ;;  %v7165_v61 = vunpack.c.h.bf16 %v7377_v45 }
  0x25   : > { %199 = vst.msk [vmem:[#allocation2 + $0x460] sm:$0x1] %vm170_vm0, %v7835_v0  ;;  %200 = vst.msk [vmem:[#allocation2 + $0x488] sm:$0x1] %vm170_vm0, %v7835_v0  ;;  %v7382_v56 = vld [vmem:[%s8092_s28 + $0xa0] sm:$0xff]   ;;  %v7381_v57 = vld [vmem:[%s8092_s28 + $0x98] sm:$0xff]  }
  0x26   : > { %201 = vst.msk [vmem:[#allocation2 + $0x4b0] sm:$0x1] %vm170_vm0, %v7835_v0  ;;  %202 = vst.msk [vmem:[#allocation2 + $0x4d8] sm:$0x1] %vm170_vm0, %v7835_v0  ;;  %v7384_v62 = vld [vmem:[%s8092_s28 + $0xb0] sm:$0xff]   ;;  %v7383_v63 = vld [vmem:[%s8092_s28 + $0xa8] sm:$0xff]  }
  0x27   : > { %203 = vst.msk [vmem:[#allocation2 + $0x500] sm:$0x1] %vm170_vm0, %v7835_v0  ;;  %204 = vst.msk [vmem:[#allocation2 + $0x528] sm:$0x1] %vm170_vm0, %v7835_v0  ;;  %v7385_v8 = vld [vmem:[%s8092_s28 + $0xb8] sm:$0xff]   ;;  %v7188_v24 = vunpack.c.l.bf16 %v7383_v63  ;;  %s7844_s19 = smov 24  }
  0x28   : > { %205 = vst.msk [vmem:[#allocation2 + $0x21] sm:$0x1] %vm170_vm0, %v7835_v0  ;;  %206 = vst.msk [vmem:[#allocation2 + $0x49] sm:$0x1] %vm170_vm0, %v7835_v0  ;;  %vm4352_vm7 = vcmask 97280   ;;  %vm4481_vm8 = vcmask 121856  }
  0x29   : > { %207 = vst.msk [vmem:[#allocation2 + $0x71] sm:$0x1] %vm170_vm0, %v7835_v0  ;;  %208 = vst.msk [vmem:[#allocation2 + $0x99] sm:$0x1] %vm170_vm0, %v7835_v0  ;;  %vm4610_vm9 = vcmask 146432   ;;  %vm4739_vm10 = vcmask 171008  }
  0x2a   : > { %209 = vst.msk [vmem:[#allocation2 + $0xc1] sm:$0x1] %vm170_vm0, %v7835_v0  ;;  %210 = vst.msk [vmem:[#allocation2 + $0xe9] sm:$0x1] %vm170_vm0, %v7835_v0  ;;  %vm4868_vm11 = vcmask 195584   ;;  %vm5019_vm12 = vcmask 220160  }
  0x2b   : > { %211 = vst.msk [vmem:[#allocation2 + $0x111] sm:$0x1] %vm170_vm0, %v7835_v0  ;;  %212 = vst.msk [vmem:[#allocation2 + $0x139] sm:$0x1] %vm170_vm0, %v7835_v0  ;;  %vm5828_vm13 = vcmask 64512   ;;  %vm6294_vm14 = vcmask 1041409  }
  0x2c   : > { %213 = vst.msk [vmem:[#allocation2 + $0x161] sm:$0x1] %vm170_vm0, %v7835_v0  ;;  %214 = vst.msk [vmem:[#allocation2 + $0x189] sm:$0x1] %vm170_vm0, %v7835_v0  ;;  %vm6297_vm15 = vcmask 1042434   ;;  %s7850_s7 = smov 56  }
  0x2d   : > { %215 = vst.msk [vmem:[#allocation2 + $0x1b1] sm:$0x1] %vm170_vm0, %v7835_v0  ;;  %216 = vst.msk [vmem:[#allocation2 + $0x1d9] sm:$0x1] %vm170_vm0, %v7835_v0  ;;  %s7851_s8 = smov 64   ;;  %s7853_s10 = smov 80  }
  0x2e   : > { %217 = vst.msk [vmem:[#allocation2 + $0x201] sm:$0x1] %vm170_vm0, %v7835_v0  ;;  %218 = vst.msk [vmem:[#allocation2 + $0x229] sm:$0x1] %vm170_vm0, %v7835_v0  ;;  %s7854_s11 = smov 88   ;;  %s7857_s20 = smov 112  }
  0x2f   : > { %219 = vst.msk [vmem:[#allocation2 + $0x251] sm:$0x1] %vm170_vm0, %v7835_v0  ;;  %220 = vst.msk [vmem:[#allocation2 + $0x279] sm:$0x1] %vm170_vm0, %v7835_v0  ;;  %s7858_s24 = smov 120   ;;  %s161_s25 = sand.u32 1, %s7825_s13  }
  0x30   : > { %221 = vst.msk [vmem:[#allocation2 + $0x2a1] sm:$0x1] %vm170_vm0, %v7835_v0  ;;  %222 = vst.msk [vmem:[#allocation2 + $0x2c9] sm:$0x1] %vm170_vm0, %v7835_v0  ;;  %s7021_s26 = sshll.u32 %s161_s25, 3  ;;  %s7101_s27 = sshll.u32 %s7902_s16, 7 }
  0x31   : > { %223 = vst.msk [vmem:[#allocation2 + $0x2f1] sm:$0x1] %vm170_vm0, %v7835_v0  ;;  %224 = vst.msk [vmem:[#allocation2 + $0x319] sm:$0x1] %vm170_vm0, %v7835_v0  ;;  %s12362_s16 = scalar_lea.sflag [#allocation4], %s161_s25 }
  0x32   : > { %225 = vst.msk [vmem:[#allocation2 + $0x341] sm:$0x1] %vm170_vm0, %v7835_v0  ;;  %226 = vst.msk [vmem:[#allocation2 + $0x369] sm:$0x1] %vm170_vm0, %v7835_v0 }
  0x33   : > { %227 = vst.msk [vmem:[#allocation2 + $0x391] sm:$0x1] %vm170_vm0, %v7835_v0  ;;  %228 = vst.msk [vmem:[#allocation2 + $0x3b9] sm:$0x1] %vm170_vm0, %v7835_v0 }
  0x34   : > { %229 = vst.msk [vmem:[#allocation2 + $0x3e1] sm:$0x1] %vm170_vm0, %v7835_v0  ;;  %230 = vst.msk [vmem:[#allocation2 + $0x409] sm:$0x1] %vm170_vm0, %v7835_v0 }
  0x35   : > { %231 = vst.msk [vmem:[#allocation2 + $0x431] sm:$0x1] %vm170_vm0, %v7835_v0  ;;  %232 = vst.msk [vmem:[#allocation2 + $0x459] sm:$0x1] %vm170_vm0, %v7835_v0 }
  0x36   : > { %233 = vst.msk [vmem:[#allocation2 + $0x481] sm:$0x1] %vm170_vm0, %v7835_v0  ;;  %234 = vst.msk [vmem:[#allocation2 + $0x4a9] sm:$0x1] %vm170_vm0, %v7835_v0 }
  0x37   : > { %235 = vst.msk [vmem:[#allocation2 + $0x4d1] sm:$0x1] %vm170_vm0, %v7835_v0  ;;  %236 = vst.msk [vmem:[#allocation2 + $0x4f9] sm:$0x1] %vm170_vm0, %v7835_v0 }
  0x38   : > { %237 = vst.msk [vmem:[#allocation2 + $0x521] sm:$0x1] %vm170_vm0, %v7835_v0  ;;  %238 = vst.msk [vmem:[#allocation2 + $0x549] sm:$0x1] %vm170_vm0, %v7835_v0  ;;  %vm6300_vm0 = vcmask 1043459  }
  0x39   : > { %243 = vst.msk [vmem:[#allocation2 + $0x18] sm:$0xff] %vm239_vm1, %v7835_v0  ;;  %248 = vst.msk [vmem:[#allocation2 + $0x530] sm:$0xff] %vm239_vm1, %v7835_v0 }
  0x3a   : > { %249 = vst.msk [vmem:[#allocation2 + $0x538] sm:$0xff] %vm239_vm1, %v7835_v0  ;;  %250 = vst.msk [vmem:[#allocation2 + $0x540] sm:$0xff] %vm239_vm1, %v7835_v0 }
  0x3b   : > { %240 = vst.msk [vmem:[#allocation2] sm:$0xff] %vm239_vm1, %v7835_v0  ;;  %247 = vst.msk [vmem:[#allocation2 + $0x528] sm:$0xff] %vm239_vm1, %v7835_v0 }
  0x3c   : > { %245 = vst.msk [vmem:[#allocation2 + $0x20] sm:$0x3] %vm244_vm2, %v7835_v0  ;;  %251 = vst.msk [vmem:[#allocation2 + $0x548] sm:$0x3] %vm244_vm2, %v7835_v0  ;;  %v7386_v0 = vld [vmem:[%s8092_s28 + $0xc0] sm:$0xff]   ;;  %vm6306_vm2 = vcmask 1045509  }
  0x3d   : > { %509 = vst.msk [vmem:[#allocation2 + $0x29] sm:$0xff] %vm239_vm1, %v7104_v4  ;;  %510 = vst.msk [vmem:[#allocation2 + $0x31] sm:$0xff] %vm239_vm1, %v7105_v5  ;;  %v7176_v4 = vunpack.c.l.bf16 %v7380_v50  ;;  %v7177_v5 = vunpack.c.h.bf16 %v7380_v50  ;;  %v7200_v29 = vunpack.c.l.bf16 %v7386_v0  ;;  %v7201_v30 = vunpack.c.h.bf16 %v7386_v0 }
  0x3e   : > { %513 = vst.msk [vmem:[#allocation2 + $0x51] sm:$0xff] %vm239_vm1, %v7112_v6  ;;  %514 = vst.msk [vmem:[#allocation2 + $0x59] sm:$0xff] %vm239_vm1, %v7113_v7  ;;  %v7172_v6 = vunpack.c.l.bf16 %v7379_v51  ;;  %v7173_v7 = vunpack.c.h.bf16 %v7379_v51 }
  0x3f   : > { %511 = vst.msk [vmem:[#allocation2 + $0x39] sm:$0xff] %vm239_vm1, %v7108_v13  ;;  %512 = vst.msk [vmem:[#allocation2 + $0x41] sm:$0xff] %vm239_vm1, %v7109_v14  ;;  %v7184_v13 = vunpack.c.l.bf16 %v7382_v56  ;;  %v7185_v14 = vunpack.c.h.bf16 %v7382_v56 }
  0x40   : > { %v8100_v12 = vld [vmem:[#allocation2 + $0x11] sm:$0xff]  ;;  %517 = vst.msk [vmem:[#allocation2 + $0x79] sm:$0xff] %vm239_vm1, %v7120_v15  ;;  %518 = vst.msk [vmem:[#allocation2 + $0x81] sm:$0xff] %vm239_vm1, %v7121_v16  ;;  %v7180_v15 = vunpack.c.l.bf16 %v7381_v57 }
  0x41   : > { %515 = vst.msk [vmem:[#allocation2 + $0x61] sm:$0xff] %vm239_vm1, %v7116_v20  ;;  %516 = vst.msk [vmem:[#allocation2 + $0x69] sm:$0xff] %vm239_vm1, %v7117_v21  ;;  %v7192_v20 = vunpack.c.l.bf16 %v7384_v62  ;;  %v7388_v21 = vld [vmem:[%s8092_s28 + $0xd0] sm:$0xff]  }
  0x42   : > { %v829_v18 = vld [vmem:[#allocation2 + $0x1] sm:$0xff]  ;;  %521 = vst.msk [vmem:[#allocation2 + $0xa1] sm:$0xff] %vm239_vm1, %v7128_v22  ;;  %522 = vst.msk [vmem:[#allocation2 + $0xa9] sm:$0xff] %vm239_vm1, %v7129_v23  ;;  %v7193_v23 = vunpack.c.h.bf16 %v7384_v62  ;;  %v7209_v36 = vunpack.c.h.bf16 %v7388_v21 }
  0x43   : > { %v8103_v19 = vld [vmem:[#allocation2 + $0x19] sm:$0xff]  ;;  %v957_v25 = vpack.c.bf16 %v830_v11, %v829_v18  ;;  %519 = vst.msk [vmem:[#allocation2 + $0x89] sm:$0xff] %vm239_vm1, %v7124_v27  ;;  %520 = vst.msk [vmem:[#allocation2 + $0x91] sm:$0xff] %vm239_vm1, %v7125_v28 }
  0x44   : > { %v958_v26 = vpack.c.bf16 %v8103_v19, %v8100_v12  ;;  %525 = vst.msk [vmem:[#allocation2 + $0xc9] sm:$0xff] %vm239_vm1, %v7136_v32  ;;  %526 = vst.msk [vmem:[#allocation2 + $0xd1] sm:$0xff] %vm239_vm1, %v7137_v33  ;;  %v833_v1 = vld [vmem:[#allocation2 + $0x29] sm:$0xff]  ;;  %v834_v2 = vld [vmem:[#allocation2 + $0x31] sm:$0xff]  ;;  %v7181_v19 = vunpack.c.h.bf16 %v7381_v57  ;;  %v7196_v33 = vunpack.c.l.bf16 %v7385_v8 }
  0x45   : > { %2430 = vrot.lane.b32.xlu0 %v957_v25, %s7836_s29  ;;  %523 = vst.msk [vmem:[#allocation2 + $0xb1] sm:$0xff] %vm239_vm1, %v7132_v34  ;;  %524 = vst.msk [vmem:[#allocation2 + $0xb9] sm:$0xff] %vm239_vm1, %v7133_v35  ;;  %v837_v3 = vld [vmem:[#allocation2 + $0x51] sm:$0xff]  ;;  %v959_v9 = vpack.c.bf16 %v834_v2, %v833_v1  ;;  %v838_v10 = vld [vmem:[#allocation2 + $0x59] sm:$0xff]  ;;  %v7189_v25 = vunpack.c.h.bf16 %v7383_v63  ;;  %v7197_v34 = vunpack.c.h.bf16 %v7385_v8  ;;  %v7208_v35 = vunpack.c.l.bf16 %v7388_v21 }
  0x46   : > { %529 = vst.msk [vmem:[#allocation2 + $0xf1] sm:$0xff] %vm239_vm1, %v7144_v39  ;;  %530 = vst.msk [vmem:[#allocation2 + $0xf9] sm:$0xff] %vm239_vm1, %v7145_v40  ;;  %v835_v11 = vld [vmem:[#allocation2 + $0x39] sm:$0xff]  ;;  %v836_v12 = vld [vmem:[#allocation2 + $0x41] sm:$0xff]  ;;  %v961_v16 = vpack.c.bf16 %v838_v10, %v837_v3 }
  0x47   : > { %527 = vst.msk [vmem:[#allocation2 + $0xd9] sm:$0xff] %vm239_vm1, %v7140_v41  ;;  %528 = vst.msk [vmem:[#allocation2 + $0xe1] sm:$0xff] %vm239_vm1, %v7141_v42  ;;  %v841_v17 = vld [vmem:[#allocation2 + $0x79] sm:$0xff]  ;;  %v842_v18 = vld [vmem:[#allocation2 + $0x81] sm:$0xff]  ;;  %2434 = vrot.lane.b32.xlu1 %v959_v9, %s7836_s29  ;;  %v960_v22 = vpack.c.bf16 %v836_v12, %v835_v11 }
  0x48   : > { %533 = vst.msk [vmem:[#allocation2 + $0x119] sm:$0xff] %vm239_vm1, %v7152_v46  ;;  %534 = vst.msk [vmem:[#allocation2 + $0x121] sm:$0xff] %vm239_vm1, %v7153_v47  ;;  %v839_v27 = vld [vmem:[#allocation2 + $0x61] sm:$0xff]  ;;  %v840_v28 = vld [vmem:[#allocation2 + $0x69] sm:$0xff] }
  0x49   : > { %531 = vst.msk [vmem:[#allocation2 + $0x101] sm:$0xff] %vm239_vm1, %v7148_v48  ;;  %532 = vst.msk [vmem:[#allocation2 + $0x109] sm:$0xff] %vm239_vm1, %v7149_v49  ;;  %2432 = vrot.lane.b32.xlu0 %v958_v26, %s7836_s29  ;;  %v963_v26 = vpack.c.bf16 %v842_v18, %v841_v17  ;;  %v845_v31 = vld [vmem:[#allocation2 + $0xa1] sm:$0xff]  ;;  %v846_v32 = vld [vmem:[#allocation2 + $0xa9] sm:$0xff]  ;;  %v962_v37 = vpack.c.bf16 %v840_v28, %v839_v27 }
  0x4a   : > { %537 = vst.msk [vmem:[#allocation2 + $0x141] sm:$0xff] %vm239_vm1, %v7160_v52  ;;  %538 = vst.msk [vmem:[#allocation2 + $0x149] sm:$0xff] %vm239_vm1, %v7161_v53  ;;  %v965_v38 = vpack.c.bf16 %v846_v32, %v845_v31  ;;  %v843_v39 = vld [vmem:[#allocation2 + $0x89] sm:$0xff]  ;;  %v844_v40 = vld [vmem:[#allocation2 + $0x91] sm:$0xff] }
  0x4b   : > { %535 = vst.msk [vmem:[#allocation2 + $0x129] sm:$0xff] %vm239_vm1, %v7156_v54  ;;  %536 = vst.msk [vmem:[#allocation2 + $0x131] sm:$0xff] %vm239_vm1, %v7157_v55  ;;  %2436 = vrot.lane.b32.xlu1 %v960_v22, %s7836_s29  ;;  %v849_v41 = vld [vmem:[#allocation2 + $0xc9] sm:$0xff]  ;;  %v850_v42 = vld [vmem:[#allocation2 + $0xd1] sm:$0xff]  ;;  %v964_v43 = vpack.c.bf16 %v844_v40, %v843_v39 }
  0x4c   : > { %541 = vst.msk [vmem:[#allocation2 + $0x169] sm:$0xff] %vm239_vm1, %v7168_v58  ;;  %542 = vst.msk [vmem:[#allocation2 + $0x171] sm:$0xff] %vm239_vm1, %v7169_v59  ;;  %v847_v44 = vld [vmem:[#allocation2 + $0xb1] sm:$0xff]  ;;  %v848_v45 = vld [vmem:[#allocation2 + $0xb9] sm:$0xff]  ;;  %v967_v47 = vpack.c.bf16 %v850_v42, %v849_v41 }
  0x4d   : > { %539 = vst.msk [vmem:[#allocation2 + $0x151] sm:$0xff] %vm239_vm1, %v7164_v60  ;;  %540 = vst.msk [vmem:[#allocation2 + $0x159] sm:$0xff] %vm239_vm1, %v7165_v61  ;;  %2438 = vrot.lane.b32.xlu0 %v961_v16, %s7836_s29  ;;  %v853_v46 = vld [vmem:[#allocation2 + $0xf1] sm:$0xff]  ;;  %v854_v48 = vld [vmem:[#allocation2 + $0xf9] sm:$0xff]  ;;  %v966_v57 = vpack.c.bf16 %v848_v45, %v847_v44 }
  0x4e   : > { %545 = vst.msk [vmem:[#allocation2 + $0x191] sm:$0xff] %vm239_vm1, %v7176_v4  ;;  %546 = vst.msk [vmem:[#allocation2 + $0x199] sm:$0xff] %vm239_vm1, %v7177_v5  ;;  %v8186_v49 = vld [vmem:[#allocation2 + $0xd9] sm:$0xff]  ;;  %v8188_v50 = vld [vmem:[#allocation2 + $0xe1] sm:$0xff]  ;;  %v969_v60 = vpack.c.bf16 %v854_v48, %v853_v46 }
  0x4f   : > { %543 = vst.msk [vmem:[#allocation2 + $0x179] sm:$0xff] %vm239_vm1, %v7172_v6  ;;  %544 = vst.msk [vmem:[#allocation2 + $0x181] sm:$0xff] %vm239_vm1, %v7173_v7  ;;  %2440 = vrot.lane.b32.xlu1 %v962_v37, %s7836_s29  ;;  %v8190_v51 = vld [vmem:[#allocation2 + $0x119] sm:$0xff]  ;;  %v8192_v52 = vld [vmem:[#allocation2 + $0x121] sm:$0xff]  ;;  %v968_v61 = vpack.c.bf16 %v8188_v50, %v8186_v49 }
  0x50   : > { %549 = vst.msk [vmem:[#allocation2 + $0x1b9] sm:$0xff] %vm239_vm1, %v7184_v13  ;;  %550 = vst.msk [vmem:[#allocation2 + $0x1c1] sm:$0xff] %vm239_vm1, %v7185_v14  ;;  %v8194_v53 = vld [vmem:[#allocation2 + $0x101] sm:$0xff]  ;;  %v8196_v54 = vld [vmem:[#allocation2 + $0x109] sm:$0xff]  ;;  %v971_v62 = vpack.c.bf16 %v8192_v52, %v8190_v51 }
  0x51   : > { %547 = vst.msk [vmem:[#allocation2 + $0x1a1] sm:$0xff] %vm239_vm1, %v7180_v15  ;;  %548 = vst.msk [vmem:[#allocation2 + $0x1a9] sm:$0xff] %vm239_vm1, %v7181_v19  ;;  %2442 = vrot.lane.b32.xlu0 %v963_v26, %s7836_s29  ;;  %v8198_v55 = vld [vmem:[#allocation2 + $0x141] sm:$0xff]  ;;  %v8200_v56 = vld [vmem:[#allocation2 + $0x149] sm:$0xff]  ;;  %v970_v63 = vpack.c.bf16 %v8196_v54, %v8194_v53 }
  0x52   : > { %553 = vst.msk [vmem:[#allocation2 + $0x1e1] sm:$0xff] %vm239_vm1, %v7192_v20  ;;  %554 = vst.msk [vmem:[#allocation2 + $0x1e9] sm:$0xff] %vm239_vm1, %v7193_v23  ;;  %v8203_v58 = vld [vmem:[#allocation2 + $0x129] sm:$0xff]  ;;  %v8205_v59 = vld [vmem:[#allocation2 + $0x131] sm:$0xff]  ;;  %v973_v0 = vpack.c.bf16 %v8200_v56, %v8198_v55 }
  0x53   : > { %551 = vst.msk [vmem:[#allocation2 + $0x1c9] sm:$0xff] %vm239_vm1, %v7188_v24  ;;  %552 = vst.msk [vmem:[#allocation2 + $0x1d1] sm:$0xff] %vm239_vm1, %v7189_v25  ;;  %2444 = vrot.lane.b32.xlu1 %v964_v43, %s7836_s29  ;;  %v7387_v1 = vld [vmem:[%s8092_s28 + $0xc8] sm:$0xff]   ;;  %v7390_v2 = vld [vmem:[%s8092_s28 + $0xe0] sm:$0xff]   ;;  %v972_v3 = vpack.c.bf16 %v8205_v59, %v8203_v58 }
  0x54   : > { %557 = vst.msk [vmem:[#allocation2 + $0x209] sm:$0xff] %vm239_vm1, %v7200_v29  ;;  %558 = vst.msk [vmem:[#allocation2 + $0x211] sm:$0xff] %vm239_vm1, %v7201_v30  ;;  %v7204_v4 = vunpack.c.l.bf16 %v7387_v1  ;;  %v7205_v5 = vunpack.c.h.bf16 %v7387_v1  ;;  %v7216_v6 = vunpack.c.l.bf16 %v7390_v2  ;;  %v7389_v7 = vld [vmem:[%s8092_s28 + $0xd8] sm:$0xff]   ;;  %v7392_v8 = vld [vmem:[%s8092_s28 + $0xf0] sm:$0xff]   ;;  %v7217_v10 = vunpack.c.h.bf16 %v7390_v2 }
  0x55   : > { %555 = vst.msk [vmem:[#allocation2 + $0x1f1] sm:$0xff] %vm239_vm1, %v7196_v33  ;;  %556 = vst.msk [vmem:[#allocation2 + $0x1f9] sm:$0xff] %vm239_vm1, %v7197_v34  ;;  %2446 = vrot.lane.b32.xlu0 %v965_v38, %s7836_s29  ;;  %v7391_v9 = vld [vmem:[%s8092_s28 + $0xe8] sm:$0xff]   ;;  %v7212_v11 = vunpack.c.l.bf16 %v7389_v7  ;;  %v7213_v12 = vunpack.c.h.bf16 %v7389_v7  ;;  %v7224_v13 = vunpack.c.l.bf16 %v7392_v8  ;;  %v7394_v14 = vld [vmem:[%s8092_s28 + $0x100] sm:$0xff]   ;;  %v7225_v17 = vunpack.c.h.bf16 %v7392_v8 }
  0x56   : > { %561 = vst.msk [vmem:[#allocation2 + $0x231] sm:$0xff] %vm239_vm1, %v7208_v35  ;;  %562 = vst.msk [vmem:[#allocation2 + $0x239] sm:$0xff] %vm239_vm1, %v7209_v36  ;;  %v7393_v15 = vld [vmem:[%s8092_s28 + $0xf8] sm:$0xff]   ;;  %v7396_v16 = vld [vmem:[%s8092_s28 + $0x110] sm:$0xff]   ;;  %v7220_v18 = vunpack.c.l.bf16 %v7391_v9  ;;  %v7221_v19 = vunpack.c.h.bf16 %v7391_v9  ;;  %v7232_v20 = vunpack.c.l.bf16 %v7394_v14  ;;  %v7233_v24 = vunpack.c.h.bf16 %v7394_v14 }
  0x57   : > { %2448 = vrot.lane.b32.xlu1 %v966_v57, %s7836_s29  ;;  %559 = vst.msk [vmem:[#allocation2 + $0x219] sm:$0xff] %vm239_vm1, %v7204_v4  ;;  %560 = vst.msk [vmem:[#allocation2 + $0x221] sm:$0xff] %vm239_vm1, %v7205_v5  ;;  %v7395_v21 = vld [vmem:[%s8092_s28 + $0x108] sm:$0xff]   ;;  %v7398_v22 = vld [vmem:[%s8092_s28 + $0x120] sm:$0xff]   ;;  %v7228_v25 = vunpack.c.l.bf16 %v7393_v15  ;;  %v7229_v26 = vunpack.c.h.bf16 %v7393_v15  ;;  %v7240_v27 = vunpack.c.l.bf16 %v7396_v16  ;;  %v7241_v31 = vunpack.c.h.bf16 %v7396_v16 }
  0x58   : > { %565 = vst.msk [vmem:[#allocation2 + $0x259] sm:$0xff] %vm239_vm1, %v7216_v6  ;;  %v7397_v23 = vld [vmem:[%s8092_s28 + $0x118] sm:$0xff]   ;;  %566 = vst.msk [vmem:[#allocation2 + $0x261] sm:$0xff] %vm239_vm1, %v7217_v10  ;;  %v7400_v28 = vld [vmem:[%s8092_s28 + $0x130] sm:$0xff]   ;;  %v7236_v32 = vunpack.c.l.bf16 %v7395_v21  ;;  %v7237_v33 = vunpack.c.h.bf16 %v7395_v21  ;;  %v7248_v34 = vunpack.c.l.bf16 %v7398_v22  ;;  %v7249_v37 = vunpack.c.h.bf16 %v7398_v22 }
  0x59   : > { %2450 = vrot.lane.b32.xlu0 %v967_v47, %s7836_s29  ;;  %563 = vst.msk [vmem:[#allocation2 + $0x241] sm:$0xff] %vm239_vm1, %v7212_v11  ;;  %564 = vst.msk [vmem:[#allocation2 + $0x249] sm:$0xff] %vm239_vm1, %v7213_v12  ;;  %v7399_v29 = vld [vmem:[%s8092_s28 + $0x128] sm:$0xff]   ;;  %v7402_v30 = vld [vmem:[%s8092_s28 + $0x140] sm:$0xff]   ;;  %v7244_v38 = vunpack.c.l.bf16 %v7397_v23  ;;  %v7245_v39 = vunpack.c.h.bf16 %v7397_v23  ;;  %v7256_v40 = vunpack.c.l.bf16 %v7400_v28  ;;  %v7257_v43 = vunpack.c.h.bf16 %v7400_v28 }
  0x5a   : > { %569 = vst.msk [vmem:[#allocation2 + $0x281] sm:$0xff] %vm239_vm1, %v7224_v13  ;;  %570 = vst.msk [vmem:[#allocation2 + $0x289] sm:$0xff] %vm239_vm1, %v7225_v17  ;;  %v7401_v35 = vld [vmem:[%s8092_s28 + $0x138] sm:$0xff]   ;;  %v7404_v36 = vld [vmem:[%s8092_s28 + $0x150] sm:$0xff]   ;;  %v7252_v44 = vunpack.c.l.bf16 %v7399_v29  ;;  %v7253_v45 = vunpack.c.h.bf16 %v7399_v29  ;;  %v7264_v46 = vunpack.c.l.bf16 %v7402_v30  ;;  %v7265_v51 = vunpack.c.h.bf16 %v7402_v30 }
  0x5b   : > { %567 = vst.msk [vmem:[#allocation2 + $0x269] sm:$0xff] %vm239_vm1, %v7220_v18  ;;  %568 = vst.msk [vmem:[#allocation2 + $0x271] sm:$0xff] %vm239_vm1, %v7221_v19  ;;  %2452 = vrot.lane.b32.xlu1 %v968_v61, %s7836_s29  ;;  %v7403_v41 = vld [vmem:[%s8092_s28 + $0x148] sm:$0xff]   ;;  %v7406_v42 = vld [vmem:[%s8092_s28 + $0x160] sm:$0xff]   ;;  %v7260_v52 = vunpack.c.l.bf16 %v7401_v35  ;;  %v7261_v57 = vunpack.c.h.bf16 %v7401_v35 }
  0x5c   : > { %573 = vst.msk [vmem:[#allocation2 + $0x2a9] sm:$0xff] %vm239_vm1, %v7232_v20  ;;  %574 = vst.msk [vmem:[#allocation2 + $0x2b1] sm:$0xff] %vm239_vm1, %v7233_v24  ;;  %v7405_v47 = vld [vmem:[%s8092_s28 + $0x158] sm:$0xff]   ;;  %v7408_v48 = vld [vmem:[%s8092_s28 + $0x170] sm:$0xff]   ;;  %v7268_v1 = vunpack.c.l.bf16 %v7403_v41  ;;  %v7269_v2 = vunpack.c.h.bf16 %v7403_v41  ;;  %v7280_v4 = vunpack.c.l.bf16 %v7406_v42  ;;  %v7281_v6 = vunpack.c.h.bf16 %v7406_v42 }
  0x5d   : > { %2454 = vrot.lane.b32.xlu0 %v969_v60, %s7836_s29  ;;  %571 = vst.msk [vmem:[#allocation2 + $0x291] sm:$0xff] %vm239_vm1, %v7228_v25  ;;  %572 = vst.msk [vmem:[#allocation2 + $0x299] sm:$0xff] %vm239_vm1, %v7229_v26  ;;  %v8261_v49 = vld [vmem:[#allocation2 + $0x169] sm:$0xff]  ;;  %v8263_v50 = vld [vmem:[#allocation2 + $0x171] sm:$0xff]  ;;  %v7272_v60 = vunpack.c.l.bf16 %v7404_v36  ;;  %v7276_v7 = vunpack.c.l.bf16 %v7405_v47  ;;  %v7277_v8 = vunpack.c.h.bf16 %v7405_v47  ;;  %v7288_v9 = vunpack.c.l.bf16 %v7408_v48 }
  0x5e   : > { %577 = vst.msk [vmem:[#allocation2 + $0x2d1] sm:$0xff] %vm239_vm1, %v7240_v27  ;;  %578 = vst.msk [vmem:[#allocation2 + $0x2d9] sm:$0xff] %vm239_vm1, %v7241_v31  ;;  %v7407_v61 = vld [vmem:[%s8092_s28 + $0x168] sm:$0xff]   ;;  %v7410_v5 = vld [vmem:[%s8092_s28 + $0x180] sm:$0xff]   ;;  %v975_v53 = vpack.c.bf16 %v8263_v50, %v8261_v49  ;;  %v7289_v12 = vunpack.c.h.bf16 %v7408_v48 }
  0x5f   : > { %575 = vst.msk [vmem:[#allocation2 + $0x2b9] sm:$0xff] %vm239_vm1, %v7236_v32  ;;  %576 = vst.msk [vmem:[#allocation2 + $0x2c1] sm:$0xff] %vm239_vm1, %v7237_v33  ;;  %2456 = vrot.lane.b32.xlu1 %v970_v63, %s7836_s29  ;;  %v7409_v10 = vld [vmem:[%s8092_s28 + $0x178] sm:$0xff]   ;;  %v7412_v11 = vld [vmem:[%s8092_s28 + $0x190] sm:$0xff]   ;;  %v7284_v13 = vunpack.c.l.bf16 %v7407_v61  ;;  %v7285_v14 = vunpack.c.h.bf16 %v7407_v61  ;;  %v7297_v16 = vunpack.c.h.bf16 %v7410_v5 }
  0x60   : > { %581 = vst.msk [vmem:[#allocation2 + $0x2f9] sm:$0xff] %vm239_vm1, %v7248_v34  ;;  %582 = vst.msk [vmem:[#allocation2 + $0x301] sm:$0xff] %vm239_vm1, %v7249_v37  ;;  %v863_v54 = vld [vmem:[#allocation2 + $0x151] sm:$0xff]  ;;  %v864_v63 = vld [vmem:[#allocation2 + $0x159] sm:$0xff]  ;;  %v7292_v18 = vunpack.c.l.bf16 %v7409_v10  ;;  %v7293_v19 = vunpack.c.h.bf16 %v7409_v10  ;;  %v7304_v20 = vunpack.c.l.bf16 %v7412_v11  ;;  %v7305_v23 = vunpack.c.h.bf16 %v7412_v11 }
  0x61   : > { %2458 = vrot.lane.b32.xlu0 %v971_v62, %s7836_s29  ;;  %579 = vst.msk [vmem:[#allocation2 + $0x2e1] sm:$0xff] %vm239_vm1, %v7244_v38  ;;  %580 = vst.msk [vmem:[#allocation2 + $0x2e9] sm:$0xff] %vm239_vm1, %v7245_v39  ;;  %v7273_v62 = vunpack.c.h.bf16 %v7404_v36  ;;  %v7411_v15 = vld [vmem:[%s8092_s28 + $0x188] sm:$0xff]   ;;  %v869_v55 = vld [vmem:[#allocation2 + $0x191] sm:$0xff]  ;;  %v974_v22 = vpack.c.bf16 %v864_v63, %v863_v54 }
  0x62   : > { %585 = vst.msk [vmem:[#allocation2 + $0x321] sm:$0xff] %vm239_vm1, %v7256_v40  ;;  %586 = vst.msk [vmem:[#allocation2 + $0x329] sm:$0xff] %vm239_vm1, %v7257_v43  ;;  %v870_v56 = vld [vmem:[#allocation2 + $0x199] sm:$0xff]  ;;  %v7300_v24 = vunpack.c.l.bf16 %v7411_v15  ;;  %v7416_v25 = vld [vmem:[%s8092_s28 + $0x1b0] sm:$0xff]   ;;  %v7301_v58 = vunpack.c.h.bf16 %v7411_v15 }
  0x63   : > { %583 = vst.msk [vmem:[#allocation2 + $0x309] sm:$0xff] %vm239_vm1, %v7252_v44  ;;  %584 = vst.msk [vmem:[#allocation2 + $0x311] sm:$0xff] %vm239_vm1, %v7253_v45  ;;  %v7414_v17 = vld [vmem:[%s8092_s28 + $0x1a0] sm:$0xff]   ;;  %v7413_v21 = vld [vmem:[%s8092_s28 + $0x198] sm:$0xff]   ;;  %2460 = vrot.lane.b32.xlu1 %v972_v3, %s7836_s29  ;;  %v977_v26 = vpack.c.bf16 %v870_v56, %v869_v55  ;;  %v7320_v33 = vunpack.c.l.bf16 %v7416_v25  ;;  %v7321_v34 = vunpack.c.h.bf16 %v7416_v25 }
  0x64   : > { %589 = vst.msk [vmem:[#allocation2 + $0x349] sm:$0xff] %vm239_vm1, %v7264_v46  ;;  %590 = vst.msk [vmem:[#allocation2 + $0x351] sm:$0xff] %vm239_vm1, %v7265_v51  ;;  %v867_v27 = vld [vmem:[#allocation2 + $0x179] sm:$0xff]  ;;  %v868_v28 = vld [vmem:[#allocation2 + $0x181] sm:$0xff]  ;;  %v7312_v59 = vunpack.c.l.bf16 %v7414_v17  ;;  %v7313_v3 = vunpack.c.h.bf16 %v7414_v17  ;;  %v7308_v31 = vunpack.c.l.bf16 %v7413_v21  ;;  %v7309_v32 = vunpack.c.h.bf16 %v7413_v21 }
  0x65   : > { %587 = vst.msk [vmem:[#allocation2 + $0x331] sm:$0xff] %vm239_vm1, %v7260_v52  ;;  %588 = vst.msk [vmem:[#allocation2 + $0x339] sm:$0xff] %vm239_vm1, %v7261_v57  ;;  %2462 = vrot.lane.b32.xlu0 %v973_v0, %s7836_s29  ;;  %v7296_v0 = vunpack.c.l.bf16 %v7410_v5  ;;  %v873_v29 = vld [vmem:[#allocation2 + $0x1b9] sm:$0xff]  ;;  %v874_v30 = vld [vmem:[#allocation2 + $0x1c1] sm:$0xff]  ;;  %v976_v35 = vpack.c.bf16 %v868_v28, %v867_v27 }
  0x66   : > { %593 = vst.msk [vmem:[#allocation2 + $0x371] sm:$0xff] %vm239_vm1, %v7272_v60  ;;  %594 = vst.msk [vmem:[#allocation2 + $0x379] sm:$0xff] %vm239_vm1, %v7273_v62  ;;  %v979_v36 = vpack.c.bf16 %v874_v30, %v873_v29  ;;  %v871_v37 = vld [vmem:[#allocation2 + $0x1a1] sm:$0xff]  ;;  %v872_v38 = vld [vmem:[#allocation2 + $0x1a9] sm:$0xff] }
  0x67   : > { %591 = vst.msk [vmem:[#allocation2 + $0x359] sm:$0xff] %vm239_vm1, %v7268_v1  ;;  %592 = vst.msk [vmem:[#allocation2 + $0x361] sm:$0xff] %vm239_vm1, %v7269_v2  ;;  %2464 = vrot.lane.b32.xlu1 %v974_v22, %s7836_s29  ;;  %v877_v39 = vld [vmem:[#allocation2 + $0x1e1] sm:$0xff]  ;;  %v878_v40 = vld [vmem:[#allocation2 + $0x1e9] sm:$0xff]  ;;  %v978_v41 = vpack.c.bf16 %v872_v38, %v871_v37 }
  0x68   : > { %597 = vst.msk [vmem:[#allocation2 + $0x399] sm:$0xff] %vm239_vm1, %v7280_v4  ;;  %598 = vst.msk [vmem:[#allocation2 + $0x3a1] sm:$0xff] %vm239_vm1, %v7281_v6  ;;  %v981_v42 = vpack.c.bf16 %v878_v40, %v877_v39  ;;  %v875_v43 = vld [vmem:[#allocation2 + $0x1c9] sm:$0xff]  ;;  %v876_v44 = vld [vmem:[#allocation2 + $0x1d1] sm:$0xff] }
  0x69   : > { %595 = vst.msk [vmem:[#allocation2 + $0x381] sm:$0xff] %vm239_vm1, %v7276_v7  ;;  %596 = vst.msk [vmem:[#allocation2 + $0x389] sm:$0xff] %vm239_vm1, %v7277_v8  ;;  %2466 = vrot.lane.b32.xlu0 %v975_v53, %s7836_s29  ;;  %v881_v45 = vld [vmem:[#allocation2 + $0x209] sm:$0xff]  ;;  %v882_v46 = vld [vmem:[#allocation2 + $0x211] sm:$0xff]  ;;  %v980_v47 = vpack.c.bf16 %v876_v44, %v875_v43 }
  0x6a   : > { %601 = vst.msk [vmem:[#allocation2 + $0x3c1] sm:$0xff] %vm239_vm1, %v7288_v9  ;;  %602 = vst.msk [vmem:[#allocation2 + $0x3c9] sm:$0xff] %vm239_vm1, %v7289_v12  ;;  %v879_v48 = vld [vmem:[#allocation2 + $0x1f1] sm:$0xff]  ;;  %v880_v49 = vld [vmem:[#allocation2 + $0x1f9] sm:$0xff]  ;;  %v983_v50 = vpack.c.bf16 %v882_v46, %v881_v45 }
  0x6b   : > { %599 = vst.msk [vmem:[#allocation2 + $0x3a9] sm:$0xff] %vm239_vm1, %v7284_v13  ;;  %600 = vst.msk [vmem:[#allocation2 + $0x3b1] sm:$0xff] %vm239_vm1, %v7285_v14  ;;  %2468 = vrot.lane.b32.xlu1 %v976_v35, %s7836_s29  ;;  %v885_v51 = vld [vmem:[#allocation2 + $0x231] sm:$0xff]  ;;  %v886_v52 = vld [vmem:[#allocation2 + $0x239] sm:$0xff]  ;;  %v982_v57 = vpack.c.bf16 %v880_v49, %v879_v48 }
  0x6c   : > { %605 = vst.msk [vmem:[#allocation2 + $0x3e9] sm:$0xff] %vm239_vm1, %v7296_v0  ;;  %606 = vst.msk [vmem:[#allocation2 + $0x3f1] sm:$0xff] %vm239_vm1, %v7297_v16  ;;  %v7415_v60 = vld [vmem:[%s8092_s28 + $0x1a8] sm:$0xff]   ;;  %v7418_v61 = vld [vmem:[%s8092_s28 + $0x1c0] sm:$0xff]   ;;  %v985_v7 = vpack.c.bf16 %v886_v52, %v885_v51 }
  0x6d   : > { %603 = vst.msk [vmem:[#allocation2 + $0x3d1] sm:$0xff] %vm239_vm1, %v7292_v18  ;;  %604 = vst.msk [vmem:[#allocation2 + $0x3d9] sm:$0xff] %vm239_vm1, %v7293_v19  ;;  %2470 = vrot.lane.b32.xlu0 %v977_v26, %s7836_s29  ;;  %v7316_v62 = vunpack.c.l.bf16 %v7415_v60  ;;  %v7317_v1 = vunpack.c.h.bf16 %v7415_v60  ;;  %v7328_v2 = vunpack.c.l.bf16 %v7418_v61  ;;  %v7329_v4 = vunpack.c.h.bf16 %v7418_v61  ;;  %v7417_v5 = vld [vmem:[%s8092_s28 + $0x1b8] sm:$0xff]   ;;  %v7420_v6 = vld [vmem:[%s8092_s28 + $0x1d0] sm:$0xff]  }
  0x6e   : > { %609 = vst.msk [vmem:[#allocation2 + $0x411] sm:$0xff] %vm239_vm1, %v7304_v20  ;;  %610 = vst.msk [vmem:[#allocation2 + $0x419] sm:$0xff] %vm239_vm1, %v7305_v23  ;;  %v883_v8 = vld [vmem:[#allocation2 + $0x219] sm:$0xff]  ;;  %v884_v9 = vld [vmem:[#allocation2 + $0x221] sm:$0xff]  ;;  %v7324_v11 = vunpack.c.l.bf16 %v7417_v5  ;;  %v7325_v53 = vunpack.c.h.bf16 %v7417_v5  ;;  %v7336_v54 = vunpack.c.l.bf16 %v7420_v6  ;;  %v7337_v12 = vunpack.c.h.bf16 %v7420_v6 }
  0x6f   : > { %607 = vst.msk [vmem:[#allocation2 + $0x3f9] sm:$0xff] %vm239_vm1, %v7300_v24  ;;  %608 = vst.msk [vmem:[#allocation2 + $0x401] sm:$0xff] %vm239_vm1, %v7301_v58  ;;  %2472 = vrot.lane.b32.xlu1 %v978_v41, %s7836_s29  ;;  %v889_v10 = vld [vmem:[#allocation2 + $0x259] sm:$0xff]  ;;  %v890_v63 = vld [vmem:[#allocation2 + $0x261] sm:$0xff]  ;;  %v984_v0 = vpack.c.bf16 %v884_v9, %v883_v8 }
  0x70   : > { %613 = vst.msk [vmem:[#allocation2 + $0x439] sm:$0xff] %vm239_vm1, %v7312_v59  ;;  %614 = vst.msk [vmem:[#allocation2 + $0x441] sm:$0xff] %vm239_vm1, %v7313_v3  ;;  %v7419_v13 = vld [vmem:[%s8092_s28 + $0x1c8] sm:$0xff]   ;;  %v7422_v14 = vld [vmem:[%s8092_s28 + $0x1e0] sm:$0xff]   ;;  %v987_v18 = vpack.c.bf16 %v890_v63, %v889_v10 }
  0x71   : > { %611 = vst.msk [vmem:[#allocation2 + $0x421] sm:$0xff] %vm239_vm1, %v7308_v31  ;;  %612 = vst.msk [vmem:[#allocation2 + $0x429] sm:$0xff] %vm239_vm1, %v7309_v32  ;;  %2474 = vrot.lane.b32.xlu0 %v979_v36, %s7836_s29  ;;  %v7332_v15 = vunpack.c.l.bf16 %v7419_v13  ;;  %v7333_v55 = vunpack.c.h.bf16 %v7419_v13  ;;  %v7344_v56 = vunpack.c.l.bf16 %v7422_v14  ;;  %v7345_v16 = vunpack.c.h.bf16 %v7422_v14  ;;  %v7421_v17 = vld [vmem:[%s8092_s28 + $0x1d8] sm:$0xff]   ;;  %v887_v19 = vld [vmem:[#allocation2 + $0x241] sm:$0xff] }
  0x72   : > { %617 = vst.msk [vmem:[#allocation2 + $0x461] sm:$0xff] %vm239_vm1, %v7320_v33  ;;  %618 = vst.msk [vmem:[#allocation2 + $0x469] sm:$0xff] %vm239_vm1, %v7321_v34  ;;  %v888_v20 = vld [vmem:[#allocation2 + $0x249] sm:$0xff]  ;;  %v7340_v21 = vunpack.c.l.bf16 %v7421_v17  ;;  %v7341_v22 = vunpack.c.h.bf16 %v7421_v17  ;;  %v893_v23 = vld [vmem:[#allocation2 + $0x281] sm:$0xff] }
  0x73   : > { %2476 = vrot.lane.b32.xlu1 %v980_v47, %s7836_s29  ;;  %615 = vst.msk [vmem:[#allocation2 + $0x449] sm:$0xff] %vm239_vm1, %v7316_v62  ;;  %616 = vst.msk [vmem:[#allocation2 + $0x451] sm:$0xff] %vm239_vm1, %v7317_v1  ;;  %v894_v24 = vld [vmem:[#allocation2 + $0x289] sm:$0xff]  ;;  %v986_v28 = vpack.c.bf16 %v888_v20, %v887_v19  ;;  %v892_v3 = vld [vmem:[#allocation2 + $0x271] sm:$0xff] }
  0x74   : > { %621 = vst.msk [vmem:[#allocation2 + $0x489] sm:$0xff] %vm239_vm1, %v7328_v2  ;;  %622 = vst.msk [vmem:[#allocation2 + $0x491] sm:$0xff] %vm239_vm1, %v7329_v4  ;;  %v7423_v25 = vld [vmem:[%s8092_s28 + $0x1e8] sm:$0xff]   ;;  %v989_v58 = vpack.c.bf16 %v894_v24, %v893_v23  ;;  %v898_v30 = vld [vmem:[#allocation2 + $0x2b1] sm:$0xff] }
  0x75   : > { %2478 = vrot.lane.b32.xlu0 %v981_v42, %s7836_s29  ;;  %619 = vst.msk [vmem:[#allocation2 + $0x471] sm:$0xff] %vm239_vm1, %v7324_v11  ;;  %620 = vst.msk [vmem:[#allocation2 + $0x479] sm:$0xff] %vm239_vm1, %v7325_v53  ;;  %v7348_v26 = vunpack.c.l.bf16 %v7423_v25  ;;  %v7349_v27 = vunpack.c.h.bf16 %v7423_v25  ;;  %v891_v59 = vld [vmem:[#allocation2 + $0x269] sm:$0xff]  ;;  %v895_v33 = vld [vmem:[#allocation2 + $0x291] sm:$0xff] }
  0x76   : > { %625 = vst.msk [vmem:[#allocation2 + $0x4b1] sm:$0xff] %vm239_vm1, %v7336_v54  ;;  %626 = vst.msk [vmem:[#allocation2 + $0x4b9] sm:$0xff] %vm239_vm1, %v7337_v12  ;;  %v897_v29 = vld [vmem:[#allocation2 + $0x2a9] sm:$0xff]  ;;  %v988_v31 = vpack.c.bf16 %v892_v3, %v891_v59  ;;  %v896_v34 = vld [vmem:[#allocation2 + $0x299] sm:$0xff] }
  0x77   : > { %2480 = vrot.lane.b32.xlu1 %v982_v57, %s7836_s29  ;;  %623 = vst.msk [vmem:[#allocation2 + $0x499] sm:$0xff] %vm239_vm1, %v7332_v15  ;;  %624 = vst.msk [vmem:[#allocation2 + $0x4a1] sm:$0xff] %vm239_vm1, %v7333_v55  ;;  %v991_v32 = vpack.c.bf16 %v898_v30, %v897_v29  ;;  %v901_v35 = vld [vmem:[#allocation2 + $0x2d1] sm:$0xff]  ;;  %v902_v36 = vld [vmem:[#allocation2 + $0x2d9] sm:$0xff]  ;;  %v990_v37 = vpack.c.bf16 %v896_v34, %v895_v33 }
  0x78   : > { %629 = vst.msk [vmem:[#allocation2 + $0x4d9] sm:$0xff] %vm239_vm1, %v7344_v56  ;;  %630 = vst.msk [vmem:[#allocation2 + $0x4e1] sm:$0xff] %vm239_vm1, %v7345_v16  ;;  %v993_v38 = vpack.c.bf16 %v902_v36, %v901_v35  ;;  %v899_v39 = vld [vmem:[#allocation2 + $0x2b9] sm:$0xff]  ;;  %v900_v40 = vld [vmem:[#allocation2 + $0x2c1] sm:$0xff] }
  0x79   : > { %2482 = vrot.lane.b32.xlu0 %v983_v50, %s7836_s29  ;;  %627 = vst.msk [vmem:[#allocation2 + $0x4c1] sm:$0xff] %vm239_vm1, %v7340_v21  ;;  %628 = vst.msk [vmem:[#allocation2 + $0x4c9] sm:$0xff] %vm239_vm1, %v7341_v22  ;;  %v905_v41 = vld [vmem:[#allocation2 + $0x2f9] sm:$0xff]  ;;  %v906_v42 = vld [vmem:[#allocation2 + $0x301] sm:$0xff]  ;;  %v992_v43 = vpack.c.bf16 %v900_v40, %v899_v39 }
  0x7a   : > { %631 = vst.msk [vmem:[#allocation2 + $0x4e9] sm:$0xff] %vm239_vm1, %v7348_v26  ;;  %632 = vst.msk [vmem:[#allocation2 + $0x4f1] sm:$0xff] %vm239_vm1, %v7349_v27  ;;  %v995_v44 = vpack.c.bf16 %v906_v42, %v905_v41  ;;  %v903_v45 = vld [vmem:[#allocation2 + $0x2e1] sm:$0xff]  ;;  %v904_v46 = vld [vmem:[#allocation2 + $0x2e9] sm:$0xff] }
  0x7b   : > { %2484 = vrot.lane.b32.xlu1 %v984_v0, %s7836_s29  ;;  %v909_v47 = vld [vmem:[#allocation2 + $0x321] sm:$0xff]  ;;  %v910_v48 = vld [vmem:[#allocation2 + $0x329] sm:$0xff]  ;;  %v994_v49 = vpack.c.bf16 %v904_v46, %v903_v45  ;;  %v908_v52 = vld [vmem:[#allocation2 + $0x311] sm:$0xff] }
  0x7c   : > { %v997_v50 = vpack.c.bf16 %v910_v48, %v909_v47  ;;  %v907_v51 = vld [vmem:[#allocation2 + $0x309] sm:$0xff]  ;;  %v914_v60 = vld [vmem:[#allocation2 + $0x351] sm:$0xff]  ;;  %v912_v2 = vld [vmem:[#allocation2 + $0x339] sm:$0xff] }
  0x7d   : > { %2486 = vrot.lane.b32.xlu0 %v985_v7, %s7836_s29  ;;  %v913_v57 = vld [vmem:[#allocation2 + $0x349] sm:$0xff]  ;;  %v996_v61 = vpack.c.bf16 %v908_v52, %v907_v51  ;;  %v911_v1 = vld [vmem:[#allocation2 + $0x331] sm:$0xff]  ;;  %v918_v5 = vld [vmem:[#allocation2 + $0x379] sm:$0xff] }
  0x7e   : > { %v999_v62 = vpack.c.bf16 %v914_v60, %v913_v57  ;;  %v917_v4 = vld [vmem:[#allocation2 + $0x371] sm:$0xff]  ;;  %v998_v6 = vpack.c.bf16 %v912_v2, %v911_v1  ;;  %v915_v8 = vld [vmem:[#allocation2 + $0x359] sm:$0xff]  ;;  %v916_v9 = vld [vmem:[#allocation2 + $0x361] sm:$0xff] }
  0x7f   : > { %2488 = vrot.lane.b32.xlu1 %v986_v28, %s7836_s29  ;;  %v1001_v7 = vpack.c.bf16 %v918_v5, %v917_v4  ;;  %v921_v10 = vld [vmem:[#allocation2 + $0x399] sm:$0xff]  ;;  %v922_v11 = vld [vmem:[#allocation2 + $0x3a1] sm:$0xff]  ;;  %v1000_v53 = vpack.c.bf16 %v916_v9, %v915_v8  ;;  %v920_v12 = vld [vmem:[#allocation2 + $0x389] sm:$0xff] }
  0x80   : > { %v1003_v54 = vpack.c.bf16 %v922_v11, %v921_v10  ;;  %v919_v63 = vld [vmem:[#allocation2 + $0x381] sm:$0xff]  ;;  %v926_v14 = vld [vmem:[#allocation2 + $0x3c9] sm:$0xff]  ;;  %v924_v0 = vld [vmem:[#allocation2 + $0x3b1] sm:$0xff] }
  0x81   : > { %2490 = vrot.lane.b32.xlu0 %v987_v18, %s7836_s29  ;;  %v925_v13 = vld [vmem:[#allocation2 + $0x3c1] sm:$0xff]  ;;  %v1002_v15 = vpack.c.bf16 %v920_v12, %v919_v63  ;;  %v923_v56 = vld [vmem:[#allocation2 + $0x3a9] sm:$0xff]  ;;  %v930_v17 = vld [vmem:[#allocation2 + $0x3f1] sm:$0xff] }
  0x82   : > { %v1005_v55 = vpack.c.bf16 %v926_v14, %v925_v13  ;;  %v929_v16 = vld [vmem:[#allocation2 + $0x3e9] sm:$0xff]  ;;  %v1004_v18 = vpack.c.bf16 %v924_v0, %v923_v56  ;;  %v927_v20 = vld [vmem:[#allocation2 + $0x3d1] sm:$0xff]  ;;  %v928_v21 = vld [vmem:[#allocation2 + $0x3d9] sm:$0xff] }
  0x83   : > { %2492 = vrot.lane.b32.xlu1 %v988_v31, %s7836_s29  ;;  %v1007_v19 = vpack.c.bf16 %v930_v17, %v929_v16  ;;  %v933_v22 = vld [vmem:[#allocation2 + $0x411] sm:$0xff]  ;;  %v934_v23 = vld [vmem:[#allocation2 + $0x419] sm:$0xff]  ;;  %v1006_v24 = vpack.c.bf16 %v928_v21, %v927_v20  ;;  %v932_v27 = vld [vmem:[#allocation2 + $0x401] sm:$0xff] }
  0x84   : > { %v1009_v25 = vpack.c.bf16 %v934_v23, %v933_v22  ;;  %v931_v26 = vld [vmem:[#allocation2 + $0x3f9] sm:$0xff]  ;;  %v935_v29 = vld [vmem:[#allocation2 + $0x421] sm:$0xff]  ;;  %v936_v30 = vld [vmem:[#allocation2 + $0x429] sm:$0xff] }
  0x85   : > { %2494 = vrot.lane.b32.xlu0 %v989_v58, %s7836_s29  ;;  %v937_v28 = vld [vmem:[#allocation2 + $0x439] sm:$0xff]  ;;  %v938_v58 = vld [vmem:[#allocation2 + $0x441] sm:$0xff]  ;;  %v1008_v59 = vpack.c.bf16 %v932_v27, %v931_v26  ;;  %v1010_v33 = vpack.c.bf16 %v936_v30, %v935_v29  ;;  %v939_v35 = vld [vmem:[#allocation2 + $0x449] sm:$0xff] }
  0x86   : > { %v1011_v3 = vpack.c.bf16 %v938_v58, %v937_v28  ;;  %v941_v31 = vld [vmem:[#allocation2 + $0x461] sm:$0xff]  ;;  %v940_v36 = vld [vmem:[#allocation2 + $0x451] sm:$0xff]  ;;  %v944_v42 = vld [vmem:[#allocation2 + $0x479] sm:$0xff] }
  0x87   : > { %2496 = vrot.lane.b32.xlu1 %v990_v37, %s7836_s29  ;;  %v945_v37 = vld [vmem:[#allocation2 + $0x489] sm:$0xff]  ;;  %v1012_v39 = vpack.c.bf16 %v940_v36, %v939_v35  ;;  %v943_v41 = vld [vmem:[#allocation2 + $0x471] sm:$0xff]  ;;  %v947_v48 = vld [vmem:[#allocation2 + $0x499] sm:$0xff] }
  0x88   : > { %v1014_v46 = vpack.c.bf16 %v944_v42, %v943_v41  ;;  %v954_v51 = vld [vmem:[#allocation2 + $0x4e1] sm:$0xff]  ;;  %v1022_v4 = vld [vmem:[#allocation2 + $0xa] sm:$0xff]  ;;  %v1023_v13 = vld [vmem:[#allocation2 + $0x12] sm:$0xff] }
  0x89   : > { %2498 = vrot.lane.b32.xlu0 %v991_v32, %s7836_s29  ;;  %v942_v32 = vld [vmem:[#allocation2 + $0x469] sm:$0xff]  ;;  %v956_v9 = vld [vmem:[#allocation2 + $0x4f1] sm:$0xff]  ;;  %v1024_v14 = vld [vmem:[#allocation2 + $0x1a] sm:$0xff] }
  0x8a   : > { %v1013_v34 = vpack.c.bf16 %v942_v32, %v941_v31  ;;  %v1021_v2 = vld [vmem:[#allocation2 + $0x2] sm:$0xff]  ;;  %v1025_v11 = vld [vmem:[#allocation2 + $0x2a] sm:$0xff]  ;;  %v1030_v56 = vld [vmem:[#allocation2 + $0x5a] sm:$0xff]  ;;  %v1150_v16 = vpack.c.bf16 %v1024_v14, %v1023_v13 }
  0x8b   : > { %2500 = vrot.lane.b32.xlu1 %v992_v43, %s7836_s29  ;;  %v949_v43 = vld [vmem:[#allocation2 + $0x4b1] sm:$0xff]  ;;  %v955_v8 = vld [vmem:[#allocation2 + $0x4e9] sm:$0xff]  ;;  %v1033_v21 = vld [vmem:[#allocation2 + $0x7a] sm:$0xff] }
  0x8c   : > { %v1020_v63 = vpack.c.bf16 %v956_v9, %v955_v8  ;;  %v1034_v22 = vld [vmem:[#allocation2 + $0x82] sm:$0xff]  ;;  %v1032_v27 = vld [vmem:[#allocation2 + $0x6a] sm:$0xff]  ;;  %v1036_v32 = vld [vmem:[#allocation2 + $0x92] sm:$0xff] }
  0x8d   : > { %2502 = vrot.lane.b32.xlu0 %v993_v38, %s7836_s29  ;;  %v946_v38 = vld [vmem:[#allocation2 + $0x491] sm:$0xff]  ;;  %v1031_v26 = vld [vmem:[#allocation2 + $0x62] sm:$0xff] }
  0x8e   : > { %v1015_v40 = vpack.c.bf16 %v946_v38, %v945_v37  ;;  %v1037_v58 = vld [vmem:[#allocation2 + $0xa2] sm:$0xff]  ;;  %v1154_v29 = vpack.c.bf16 %v1032_v27, %v1031_v26  ;;  %v1035_v31 = vld [vmem:[#allocation2 + $0x8a] sm:$0xff]  ;;  %v1042_v35 = vld [vmem:[#allocation2 + $0xd2] sm:$0xff] }
  0x8f   : > { %2504 = vrot.lane.b32.xlu1 %v994_v49, %s7836_s29  ;;  %v948_v49 = vld [vmem:[#allocation2 + $0x4a1] sm:$0xff]  ;;  %v1156_v37 = vpack.c.bf16 %v1036_v32, %v1035_v31  ;;  %v1045_v42 = vld [vmem:[#allocation2 + $0xf2] sm:$0xff]  ;;  %v1054_v8 = vld [vmem:[#allocation2 + $0x14a] sm:$0xff] }
  0x90   : > { %v1016_v57 = vpack.c.bf16 %v948_v49, %v947_v48  ;;  %v1043_v48 = vld [vmem:[#allocation2 + $0xda] sm:$0xff]  ;;  %v1044_v49 = vld [vmem:[#allocation2 + $0xe2] sm:$0xff]  ;;  %v1057_v14 = vld [vmem:[#allocation2 + $0x16a] sm:$0xff] }
  0x91   : > { %2506 = vrot.lane.b32.xlu0 %v995_v44, %s7836_s29  ;;  %v950_v44 = vld [vmem:[#allocation2 + $0x4b9] sm:$0xff]  ;;  %v1066_v31 = vld [vmem:[#allocation2 + $0x1c2] sm:$0xff] }
  0x92   : > { %v1017_v47 = vpack.c.bf16 %v950_v44, %v949_v43  ;;  %v1046_v43 = vld [vmem:[#allocation2 + $0xfa] sm:$0xff] }
  0x93   : > { %2508 = vrot.lane.b32.xlu1 %v996_v61, %s7836_s29  ;;  %v951_v61 = vld [vmem:[#allocation2 + $0x4c1] sm:$0xff] }
  0x95   : > { %2510 = vrot.lane.b32.xlu0 %v997_v50, %s7836_s29  ;;  %v953_v50 = vld [vmem:[#allocation2 + $0x4d9] sm:$0xff] }
  0x96   : > { %v1019_v60 = vpack.c.bf16 %v954_v51, %v953_v50  ;;  %v1049_v51 = vld [vmem:[#allocation2 + $0x11a] sm:$0xff] }
  0x97   : > { %2512 = vrot.lane.b32.xlu1 %v998_v6, %s7836_s29 }
  0x99   : > { %2514 = vrot.lane.b32.xlu0 %v999_v62, %s7836_s29  ;;  %v952_v62 = vld [vmem:[#allocation2 + $0x4c9] sm:$0xff] }
  0x9a   : > { %v1018_v6 = vpack.c.bf16 %v952_v62, %v951_v61  ;;  %v1160_v61 = vpack.c.bf16 %v1044_v49, %v1043_v48  ;;  %v1067_v48 = vld [vmem:[#allocation2 + $0x1ca] sm:$0xff]  ;;  %v1068_v49 = vld [vmem:[#allocation2 + $0x1d2] sm:$0xff] }
  0x9b   : > { %2516 = vrot.lane.b32.xlu1 %v1000_v53, %s7836_s29  ;;  %v1026_v53 = vld [vmem:[#allocation2 + $0x32] sm:$0xff] }
  0x9c   : > { %v1151_v12 = vpack.c.bf16 %v1026_v53, %v1025_v11 }
  0x9d   : > { %2518 = vrot.lane.b32.xlu0 %v1001_v7, %s7836_s29  ;;  %v1149_v7 = vpack.c.bf16 %v1022_v4, %v1021_v2  ;;  %v1047_v2 = vld [vmem:[#allocation2 + $0x102] sm:$0xff]  ;;  %v1048_v4 = vld [vmem:[#allocation2 + $0x10a] sm:$0xff] }
  0x9e   : > { %v1162_v11 = vpack.c.bf16 %v1048_v4, %v1047_v2  ;;  %v1172_v2 = vpack.c.bf16 %v1068_v49, %v1067_v48  ;;  %v1090_v48 = vld [vmem:[#allocation2 + $0x2b2] sm:$0xff] }
  0x9f   : > { %2520 = vrot.lane.b32.xlu1 %v1002_v15, %s7836_s29 }
  0xa1   : > { %2522 = vrot.lane.b32.xlu0 %v1003_v54, %s7836_s29 }
  0xa3   : > { %2524 = vrot.lane.b32.xlu1 %v1004_v18, %s7836_s29  ;;  %v1027_v18 = vld [vmem:[#allocation2 + $0x3a] sm:$0xff] }
  0xa5   : > { %2526 = vrot.lane.b32.xlu0 %v1005_v55, %s7836_s29  ;;  %v1029_v55 = vld [vmem:[#allocation2 + $0x52] sm:$0xff] }
  0xa6   : > { %v1153_v17 = vpack.c.bf16 %v1030_v56, %v1029_v55  ;;  %v1058_v55 = vld [vmem:[#allocation2 + $0x172] sm:$0xff] }
  0xa7   : > { %2528 = vrot.lane.b32.xlu1 %v1006_v24, %s7836_s29 }
  0xa9   : > { %2530 = vrot.lane.b32.xlu0 %v1007_v19, %s7836_s29  ;;  %v1028_v19 = vld [vmem:[#allocation2 + $0x42] sm:$0xff] }
  0xaa   : > { %v1152_v24 = vpack.c.bf16 %v1028_v19, %v1027_v18  ;;  %v1055_v18 = vld [vmem:[#allocation2 + $0x152] sm:$0xff]  ;;  %v1056_v19 = vld [vmem:[#allocation2 + $0x15a] sm:$0xff] }
  0xab   : > { %2532 = vrot.lane.b32.xlu1 %v1008_v59, %s7836_s29  ;;  %v1038_v59 = vld [vmem:[#allocation2 + $0xaa] sm:$0xff]  ;;  %v1166_v26 = vpack.c.bf16 %v1056_v19, %v1055_v18  ;;  %v1081_v19 = vld [vmem:[#allocation2 + $0x25a] sm:$0xff] }
  0xac   : > { %v1157_v30 = vpack.c.bf16 %v1038_v59, %v1037_v58  ;;  %v1059_v58 = vld [vmem:[#allocation2 + $0x17a] sm:$0xff]  ;;  %v1060_v59 = vld [vmem:[#allocation2 + $0x182] sm:$0xff] }
  0xad   : > { %2534 = vrot.lane.b32.xlu0 %v1009_v25, %s7836_s29  ;;  %v1155_v25 = vpack.c.bf16 %v1034_v22, %v1033_v21  ;;  %v1061_v22 = vld [vmem:[#allocation2 + $0x192] sm:$0xff] }
  0xaf   : > { %2536 = vrot.lane.b32.xlu1 %v1010_v33, %s7836_s29 }
  0xb1   : > { %2538 = vrot.lane.b32.xlu0 %v1011_v3, %s7836_s29 }
  0xb3   : > { %2540 = vrot.lane.b32.xlu1 %v1012_v39, %s7836_s29  ;;  %v1039_v39 = vld [vmem:[#allocation2 + $0xb2] sm:$0xff] }
  0xb5   : > { %2542 = vrot.lane.b32.xlu0 %v1013_v34, %s7836_s29  ;;  %v1041_v34 = vld [vmem:[#allocation2 + $0xca] sm:$0xff] }
  0xb6   : > { %v1159_v38 = vpack.c.bf16 %v1042_v35, %v1041_v34  ;;  %v1168_v34 = vpack.c.bf16 %v1060_v59, %v1059_v58  ;;  %v1079_v58 = vld [vmem:[#allocation2 + $0x242] sm:$0xff]  ;;  %v1080_v59 = vld [vmem:[#allocation2 + $0x24a] sm:$0xff] }
  0xb7   : > { %v8387_v45 = vpop.permute.xlu0 %2430  ;;  %2544 = vrot.lane.b32.xlu1 %v1014_v46, %s7836_s29 }
  0xb9   : > { %2546 = vrot.lane.b32.xlu0 %v1015_v40, %s7836_s29  ;;  %v8395_v1 = vpop.permute.xlu1 %2434  ;;  %v1040_v40 = vld [vmem:[#allocation2 + $0xba] sm:$0xff] }
  0xba   : > { %v1158_v46 = vpack.c.bf16 %v1040_v40, %v1039_v39  ;;  %v1069_v40 = vld [vmem:[#allocation2 + $0x1e2] sm:$0xff] }
  0xbb   : > { %v8391_v52 = vpop.permute.xlu0 %2432  ;;  %2548 = vrot.lane.b32.xlu1 %v1016_v57, %s7836_s29  ;;  %v1050_v57 = vld [vmem:[#allocation2 + $0x122] sm:$0xff] }
  0xbc   : > { %v1163_v62 = vpack.c.bf16 %v1050_v57, %v1049_v51  ;;  %v1073_v57 = vld [vmem:[#allocation2 + $0x20a] sm:$0xff] }
  0xbd   : > { %2550 = vrot.lane.b32.xlu0 %v1017_v47, %s7836_s29  ;;  %v8401_v10 = vpop.permute.xlu1 %2436  ;;  %v1161_v47 = vpack.c.bf16 %v1046_v43, %v1045_v42  ;;  %v1070_v42 = vld [vmem:[#allocation2 + $0x1ea] sm:$0xff] }
  0xbf   : > { %v8397_v5 = vpop.permute.xlu0 %2438  ;;  %2552 = vrot.lane.b32.xlu1 %v1018_v6, %s7836_s29 }
  0xc0   : > { %12445 = vst [vmem:[#allocation6_spill] sm:$0xff] %v8397_v5 }
  0xc1   : > { %2554 = vrot.lane.b32.xlu0 %v1019_v60, %s7836_s29  ;;  %v8407_v15 = vpop.permute.xlu1 %2440 }
  0xc2   : > { %12447 = vst [vmem:[#allocation8_spill] sm:$0xff] %v8407_v15  ;;  %v1659_v15 = vld [vmem:[#allocation2 + $0x292] sm:$0xff] }
  0xc3   : > { %v8403_v54 = vpop.permute.xlu0 %2442  ;;  %2556 = vrot.lane.b32.xlu1 %v1020_v63, %s7836_s29  ;;  %v1051_v63 = vld [vmem:[#allocation2 + $0x12a] sm:$0xff]  ;;  %s7845_s29 = smov 16  }
  0xc4   : > { %12446 = vst [vmem:[#allocation7_spill] sm:$0xff] %v8403_v54 }
  0xc5   : > { %2622 = vrot.lane.b32.xlu0 %v1149_v7, %s7837_s30  ;;  %v8413_v20 = vpop.permute.xlu1 %2444  ;;  %v1053_v7 = vld [vmem:[#allocation2 + $0x142] sm:$0xff] }
  0xc6   : > { %12449 = vst [vmem:[#allocation10_spill] sm:$0xff] %v8413_v20  ;;  %v1165_v53 = vpack.c.bf16 %v1054_v8, %v1053_v7  ;;  %v1071_v7 = vld [vmem:[#allocation2 + $0x1f2] sm:$0xff]  ;;  %v1072_v8 = vld [vmem:[#allocation2 + $0x1fa] sm:$0xff]  ;;  %v1527_v20 = vld [vmem:[#allocation2 + $0x4e9] sm:$0xff] }
  0xc7   : > { %v8409_v0 = vpop.permute.xlu0 %2446  ;;  %2624 = vrot.lane.b32.xlu1 %v1150_v16, %s7837_s30 }
  0xc8   : > { %12448 = vst [vmem:[#allocation9_spill] sm:$0xff] %v8409_v0  ;;  %v1419_v0 = vld [vmem:[#allocation2 + $0xb1] sm:$0xff] }
  0xc9   : > { %2626 = vrot.lane.b32.xlu0 %v1151_v12, %s7837_s30  ;;  %v8419_v28 = vpop.permute.xlu1 %2448  ;;  %v1052_v12 = vld [vmem:[#allocation2 + $0x132] sm:$0xff] }
  0xca   : > { %12451 = vst [vmem:[#allocation12_spill] sm:$0xff] %v8419_v28  ;;  %v1164_v16 = vpack.c.bf16 %v1052_v12, %v1051_v63  ;;  %v1078_v63 = vld [vmem:[#allocation2 + $0x23a] sm:$0xff] }
  0xcb   : > { %v8415_v23 = vpop.permute.xlu0 %2450  ;;  %2628 = vrot.lane.b32.xlu1 %v1152_v24, %s7837_s30  ;;  %v1062_v24 = vld [vmem:[#allocation2 + $0x19a] sm:$0xff] }
  0xcc   : > { %12450 = vst [vmem:[#allocation11_spill] sm:$0xff] %v8415_v23  ;;  %v1169_v27 = vpack.c.bf16 %v1062_v24, %v1061_v22  ;;  %v1082_v22 = vld [vmem:[#allocation2 + $0x262] sm:$0xff] }
  0xcd   : > { %2630 = vrot.lane.b32.xlu0 %v1153_v17, %s7837_s30  ;;  %v8425_v33 = vpop.permute.xlu1 %2452  ;;  %v1167_v17 = vpack.c.bf16 %v1058_v55, %v1057_v14  ;;  %v1174_v14 = vpack.c.bf16 %v1072_v8, %v1071_v7  ;;  %v1093_v8 = vld [vmem:[#allocation2 + $0x2d2] sm:$0xff] }
  0xce   : > { %12453 = vst [vmem:[#allocation14_spill] sm:$0xff] %v8425_v33 }
  0xcf   : > { %v8421_v3 = vpop.permute.xlu0 %2454  ;;  %2632 = vrot.lane.b32.xlu1 %v1154_v29, %s7837_s30 }
  0xd0   : > { %12452 = vst [vmem:[#allocation13_spill] sm:$0xff] %v8421_v3 }
  0xd1   : > { %2634 = vrot.lane.b32.xlu0 %v1155_v25, %s7837_s30  ;;  %v8431_v41 = vpop.permute.xlu1 %2456 }
  0xd2   : > { %12455 = vst [vmem:[#allocation16_spill] sm:$0xff] %v8431_v41  ;;  %v721_v41 = vld [vmem:[#allocation2 + $0x348] sm:$0xff] }
  0xd3   : > { %v8427_v36 = vpop.permute.xlu0 %2458  ;;  %2636 = vrot.lane.b32.xlu1 %v1156_v37, %s7837_s30  ;;  %v1063_v37 = vld [vmem:[#allocation2 + $0x1a2] sm:$0xff] }
  0xd4   : > { %12454 = vst [vmem:[#allocation15_spill] sm:$0xff] %v8427_v36  ;;  %v717_v36 = vld [vmem:[#allocation2 + $0x320] sm:$0xff] }
  0xd5   : > { %2638 = vrot.lane.b32.xlu0 %v1157_v30, %s7837_s30  ;;  %v8437_v50 = vpop.permute.xlu1 %2460  ;;  %v1065_v30 = vld [vmem:[#allocation2 + $0x1ba] sm:$0xff] }
  0xd6   : > { %12457 = vst [vmem:[#allocation18_spill] sm:$0xff] %v8437_v50  ;;  %v1171_v35 = vpack.c.bf16 %v1066_v31, %v1065_v30  ;;  %v1085_v31 = vld [vmem:[#allocation2 + $0x282] sm:$0xff] }
  0xd7   : > { %v8433_v44 = vpop.permute.xlu0 %2462  ;;  %2640 = vrot.lane.b32.xlu1 %v1158_v46, %s7837_s30  ;;  %v714_v50 = vld [vmem:[#allocation2 + $0x300] sm:$0xff] }
  0xd8   : > { %12456 = vst [vmem:[#allocation17_spill] sm:$0xff] %v8433_v44  ;;  %v1239_v44 = vld [vmem:[#allocation2 + $0x128] sm:$0xff] }
  0xd9   : > { %2642 = vrot.lane.b32.xlu0 %v1159_v38, %s7837_s30  ;;  %v8443_v6 = vpop.permute.xlu1 %2464  ;;  %v1064_v38 = vld [vmem:[#allocation2 + $0x1aa] sm:$0xff] }
  0xda   : > { %12459 = vst [vmem:[#allocation20_spill] sm:$0xff] %v8443_v6  ;;  %v1170_v46 = vpack.c.bf16 %v1064_v38, %v1063_v37  ;;  %v1178_v37 = vpack.c.bf16 %v1080_v59, %v1079_v58  ;;  %v1235_v6 = vld [vmem:[#allocation2 + $0x100] sm:$0xff] }
  0xdb   : > { %v8439_v60 = vpop.permute.xlu0 %2466  ;;  %2644 = vrot.lane.b32.xlu1 %v1160_v61, %s7837_s30  ;;  %v1074_v61 = vld [vmem:[#allocation2 + $0x212] sm:$0xff] }
  0xdc   : > { %12458 = vst [vmem:[#allocation19_spill] sm:$0xff] %v8439_v60  ;;  %v1175_v4 = vpack.c.bf16 %v1074_v61, %v1073_v57 }
  0xdd   : > { %2646 = vrot.lane.b32.xlu0 %v1161_v47, %s7837_s30  ;;  %v8449_v13 = vpop.permute.xlu1 %2468  ;;  %v1173_v47 = vpack.c.bf16 %v1070_v42, %v1069_v40  ;;  %v1083_v40 = vld [vmem:[#allocation2 + $0x26a] sm:$0xff]  ;;  %v1084_v42 = vld [vmem:[#allocation2 + $0x272] sm:$0xff] }
  0xde   : > { %12461 = vst [vmem:[#allocation22_spill] sm:$0xff] %v8449_v13  ;;  %v1180_v57 = vpack.c.bf16 %v1084_v42, %v1083_v40  ;;  %v1102_v40 = vld [vmem:[#allocation2 + $0x32a] sm:$0xff] }
  0xdf   : > { %v8445_v9 = vpop.permute.xlu0 %2470  ;;  %2648 = vrot.lane.b32.xlu1 %v1162_v11, %s7837_s30  ;;  %v1227_v13 = vld [vmem:[#allocation2 + $0xb0] sm:$0xff] }
  0xe0   : > { %12460 = vst [vmem:[#allocation21_spill] sm:$0xff] %v8445_v9 }
  0xe1   : > { %2650 = vrot.lane.b32.xlu0 %v1163_v62, %s7837_s30  ;;  %v8455_v21 = vpop.permute.xlu1 %2472 }
  0xe2   : > { %12463 = vst [vmem:[#allocation24_spill] sm:$0xff] %v8455_v21 }
  0xe3   : > { %v8451_v56 = vpop.permute.xlu0 %2474  ;;  %2652 = vrot.lane.b32.xlu1 %v1164_v16, %s7837_s30  ;;  %v1075_v16 = vld [vmem:[#allocation2 + $0x21a] sm:$0xff] }
  0xe4   : > { %12462 = vst [vmem:[#allocation23_spill] sm:$0xff] %v8451_v56 }
  0xe5   : > { %2654 = vrot.lane.b32.xlu0 %v1165_v53, %s7837_s30  ;;  %v8461_v29 = vpop.permute.xlu1 %2476  ;;  %v1077_v53 = vld [vmem:[#allocation2 + $0x232] sm:$0xff] }
  0xe6   : > { %12465 = vst [vmem:[#allocation26_spill] sm:$0xff] %v8461_v29  ;;  %v1177_v55 = vpack.c.bf16 %v1078_v63, %v1077_v53  ;;  %v1094_v53 = vld [vmem:[#allocation2 + $0x2da] sm:$0xff] }
  0xe7   : > { %v8457_v25 = vpop.permute.xlu0 %2478  ;;  %2656 = vrot.lane.b32.xlu1 %v1166_v26, %s7837_s30 }
  0xe8   : > { %12464 = vst [vmem:[#allocation25_spill] sm:$0xff] %v8457_v25 }
  0xe9   : > { %2658 = vrot.lane.b32.xlu0 %v1167_v17, %s7837_s30  ;;  %v8467_v39 = vpop.permute.xlu1 %2480  ;;  %v1076_v17 = vld [vmem:[#allocation2 + $0x222] sm:$0xff] }
  0xea   : > { %12467 = vst [vmem:[#allocation28_spill] sm:$0xff] %v8467_v39  ;;  %v1176_v26 = vpack.c.bf16 %v1076_v17, %v1075_v16  ;;  %v1091_v16 = vld [vmem:[#allocation2 + $0x2ba] sm:$0xff]  ;;  %v1092_v17 = vld [vmem:[#allocation2 + $0x2c2] sm:$0xff] }
  0xeb   : > { %v8463_v32 = vpop.permute.xlu0 %2482  ;;  %2660 = vrot.lane.b32.xlu1 %v1168_v34, %s7837_s30  ;;  %v1086_v34 = vld [vmem:[#allocation2 + $0x28a] sm:$0xff]  ;;  %v1184_v58 = vpack.c.bf16 %v1092_v17, %v1091_v16  ;;  %v1103_v16 = vld [vmem:[#allocation2 + $0x332] sm:$0xff]  ;;  %v1104_v17 = vld [vmem:[#allocation2 + $0x33a] sm:$0xff] }
  0xec   : > { %12466 = vst [vmem:[#allocation27_spill] sm:$0xff] %v8463_v32  ;;  %v1181_v38 = vpack.c.bf16 %v1086_v34, %v1085_v31  ;;  %v1095_v31 = vld [vmem:[#allocation2 + $0x2e2] sm:$0xff]  ;;  %v1096_v34 = vld [vmem:[#allocation2 + $0x2ea] sm:$0xff]  ;;  %v1123_v39 = vld [vmem:[#allocation2 + $0x3fa] sm:$0xff] }
  0xed   : > { %2662 = vrot.lane.b32.xlu0 %v1169_v27, %s7837_s30  ;;  %v8473_v51 = vpop.permute.xlu1 %2484  ;;  %v1179_v27 = vpack.c.bf16 %v1082_v22, %v1081_v19  ;;  %v1097_v22 = vld [vmem:[#allocation2 + $0x2fa] sm:$0xff] }
  0xee   : > { %12469 = vst [vmem:[#allocation30_spill] sm:$0xff] %v8473_v51  ;;  %v1119_v51 = vld [vmem:[#allocation2 + $0x3d2] sm:$0xff] }
  0xef   : > { %v8469_v43 = vpop.permute.xlu0 %2486  ;;  %2664 = vrot.lane.b32.xlu1 %v1170_v46, %s7837_s30 }
  0xf0   : > { %12468 = vst [vmem:[#allocation29_spill] sm:$0xff] %v8469_v43 }
  0xf1   : > { %2666 = vrot.lane.b32.xlu0 %v1171_v35, %s7837_s30  ;;  %v8479_v11 = vpop.permute.xlu1 %2488 }
  0xf2   : > { %12471 = vst [vmem:[#allocation32_spill] sm:$0xff] %v8479_v11  ;;  %v1115_v11 = vld [vmem:[#allocation2 + $0x3aa] sm:$0xff] }
  0xf3   : > { %v8475_v62 = vpop.permute.xlu0 %2490  ;;  %2668 = vrot.lane.b32.xlu1 %v1172_v2, %s7837_s30  ;;  %v1087_v2 = vld [vmem:[#allocation2 + $0x292] sm:$0xff] }
  0xf4   : > { %12470 = vst [vmem:[#allocation31_spill] sm:$0xff] %v8475_v62 }
  0xf5   : > { %2670 = vrot.lane.b32.xlu0 %v1173_v47, %s7837_s30  ;;  %v8485_v18 = vpop.permute.xlu1 %2492  ;;  %v1089_v47 = vld [vmem:[#allocation2 + $0x2aa] sm:$0xff] }
  0xf6   : > { %12472 = vst [vmem:[#allocation33_spill] sm:$0xff] %v8485_v18  ;;  %v1183_v61 = vpack.c.bf16 %v1090_v48, %v1089_v47  ;;  %v1186_v47 = vpack.c.bf16 %v1096_v34, %v1095_v31  ;;  %v1190_v31 = vpack.c.bf16 %v1104_v17, %v1103_v16  ;;  %v1111_v18 = vld [vmem:[#allocation2 + $0x382] sm:$0xff]  ;;  %v1118_v17 = vld [vmem:[#allocation2 + $0x3ca] sm:$0xff] }
  0xf7   : > { %v8481_v12 = vpop.permute.xlu0 %2494  ;;  %2672 = vrot.lane.b32.xlu1 %v1174_v14, %s7837_s30 }
  0xf9   : > { %2674 = vrot.lane.b32.xlu0 %v1175_v4, %s7837_s30  ;;  %v8491_v30 = vpop.permute.xlu1 %2496  ;;  %v1088_v4 = vld [vmem:[#allocation2 + $0x29a] sm:$0xff] }
  0xfa   : > { %v1182_v14 = vpack.c.bf16 %v1088_v4, %v1087_v2  ;;  %v1105_v4 = vld [vmem:[#allocation2 + $0x34a] sm:$0xff] }
  0xfb   : > { %v8487_v24 = vpop.permute.xlu0 %2498  ;;  %2676 = vrot.lane.b32.xlu1 %v1176_v26, %s7837_s30  ;;  %v1098_v26 = vld [vmem:[#allocation2 + $0x302] sm:$0xff] }
  0xfc   : > { %v1187_v59 = vpack.c.bf16 %v1098_v26, %v1097_v22  ;;  %v1109_v26 = vld [vmem:[#allocation2 + $0x372] sm:$0xff] }
  0xfd   : > { %2678 = vrot.lane.b32.xlu0 %v1177_v55, %s7837_s30  ;;  %v8497_v46 = vpop.permute.xlu1 %2500  ;;  %v1185_v55 = vpack.c.bf16 %v1094_v53, %v1093_v8  ;;  %v1106_v8 = vld [vmem:[#allocation2 + $0x352] sm:$0xff] }
  0xfe   : > { %12474 = vst [vmem:[#allocation35_spill] sm:$0xff] %v8497_v46  ;;  %v1982_v46 = vld [vmem:[#allocation2 + $0x51] sm:$0xff] }
  0xff   : > { %v8493_v35 = vpop.permute.xlu0 %2502  ;;  %2680 = vrot.lane.b32.xlu1 %v1178_v37, %s7837_s30 }
 0x100   : > { %12473 = vst [vmem:[#allocation34_spill] sm:$0xff] %v8493_v35  ;;  %v1627_v35 = vld [vmem:[#allocation2 + $0x152] sm:$0xff] }
 0x101   : > { %2682 = vrot.lane.b32.xlu0 %v1179_v27, %s7837_s30  ;;  %v8503_v7 = vpop.permute.xlu1 %2504 }
 0x102   : > { %12476 = vst [vmem:[#allocation37_spill] sm:$0xff] %v8503_v7  ;;  %v1622_v7 = vld [vmem:[#allocation2 + $0x122] sm:$0xff] }
 0x103   : > { %v8499_v49 = vpop.permute.xlu0 %2506  ;;  %2684 = vrot.lane.b32.xlu1 %v1180_v57, %s7837_s30  ;;  %v1099_v57 = vld [vmem:[#allocation2 + $0x30a] sm:$0xff] }
 0x104   : > { %12475 = vst [vmem:[#allocation36_spill] sm:$0xff] %v8499_v49 }
 0x105   : > { %2686 = vrot.lane.b32.xlu0 %v1181_v38, %s7837_s30  ;;  %v8509_v19 = vpop.permute.xlu1 %2508  ;;  %v1101_v38 = vld [vmem:[#allocation2 + $0x322] sm:$0xff] }
 0x106   : > { %12478 = vst [vmem:[#allocation39_spill] sm:$0xff] %v8509_v19  ;;  %v1189_v48 = vpack.c.bf16 %v1102_v40, %v1101_v38  ;;  %v1107_v38 = vld [vmem:[#allocation2 + $0x35a] sm:$0xff]  ;;  %v1108_v40 = vld [vmem:[#allocation2 + $0x362] sm:$0xff] }
 0x107   : > { %v8505_v63 = vpop.permute.xlu0 %2510  ;;  %2688 = vrot.lane.b32.xlu1 %v1182_v14, %s7837_s30 }
 0x108   : > { %12477 = vst [vmem:[#allocation38_spill] sm:$0xff] %v8505_v63 }
 0x109   : > { %2690 = vrot.lane.b32.xlu0 %v1183_v61, %s7837_s30  ;;  %v8515_v37 = vpop.permute.xlu1 %2512  ;;  %v1100_v61 = vld [vmem:[#allocation2 + $0x312] sm:$0xff] }
 0x10a   : > { %12480 = vst [vmem:[#allocation41_spill] sm:$0xff] %v8515_v37  ;;  %v1188_v14 = vpack.c.bf16 %v1100_v61, %v1099_v57  ;;  %v1114_v57 = vld [vmem:[#allocation2 + $0x3a2] sm:$0xff] }
 0x10b   : > { %v8511_v27 = vpop.permute.xlu0 %2514  ;;  %2692 = vrot.lane.b32.xlu1 %v1184_v58, %s7837_s30  ;;  %v1110_v58 = vld [vmem:[#allocation2 + $0x37a] sm:$0xff] }
 0x10c   : > { %12479 = vst [vmem:[#allocation40_spill] sm:$0xff] %v8511_v27  ;;  %v1193_v34 = vpack.c.bf16 %v1110_v58, %v1109_v26 }
 0x10d   : > { %2694 = vrot.lane.b32.xlu0 %v1185_v55, %s7837_s30  ;;  %v8521_v2 = vpop.permute.xlu1 %2516  ;;  %v1191_v55 = vpack.c.bf16 %v1106_v8, %v1105_v4  ;;  %v1192_v4 = vpack.c.bf16 %v1108_v40, %v1107_v38  ;;  %v1122_v40 = vld [vmem:[#allocation2 + $0x3f2] sm:$0xff] }
 0x10e   : > { %12482 = vst [vmem:[#allocation43_spill] sm:$0xff] %v8521_v2 }
 0x10f   : > { %v8517_v42 = vpop.permute.xlu0 %2518  ;;  %2696 = vrot.lane.b32.xlu1 %v1186_v47, %s7837_s30 }
 0x110   : > { %12481 = vst [vmem:[#allocation42_spill] sm:$0xff] %v8517_v42 }
 0x111   : > { %2698 = vrot.lane.b32.xlu0 %v1187_v59, %s7837_s30  ;;  %v8527_v22 = vpop.permute.xlu1 %2520 }
 0x112   : > { %12484 = vst [vmem:[#allocation45_spill] sm:$0xff] %v8527_v22  ;;  %v718_v22 = vld [vmem:[#allocation2 + $0x328] sm:$0xff] }
 0x113   : > { %v8523_v53 = vpop.permute.xlu0 %2522  ;;  %2700 = vrot.lane.b32.xlu1 %v1188_v14, %s7837_s30  ;;  %v1112_v14 = vld [vmem:[#allocation2 + $0x38a] sm:$0xff] }
 0x114   : > { %12483 = vst [vmem:[#allocation44_spill] sm:$0xff] %v8523_v53  ;;  %v1194_v58 = vpack.c.bf16 %v1112_v14, %v1111_v18  ;;  %v1126_v14 = vld [vmem:[#allocation2 + $0x41a] sm:$0xff] }
 0x115   : > { %2702 = vrot.lane.b32.xlu0 %v1189_v48, %s7837_s30  ;;  %v8533_v47 = vpop.permute.xlu1 %2524  ;;  %v1113_v48 = vld [vmem:[#allocation2 + $0x39a] sm:$0xff] }
 0x116   : > { %12486 = vst [vmem:[#allocation47_spill] sm:$0xff] %v8533_v47  ;;  %v1195_v8 = vpack.c.bf16 %v1114_v57, %v1113_v48  ;;  %v1243_v47 = vld [vmem:[#allocation2 + $0x150] sm:$0xff] }
 0x117   : > { %v8529_v59 = vpop.permute.xlu0 %2526  ;;  %2704 = vrot.lane.b32.xlu1 %v1190_v31, %s7837_s30  ;;  %v1116_v31 = vld [vmem:[#allocation2 + $0x3b2] sm:$0xff] }
 0x118   : > { %12485 = vst [vmem:[#allocation46_spill] sm:$0xff] %v8529_v59  ;;  %v1196_v57 = vpack.c.bf16 %v1116_v31, %v1115_v11  ;;  %v1130_v31 = vld [vmem:[#allocation2 + $0x442] sm:$0xff] }
 0x119   : > { %2706 = vrot.lane.b32.xlu0 %v1191_v55, %s7837_s30  ;;  %v8539_v16 = vpop.permute.xlu1 %2528  ;;  %v1117_v55 = vld [vmem:[#allocation2 + $0x3c2] sm:$0xff] }
 0x11a   : > { %12488 = vst [vmem:[#allocation49_spill] sm:$0xff] %v8539_v16  ;;  %v1197_v62 = vpack.c.bf16 %v1118_v17, %v1117_v55  ;;  %v1231_v16 = vld [vmem:[#allocation2 + $0xd8] sm:$0xff] }
 0x11b   : > { %v8535_v61 = vpop.permute.xlu0 %2530  ;;  %2708 = vrot.lane.b32.xlu1 %v1192_v4, %s7837_s30  ;;  %v1120_v4 = vld [vmem:[#allocation2 + $0x3da] sm:$0xff] }
 0x11c   : > { %12487 = vst [vmem:[#allocation48_spill] sm:$0xff] %v8535_v61  ;;  %v1198_v17 = vpack.c.bf16 %v1120_v4, %v1119_v51  ;;  %v1134_v4 = vld [vmem:[#allocation2 + $0x46a] sm:$0xff] }
 0x11d   : > { %2710 = vrot.lane.b32.xlu0 %v1193_v34, %s7837_s30  ;;  %v8545_v38 = vpop.permute.xlu1 %2532  ;;  %v1121_v34 = vld [vmem:[#allocation2 + $0x3ea] sm:$0xff] }
 0x11e   : > { %12490 = vst [vmem:[#allocation51_spill] sm:$0xff] %v8545_v38  ;;  %v1199_v43 = vpack.c.bf16 %v1122_v40, %v1121_v34  ;;  %v1223_v38 = vld [vmem:[#allocation2 + $0x88] sm:$0xff] }
 0x11f   : > { %v8541_v26 = vpop.permute.xlu0 %2534  ;;  %2712 = vrot.lane.b32.xlu1 %v1194_v58, %s7837_s30  ;;  %v1124_v58 = vld [vmem:[#allocation2 + $0x402] sm:$0xff] }
 0x120   : > { %12489 = vst [vmem:[#allocation50_spill] sm:$0xff] %v8541_v26  ;;  %v1200_v40 = vpack.c.bf16 %v1124_v58, %v1123_v39  ;;  %v1132_v39 = vld [vmem:[#allocation2 + $0x452] sm:$0xff] }
 0x121   : > { %2714 = vrot.lane.b32.xlu0 %v1195_v8, %s7837_s30  ;;  %v8551_v18 = vpop.permute.xlu1 %2536  ;;  %v1125_v8 = vld [vmem:[#allocation2 + $0x412] sm:$0xff] }
 0x122   : > { %12492 = vst [vmem:[#allocation53_spill] sm:$0xff] %v8551_v18  ;;  %v1127_v18 = vld [vmem:[#allocation2 + $0x422] sm:$0xff] }
 0x123   : > { %v8547_v48 = vpop.permute.xlu0 %2538  ;;  %2716 = vrot.lane.b32.xlu1 %v1196_v57, %s7837_s30  ;;  %v1128_v57 = vld [vmem:[#allocation2 + $0x42a] sm:$0xff] }
 0x124   : > { %12491 = vst [vmem:[#allocation52_spill] sm:$0xff] %v8547_v48  ;;  %v1201_v48 = vpack.c.bf16 %v1126_v14, %v1125_v8  ;;  %v1202_v14 = vpack.c.bf16 %v1128_v57, %v1127_v18  ;;  %v1136_v18 = vld [vmem:[#allocation2 + $0x47a] sm:$0xff] }
 0x125   : > { %2718 = vrot.lane.b32.xlu0 %v1197_v62, %s7837_s30  ;;  %v8557_v11 = vpop.permute.xlu1 %2540  ;;  %v1129_v62 = vld [vmem:[#allocation2 + $0x43a] sm:$0xff] }
 0x126   : > { %12494 = vst [vmem:[#allocation55_spill] sm:$0xff] %v8557_v11  ;;  %v7424_v11 = vld [vmem:[%s8092_s28 + $0x1f0] sm:$0xff]  }
 0x127   : > { %v8553_v55 = vpop.permute.xlu0 %2542  ;;  %2720 = vrot.lane.b32.xlu1 %v1198_v17, %s7837_s30  ;;  %v1131_v17 = vld [vmem:[#allocation2 + $0x44a] sm:$0xff]  ;;  %v7352_v57 = vunpack.c.l.bf16 %v7424_v11 }
 0x128   : > { %12493 = vst [vmem:[#allocation54_spill] sm:$0xff] %v8553_v55  ;;  %v1203_v55 = vpack.c.bf16 %v1130_v31, %v1129_v62  ;;  %v1138_v62 = vld [vmem:[#allocation2 + $0x492] sm:$0xff] }
 0x129   : > { %2722 = vrot.lane.b32.xlu0 %v1199_v43, %s7837_s30  ;;  %v8563_v51 = vpop.permute.xlu1 %2544  ;;  %v1133_v43 = vld [vmem:[#allocation2 + $0x462] sm:$0xff]  ;;  %633 = vst.msk [vmem:[#allocation2 + $0x501] sm:$0xff] %vm239_vm1, %v7352_v57 }
 0x12a   : > { %12496 = vst [vmem:[#allocation57_spill] sm:$0xff] %v8563_v51  ;;  %v1204_v51 = vpack.c.bf16 %v1132_v39, %v1131_v17  ;;  %v1139_v17 = vld [vmem:[#allocation2 + $0x49a] sm:$0xff]  ;;  %v1140_v39 = vld [vmem:[#allocation2 + $0x4a2] sm:$0xff] }
 0x12b   : > { %v8559_v34 = vpop.permute.xlu0 %2546  ;;  %2724 = vrot.lane.b32.xlu1 %v1200_v40, %s7837_s30  ;;  %v1135_v40 = vld [vmem:[#allocation2 + $0x472] sm:$0xff]  ;;  %v1208_v57 = vpack.c.bf16 %v1140_v39, %v1139_v17 }
 0x12c   : > { %12495 = vst [vmem:[#allocation56_spill] sm:$0xff] %v8559_v34  ;;  %v1205_v34 = vpack.c.bf16 %v1134_v4, %v1133_v43  ;;  %v1141_v4 = vld [vmem:[#allocation2 + $0x4b2] sm:$0xff] }
 0x12d   : > { %2726 = vrot.lane.b32.xlu0 %v1201_v48, %s7837_s30  ;;  %v8569_v58 = vpop.permute.xlu1 %2548  ;;  %v1137_v48 = vld [vmem:[#allocation2 + $0x48a] sm:$0xff]  ;;  %v1148_v17 = vld [vmem:[#allocation2 + $0x4f2] sm:$0xff] }
 0x12e   : > { %12498 = vst [vmem:[#allocation59_spill] sm:$0xff] %v8569_v58  ;;  %v1142_v58 = vld [vmem:[#allocation2 + $0x4ba] sm:$0xff] }
 0x12f   : > { %v8565_v8 = vpop.permute.xlu0 %2550  ;;  %2728 = vrot.lane.b32.xlu1 %v1202_v14, %s7837_s30  ;;  %v1206_v14 = vpack.c.bf16 %v1136_v18, %v1135_v40  ;;  %v1143_v40 = vld [vmem:[#allocation2 + $0x4c2] sm:$0xff] }
 0x130   : > { %12497 = vst [vmem:[#allocation58_spill] sm:$0xff] %v8565_v8  ;;  %v1207_v8 = vpack.c.bf16 %v1138_v62, %v1137_v48  ;;  %v1145_v48 = vld [vmem:[#allocation2 + $0x4da] sm:$0xff]  ;;  %v1146_v62 = vld [vmem:[#allocation2 + $0x4e2] sm:$0xff] }
 0x131   : > { %2730 = vrot.lane.b32.xlu0 %v1203_v55, %s7837_s30  ;;  %v7353_v55 = vunpack.c.h.bf16 %v7424_v11  ;;  %v8576_v43 = vpop.permute.xlu1 %2552  ;;  %v1213_v18 = vld [vmem:[#allocation2 + $0x28] sm:$0xff] }
 0x132   : > { %12500 = vst [vmem:[#allocation61_spill] sm:$0xff] %v8576_v43  ;;  %v7425_v43 = vld [vmem:[%s8092_s28 + $0x1f8] sm:$0xff]   ;;  %s163_s28 = scalar_lea.vmem [#allocation3], %s7021_s26 }
 0x133   : > { %v8571_v31 = vpop.permute.xlu0 %2554  ;;  %634 = vst.msk [vmem:[#allocation2 + $0x509] sm:$0xff] %vm239_vm1, %v7353_v55  ;;  %2732 = vrot.lane.b32.xlu1 %v1204_v51, %s7837_s30  ;;  %v7356_v32 = vunpack.c.l.bf16 %v7425_v43  ;;  %v7357_v55 = vunpack.c.h.bf16 %v7425_v43  ;;  %v1211_v51 = vpack.c.bf16 %v1146_v62, %v1145_v48  ;;  %v1217_v48 = vld [vmem:[#allocation2 + $0x50] sm:$0xff]  ;;  %v1218_v62 = vld [vmem:[#allocation2 + $0x58] sm:$0xff] }
 0x134   : > { %12499 = vst [vmem:[#allocation60_spill] sm:$0xff] %v8571_v31 }
 0x135   : > { %2734 = vrot.lane.b32.xlu0 %v1205_v34, %s7837_s30  ;;  %v1209_v34 = vpack.c.bf16 %v1142_v58, %v1141_v4  ;;  %v8584_v11 = vpop.permute.xlu1 %2556  ;;  %v1214_v4 = vld [vmem:[#allocation2 + $0x30] sm:$0xff]  ;;  %635 = vst.msk [vmem:[#allocation2 + $0x511] sm:$0xff] %vm239_vm1, %v7356_v32  ;;  %636 = vst.msk [vmem:[#allocation2 + $0x519] sm:$0xff] %vm239_vm1, %v7357_v55  ;;  %v1343_v55 = vpack.c.bf16 %v1218_v62, %v1217_v48  ;;  %v1226_v48 = vld [vmem:[#allocation2 + $0xa8] sm:$0xff] }
 0x136   : > { %12501 = vst [vmem:[#allocation62_spill] sm:$0xff] %v8584_v11  ;;  %v1341_v43 = vpack.c.bf16 %v1214_v4, %v1213_v18  ;;  %v1222_v18 = vld [vmem:[#allocation2 + $0x80] sm:$0xff] }
 0x137   : > { %v8578_v26 = vpop.permute.xlu0 %2622  ;;  %2736 = vrot.lane.b32.xlu1 %v1206_v14, %s7837_s30 }
 0x139   : > { %2738 = vrot.lane.b32.xlu0 %v1207_v8, %s7837_s30  ;;  %v1144_v8 = vld [vmem:[#allocation2 + $0x4ca] sm:$0xff]  ;;  %v8591_v58 = vpop.permute.xlu1 %2624 }
 0x13a   : > { %v1210_v14 = vpack.c.bf16 %v1144_v8, %v1143_v40  ;;  %v1216_v40 = vld [vmem:[#allocation2 + $0x40] sm:$0xff] }
 0x13b   : > { %v8586_v31 = vpop.permute.xlu0 %2626  ;;  %2740 = vrot.lane.b32.xlu1 %v1208_v57, %s7837_s30  ;;  %v1215_v57 = vld [vmem:[#allocation2 + $0x38] sm:$0xff] }
 0x13c   : > { %v1342_v25 = vpack.c.bf16 %v1216_v40, %v1215_v57  ;;  %v1230_v40 = vld [vmem:[#allocation2 + $0xd0] sm:$0xff]  ;;  %v1340_v37 = vld [vmem:[#allocation2 + $0x518] sm:$0xff] }
 0x13d   : > { %2742 = vrot.lane.b32.xlu0 %v1209_v34, %s7837_s30  ;;  %v1147_v34 = vld [vmem:[#allocation2 + $0x4ea] sm:$0xff]  ;;  %v8599_v39 = vpop.permute.xlu1 %2628 }
 0x13e   : > { %v1212_v32 = vpack.c.bf16 %v1148_v17, %v1147_v34  ;;  %v1220_v34 = vld [vmem:[#allocation2 + $0x68] sm:$0xff] }
 0x13f   : > { %v8595_v11 = vpop.permute.xlu0 %2630  ;;  %2744 = vrot.lane.b32.xlu1 %v1210_v14, %s7837_s30  ;;  %v1219_v14 = vld [vmem:[#allocation2 + $0x60] sm:$0xff] }
 0x140   : > { %12502 = vst [vmem:[#allocation63_spill] sm:$0xff] %v8595_v11  ;;  %v1344_v56 = vpack.c.bf16 %v1220_v34, %v1219_v14  ;;  %v1234_v34 = vld [vmem:[#allocation2 + $0xf8] sm:$0xff]  ;;  %v1790_v11 = vld [vmem:[#allocation2 + $0x50] sm:$0xff] }
 0x141   : > { %2746 = vrot.lane.b32.xlu0 %v1211_v51, %s7837_s30  ;;  %v8605_v8 = vpop.permute.xlu1 %2632  ;;  %v1221_v51 = vld [vmem:[#allocation2 + $0x78] sm:$0xff] }
 0x142   : > { %12504 = vst [vmem:[#allocation65_spill] sm:$0xff] %v8605_v8  ;;  %v1345_v21 = vpack.c.bf16 %v1222_v18, %v1221_v51  ;;  %v1655_v8 = vld [vmem:[#allocation2 + $0x26a] sm:$0xff] }
 0x143   : > { %v8601_v29 = vpop.permute.xlu0 %2634  ;;  %2748 = vrot.lane.b32.xlu1 %v1212_v32, %s7837_s30  ;;  %v1224_v32 = vld [vmem:[#allocation2 + $0x90] sm:$0xff]  ;;  %s7846_s30 = smov 8  }
 0x144   : > { %12503 = vst [vmem:[#allocation64_spill] sm:$0xff] %v8601_v29  ;;  %v1346_v18 = vpack.c.bf16 %v1224_v32, %v1223_v38  ;;  %v1238_v32 = vld [vmem:[#allocation2 + $0x120] sm:$0xff] }
 0x145   : > { %2814 = vrot.lane.b32.xlu0 %v1341_v43, %s7838_s4  ;;  %v8611_v17 = vpop.permute.xlu1 %2636  ;;  %v1225_v43 = vld [vmem:[#allocation2 + $0xa0] sm:$0xff] }
 0x146   : > { %12506 = vst [vmem:[#allocation67_spill] sm:$0xff] %v8611_v17  ;;  %v1347_v9 = vpack.c.bf16 %v1226_v48, %v1225_v43  ;;  %v1488_v17 = vld [vmem:[#allocation2 + $0x361] sm:$0xff] }
 0x147   : > { %v8607_v4 = vpop.permute.xlu0 %2638  ;;  %2816 = vrot.lane.b32.xlu1 %v1342_v25, %s7838_s4  ;;  %v1228_v25 = vld [vmem:[#allocation2 + $0xb8] sm:$0xff] }
 0x148   : > { %12505 = vst [vmem:[#allocation66_spill] sm:$0xff] %v8607_v4  ;;  %v1348_v48 = vpack.c.bf16 %v1228_v25, %v1227_v13  ;;  %v1242_v25 = vld [vmem:[#allocation2 + $0x148] sm:$0xff] }
 0x149   : > { %2818 = vrot.lane.b32.xlu0 %v1343_v55, %s7838_s4  ;;  %v8617_v57 = vpop.permute.xlu1 %2640  ;;  %v1229_v55 = vld [vmem:[#allocation2 + $0xc8] sm:$0xff] }
 0x14a   : > { %12508 = vst [vmem:[#allocation69_spill] sm:$0xff] %v8617_v57  ;;  %v1349_v61 = vpack.c.bf16 %v1230_v40, %v1229_v55  ;;  %v1415_v4 = vld [vmem:[#allocation2 + $0x89] sm:$0xff] }
 0x14b   : > { %v8613_v62 = vpop.permute.xlu0 %2642  ;;  %2820 = vrot.lane.b32.xlu1 %v1344_v56, %s7838_s4  ;;  %v1232_v56 = vld [vmem:[#allocation2 + $0xe0] sm:$0xff] }
 0x14c   : > { %12507 = vst [vmem:[#allocation68_spill] sm:$0xff] %v8613_v62  ;;  %v1350_v40 = vpack.c.bf16 %v1232_v56, %v1231_v16  ;;  %v1246_v56 = vld [vmem:[#allocation2 + $0x170] sm:$0xff] }
 0x14d   : > { %2822 = vrot.lane.b32.xlu0 %v1345_v21, %s7838_s4  ;;  %v8623_v14 = vpop.permute.xlu1 %2644  ;;  %v1233_v21 = vld [vmem:[#allocation2 + $0xf0] sm:$0xff] }
 0x14e   : > { %12510 = vst [vmem:[#allocation71_spill] sm:$0xff] %v8623_v14  ;;  %v1351_v60 = vpack.c.bf16 %v1234_v34, %v1233_v21  ;;  %v729_v14 = vld [vmem:[#allocation2 + $0x398] sm:$0xff] }
 0x14f   : > { %v8619_v51 = vpop.permute.xlu0 %2646  ;;  %2824 = vrot.lane.b32.xlu1 %v1346_v18, %s7838_s4  ;;  %v1236_v18 = vld [vmem:[#allocation2 + $0x108] sm:$0xff] }
 0x150   : > { %12509 = vst [vmem:[#allocation70_spill] sm:$0xff] %v8619_v51  ;;  %v1352_v34 = vpack.c.bf16 %v1236_v18, %v1235_v6  ;;  %v1250_v18 = vld [vmem:[#allocation2 + $0x198] sm:$0xff]  ;;  %v722_v51 = vld [vmem:[#allocation2 + $0x350] sm:$0xff] }
 0x151   : > { %2826 = vrot.lane.b32.xlu0 %v1347_v9, %s7838_s4  ;;  %v8629_v38 = vpop.permute.xlu1 %2648  ;;  %v1237_v9 = vld [vmem:[#allocation2 + $0x118] sm:$0xff] }
 0x152   : > { %12512 = vst [vmem:[#allocation73_spill] sm:$0xff] %v8629_v38  ;;  %v1353_v59 = vpack.c.bf16 %v1238_v32, %v1237_v9 }
 0x153   : > { %v8625_v43 = vpop.permute.xlu0 %2650  ;;  %2828 = vrot.lane.b32.xlu1 %v1348_v48, %s7838_s4  ;;  %v1240_v48 = vld [vmem:[#allocation2 + $0x130] sm:$0xff] }
 0x154   : > { %12511 = vst [vmem:[#allocation72_spill] sm:$0xff] %v8625_v43  ;;  %v1354_v32 = vpack.c.bf16 %v1240_v48, %v1239_v44  ;;  %v1254_v48 = vld [vmem:[#allocation2 + $0x1c0] sm:$0xff] }
 0x155   : > { %2830 = vrot.lane.b32.xlu0 %v1349_v61, %s7838_s4  ;;  %v8635_v13 = vpop.permute.xlu1 %2652  ;;  %v1241_v61 = vld [vmem:[#allocation2 + $0x140] sm:$0xff] }
 0x156   : > { %12514 = vst [vmem:[#allocation75_spill] sm:$0xff] %v8635_v13  ;;  %v713_v13 = vld [vmem:[#allocation2 + $0x2f8] sm:$0xff] }
 0x157   : > { %v8631_v55 = vpop.permute.xlu0 %2654  ;;  %2832 = vrot.lane.b32.xlu1 %v1350_v40, %s7838_s4  ;;  %v1244_v40 = vld [vmem:[#allocation2 + $0x158] sm:$0xff] }
 0x158   : > { %12513 = vst [vmem:[#allocation74_spill] sm:$0xff] %v8631_v55  ;;  %v1355_v55 = vpack.c.bf16 %v1242_v25, %v1241_v61  ;;  %v1356_v25 = vpack.c.bf16 %v1244_v40, %v1243_v47  ;;  %v1258_v40 = vld [vmem:[#allocation2 + $0x1e8] sm:$0xff] }
 0x159   : > { %2834 = vrot.lane.b32.xlu0 %v1351_v60, %s7838_s4  ;;  %v8641_v16 = vpop.permute.xlu1 %2656  ;;  %v1245_v60 = vld [vmem:[#allocation2 + $0x168] sm:$0xff] }
 0x15a   : > { %12516 = vst [vmem:[#allocation77_spill] sm:$0xff] %v8641_v16  ;;  %v1247_v16 = vld [vmem:[#allocation2 + $0x178] sm:$0xff] }
 0x15b   : > { %v8637_v21 = vpop.permute.xlu0 %2658  ;;  %2836 = vrot.lane.b32.xlu1 %v1352_v34, %s7838_s4  ;;  %v1248_v34 = vld [vmem:[#allocation2 + $0x180] sm:$0xff] }
 0x15c   : > { %12515 = vst [vmem:[#allocation76_spill] sm:$0xff] %v8637_v21  ;;  %v1357_v21 = vpack.c.bf16 %v1246_v56, %v1245_v60  ;;  %v1358_v56 = vpack.c.bf16 %v1248_v34, %v1247_v16  ;;  %v1262_v34 = vld [vmem:[#allocation2 + $0x210] sm:$0xff] }
 0x15d   : > { %2838 = vrot.lane.b32.xlu0 %v1353_v59, %s7838_s4  ;;  %v8647_v6 = vpop.permute.xlu1 %2660  ;;  %v1249_v59 = vld [vmem:[#allocation2 + $0x190] sm:$0xff] }
 0x15e   : > { %12518 = vst [vmem:[#allocation79_spill] sm:$0xff] %v8647_v6  ;;  %v1251_v6 = vld [vmem:[#allocation2 + $0x1a0] sm:$0xff] }
 0x15f   : > { %v8643_v9 = vpop.permute.xlu0 %2662  ;;  %2840 = vrot.lane.b32.xlu1 %v1354_v32, %s7838_s4  ;;  %v1252_v32 = vld [vmem:[#allocation2 + $0x1a8] sm:$0xff] }
 0x160   : > { %12517 = vst [vmem:[#allocation78_spill] sm:$0xff] %v8643_v9  ;;  %v1359_v9 = vpack.c.bf16 %v1250_v18, %v1249_v59  ;;  %v1360_v18 = vpack.c.bf16 %v1252_v32, %v1251_v6  ;;  %v1266_v32 = vld [vmem:[#allocation2 + $0x238] sm:$0xff] }
 0x161   : > { %2842 = vrot.lane.b32.xlu0 %v1355_v55, %s7838_s4  ;;  %v8653_v44 = vpop.permute.xlu1 %2664  ;;  %v1253_v55 = vld [vmem:[#allocation2 + $0x1b8] sm:$0xff] }
 0x162   : > { %12520 = vst [vmem:[#allocation81_spill] sm:$0xff] %v8653_v44  ;;  %v1255_v44 = vld [vmem:[#allocation2 + $0x1c8] sm:$0xff] }
 0x163   : > { %v8649_v61 = vpop.permute.xlu0 %2666  ;;  %2844 = vrot.lane.b32.xlu1 %v1356_v25, %s7838_s4  ;;  %v1256_v25 = vld [vmem:[#allocation2 + $0x1d0] sm:$0xff] }
 0x164   : > { %12519 = vst [vmem:[#allocation80_spill] sm:$0xff] %v8649_v61  ;;  %v1361_v61 = vpack.c.bf16 %v1254_v48, %v1253_v55  ;;  %v1362_v48 = vpack.c.bf16 %v1256_v25, %v1255_v44  ;;  %v1270_v25 = vld [vmem:[#allocation2 + $0x260] sm:$0xff] }
 0x165   : > { %2846 = vrot.lane.b32.xlu0 %v1357_v21, %s7838_s4  ;;  %v8659_v47 = vpop.permute.xlu1 %2668  ;;  %v1257_v21 = vld [vmem:[#allocation2 + $0x1e0] sm:$0xff] }
 0x166   : > { %12522 = vst [vmem:[#allocation83_spill] sm:$0xff] %v8659_v47  ;;  %v1259_v47 = vld [vmem:[#allocation2 + $0x1f0] sm:$0xff] }
 0x167   : > { %v8655_v60 = vpop.permute.xlu0 %2670  ;;  %2848 = vrot.lane.b32.xlu1 %v1358_v56, %s7838_s4  ;;  %v1260_v56 = vld [vmem:[#allocation2 + $0x1f8] sm:$0xff] }
 0x168   : > { %12521 = vst [vmem:[#allocation82_spill] sm:$0xff] %v8655_v60  ;;  %v1363_v60 = vpack.c.bf16 %v1258_v40, %v1257_v21  ;;  %v1364_v40 = vpack.c.bf16 %v1260_v56, %v1259_v47  ;;  %v1274_v56 = vld [vmem:[#allocation2 + $0x288] sm:$0xff] }
 0x169   : > { %2850 = vrot.lane.b32.xlu0 %v1359_v9, %s7838_s4  ;;  %v8665_v16 = vpop.permute.xlu1 %2672  ;;  %v1261_v9 = vld [vmem:[#allocation2 + $0x208] sm:$0xff] }
 0x16a   : > { %12524 = vst [vmem:[#allocation85_spill] sm:$0xff] %v8665_v16  ;;  %v1263_v16 = vld [vmem:[#allocation2 + $0x218] sm:$0xff] }
 0x16b   : > { %v8661_v59 = vpop.permute.xlu0 %2674  ;;  %2852 = vrot.lane.b32.xlu1 %v1360_v18, %s7838_s4  ;;  %v1264_v18 = vld [vmem:[#allocation2 + $0x220] sm:$0xff] }
 0x16c   : > { %12523 = vst [vmem:[#allocation84_spill] sm:$0xff] %v8661_v59  ;;  %v1365_v59 = vpack.c.bf16 %v1262_v34, %v1261_v9  ;;  %v1366_v34 = vpack.c.bf16 %v1264_v18, %v1263_v16  ;;  %v699_v16 = vld [vmem:[#allocation2 + $0x268] sm:$0xff] }
 0x16d   : > { %2854 = vrot.lane.b32.xlu0 %v1361_v61, %s7838_s4  ;;  %v8671_v6 = vpop.permute.xlu1 %2676  ;;  %v1265_v61 = vld [vmem:[#allocation2 + $0x230] sm:$0xff]  ;;  %v705_v18 = vld [vmem:[#allocation2 + $0x2a8] sm:$0xff] }
 0x16e   : > { %12526 = vst [vmem:[#allocation87_spill] sm:$0xff] %v8671_v6  ;;  %v1267_v6 = vld [vmem:[#allocation2 + $0x240] sm:$0xff] }
 0x16f   : > { %v8667_v55 = vpop.permute.xlu0 %2678  ;;  %2856 = vrot.lane.b32.xlu1 %v1362_v48, %s7838_s4  ;;  %v1268_v48 = vld [vmem:[#allocation2 + $0x248] sm:$0xff] }
 0x170   : > { %12525 = vst [vmem:[#allocation86_spill] sm:$0xff] %v8667_v55  ;;  %v1367_v55 = vpack.c.bf16 %v1266_v32, %v1265_v61  ;;  %v1368_v32 = vpack.c.bf16 %v1268_v48, %v1267_v6 }
 0x171   : > { %2858 = vrot.lane.b32.xlu0 %v1363_v60, %s7838_s4  ;;  %v8677_v44 = vpop.permute.xlu1 %2680  ;;  %v1269_v60 = vld [vmem:[#allocation2 + $0x258] sm:$0xff] }
 0x172   : > { %12528 = vst [vmem:[#allocation89_spill] sm:$0xff] %v8677_v44 }
 0x173   : > { %v8673_v21 = vpop.permute.xlu0 %2682  ;;  %2860 = vrot.lane.b32.xlu1 %v1364_v40, %s7838_s4  ;;  %v700_v40 = vld [vmem:[#allocation2 + $0x270] sm:$0xff] }
 0x174   : > { %12527 = vst [vmem:[#allocation88_spill] sm:$0xff] %v8673_v21  ;;  %v1369_v21 = vpack.c.bf16 %v1270_v25, %v1269_v60  ;;  %v706_v60 = vld [vmem:[#allocation2 + $0x2b0] sm:$0xff]  ;;  %v8695_v25 = vpack.c.bf16 %v700_v40, %v699_v16  ;;  %v707_v40 = vld [vmem:[#allocation2 + $0x2b8] sm:$0xff] }
 0x175   : > { %2862 = vrot.lane.b32.xlu0 %v1365_v59, %s7838_s4  ;;  %v8683_v47 = vpop.permute.xlu1 %2684  ;;  %v1273_v59 = vld [vmem:[#allocation2 + $0x280] sm:$0xff]  ;;  %v8699_v6 = vpack.c.bf16 %v706_v60, %v705_v18 }
 0x176   : > { %12529 = vst [vmem:[#allocation90_spill] sm:$0xff] %v8683_v47  ;;  %v1371_v44 = vpack.c.bf16 %v1274_v56, %v1273_v59  ;;  %12532 = vst [vmem:[#allocation93_spill] sm:$0xff] %v8695_v25  ;;  %v709_v59 = vld [vmem:[#allocation2 + $0x2d0] sm:$0xff]  ;;  %v710_v56 = vld [vmem:[#allocation2 + $0x2d8] sm:$0xff] }
 0x177   : > { %v8679_v9 = vpop.permute.xlu0 %2686  ;;  %2864 = vrot.lane.b32.xlu1 %v1366_v34, %s7838_s4  ;;  %v704_v34 = vld [vmem:[#allocation2 + $0x298] sm:$0xff]  ;;  %v8711_v16 = vpack.c.bf16 %v710_v56, %v709_v59  ;;  %v708_v18 = vld [vmem:[#allocation2 + $0x2c0] sm:$0xff]  ;;  %v712_v56 = vld [vmem:[#allocation2 + $0x2e8] sm:$0xff] }
 0x178   : > { %v711_v59 = vld [vmem:[#allocation2 + $0x2e0] sm:$0xff] }
 0x179   : > { %2866 = vrot.lane.b32.xlu0 %v1367_v55, %s7838_s4  ;;  %v8689_v53 = vpop.permute.xlu1 %2688  ;;  %12536 = vst [vmem:[#allocation97_spill] sm:$0xff] %v8711_v16  ;;  %v8731_v42 = vpack.c.bf16 %v712_v56, %v711_v59  ;;  %v8747_v56 = vpack.c.bf16 %v722_v51, %v721_v41  ;;  %v723_v41 = vld [vmem:[#allocation2 + $0x358] sm:$0xff]  ;;  %v724_v51 = vld [vmem:[#allocation2 + $0x360] sm:$0xff] }
 0x17a   : > { %v8767_v33 = vpack.c.bf16 %v724_v51, %v723_v41 }
 0x17b   : > { %v8685_v61 = vpop.permute.xlu0 %2690  ;;  %2868 = vrot.lane.b32.xlu1 %v1368_v32, %s7838_s4  ;;  %12542 = vst [vmem:[#allocation103_spill] sm:$0xff] %v8731_v42  ;;  %12548 = vst [vmem:[#allocation109_spill] sm:$0xff] %v8747_v56 }
 0x17c   : > { %12530 = vst [vmem:[#allocation91_spill] sm:$0xff] %v8685_v61  ;;  %12554 = vst [vmem:[#allocation115_spill] sm:$0xff] %v8767_v33  ;;  %v1984_v61 = vld [vmem:[#allocation2 + $0x61] sm:$0xff] }
 0x17d   : > { %2870 = vrot.lane.b32.xlu0 %v1369_v21, %s7838_s4  ;;  %v8697_v47 = vpop.permute.xlu1 %2692  ;;  %v703_v21 = vld [vmem:[#allocation2 + $0x290] sm:$0xff] }
 0x17e   : > { %12533 = vst [vmem:[#allocation94_spill] sm:$0xff] %v8697_v47  ;;  %v8707_v32 = vpack.c.bf16 %v704_v34, %v703_v21  ;;  %v8723_v34 = vpack.c.bf16 %v714_v50, %v713_v13  ;;  %v715_v50 = vld [vmem:[#allocation2 + $0x308] sm:$0xff]  ;;  %v716_v13 = vld [vmem:[#allocation2 + $0x310] sm:$0xff] }
 0x17f   : > { %v8691_v55 = vpop.permute.xlu0 %2694  ;;  %2872 = vrot.lane.b32.xlu1 %v8695_v25, %s7838_s4  ;;  %v8719_v25 = vpack.c.bf16 %v708_v18, %v707_v40  ;;  %v8735_v18 = vpack.c.bf16 %v718_v22, %v717_v36  ;;  %v8743_v3 = vpack.c.bf16 %v716_v13, %v715_v50  ;;  %v719_v36 = vld [vmem:[#allocation2 + $0x330] sm:$0xff]  ;;  %v720_v22 = vld [vmem:[#allocation2 + $0x338] sm:$0xff] }
 0x180   : > { %12531 = vst [vmem:[#allocation92_spill] sm:$0xff] %v8691_v55  ;;  %12540 = vst [vmem:[#allocation101_spill] sm:$0xff] %v8723_v34  ;;  %v8755_v27 = vpack.c.bf16 %v720_v22, %v719_v36 }
 0x181   : > { %2874 = vrot.lane.b32.xlu0 %v1371_v44, %s7838_s4  ;;  %v8709_v44 = vpop.permute.xlu1 %2696  ;;  %12538 = vst [vmem:[#allocation99_spill] sm:$0xff] %v8719_v25  ;;  %12544 = vst [vmem:[#allocation105_spill] sm:$0xff] %v8735_v18 }
 0x182   : > { %12535 = vst [vmem:[#allocation96_spill] sm:$0xff] %v8709_v44  ;;  %12546 = vst [vmem:[#allocation107_spill] sm:$0xff] %v8743_v3 }
 0x183   : > { %v8701_v48 = vpop.permute.xlu0 %2698  ;;  %2876 = vrot.lane.b32.xlu1 %v8707_v32, %s7838_s4  ;;  %12550 = vst [vmem:[#allocation111_spill] sm:$0xff] %v8755_v27 }
 0x184   : > { %12534 = vst [vmem:[#allocation95_spill] sm:$0xff] %v8701_v48 }
 0x185   : > { %2878 = vrot.lane.b32.xlu0 %v8699_v6, %s7838_s4  ;;  %v8721_v21 = vpop.permute.xlu1 %2700 }
 0x186   : > { %12539 = vst [vmem:[#allocation100_spill] sm:$0xff] %v8721_v21  ;;  %v1463_v21 = vld [vmem:[#allocation2 + $0x269] sm:$0xff] }
 0x187   : > { %v8713_v60 = vpop.permute.xlu0 %2702  ;;  %2880 = vrot.lane.b32.xlu1 %v8719_v25, %s7838_s4 }
 0x188   : > { %12537 = vst [vmem:[#allocation98_spill] sm:$0xff] %v8713_v60 }
 0x189   : > { %2882 = vrot.lane.b32.xlu0 %v8711_v16, %s7838_s4  ;;  %v8733_v40 = vpop.permute.xlu1 %2704 }
 0x18a   : > { %12543 = vst [vmem:[#allocation104_spill] sm:$0xff] %v8733_v40  ;;  %v763_v40 = vld [vmem:[#allocation2 + $0x4e8] sm:$0xff] }
 0x18b   : > { %v8725_v43 = vpop.permute.xlu0 %2706  ;;  %2884 = vrot.lane.b32.xlu1 %v8731_v42, %s7838_s4  ;;  %v1621_v42 = vld [vmem:[#allocation2 + $0x11a] sm:$0xff] }
 0x18c   : > { %12541 = vst [vmem:[#allocation102_spill] sm:$0xff] %v8725_v43  ;;  %v725_v43 = vld [vmem:[#allocation2 + $0x370] sm:$0xff] }
 0x18d   : > { %2886 = vrot.lane.b32.xlu0 %v8723_v34, %s7838_s4  ;;  %v8745_v59 = vpop.permute.xlu1 %2708 }
 0x18e   : > { %12547 = vst [vmem:[#allocation108_spill] sm:$0xff] %v8745_v59 }
 0x18f   : > { %v8737_v38 = vpop.permute.xlu0 %2710  ;;  %2888 = vrot.lane.b32.xlu1 %v8743_v3, %s7838_s4  ;;  %v1467_v3 = vld [vmem:[#allocation2 + $0x291] sm:$0xff] }
 0x190   : > { %12545 = vst [vmem:[#allocation106_spill] sm:$0xff] %v8737_v38  ;;  %v726_v38 = vld [vmem:[#allocation2 + $0x378] sm:$0xff] }
 0x191   : > { %2890 = vrot.lane.b32.xlu0 %v8735_v18, %s7838_s4  ;;  %v8757_v50 = vpop.permute.xlu1 %2712  ;;  %v8759_v13 = vpack.c.bf16 %v726_v38, %v725_v43  ;;  %v727_v43 = vld [vmem:[#allocation2 + $0x380] sm:$0xff]  ;;  %v728_v38 = vld [vmem:[#allocation2 + $0x388] sm:$0xff] }
 0x192   : > { %12551 = vst [vmem:[#allocation112_spill] sm:$0xff] %v8757_v50  ;;  %v8779_v62 = vpack.c.bf16 %v728_v38, %v727_v43 }
 0x193   : > { %v8749_v2 = vpop.permute.xlu0 %2714  ;;  %12552 = vst [vmem:[#allocation113_spill] sm:$0xff] %v8759_v13  ;;  %2892 = vrot.lane.b32.xlu1 %v8755_v27, %s7838_s4  ;;  %v1339_v27 = vld [vmem:[#allocation2 + $0x510] sm:$0xff] }
 0x194   : > { %12549 = vst [vmem:[#allocation110_spill] sm:$0xff] %v8749_v2  ;;  %v730_v2 = vld [vmem:[#allocation2 + $0x3a0] sm:$0xff]  ;;  %12558 = vst [vmem:[#allocation119_spill] sm:$0xff] %v8779_v62  ;;  %v1404_v60 = vpack.c.bf16 %v1340_v37, %v1339_v27  ;;  %v1412_v27 = vld [vmem:[#allocation2 + $0x69] sm:$0xff] }
 0x195   : > { %2894 = vrot.lane.b32.xlu0 %v8747_v56, %s7838_s4  ;;  %v8769_v36 = vpop.permute.xlu1 %2716  ;;  %v8771_v22 = vpack.c.bf16 %v730_v2, %v729_v14  ;;  %v733_v56 = vld [vmem:[#allocation2 + $0x3c0] sm:$0xff]  ;;  %v731_v2 = vld [vmem:[#allocation2 + $0x3a8] sm:$0xff]  ;;  %v732_v14 = vld [vmem:[#allocation2 + $0x3b0] sm:$0xff] }
 0x196   : > { %12555 = vst [vmem:[#allocation116_spill] sm:$0xff] %v8769_v36 }
 0x197   : > { %v8761_v59 = vpop.permute.xlu0 %2718  ;;  %12556 = vst [vmem:[#allocation117_spill] sm:$0xff] %v8771_v22  ;;  %2896 = vrot.lane.b32.xlu1 %v8767_v33, %s7838_s4  ;;  %v8791_v33 = vpack.c.bf16 %v732_v14, %v731_v2 }
 0x198   : > { %12553 = vst [vmem:[#allocation114_spill] sm:$0xff] %v8761_v59  ;;  %v734_v59 = vld [vmem:[#allocation2 + $0x3c8] sm:$0xff] }
 0x199   : > { %2898 = vrot.lane.b32.xlu0 %v8759_v13, %s7838_s4  ;;  %v8781_v41 = vpop.permute.xlu1 %2720  ;;  %v8783_v51 = vpack.c.bf16 %v734_v59, %v733_v56  ;;  %v737_v13 = vld [vmem:[#allocation2 + $0x3e8] sm:$0xff]  ;;  %12562 = vst [vmem:[#allocation123_spill] sm:$0xff] %v8791_v33  ;;  %v735_v59 = vld [vmem:[#allocation2 + $0x3d0] sm:$0xff]  ;;  %v736_v56 = vld [vmem:[#allocation2 + $0x3d8] sm:$0xff] }
 0x19a   : > { %12559 = vst [vmem:[#allocation120_spill] sm:$0xff] %v8781_v41 }
 0x19b   : > { %v8773_v50 = vpop.permute.xlu0 %2722  ;;  %12560 = vst [vmem:[#allocation121_spill] sm:$0xff] %v8783_v51  ;;  %2900 = vrot.lane.b32.xlu1 %v8779_v62, %s7838_s4  ;;  %v8803_v62 = vpack.c.bf16 %v736_v56, %v735_v59 }
 0x19c   : > { %12557 = vst [vmem:[#allocation118_spill] sm:$0xff] %v8773_v50  ;;  %v738_v50 = vld [vmem:[#allocation2 + $0x3f0] sm:$0xff] }
 0x19d   : > { %2902 = vrot.lane.b32.xlu0 %v8771_v22, %s7838_s4  ;;  %v8793_v43 = vpop.permute.xlu1 %2724  ;;  %v8795_v38 = vpack.c.bf16 %v738_v50, %v737_v13  ;;  %v741_v22 = vld [vmem:[#allocation2 + $0x410] sm:$0xff]  ;;  %12566 = vst [vmem:[#allocation127_spill] sm:$0xff] %v8803_v62  ;;  %v739_v50 = vld [vmem:[#allocation2 + $0x3f8] sm:$0xff]  ;;  %v740_v13 = vld [vmem:[#allocation2 + $0x400] sm:$0xff] }
 0x19e   : > { %12563 = vst [vmem:[#allocation124_spill] sm:$0xff] %v8793_v43 }
 0x19f   : > { %v8785_v36 = vpop.permute.xlu0 %2726  ;;  %12564 = vst [vmem:[#allocation125_spill] sm:$0xff] %v8795_v38  ;;  %2904 = vrot.lane.b32.xlu1 %v8791_v33, %s7838_s4  ;;  %v8815_v33 = vpack.c.bf16 %v740_v13, %v739_v50 }
 0x1a0   : > { %12561 = vst [vmem:[#allocation122_spill] sm:$0xff] %v8785_v36  ;;  %v742_v36 = vld [vmem:[#allocation2 + $0x418] sm:$0xff] }
 0x1a1   : > { %2906 = vrot.lane.b32.xlu0 %v8783_v51, %s7838_s4  ;;  %v8805_v2 = vpop.permute.xlu1 %2728  ;;  %v8807_v14 = vpack.c.bf16 %v742_v36, %v741_v22  ;;  %v745_v51 = vld [vmem:[#allocation2 + $0x438] sm:$0xff]  ;;  %12570 = vst [vmem:[#allocation131_spill] sm:$0xff] %v8815_v33  ;;  %v743_v36 = vld [vmem:[#allocation2 + $0x420] sm:$0xff]  ;;  %v744_v22 = vld [vmem:[#allocation2 + $0x428] sm:$0xff] }
 0x1a2   : > { %12567 = vst [vmem:[#allocation128_spill] sm:$0xff] %v8805_v2 }
 0x1a3   : > { %v8797_v41 = vpop.permute.xlu0 %2730  ;;  %12568 = vst [vmem:[#allocation129_spill] sm:$0xff] %v8807_v14  ;;  %2908 = vrot.lane.b32.xlu1 %v8803_v62, %s7838_s4  ;;  %v8827_v62 = vpack.c.bf16 %v744_v22, %v743_v36 }
 0x1a4   : > { %12565 = vst [vmem:[#allocation126_spill] sm:$0xff] %v8797_v41  ;;  %v746_v41 = vld [vmem:[#allocation2 + $0x440] sm:$0xff] }
 0x1a5   : > { %2910 = vrot.lane.b32.xlu0 %v8795_v38, %s7838_s4  ;;  %v8817_v59 = vpop.permute.xlu1 %2732  ;;  %v8819_v56 = vpack.c.bf16 %v746_v41, %v745_v51  ;;  %v749_v38 = vld [vmem:[#allocation2 + $0x460] sm:$0xff]  ;;  %12574 = vst [vmem:[#allocation135_spill] sm:$0xff] %v8827_v62  ;;  %v747_v41 = vld [vmem:[#allocation2 + $0x448] sm:$0xff]  ;;  %v748_v51 = vld [vmem:[#allocation2 + $0x450] sm:$0xff] }
 0x1a6   : > { %12571 = vst [vmem:[#allocation132_spill] sm:$0xff] %v8817_v59 }
 0x1a7   : > { %v8809_v43 = vpop.permute.xlu0 %2734  ;;  %12572 = vst [vmem:[#allocation133_spill] sm:$0xff] %v8819_v56  ;;  %2912 = vrot.lane.b32.xlu1 %v8815_v33, %s7838_s4  ;;  %v8839_v33 = vpack.c.bf16 %v748_v51, %v747_v41 }
 0x1a8   : > { %12569 = vst [vmem:[#allocation130_spill] sm:$0xff] %v8809_v43  ;;  %v750_v43 = vld [vmem:[#allocation2 + $0x468] sm:$0xff] }
 0x1a9   : > { %2914 = vrot.lane.b32.xlu0 %v8807_v14, %s7838_s4  ;;  %v8829_v50 = vpop.permute.xlu1 %2736  ;;  %v8831_v13 = vpack.c.bf16 %v750_v43, %v749_v38  ;;  %v753_v14 = vld [vmem:[#allocation2 + $0x488] sm:$0xff]  ;;  %12578 = vst [vmem:[#allocation139_spill] sm:$0xff] %v8839_v33  ;;  %v751_v43 = vld [vmem:[#allocation2 + $0x470] sm:$0xff]  ;;  %v752_v38 = vld [vmem:[#allocation2 + $0x478] sm:$0xff] }
 0x1aa   : > { %12575 = vst [vmem:[#allocation136_spill] sm:$0xff] %v8829_v50 }
 0x1ab   : > { %v8821_v2 = vpop.permute.xlu0 %2738  ;;  %12576 = vst [vmem:[#allocation137_spill] sm:$0xff] %v8831_v13  ;;  %2916 = vrot.lane.b32.xlu1 %v8827_v62, %s7838_s4  ;;  %v8851_v62 = vpack.c.bf16 %v752_v38, %v751_v43  ;;  %v1337_v38 = vld [vmem:[#allocation2 + $0x500] sm:$0xff] }
 0x1ac   : > { %12573 = vst [vmem:[#allocation134_spill] sm:$0xff] %v8821_v2  ;;  %v754_v2 = vld [vmem:[#allocation2 + $0x490] sm:$0xff] }
 0x1ad   : > { %2918 = vrot.lane.b32.xlu0 %v8819_v56, %s7838_s4  ;;  %v8841_v36 = vpop.permute.xlu1 %2740  ;;  %v8843_v22 = vpack.c.bf16 %v754_v2, %v753_v14  ;;  %v757_v56 = vld [vmem:[#allocation2 + $0x4b0] sm:$0xff]  ;;  %12582 = vst [vmem:[#allocation143_spill] sm:$0xff] %v8851_v62  ;;  %v755_v2 = vld [vmem:[#allocation2 + $0x498] sm:$0xff]  ;;  %v756_v14 = vld [vmem:[#allocation2 + $0x4a0] sm:$0xff] }
 0x1ae   : > { %12579 = vst [vmem:[#allocation140_spill] sm:$0xff] %v8841_v36 }
 0x1af   : > { %v8833_v59 = vpop.permute.xlu0 %2742  ;;  %12580 = vst [vmem:[#allocation141_spill] sm:$0xff] %v8843_v22  ;;  %2920 = vrot.lane.b32.xlu1 %v8839_v33, %s7838_s4  ;;  %v8863_v33 = vpack.c.bf16 %v756_v14, %v755_v2  ;;  %v1405_v14 = vld [vmem:[#allocation2 + $0x29] sm:$0xff] }
 0x1b0   : > { %12577 = vst [vmem:[#allocation138_spill] sm:$0xff] %v8833_v59  ;;  %v758_v59 = vld [vmem:[#allocation2 + $0x4b8] sm:$0xff] }
 0x1b1   : > { %2922 = vrot.lane.b32.xlu0 %v8831_v13, %s7838_s4  ;;  %v8853_v41 = vpop.permute.xlu1 %2744  ;;  %v8855_v51 = vpack.c.bf16 %v758_v59, %v757_v56  ;;  %v761_v13 = vld [vmem:[#allocation2 + $0x4d8] sm:$0xff]  ;;  %12585 = vst [vmem:[#allocation146_spill] sm:$0xff] %v8863_v33  ;;  %v759_v56 = vld [vmem:[#allocation2 + $0x4c0] sm:$0xff] }
 0x1b2   : > { %12583 = vst [vmem:[#allocation144_spill] sm:$0xff] %v8853_v41  ;;  %v1338_v41 = vld [vmem:[#allocation2 + $0x508] sm:$0xff] }
 0x1b3   : > { %v8845_v50 = vpop.permute.xlu0 %2746  ;;  %12584 = vst [vmem:[#allocation145_spill] sm:$0xff] %v8855_v51  ;;  %2924 = vrot.lane.b32.xlu1 %v8851_v62, %s7838_s4  ;;  %v1403_v62 = vpack.c.bf16 %v1338_v41, %v1337_v38  ;;  %v1409_v41 = vld [vmem:[#allocation2 + $0x51] sm:$0xff]  ;;  %v1410_v38 = vld [vmem:[#allocation2 + $0x59] sm:$0xff] }
 0x1b4   : > { %12581 = vst [vmem:[#allocation142_spill] sm:$0xff] %v8845_v50  ;;  %v762_v50 = vld [vmem:[#allocation2 + $0x4e0] sm:$0xff] }
 0x1b5   : > { %2926 = vrot.lane.b32.xlu0 %v8843_v22, %s7838_s4  ;;  %v8865_v43 = vpop.permute.xlu1 %2748  ;;  %v8867_v59 = vpack.c.bf16 %v762_v50, %v761_v13  ;;  %v760_v22 = vld [vmem:[#allocation2 + $0x4c8] sm:$0xff]  ;;  %v764_v50 = vld [vmem:[#allocation2 + $0x4f0] sm:$0xff] }
 0x1b6   : > { %12586 = vst [vmem:[#allocation147_spill] sm:$0xff] %v8865_v43  ;;  %v1406_v43 = vld [vmem:[#allocation2 + $0x31] sm:$0xff] }
 0x1b7   : > { %v8857_v36 = vpop.permute.xlu0 %2814  ;;  %12587 = vst [vmem:[#allocation148_spill] sm:$0xff] %v8867_v59  ;;  %2928 = vrot.lane.b32.xlu1 %v8863_v33, %s7838_s4  ;;  %v1533_v33 = vpack.c.bf16 %v1406_v43, %v1405_v14  ;;  %v1408_v43 = vld [vmem:[#allocation2 + $0x41] sm:$0xff] }
 0x1b9   : > { %2930 = vrot.lane.b32.xlu0 %v8855_v51, %s7838_s4  ;;  %v8875_v51 = vpack.c.bf16 %v760_v22, %v759_v56  ;;  %v8877_v2 = vpop.permute.xlu1 %2816 }
 0x1bb   : > { %v8869_v23 = vpop.permute.xlu0 %2818  ;;  %12588 = vst [vmem:[#allocation149_spill] sm:$0xff] %v8875_v51  ;;  %2932 = vrot.lane.b32.xlu1 %v8875_v51, %s7838_s4  ;;  %v1535_v51 = vpack.c.bf16 %v1410_v38, %v1409_v41  ;;  %v1418_v41 = vld [vmem:[#allocation2 + $0xa9] sm:$0xff] }
 0x1bd   : > { %2934 = vrot.lane.b32.xlu0 %v8867_v59, %s7838_s4  ;;  %v8884_v59 = vpack.c.bf16 %v764_v50, %v763_v40  ;;  %v8886_v22 = vpop.permute.xlu1 %2820  ;;  %v1413_v40 = vld [vmem:[#allocation2 + $0x79] sm:$0xff]  ;;  %v1414_v50 = vld [vmem:[#allocation2 + $0x81] sm:$0xff] }
 0x1be   : > { %v1537_v57 = vpack.c.bf16 %v1414_v50, %v1413_v40 }
 0x1bf   : > { %v8879_v13 = vpop.permute.xlu0 %2822  ;;  %12590 = vst [vmem:[#allocation151_spill] sm:$0xff] %v8884_v59  ;;  %2936 = vrot.lane.b32.xlu1 %v8884_v59, %s7838_s4  ;;  %v1411_v59 = vld [vmem:[#allocation2 + $0x61] sm:$0xff] }
 0x1c0   : > { %12589 = vst [vmem:[#allocation150_spill] sm:$0xff] %v8879_v13  ;;  %v1536_v28 = vpack.c.bf16 %v1412_v27, %v1411_v59  ;;  %v1426_v27 = vld [vmem:[#allocation2 + $0xf9] sm:$0xff] }
 0x1c1   : > { %2938 = vrot.lane.b32.xlu0 %v1403_v62, %s7838_s4  ;;  %v1407_v62 = vld [vmem:[#allocation2 + $0x39] sm:$0xff]  ;;  %v8893_v14 = vpop.permute.xlu1 %2824 }
 0x1c2   : > { %12592 = vst [vmem:[#allocation153_spill] sm:$0xff] %v8893_v14  ;;  %v1534_v63 = vpack.c.bf16 %v1408_v43, %v1407_v62  ;;  %v1422_v43 = vld [vmem:[#allocation2 + $0xd1] sm:$0xff]  ;;  %v1628_v14 = vld [vmem:[#allocation2 + $0x15a] sm:$0xff] }
 0x1c3   : > { %v8888_v56 = vpop.permute.xlu0 %2826  ;;  %2940 = vrot.lane.b32.xlu1 %v1404_v60, %s7838_s4  ;;  %v1416_v60 = vld [vmem:[#allocation2 + $0x91] sm:$0xff]  ;;  %s7847_s4 = smov 32  }
 0x1c4   : > { %12591 = vst [vmem:[#allocation152_spill] sm:$0xff] %v8888_v56  ;;  %v1538_v50 = vpack.c.bf16 %v1416_v60, %v1415_v4  ;;  %v1430_v60 = vld [vmem:[#allocation2 + $0x121] sm:$0xff]  ;;  %v1531_v56 = vld [vmem:[#allocation2 + $0x511] sm:$0xff] }
 0x1c5   : > { %3006 = vrot.lane.b32.xlu0 %v1533_v33, %s7839_s5  ;;  %v8899_v37 = vpop.permute.xlu1 %2828  ;;  %v1417_v33 = vld [vmem:[#allocation2 + $0xa1] sm:$0xff] }
 0x1c6   : > { %12594 = vst [vmem:[#allocation155_spill] sm:$0xff] %v8899_v37  ;;  %v1487_v37 = vld [vmem:[#allocation2 + $0x359] sm:$0xff] }
 0x1c7   : > { %v8895_v18 = vpop.permute.xlu0 %2830  ;;  %3008 = vrot.lane.b32.xlu1 %v1534_v63, %s7839_s5  ;;  %v1420_v63 = vld [vmem:[#allocation2 + $0xb9] sm:$0xff] }
 0x1c8   : > { %12593 = vst [vmem:[#allocation154_spill] sm:$0xff] %v8895_v18  ;;  %v1539_v18 = vpack.c.bf16 %v1418_v41, %v1417_v33  ;;  %v1540_v41 = vpack.c.bf16 %v1420_v63, %v1419_v0  ;;  %v1434_v63 = vld [vmem:[#allocation2 + $0x149] sm:$0xff] }
 0x1c9   : > { %3010 = vrot.lane.b32.xlu0 %v1535_v51, %s7839_s5  ;;  %v8905_v62 = vpop.permute.xlu1 %2832  ;;  %v1421_v51 = vld [vmem:[#allocation2 + $0xc9] sm:$0xff] }
 0x1ca   : > { %12596 = vst [vmem:[#allocation157_spill] sm:$0xff] %v8905_v62  ;;  %v1423_v62 = vld [vmem:[#allocation2 + $0xd9] sm:$0xff] }
 0x1cb   : > { %v8901_v38 = vpop.permute.xlu0 %2834  ;;  %3012 = vrot.lane.b32.xlu1 %v1536_v28, %s7839_s5  ;;  %v1424_v28 = vld [vmem:[#allocation2 + $0xe1] sm:$0xff] }
 0x1cc   : > { %12595 = vst [vmem:[#allocation156_spill] sm:$0xff] %v8901_v38  ;;  %v1541_v38 = vpack.c.bf16 %v1422_v43, %v1421_v51  ;;  %v1542_v43 = vpack.c.bf16 %v1424_v28, %v1423_v62  ;;  %v1438_v28 = vld [vmem:[#allocation2 + $0x171] sm:$0xff] }
 0x1cd   : > { %3014 = vrot.lane.b32.xlu0 %v1537_v57, %s7839_s5  ;;  %v8911_v59 = vpop.permute.xlu1 %2836  ;;  %v1425_v57 = vld [vmem:[#allocation2 + $0xf1] sm:$0xff] }
 0x1ce   : > { %12598 = vst [vmem:[#allocation159_spill] sm:$0xff] %v8911_v59  ;;  %v1427_v59 = vld [vmem:[#allocation2 + $0x101] sm:$0xff] }
 0x1cf   : > { %v8907_v40 = vpop.permute.xlu0 %2838  ;;  %3016 = vrot.lane.b32.xlu1 %v1538_v50, %s7839_s5  ;;  %v1428_v50 = vld [vmem:[#allocation2 + $0x109] sm:$0xff] }
 0x1d0   : > { %12597 = vst [vmem:[#allocation158_spill] sm:$0xff] %v8907_v40  ;;  %v1543_v40 = vpack.c.bf16 %v1426_v27, %v1425_v57  ;;  %v1544_v27 = vpack.c.bf16 %v1428_v50, %v1427_v59  ;;  %v1442_v50 = vld [vmem:[#allocation2 + $0x199] sm:$0xff] }
 0x1d1   : > { %3018 = vrot.lane.b32.xlu0 %v1539_v18, %s7839_s5  ;;  %v8917_v4 = vpop.permute.xlu1 %2840  ;;  %v1429_v18 = vld [vmem:[#allocation2 + $0x119] sm:$0xff] }
 0x1d2   : > { %12600 = vst [vmem:[#allocation161_spill] sm:$0xff] %v8917_v4  ;;  %v1431_v4 = vld [vmem:[#allocation2 + $0x129] sm:$0xff] }
 0x1d3   : > { %v8913_v33 = vpop.permute.xlu0 %2842  ;;  %3020 = vrot.lane.b32.xlu1 %v1540_v41, %s7839_s5  ;;  %v1432_v41 = vld [vmem:[#allocation2 + $0x131] sm:$0xff] }
 0x1d4   : > { %12599 = vst [vmem:[#allocation160_spill] sm:$0xff] %v8913_v33  ;;  %v1545_v33 = vpack.c.bf16 %v1430_v60, %v1429_v18  ;;  %v1546_v60 = vpack.c.bf16 %v1432_v41, %v1431_v4  ;;  %v1446_v41 = vld [vmem:[#allocation2 + $0x1c1] sm:$0xff] }
 0x1d5   : > { %3022 = vrot.lane.b32.xlu0 %v1541_v38, %s7839_s5  ;;  %v8923_v0 = vpop.permute.xlu1 %2844  ;;  %v1433_v38 = vld [vmem:[#allocation2 + $0x141] sm:$0xff] }
 0x1d6   : > { %12602 = vst [vmem:[#allocation163_spill] sm:$0xff] %v8923_v0  ;;  %v1435_v0 = vld [vmem:[#allocation2 + $0x151] sm:$0xff] }
 0x1d7   : > { %v8919_v51 = vpop.permute.xlu0 %2846  ;;  %3024 = vrot.lane.b32.xlu1 %v1542_v43, %s7839_s5  ;;  %v1436_v43 = vld [vmem:[#allocation2 + $0x159] sm:$0xff] }
 0x1d8   : > { %12601 = vst [vmem:[#allocation162_spill] sm:$0xff] %v8919_v51  ;;  %v1547_v51 = vpack.c.bf16 %v1434_v63, %v1433_v38  ;;  %v1548_v63 = vpack.c.bf16 %v1436_v43, %v1435_v0  ;;  %v1450_v43 = vld [vmem:[#allocation2 + $0x1e9] sm:$0xff] }
 0x1d9   : > { %3026 = vrot.lane.b32.xlu0 %v1543_v40, %s7839_s5  ;;  %v8929_v62 = vpop.permute.xlu1 %2848  ;;  %v1437_v40 = vld [vmem:[#allocation2 + $0x169] sm:$0xff] }
 0x1da   : > { %12604 = vst [vmem:[#allocation165_spill] sm:$0xff] %v8929_v62  ;;  %v1439_v62 = vld [vmem:[#allocation2 + $0x179] sm:$0xff] }
 0x1db   : > { %v8925_v57 = vpop.permute.xlu0 %2850  ;;  %3028 = vrot.lane.b32.xlu1 %v1544_v27, %s7839_s5  ;;  %v1440_v27 = vld [vmem:[#allocation2 + $0x181] sm:$0xff] }
 0x1dc   : > { %12603 = vst [vmem:[#allocation164_spill] sm:$0xff] %v8925_v57  ;;  %v1549_v57 = vpack.c.bf16 %v1438_v28, %v1437_v40  ;;  %v1550_v28 = vpack.c.bf16 %v1440_v27, %v1439_v62  ;;  %v1454_v27 = vld [vmem:[#allocation2 + $0x211] sm:$0xff] }
 0x1dd   : > { %3030 = vrot.lane.b32.xlu0 %v1545_v33, %s7839_s5  ;;  %v8935_v59 = vpop.permute.xlu1 %2852  ;;  %v1441_v33 = vld [vmem:[#allocation2 + $0x191] sm:$0xff] }
 0x1de   : > { %12606 = vst [vmem:[#allocation167_spill] sm:$0xff] %v8935_v59  ;;  %v1443_v59 = vld [vmem:[#allocation2 + $0x1a1] sm:$0xff] }
 0x1df   : > { %v8931_v18 = vpop.permute.xlu0 %2854  ;;  %3032 = vrot.lane.b32.xlu1 %v1546_v60, %s7839_s5  ;;  %v1444_v60 = vld [vmem:[#allocation2 + $0x1a9] sm:$0xff] }
 0x1e0   : > { %12605 = vst [vmem:[#allocation166_spill] sm:$0xff] %v8931_v18  ;;  %v1551_v18 = vpack.c.bf16 %v1442_v50, %v1441_v33  ;;  %v1552_v50 = vpack.c.bf16 %v1444_v60, %v1443_v59  ;;  %v1458_v60 = vld [vmem:[#allocation2 + $0x239] sm:$0xff] }
 0x1e1   : > { %3034 = vrot.lane.b32.xlu0 %v1547_v51, %s7839_s5  ;;  %v8941_v4 = vpop.permute.xlu1 %2856  ;;  %v1445_v51 = vld [vmem:[#allocation2 + $0x1b9] sm:$0xff] }
 0x1e2   : > { %12608 = vst [vmem:[#allocation169_spill] sm:$0xff] %v8941_v4  ;;  %v1447_v4 = vld [vmem:[#allocation2 + $0x1c9] sm:$0xff] }
 0x1e3   : > { %v8937_v38 = vpop.permute.xlu0 %2858  ;;  %3036 = vrot.lane.b32.xlu1 %v1548_v63, %s7839_s5  ;;  %v1448_v63 = vld [vmem:[#allocation2 + $0x1d1] sm:$0xff] }
 0x1e4   : > { %12607 = vst [vmem:[#allocation168_spill] sm:$0xff] %v8937_v38  ;;  %v1553_v38 = vpack.c.bf16 %v1446_v41, %v1445_v51  ;;  %v1554_v41 = vpack.c.bf16 %v1448_v63, %v1447_v4  ;;  %v1462_v63 = vld [vmem:[#allocation2 + $0x261] sm:$0xff] }
 0x1e5   : > { %3038 = vrot.lane.b32.xlu0 %v1549_v57, %s7839_s5  ;;  %v8947_v0 = vpop.permute.xlu1 %2860  ;;  %v1449_v57 = vld [vmem:[#allocation2 + $0x1e1] sm:$0xff] }
 0x1e6   : > { %12610 = vst [vmem:[#allocation171_spill] sm:$0xff] %v8947_v0  ;;  %v1451_v0 = vld [vmem:[#allocation2 + $0x1f1] sm:$0xff] }
 0x1e7   : > { %v8943_v40 = vpop.permute.xlu0 %2862  ;;  %3040 = vrot.lane.b32.xlu1 %v1550_v28, %s7839_s5  ;;  %v1452_v28 = vld [vmem:[#allocation2 + $0x1f9] sm:$0xff] }
 0x1e8   : > { %12609 = vst [vmem:[#allocation170_spill] sm:$0xff] %v8943_v40  ;;  %v1555_v40 = vpack.c.bf16 %v1450_v43, %v1449_v57  ;;  %v1556_v43 = vpack.c.bf16 %v1452_v28, %v1451_v0  ;;  %v1466_v28 = vld [vmem:[#allocation2 + $0x289] sm:$0xff] }
 0x1e9   : > { %3042 = vrot.lane.b32.xlu0 %v1551_v18, %s7839_s5  ;;  %v8953_v62 = vpop.permute.xlu1 %2864  ;;  %v1453_v18 = vld [vmem:[#allocation2 + $0x209] sm:$0xff] }
 0x1ea   : > { %12612 = vst [vmem:[#allocation173_spill] sm:$0xff] %v8953_v62  ;;  %v1455_v62 = vld [vmem:[#allocation2 + $0x219] sm:$0xff] }
 0x1eb   : > { %v8949_v33 = vpop.permute.xlu0 %2866  ;;  %3044 = vrot.lane.b32.xlu1 %v1552_v50, %s7839_s5  ;;  %v1456_v50 = vld [vmem:[#allocation2 + $0x221] sm:$0xff] }
 0x1ec   : > { %12611 = vst [vmem:[#allocation172_spill] sm:$0xff] %v8949_v33  ;;  %v1557_v33 = vpack.c.bf16 %v1454_v27, %v1453_v18  ;;  %v1558_v27 = vpack.c.bf16 %v1456_v50, %v1455_v62  ;;  %v1470_v50 = vld [vmem:[#allocation2 + $0x2b1] sm:$0xff] }
 0x1ed   : > { %3046 = vrot.lane.b32.xlu0 %v1553_v38, %s7839_s5  ;;  %v8959_v59 = vpop.permute.xlu1 %2868  ;;  %v1457_v38 = vld [vmem:[#allocation2 + $0x231] sm:$0xff] }
 0x1ee   : > { %12614 = vst [vmem:[#allocation175_spill] sm:$0xff] %v8959_v59  ;;  %v1459_v59 = vld [vmem:[#allocation2 + $0x241] sm:$0xff] }
 0x1ef   : > { %v8955_v51 = vpop.permute.xlu0 %2870  ;;  %3048 = vrot.lane.b32.xlu1 %v1554_v41, %s7839_s5  ;;  %v1460_v41 = vld [vmem:[#allocation2 + $0x249] sm:$0xff] }
 0x1f0   : > { %12613 = vst [vmem:[#allocation174_spill] sm:$0xff] %v8955_v51  ;;  %v1559_v51 = vpack.c.bf16 %v1458_v60, %v1457_v38  ;;  %v1560_v60 = vpack.c.bf16 %v1460_v41, %v1459_v59  ;;  %v1474_v41 = vld [vmem:[#allocation2 + $0x2d9] sm:$0xff] }
 0x1f1   : > { %3050 = vrot.lane.b32.xlu0 %v1555_v40, %s7839_s5  ;;  %v8965_v4 = vpop.permute.xlu1 %2872  ;;  %v1461_v40 = vld [vmem:[#allocation2 + $0x259] sm:$0xff] }
 0x1f2   : > { %12616 = vst [vmem:[#allocation177_spill] sm:$0xff] %v8965_v4 }
 0x1f3   : > { %v8961_v57 = vpop.permute.xlu0 %2874  ;;  %3052 = vrot.lane.b32.xlu1 %v1556_v43, %s7839_s5  ;;  %v1464_v43 = vld [vmem:[#allocation2 + $0x271] sm:$0xff] }
 0x1f4   : > { %12615 = vst [vmem:[#allocation176_spill] sm:$0xff] %v8961_v57  ;;  %v1561_v57 = vpack.c.bf16 %v1462_v63, %v1461_v40  ;;  %v1562_v63 = vpack.c.bf16 %v1464_v43, %v1463_v21  ;;  %v1472_v21 = vld [vmem:[#allocation2 + $0x2c1] sm:$0xff] }
 0x1f5   : > { %3054 = vrot.lane.b32.xlu0 %v1557_v33, %s7839_s5  ;;  %v8971_v0 = vpop.permute.xlu1 %2876  ;;  %v1465_v33 = vld [vmem:[#allocation2 + $0x281] sm:$0xff] }
 0x1f6   : > { %12617 = vst [vmem:[#allocation178_spill] sm:$0xff] %v8971_v0  ;;  %v1563_v4 = vpack.c.bf16 %v1466_v28, %v1465_v33 }
 0x1f7   : > { %v8967_v18 = vpop.permute.xlu0 %2878  ;;  %3056 = vrot.lane.b32.xlu1 %v1558_v27, %s7839_s5  ;;  %v1468_v27 = vld [vmem:[#allocation2 + $0x299] sm:$0xff] }
 0x1f8   : > { %v1564_v28 = vpack.c.bf16 %v1468_v27, %v1467_v3  ;;  %v1475_v3 = vld [vmem:[#allocation2 + $0x2e1] sm:$0xff]  ;;  %v1476_v27 = vld [vmem:[#allocation2 + $0x2e9] sm:$0xff] }
 0x1f9   : > { %3058 = vrot.lane.b32.xlu0 %v1559_v51, %s7839_s5  ;;  %v8977_v62 = vpop.permute.xlu1 %2880  ;;  %v1469_v51 = vld [vmem:[#allocation2 + $0x2a9] sm:$0xff]  ;;  %v9003_v34 = vpack.c.bf16 %v1476_v27, %v1475_v3  ;;  %v1483_v3 = vld [vmem:[#allocation2 + $0x331] sm:$0xff]  ;;  %v1484_v27 = vld [vmem:[#allocation2 + $0x339] sm:$0xff] }
 0x1fa   : > { %v1565_v0 = vpack.c.bf16 %v1470_v50, %v1469_v51  ;;  %v1478_v51 = vld [vmem:[#allocation2 + $0x301] sm:$0xff] }
 0x1fb   : > { %v8973_v38 = vpop.permute.xlu0 %2882  ;;  %3060 = vrot.lane.b32.xlu1 %v1560_v60, %s7839_s5  ;;  %v1471_v60 = vld [vmem:[#allocation2 + $0x2b9] sm:$0xff] }
 0x1fc   : > { %12618 = vst [vmem:[#allocation179_spill] sm:$0xff] %v8973_v38  ;;  %v1566_v48 = vpack.c.bf16 %v1472_v21, %v1471_v60  ;;  %v1479_v60 = vld [vmem:[#allocation2 + $0x309] sm:$0xff]  ;;  %v1480_v21 = vld [vmem:[#allocation2 + $0x311] sm:$0xff]  ;;  %v1856_v38 = vld [vmem:[#allocation2 + $0x2e0] sm:$0xff] }
 0x1fd   : > { %3062 = vrot.lane.b32.xlu0 %v1561_v57, %s7839_s5  ;;  %v8983_v59 = vpop.permute.xlu1 %2884  ;;  %v1473_v57 = vld [vmem:[#allocation2 + $0x2d1] sm:$0xff] }
 0x1fe   : > { %12620 = vst [vmem:[#allocation181_spill] sm:$0xff] %v8983_v59  ;;  %v8989_v19 = vpack.c.bf16 %v1474_v41, %v1473_v57  ;;  %v1481_v57 = vld [vmem:[#allocation2 + $0x321] sm:$0xff]  ;;  %v1482_v41 = vld [vmem:[#allocation2 + $0x329] sm:$0xff] }
 0x1ff   : > { %v8979_v40 = vpop.permute.xlu0 %2886  ;;  %3064 = vrot.lane.b32.xlu1 %v1562_v63, %s7839_s5  ;;  %v1793_v59 = vld [vmem:[#allocation2 + $0x68] sm:$0xff] }
 0x200   : > { %12619 = vst [vmem:[#allocation180_spill] sm:$0xff] %v8979_v40  ;;  %v1620_v40 = vld [vmem:[#allocation2 + $0x10a] sm:$0xff] }
 0x201   : > { %3066 = vrot.lane.b32.xlu0 %v1563_v4, %s7839_s5  ;;  %v8991_v43 = vpop.permute.xlu1 %2888  ;;  %v1477_v4 = vld [vmem:[#allocation2 + $0x2f9] sm:$0xff] }
 0x202   : > { %12622 = vst [vmem:[#allocation183_spill] sm:$0xff] %v8991_v43  ;;  %v1569_v63 = vpack.c.bf16 %v1478_v51, %v1477_v4  ;;  %v1485_v4 = vld [vmem:[#allocation2 + $0x349] sm:$0xff]  ;;  %v1486_v51 = vld [vmem:[#allocation2 + $0x351] sm:$0xff] }
 0x203   : > { %v8985_v33 = vpop.permute.xlu0 %2890  ;;  %3068 = vrot.lane.b32.xlu1 %v1564_v28, %s7839_s5  ;;  %v1571_v28 = vpack.c.bf16 %v1482_v41, %v1481_v57  ;;  %v1490_v57 = vld [vmem:[#allocation2 + $0x379] sm:$0xff] }
 0x204   : > { %12621 = vst [vmem:[#allocation182_spill] sm:$0xff] %v8985_v33 }
 0x205   : > { %3070 = vrot.lane.b32.xlu0 %v1565_v0, %s7839_s5  ;;  %v8998_v0 = vpop.permute.xlu1 %2892 }
 0x206   : > { %12624 = vst [vmem:[#allocation185_spill] sm:$0xff] %v8998_v0  ;;  %v1570_v0 = vpack.c.bf16 %v1480_v21, %v1479_v60  ;;  %v1494_v21 = vld [vmem:[#allocation2 + $0x3a1] sm:$0xff] }
 0x207   : > { %v8993_v50 = vpop.permute.xlu0 %2894  ;;  %3072 = vrot.lane.b32.xlu1 %v1566_v48, %s7839_s5  ;;  %v1573_v48 = vpack.c.bf16 %v1486_v51, %v1485_v4  ;;  %v1574_v51 = vpack.c.bf16 %v1488_v17, %v1487_v37  ;;  %v1502_v37 = vld [vmem:[#allocation2 + $0x3f1] sm:$0xff] }
 0x208   : > { %12623 = vst [vmem:[#allocation184_spill] sm:$0xff] %v8993_v50 }
 0x209   : > { %3074 = vrot.lane.b32.xlu0 %v8989_v19, %s7839_s5  ;;  %v9006_v50 = vpop.permute.xlu1 %2896 }
 0x20a   : > { %12626 = vst [vmem:[#allocation187_spill] sm:$0xff] %v9006_v50  ;;  %v1572_v50 = vpack.c.bf16 %v1484_v27, %v1483_v3  ;;  %v1498_v27 = vld [vmem:[#allocation2 + $0x3c9] sm:$0xff] }
 0x20b   : > { %v9000_v33 = vpop.permute.xlu0 %2898  ;;  %3076 = vrot.lane.b32.xlu1 %v9003_v34, %s7839_s5 }
 0x20c   : > { %12625 = vst [vmem:[#allocation186_spill] sm:$0xff] %v9000_v33 }
 0x20d   : > { %3078 = vrot.lane.b32.xlu0 %v1569_v63, %s7839_s5  ;;  %v9013_v33 = vpop.permute.xlu1 %2900  ;;  %v1489_v63 = vld [vmem:[#allocation2 + $0x371] sm:$0xff] }
 0x20e   : > { %12628 = vst [vmem:[#allocation189_spill] sm:$0xff] %v9013_v33  ;;  %v1491_v33 = vld [vmem:[#allocation2 + $0x381] sm:$0xff] }
 0x20f   : > { %v9008_v49 = vpop.permute.xlu0 %2902  ;;  %3080 = vrot.lane.b32.xlu1 %v1570_v0, %s7839_s5  ;;  %v1492_v0 = vld [vmem:[#allocation2 + $0x389] sm:$0xff] }
 0x210   : > { %12627 = vst [vmem:[#allocation188_spill] sm:$0xff] %v9008_v49  ;;  %v1575_v49 = vpack.c.bf16 %v1490_v57, %v1489_v63  ;;  %v1576_v57 = vpack.c.bf16 %v1492_v0, %v1491_v33  ;;  %v1506_v0 = vld [vmem:[#allocation2 + $0x419] sm:$0xff] }
 0x211   : > { %3082 = vrot.lane.b32.xlu0 %v1571_v28, %s7839_s5  ;;  %v9019_v60 = vpop.permute.xlu1 %2904  ;;  %v1493_v28 = vld [vmem:[#allocation2 + $0x399] sm:$0xff] }
 0x212   : > { %12630 = vst [vmem:[#allocation191_spill] sm:$0xff] %v9019_v60  ;;  %v1495_v60 = vld [vmem:[#allocation2 + $0x3a9] sm:$0xff] }
 0x213   : > { %v9015_v41 = vpop.permute.xlu0 %2906  ;;  %3084 = vrot.lane.b32.xlu1 %v1572_v50, %s7839_s5  ;;  %v1496_v50 = vld [vmem:[#allocation2 + $0x3b1] sm:$0xff] }
 0x214   : > { %12629 = vst [vmem:[#allocation190_spill] sm:$0xff] %v9015_v41  ;;  %v1577_v41 = vpack.c.bf16 %v1494_v21, %v1493_v28  ;;  %v1578_v21 = vpack.c.bf16 %v1496_v50, %v1495_v60  ;;  %v1510_v50 = vld [vmem:[#allocation2 + $0x441] sm:$0xff] }
 0x215   : > { %3086 = vrot.lane.b32.xlu0 %v1573_v48, %s7839_s5  ;;  %v9025_v3 = vpop.permute.xlu1 %2908  ;;  %v1497_v48 = vld [vmem:[#allocation2 + $0x3c1] sm:$0xff] }
 0x216   : > { %12632 = vst [vmem:[#allocation193_spill] sm:$0xff] %v9025_v3  ;;  %v1499_v3 = vld [vmem:[#allocation2 + $0x3d1] sm:$0xff] }
 0x217   : > { %v9021_v4 = vpop.permute.xlu0 %2910  ;;  %3088 = vrot.lane.b32.xlu1 %v1574_v51, %s7839_s5  ;;  %v1500_v51 = vld [vmem:[#allocation2 + $0x3d9] sm:$0xff] }
 0x218   : > { %12631 = vst [vmem:[#allocation192_spill] sm:$0xff] %v9021_v4  ;;  %v1579_v4 = vpack.c.bf16 %v1498_v27, %v1497_v48  ;;  %v1580_v27 = vpack.c.bf16 %v1500_v51, %v1499_v3  ;;  %v1514_v51 = vld [vmem:[#allocation2 + $0x469] sm:$0xff] }
 0x219   : > { %3090 = vrot.lane.b32.xlu0 %v1575_v49, %s7839_s5  ;;  %v9031_v17 = vpop.permute.xlu1 %2912  ;;  %v1501_v49 = vld [vmem:[#allocation2 + $0x3e9] sm:$0xff] }
 0x21a   : > { %12634 = vst [vmem:[#allocation195_spill] sm:$0xff] %v9031_v17  ;;  %v1503_v17 = vld [vmem:[#allocation2 + $0x3f9] sm:$0xff] }
 0x21b   : > { %v9027_v63 = vpop.permute.xlu0 %2914  ;;  %3092 = vrot.lane.b32.xlu1 %v1576_v57, %s7839_s5  ;;  %v1504_v57 = vld [vmem:[#allocation2 + $0x401] sm:$0xff] }
 0x21c   : > { %12633 = vst [vmem:[#allocation194_spill] sm:$0xff] %v9027_v63  ;;  %v1581_v63 = vpack.c.bf16 %v1502_v37, %v1501_v49  ;;  %v1582_v37 = vpack.c.bf16 %v1504_v57, %v1503_v17  ;;  %v1518_v57 = vld [vmem:[#allocation2 + $0x491] sm:$0xff] }
 0x21d   : > { %3094 = vrot.lane.b32.xlu0 %v1577_v41, %s7839_s5  ;;  %v9037_v33 = vpop.permute.xlu1 %2916  ;;  %v1505_v41 = vld [vmem:[#allocation2 + $0x411] sm:$0xff] }
 0x21e   : > { %12636 = vst [vmem:[#allocation197_spill] sm:$0xff] %v9037_v33  ;;  %v1507_v33 = vld [vmem:[#allocation2 + $0x421] sm:$0xff] }
 0x21f   : > { %v9033_v28 = vpop.permute.xlu0 %2918  ;;  %3096 = vrot.lane.b32.xlu1 %v1578_v21, %s7839_s5  ;;  %v1508_v21 = vld [vmem:[#allocation2 + $0x429] sm:$0xff] }
 0x220   : > { %12635 = vst [vmem:[#allocation196_spill] sm:$0xff] %v9033_v28  ;;  %v1583_v28 = vpack.c.bf16 %v1506_v0, %v1505_v41  ;;  %v1584_v0 = vpack.c.bf16 %v1508_v21, %v1507_v33  ;;  %v1522_v21 = vld [vmem:[#allocation2 + $0x4b9] sm:$0xff] }
 0x221   : > { %3098 = vrot.lane.b32.xlu0 %v1579_v4, %s7839_s5  ;;  %v9043_v60 = vpop.permute.xlu1 %2920  ;;  %v1509_v4 = vld [vmem:[#allocation2 + $0x439] sm:$0xff] }
 0x222   : > { %12638 = vst [vmem:[#allocation199_spill] sm:$0xff] %v9043_v60  ;;  %v1511_v60 = vld [vmem:[#allocation2 + $0x449] sm:$0xff] }
 0x223   : > { %v9039_v48 = vpop.permute.xlu0 %2922  ;;  %3100 = vrot.lane.b32.xlu1 %v1580_v27, %s7839_s5  ;;  %v1512_v27 = vld [vmem:[#allocation2 + $0x451] sm:$0xff] }
 0x224   : > { %12637 = vst [vmem:[#allocation198_spill] sm:$0xff] %v9039_v48  ;;  %v1585_v48 = vpack.c.bf16 %v1510_v50, %v1509_v4  ;;  %v1586_v50 = vpack.c.bf16 %v1512_v27, %v1511_v60  ;;  %v1526_v27 = vld [vmem:[#allocation2 + $0x4e1] sm:$0xff] }
 0x225   : > { %3102 = vrot.lane.b32.xlu0 %v1581_v63, %s7839_s5  ;;  %v9049_v3 = vpop.permute.xlu1 %2924  ;;  %v1513_v63 = vld [vmem:[#allocation2 + $0x461] sm:$0xff] }
 0x226   : > { %12640 = vst [vmem:[#allocation201_spill] sm:$0xff] %v9049_v3  ;;  %v1515_v3 = vld [vmem:[#allocation2 + $0x471] sm:$0xff] }
 0x227   : > { %v9045_v49 = vpop.permute.xlu0 %2926  ;;  %3104 = vrot.lane.b32.xlu1 %v1582_v37, %s7839_s5  ;;  %v1516_v37 = vld [vmem:[#allocation2 + $0x479] sm:$0xff] }
 0x228   : > { %12639 = vst [vmem:[#allocation200_spill] sm:$0xff] %v9045_v49  ;;  %v1587_v49 = vpack.c.bf16 %v1514_v51, %v1513_v63  ;;  %v1588_v51 = vpack.c.bf16 %v1516_v37, %v1515_v3  ;;  %v1530_v37 = vld [vmem:[#allocation2 + $0x509] sm:$0xff] }
 0x229   : > { %3106 = vrot.lane.b32.xlu0 %v1583_v28, %s7839_s5  ;;  %v9055_v17 = vpop.permute.xlu1 %2928  ;;  %v1517_v28 = vld [vmem:[#allocation2 + $0x489] sm:$0xff] }
 0x22a   : > { %12642 = vst [vmem:[#allocation203_spill] sm:$0xff] %v9055_v17  ;;  %v1519_v17 = vld [vmem:[#allocation2 + $0x499] sm:$0xff] }
 0x22b   : > { %v9051_v41 = vpop.permute.xlu0 %2930  ;;  %3108 = vrot.lane.b32.xlu1 %v1584_v0, %s7839_s5  ;;  %v1520_v0 = vld [vmem:[#allocation2 + $0x4a1] sm:$0xff] }
 0x22c   : > { %12641 = vst [vmem:[#allocation202_spill] sm:$0xff] %v9051_v41  ;;  %v1589_v41 = vpack.c.bf16 %v1518_v57, %v1517_v28  ;;  %v1590_v57 = vpack.c.bf16 %v1520_v0, %v1519_v17  ;;  %v1598_v0 = vld [vmem:[#allocation2 + $0x32] sm:$0xff] }
 0x22d   : > { %3110 = vrot.lane.b32.xlu0 %v1585_v48, %s7839_s5  ;;  %v9061_v33 = vpop.permute.xlu1 %2932  ;;  %v1521_v48 = vld [vmem:[#allocation2 + $0x4b1] sm:$0xff] }
 0x22e   : > { %12644 = vst [vmem:[#allocation205_spill] sm:$0xff] %v9061_v33  ;;  %v1523_v33 = vld [vmem:[#allocation2 + $0x4c1] sm:$0xff] }
 0x22f   : > { %v9057_v4 = vpop.permute.xlu0 %2934  ;;  %3112 = vrot.lane.b32.xlu1 %v1586_v50, %s7839_s5  ;;  %v1524_v50 = vld [vmem:[#allocation2 + $0x4c9] sm:$0xff] }
 0x230   : > { %12643 = vst [vmem:[#allocation204_spill] sm:$0xff] %v9057_v4  ;;  %v1591_v4 = vpack.c.bf16 %v1522_v21, %v1521_v48  ;;  %v1592_v21 = vpack.c.bf16 %v1524_v50, %v1523_v33  ;;  %v1602_v50 = vld [vmem:[#allocation2 + $0x5a] sm:$0xff] }
 0x231   : > { %3114 = vrot.lane.b32.xlu0 %v1587_v49, %s7839_s5  ;;  %v9067_v60 = vpop.permute.xlu1 %2936  ;;  %v1525_v49 = vld [vmem:[#allocation2 + $0x4d9] sm:$0xff] }
 0x232   : > { %12646 = vst [vmem:[#allocation207_spill] sm:$0xff] %v9067_v60 }
 0x233   : > { %v9063_v63 = vpop.permute.xlu0 %2938  ;;  %3116 = vrot.lane.b32.xlu1 %v1588_v51, %s7839_s5  ;;  %v1528_v51 = vld [vmem:[#allocation2 + $0x4f1] sm:$0xff] }
 0x234   : > { %12645 = vst [vmem:[#allocation206_spill] sm:$0xff] %v9063_v63  ;;  %v1593_v63 = vpack.c.bf16 %v1526_v27, %v1525_v49  ;;  %v1594_v27 = vpack.c.bf16 %v1528_v51, %v1527_v20  ;;  %v1599_v20 = vld [vmem:[#allocation2 + $0x3a] sm:$0xff] }
 0x235   : > { %3118 = vrot.lane.b32.xlu0 %v1589_v41, %s7839_s5  ;;  %v9073_v3 = vpop.permute.xlu1 %2940  ;;  %v1529_v41 = vld [vmem:[#allocation2 + $0x501] sm:$0xff] }
 0x236   : > { %12647 = vst [vmem:[#allocation208_spill] sm:$0xff] %v9073_v3  ;;  %v1595_v60 = vpack.c.bf16 %v1530_v37, %v1529_v41  ;;  %v1605_v51 = vld [vmem:[#allocation2 + $0x7a] sm:$0xff] }
 0x237   : > { %v9069_v28 = vpop.permute.xlu0 %3006  ;;  %3120 = vrot.lane.b32.xlu1 %v1590_v57, %s7839_s5  ;;  %v1532_v57 = vld [vmem:[#allocation2 + $0x519] sm:$0xff] }
 0x238   : > { %v1596_v37 = vpack.c.bf16 %v1532_v57, %v1531_v56 }
 0x239   : > { %3122 = vrot.lane.b32.xlu0 %v1591_v4, %s7839_s5  ;;  %v9079_v17 = vpop.permute.xlu1 %3008  ;;  %v1597_v4 = vld [vmem:[#allocation2 + $0x2a] sm:$0xff] }
 0x23a   : > { %v1725_v3 = vpack.c.bf16 %v1598_v0, %v1597_v4  ;;  %v1606_v4 = vld [vmem:[#allocation2 + $0x82] sm:$0xff] }
 0x23b   : > { %v9075_v48 = vpop.permute.xlu0 %3010  ;;  %3124 = vrot.lane.b32.xlu1 %v1592_v21, %s7839_s5  ;;  %v1600_v21 = vld [vmem:[#allocation2 + $0x42] sm:$0xff]  ;;  %v9100_v56 = vpack.c.bf16 %v1606_v4, %v1605_v51  ;;  %v1613_v4 = vld [vmem:[#allocation2 + $0xca] sm:$0xff] }
 0x23c   : > { %v1726_v54 = vpack.c.bf16 %v1600_v21, %v1599_v20  ;;  %v1607_v20 = vld [vmem:[#allocation2 + $0x8a] sm:$0xff]  ;;  %v1608_v21 = vld [vmem:[#allocation2 + $0x92] sm:$0xff] }
 0x23d   : > { %3126 = vrot.lane.b32.xlu0 %v1593_v63, %s7839_s5  ;;  %v9085_v33 = vpop.permute.xlu1 %3012  ;;  %v1601_v63 = vld [vmem:[#allocation2 + $0x52] sm:$0xff] }
 0x23e   : > { %12649 = vst [vmem:[#allocation210_spill] sm:$0xff] %v9085_v33  ;;  %v9091_v29 = vpack.c.bf16 %v1602_v50, %v1601_v63  ;;  %v1609_v63 = vld [vmem:[#allocation2 + $0xa2] sm:$0xff]  ;;  %v1610_v50 = vld [vmem:[#allocation2 + $0xaa] sm:$0xff] }
 0x23f   : > { %v9081_v49 = vpop.permute.xlu0 %3014  ;;  %3128 = vrot.lane.b32.xlu1 %v1594_v27, %s7839_s5  ;;  %v1603_v27 = vld [vmem:[#allocation2 + $0x62] sm:$0xff] }
 0x240   : > { %12648 = vst [vmem:[#allocation209_spill] sm:$0xff] %v9081_v49  ;;  %v1985_v33 = vld [vmem:[#allocation2 + $0x69] sm:$0xff] }
 0x241   : > { %3130 = vrot.lane.b32.xlu0 %v1595_v60, %s7839_s5  ;;  %v9093_v60 = vpop.permute.xlu1 %3016 }
 0x242   : > { %12651 = vst [vmem:[#allocation212_spill] sm:$0xff] %v9093_v60 }
 0x243   : > { %v9087_v41 = vpop.permute.xlu0 %3018  ;;  %3132 = vrot.lane.b32.xlu1 %v1596_v37, %s7839_s5  ;;  %v9111_v37 = vpack.c.bf16 %v1610_v50, %v1609_v63  ;;  %v1617_v50 = vld [vmem:[#allocation2 + $0xf2] sm:$0xff]  ;;  %s7848_s5 = smov 40  }
 0x244   : > { %12650 = vst [vmem:[#allocation211_spill] sm:$0xff] %v9087_v41 }
 0x245   : > { %3198 = vrot.lane.b32.xlu0 %v1725_v3, %s7840_s6  ;;  %v1604_v3 = vld [vmem:[#allocation2 + $0x6a] sm:$0xff]  ;;  %v9102_v57 = vpop.permute.xlu1 %3020 }
 0x246   : > { %12653 = vst [vmem:[#allocation214_spill] sm:$0xff] %v9102_v57  ;;  %v9107_v43 = vpack.c.bf16 %v1604_v3, %v1603_v27  ;;  %v1611_v27 = vld [vmem:[#allocation2 + $0xb2] sm:$0xff]  ;;  %v1612_v3 = vld [vmem:[#allocation2 + $0xba] sm:$0xff] }
 0x247   : > { %v9095_v0 = vpop.permute.xlu0 %3022  ;;  %3200 = vrot.lane.b32.xlu1 %v1726_v54, %s7840_s6 }
 0x248   : > { %12652 = vst [vmem:[#allocation213_spill] sm:$0xff] %v9095_v0  ;;  %v1614_v0 = vld [vmem:[#allocation2 + $0xd2] sm:$0xff] }
 0x249   : > { %3202 = vrot.lane.b32.xlu0 %v9091_v29, %s7840_s6  ;;  %v9113_v51 = vpop.permute.xlu1 %3024  ;;  %v9123_v54 = vpack.c.bf16 %v1614_v0, %v1613_v4  ;;  %v1616_v0 = vld [vmem:[#allocation2 + $0xe2] sm:$0xff] }
 0x24a   : > { %12655 = vst [vmem:[#allocation216_spill] sm:$0xff] %v9113_v51  ;;  %v1618_v51 = vld [vmem:[#allocation2 + $0xfa] sm:$0xff] }
 0x24b   : > { %v9104_v41 = vpop.permute.xlu0 %3026  ;;  %3204 = vrot.lane.b32.xlu1 %v9107_v43, %s7840_s6 }
 0x24c   : > { %12654 = vst [vmem:[#allocation215_spill] sm:$0xff] %v9104_v41  ;;  %v9119_v41 = vpack.c.bf16 %v1608_v21, %v1607_v20  ;;  %v1735_v20 = vpack.c.bf16 %v1618_v51, %v1617_v50  ;;  %v1615_v21 = vld [vmem:[#allocation2 + $0xda] sm:$0xff]  ;;  %v1625_v51 = vld [vmem:[#allocation2 + $0x142] sm:$0xff]  ;;  %v1626_v50 = vld [vmem:[#allocation2 + $0x14a] sm:$0xff] }
 0x24d   : > { %3206 = vrot.lane.b32.xlu0 %v9100_v56, %s7840_s6  ;;  %v9125_v63 = vpop.permute.xlu1 %3028 }
 0x24e   : > { %12657 = vst [vmem:[#allocation218_spill] sm:$0xff] %v9125_v63 }
 0x24f   : > { %v9115_v57 = vpop.permute.xlu0 %3030  ;;  %3208 = vrot.lane.b32.xlu1 %v9119_v41, %s7840_s6 }
 0x250   : > { %12656 = vst [vmem:[#allocation217_spill] sm:$0xff] %v9115_v57  ;;  %v9131_v57 = vpack.c.bf16 %v1612_v3, %v1611_v27  ;;  %v1737_v27 = vpack.c.bf16 %v1622_v7, %v1621_v42  ;;  %v1619_v3 = vld [vmem:[#allocation2 + $0x102] sm:$0xff]  ;;  %v1629_v7 = vld [vmem:[#allocation2 + $0x16a] sm:$0xff]  ;;  %v1630_v42 = vld [vmem:[#allocation2 + $0x172] sm:$0xff] }
 0x251   : > { %3210 = vrot.lane.b32.xlu0 %v9111_v37, %s7840_s6  ;;  %v9135_v4 = vpop.permute.xlu1 %3032 }
 0x252   : > { %12659 = vst [vmem:[#allocation220_spill] sm:$0xff] %v9135_v4  ;;  %v1739_v4 = vpack.c.bf16 %v1626_v50, %v1625_v51  ;;  %v1740_v50 = vpack.c.bf16 %v1628_v14, %v1627_v35  ;;  %v1641_v14 = vld [vmem:[#allocation2 + $0x1e2] sm:$0xff] }
 0x253   : > { %v9127_v44 = vpop.permute.xlu0 %3034  ;;  %3212 = vrot.lane.b32.xlu1 %v9131_v57, %s7840_s6 }
 0x254   : > { %12658 = vst [vmem:[#allocation219_spill] sm:$0xff] %v9127_v44  ;;  %v9141_v44 = vpack.c.bf16 %v1616_v0, %v1615_v21  ;;  %v1623_v21 = vld [vmem:[#allocation2 + $0x12a] sm:$0xff]  ;;  %v1624_v0 = vld [vmem:[#allocation2 + $0x132] sm:$0xff] }
 0x255   : > { %3214 = vrot.lane.b32.xlu0 %v9123_v54, %s7840_s6  ;;  %v9144_v55 = vpop.permute.xlu1 %3036 }
 0x256   : > { %12661 = vst [vmem:[#allocation222_spill] sm:$0xff] %v9144_v55  ;;  %v1738_v55 = vpack.c.bf16 %v1624_v0, %v1623_v21  ;;  %v1638_v0 = vld [vmem:[#allocation2 + $0x1c2] sm:$0xff] }
 0x257   : > { %v9137_v63 = vpop.permute.xlu0 %3038  ;;  %3216 = vrot.lane.b32.xlu1 %v9141_v44, %s7840_s6 }
 0x258   : > { %12660 = vst [vmem:[#allocation221_spill] sm:$0xff] %v9137_v63  ;;  %v1736_v63 = vpack.c.bf16 %v1620_v40, %v1619_v3  ;;  %v1634_v3 = vld [vmem:[#allocation2 + $0x19a] sm:$0xff] }
 0x259   : > { %3218 = vrot.lane.b32.xlu0 %v1735_v20, %s7840_s6  ;;  %v9151_v16 = vpop.permute.xlu1 %3040 }
 0x25a   : > { %12663 = vst [vmem:[#allocation224_spill] sm:$0xff] %v9151_v16  ;;  %v1631_v16 = vld [vmem:[#allocation2 + $0x17a] sm:$0xff] }
 0x25b   : > { %v9146_v60 = vpop.permute.xlu0 %3042  ;;  %3220 = vrot.lane.b32.xlu1 %v1736_v63, %s7840_s6  ;;  %v1632_v63 = vld [vmem:[#allocation2 + $0x182] sm:$0xff] }
 0x25c   : > { %12662 = vst [vmem:[#allocation223_spill] sm:$0xff] %v9146_v60  ;;  %v1741_v60 = vpack.c.bf16 %v1630_v42, %v1629_v7  ;;  %v1742_v42 = vpack.c.bf16 %v1632_v63, %v1631_v16  ;;  %v1646_v63 = vld [vmem:[#allocation2 + $0x212] sm:$0xff] }
 0x25d   : > { %3222 = vrot.lane.b32.xlu0 %v1737_v27, %s7840_s6  ;;  %v9157_v40 = vpop.permute.xlu1 %3044  ;;  %v1633_v27 = vld [vmem:[#allocation2 + $0x192] sm:$0xff] }
 0x25e   : > { %12665 = vst [vmem:[#allocation226_spill] sm:$0xff] %v9157_v40  ;;  %v1635_v40 = vld [vmem:[#allocation2 + $0x1a2] sm:$0xff] }
 0x25f   : > { %v9153_v20 = vpop.permute.xlu0 %3046  ;;  %3224 = vrot.lane.b32.xlu1 %v1738_v55, %s7840_s6  ;;  %v1636_v55 = vld [vmem:[#allocation2 + $0x1aa] sm:$0xff] }
 0x260   : > { %12664 = vst [vmem:[#allocation225_spill] sm:$0xff] %v9153_v20  ;;  %v1743_v20 = vpack.c.bf16 %v1634_v3, %v1633_v27  ;;  %v1744_v3 = vpack.c.bf16 %v1636_v55, %v1635_v40  ;;  %v1650_v55 = vld [vmem:[#allocation2 + $0x23a] sm:$0xff] }
 0x261   : > { %3226 = vrot.lane.b32.xlu0 %v1739_v4, %s7840_s6  ;;  %v9163_v21 = vpop.permute.xlu1 %3048  ;;  %v1637_v4 = vld [vmem:[#allocation2 + $0x1ba] sm:$0xff] }
 0x262   : > { %12667 = vst [vmem:[#allocation228_spill] sm:$0xff] %v9163_v21  ;;  %v1639_v21 = vld [vmem:[#allocation2 + $0x1ca] sm:$0xff] }
 0x263   : > { %v9159_v51 = vpop.permute.xlu0 %3050  ;;  %3228 = vrot.lane.b32.xlu1 %v1740_v50, %s7840_s6  ;;  %v1640_v50 = vld [vmem:[#allocation2 + $0x1d2] sm:$0xff] }
 0x264   : > { %12666 = vst [vmem:[#allocation227_spill] sm:$0xff] %v9159_v51  ;;  %v1745_v51 = vpack.c.bf16 %v1638_v0, %v1637_v4  ;;  %v1746_v0 = vpack.c.bf16 %v1640_v50, %v1639_v21  ;;  %v1654_v50 = vld [vmem:[#allocation2 + $0x262] sm:$0xff] }
 0x265   : > { %3230 = vrot.lane.b32.xlu0 %v1741_v60, %s7840_s6  ;;  %v9169_v35 = vpop.permute.xlu1 %3052  ;;  %v1642_v60 = vld [vmem:[#allocation2 + $0x1ea] sm:$0xff] }
 0x266   : > { %12669 = vst [vmem:[#allocation230_spill] sm:$0xff] %v9169_v35  ;;  %v1643_v35 = vld [vmem:[#allocation2 + $0x1f2] sm:$0xff] }
 0x267   : > { %v9165_v7 = vpop.permute.xlu0 %3054  ;;  %3232 = vrot.lane.b32.xlu1 %v1742_v42, %s7840_s6  ;;  %v1644_v42 = vld [vmem:[#allocation2 + $0x1fa] sm:$0xff] }
 0x268   : > { %12668 = vst [vmem:[#allocation229_spill] sm:$0xff] %v9165_v7  ;;  %v1747_v7 = vpack.c.bf16 %v1642_v60, %v1641_v14  ;;  %v1748_v60 = vpack.c.bf16 %v1644_v42, %v1643_v35  ;;  %v1658_v42 = vld [vmem:[#allocation2 + $0x28a] sm:$0xff] }
 0x269   : > { %3234 = vrot.lane.b32.xlu0 %v1743_v20, %s7840_s6  ;;  %v9175_v16 = vpop.permute.xlu1 %3056  ;;  %v1645_v20 = vld [vmem:[#allocation2 + $0x20a] sm:$0xff] }
 0x26a   : > { %12671 = vst [vmem:[#allocation232_spill] sm:$0xff] %v9175_v16  ;;  %v1647_v16 = vld [vmem:[#allocation2 + $0x21a] sm:$0xff] }
 0x26b   : > { %v9171_v27 = vpop.permute.xlu0 %3058  ;;  %3236 = vrot.lane.b32.xlu1 %v1744_v3, %s7840_s6  ;;  %v1648_v3 = vld [vmem:[#allocation2 + $0x222] sm:$0xff] }
 0x26c   : > { %12670 = vst [vmem:[#allocation231_spill] sm:$0xff] %v9171_v27  ;;  %v1749_v27 = vpack.c.bf16 %v1646_v63, %v1645_v20  ;;  %v1750_v63 = vpack.c.bf16 %v1648_v3, %v1647_v16  ;;  %v1662_v3 = vld [vmem:[#allocation2 + $0x2b2] sm:$0xff] }
 0x26d   : > { %3238 = vrot.lane.b32.xlu0 %v1745_v51, %s7840_s6  ;;  %v9181_v40 = vpop.permute.xlu1 %3060  ;;  %v1649_v51 = vld [vmem:[#allocation2 + $0x232] sm:$0xff] }
 0x26e   : > { %12673 = vst [vmem:[#allocation234_spill] sm:$0xff] %v9181_v40  ;;  %v1651_v40 = vld [vmem:[#allocation2 + $0x242] sm:$0xff] }
 0x26f   : > { %v9177_v4 = vpop.permute.xlu0 %3062  ;;  %3240 = vrot.lane.b32.xlu1 %v1746_v0, %s7840_s6  ;;  %v1652_v0 = vld [vmem:[#allocation2 + $0x24a] sm:$0xff] }
 0x270   : > { %12672 = vst [vmem:[#allocation233_spill] sm:$0xff] %v9177_v4  ;;  %v1751_v4 = vpack.c.bf16 %v1650_v55, %v1649_v51  ;;  %v1752_v55 = vpack.c.bf16 %v1652_v0, %v1651_v40  ;;  %v1666_v0 = vld [vmem:[#allocation2 + $0x2da] sm:$0xff] }
 0x271   : > { %3242 = vrot.lane.b32.xlu0 %v1747_v7, %s7840_s6  ;;  %v9187_v21 = vpop.permute.xlu1 %3064  ;;  %v1653_v7 = vld [vmem:[#allocation2 + $0x25a] sm:$0xff] }
 0x272   : > { %12675 = vst [vmem:[#allocation236_spill] sm:$0xff] %v9187_v21 }
 0x273   : > { %v9183_v14 = vpop.permute.xlu0 %3066  ;;  %3244 = vrot.lane.b32.xlu1 %v1748_v60, %s7840_s6  ;;  %v1656_v60 = vld [vmem:[#allocation2 + $0x272] sm:$0xff] }
 0x274   : > { %12674 = vst [vmem:[#allocation235_spill] sm:$0xff] %v9183_v14  ;;  %v1753_v14 = vpack.c.bf16 %v1654_v50, %v1653_v7  ;;  %v1754_v50 = vpack.c.bf16 %v1656_v60, %v1655_v8  ;;  %v1664_v8 = vld [vmem:[#allocation2 + $0x2c2] sm:$0xff] }
 0x275   : > { %3246 = vrot.lane.b32.xlu0 %v1749_v27, %s7840_s6  ;;  %v9193_v35 = vpop.permute.xlu1 %3068  ;;  %v1657_v27 = vld [vmem:[#allocation2 + $0x282] sm:$0xff] }
 0x276   : > { %12676 = vst [vmem:[#allocation237_spill] sm:$0xff] %v9193_v35  ;;  %v1755_v21 = vpack.c.bf16 %v1658_v42, %v1657_v27 }
 0x277   : > { %v9189_v20 = vpop.permute.xlu0 %3070  ;;  %3248 = vrot.lane.b32.xlu1 %v1750_v63, %s7840_s6  ;;  %v1660_v63 = vld [vmem:[#allocation2 + $0x29a] sm:$0xff] }
 0x278   : > { %v1756_v42 = vpack.c.bf16 %v1660_v63, %v1659_v15  ;;  %v1667_v15 = vld [vmem:[#allocation2 + $0x2e2] sm:$0xff] }
 0x279   : > { %3250 = vrot.lane.b32.xlu0 %v1751_v4, %s7840_s6  ;;  %v9199_v16 = vpop.permute.xlu1 %3072  ;;  %v1661_v4 = vld [vmem:[#allocation2 + $0x2aa] sm:$0xff] }
 0x27a   : > { %v1757_v35 = vpack.c.bf16 %v1662_v3, %v1661_v4  ;;  %v1670_v4 = vld [vmem:[#allocation2 + $0x302] sm:$0xff] }
 0x27b   : > { %v9195_v51 = vpop.permute.xlu0 %3074  ;;  %3252 = vrot.lane.b32.xlu1 %v1752_v55, %s7840_s6  ;;  %v1663_v55 = vld [vmem:[#allocation2 + $0x2ba] sm:$0xff] }
 0x27c   : > { %12677 = vst [vmem:[#allocation238_spill] sm:$0xff] %v9195_v51  ;;  %v1758_v49 = vpack.c.bf16 %v1664_v8, %v1663_v55  ;;  %v1671_v55 = vld [vmem:[#allocation2 + $0x30a] sm:$0xff]  ;;  %v1672_v8 = vld [vmem:[#allocation2 + $0x312] sm:$0xff] }
 0x27d   : > { %3254 = vrot.lane.b32.xlu0 %v1753_v14, %s7840_s6  ;;  %v9205_v40 = vpop.permute.xlu1 %3076  ;;  %v1665_v14 = vld [vmem:[#allocation2 + $0x2d2] sm:$0xff] }
 0x27e   : > { %12679 = vst [vmem:[#allocation240_spill] sm:$0xff] %v9205_v40  ;;  %v1792_v40 = vld [vmem:[#allocation2 + $0x60] sm:$0xff] }
 0x27f   : > { %v9201_v7 = vpop.permute.xlu0 %3078  ;;  %3256 = vrot.lane.b32.xlu1 %v1754_v50, %s7840_s6 }
 0x280   : > { %12678 = vst [vmem:[#allocation239_spill] sm:$0xff] %v9201_v7  ;;  %v9211_v7 = vpack.c.bf16 %v1666_v0, %v1665_v14  ;;  %v1673_v14 = vld [vmem:[#allocation2 + $0x322] sm:$0xff]  ;;  %v1674_v0 = vld [vmem:[#allocation2 + $0x32a] sm:$0xff] }
 0x281   : > { %3258 = vrot.lane.b32.xlu0 %v1755_v21, %s7840_s6  ;;  %v9213_v60 = vpop.permute.xlu1 %3080  ;;  %v1669_v21 = vld [vmem:[#allocation2 + $0x2fa] sm:$0xff] }
 0x282   : > { %12681 = vst [vmem:[#allocation242_spill] sm:$0xff] %v9213_v60  ;;  %v9220_v50 = vpack.c.bf16 %v1670_v4, %v1669_v21  ;;  %v1677_v4 = vld [vmem:[#allocation2 + $0x34a] sm:$0xff] }
 0x283   : > { %v9207_v27 = vpop.permute.xlu0 %3082  ;;  %3260 = vrot.lane.b32.xlu1 %v1756_v42, %s7840_s6  ;;  %v9231_v42 = vpack.c.bf16 %v1674_v0, %v1673_v14  ;;  %v1681_v0 = vld [vmem:[#allocation2 + $0x372] sm:$0xff] }
 0x284   : > { %12680 = vst [vmem:[#allocation241_spill] sm:$0xff] %v9207_v27 }
 0x285   : > { %3262 = vrot.lane.b32.xlu0 %v1757_v35, %s7840_s6  ;;  %v1668_v35 = vld [vmem:[#allocation2 + $0x2ea] sm:$0xff]  ;;  %v9222_v63 = vpop.permute.xlu1 %3084 }
 0x286   : > { %12683 = vst [vmem:[#allocation244_spill] sm:$0xff] %v9222_v63  ;;  %v9227_v60 = vpack.c.bf16 %v1668_v35, %v1667_v15  ;;  %v1675_v15 = vld [vmem:[#allocation2 + $0x332] sm:$0xff]  ;;  %v1676_v35 = vld [vmem:[#allocation2 + $0x33a] sm:$0xff] }
 0x287   : > { %v9215_v3 = vpop.permute.xlu0 %3086  ;;  %3264 = vrot.lane.b32.xlu1 %v1758_v49, %s7840_s6 }
 0x288   : > { %12682 = vst [vmem:[#allocation243_spill] sm:$0xff] %v9215_v3  ;;  %v1678_v3 = vld [vmem:[#allocation2 + $0x352] sm:$0xff] }
 0x289   : > { %3266 = vrot.lane.b32.xlu0 %v9211_v7, %s7840_s6  ;;  %v9233_v21 = vpop.permute.xlu1 %3088  ;;  %v9243_v49 = vpack.c.bf16 %v1678_v3, %v1677_v4  ;;  %v1679_v3 = vld [vmem:[#allocation2 + $0x35a] sm:$0xff] }
 0x28a   : > { %12685 = vst [vmem:[#allocation246_spill] sm:$0xff] %v9233_v21  ;;  %v1682_v21 = vld [vmem:[#allocation2 + $0x37a] sm:$0xff] }
 0x28b   : > { %v9224_v27 = vpop.permute.xlu0 %3090  ;;  %3268 = vrot.lane.b32.xlu1 %v9227_v60, %s7840_s6 }
 0x28c   : > { %12684 = vst [vmem:[#allocation245_spill] sm:$0xff] %v9224_v27  ;;  %v9239_v27 = vpack.c.bf16 %v1672_v8, %v1671_v55  ;;  %v9255_v55 = vpack.c.bf16 %v1682_v21, %v1681_v0  ;;  %v1680_v8 = vld [vmem:[#allocation2 + $0x362] sm:$0xff]  ;;  %v1684_v21 = vld [vmem:[#allocation2 + $0x38a] sm:$0xff] }
 0x28d   : > { %3270 = vrot.lane.b32.xlu0 %v9220_v50, %s7840_s6  ;;  %v9245_v14 = vpop.permute.xlu1 %3092 }
 0x28e   : > { %12687 = vst [vmem:[#allocation248_spill] sm:$0xff] %v9245_v14  ;;  %v1791_v14 = vld [vmem:[#allocation2 + $0x58] sm:$0xff] }
 0x28f   : > { %v9235_v63 = vpop.permute.xlu0 %3094  ;;  %3272 = vrot.lane.b32.xlu1 %v9239_v27, %s7840_s6 }
 0x290   : > { %12686 = vst [vmem:[#allocation247_spill] sm:$0xff] %v9235_v63  ;;  %v9251_v63 = vpack.c.bf16 %v1676_v35, %v1675_v15  ;;  %v1918_v15 = vpack.c.bf16 %v1791_v14, %v1790_v11  ;;  %v1683_v35 = vld [vmem:[#allocation2 + $0x382] sm:$0xff]  ;;  %v1919_v11 = vpack.c.bf16 %v1793_v59, %v1792_v40  ;;  %v1854_v14 = vld [vmem:[#allocation2 + $0x2d0] sm:$0xff] }
 0x291   : > { %3274 = vrot.lane.b32.xlu0 %v9231_v42, %s7840_s6  ;;  %v9257_v4 = vpop.permute.xlu1 %3096 }
 0x292   : > { %12689 = vst [vmem:[#allocation250_spill] sm:$0xff] %v9257_v4 }
 0x293   : > { %v9247_v13 = vpop.permute.xlu0 %3098  ;;  %3276 = vrot.lane.b32.xlu1 %v9251_v63, %s7840_s6 }
 0x294   : > { %12688 = vst [vmem:[#allocation249_spill] sm:$0xff] %v9247_v13  ;;  %v9263_v13 = vpack.c.bf16 %v1680_v8, %v1679_v3  ;;  %v9276_v3 = vpack.c.bf16 %v1684_v21, %v1683_v35  ;;  %v1855_v8 = vld [vmem:[#allocation2 + $0x2d8] sm:$0xff] }
 0x295   : > { %3278 = vrot.lane.b32.xlu0 %v9243_v49, %s7840_s6  ;;  %v9267_v0 = vpop.permute.xlu1 %3100  ;;  %v1983_v35 = vld [vmem:[#allocation2 + $0x59] sm:$0xff]  ;;  %v1950_v40 = vpack.c.bf16 %v1855_v8, %v1854_v14 }
 0x296   : > { %12691 = vst [vmem:[#allocation252_spill] sm:$0xff] %v9267_v0  ;;  %v7842_v0 = vmov 65535  }
 0x297   : > { %v9259_v5 = vpop.permute.xlu0 %3102  ;;  %3280 = vrot.lane.b32.xlu1 %v9263_v13, %s7840_s6  ;;  %v5150_v47 = vsel %vm5148_vm3, 4294967295, %v7842_v0  ;;  %v1857_v0 = vld [vmem:[#allocation2 + $0x2e8] sm:$0xff]  ;;  %vm6309_vm3 = vcmask 1046534  }
 0x298   : > { %12690 = vst [vmem:[#allocation251_spill] sm:$0xff] %v9259_v5  ;;  %v7767_v5 = vld [vmem:[%s12406_s1] sm:$0xff]   ;;  %v5151_v21 = vsel %vm5149_vm4, %v5150_v47, 0  ;;  %vm6312_vm4 = vcmask 1047559  }
 0x299   : > { %3282 = vrot.lane.b32.xlu0 %v9255_v55, %s7840_s6  ;;  %7492 = vmatprep.subr.bf16.mxu0 %v7767_v5  ;;  %v9282_v25 = vpop.permute.xlu1 %3104 }
 0x29a   : > { %12693 = vst [vmem:[#allocation254_spill] sm:$0xff] %v9282_v25  ;;  %7493 = vmatpush3.bf16.msra.mxu0 %v7767_v5  ;;  %7624 = vmatprep.subr.bf16.mxu1 %v7767_v5 }
 0x29b   : > { %v9269_v4 = vpop.permute.xlu0 %3106  ;;  %7626 = vmatpush3.bf16.msra.mxu1 %v7767_v5  ;;  %3284 = vrot.lane.b32.xlu1 %v9276_v3, %s7840_s6  ;;  %v1951_v5 = vpack.c.bf16 %v1857_v0, %v1856_v38  ;;  %v1794_v38 = vld [vmem:[#allocation2 + $0x78] sm:$0xff] }
 0x29c   : > { %12692 = vst [vmem:[#allocation253_spill] sm:$0xff] %v9269_v4  ;;  %v7768_v4 = vld [vmem:[%s12406_s1 + $0x8] sm:$0x3f]   ;;  %v1858_v0 = vld [vmem:[#allocation2 + $0x2f8] sm:$0xff] }
 0x29d   : > { %3390 = vrot.lane.b32.xlu0 %v1918_v15, %s7841_s9  ;;  %v5153_v59 = vand.u32 %v7768_v4, %v5151_v21  ;;  %v2110_v15 = vpack.c.bf16 %v1983_v35, %v1982_v46  ;;  %v9289_v25 = vpop.permute.xlu1 %3108  ;;  %v2111_v4 = vpack.c.bf16 %v1985_v33, %v1984_v61  ;;  %v1795_v33 = vld [vmem:[#allocation2 + $0x80] sm:$0xff] }
 0x29e   : > { %12695 = vst [vmem:[#allocation256_spill] sm:$0xff] %v9289_v25  ;;  %v1920_v21 = vpack.c.bf16 %v1795_v33, %v1794_v38 }
 0x29f   : > { %v9284_v51 = vpop.permute.xlu0 %3110  ;;  %7494 = vmatprep.subr.bf16.mxu0 %v5153_v59  ;;  %7625 = vmatprep.subr.bf16.mxu1 %v5153_v59 }
 0x2a0   : > { %12694 = vst [vmem:[#allocation255_spill] sm:$0xff] %v9284_v51  ;;  %7495 = vmatpush3.bf16.msra.mxu0 %v5153_v59  ;;  %7627 = vmatpush3.bf16.msra.mxu1 %v5153_v59 }
 0x2a1   : > { %3392 = vrot.lane.b32.xlu0 %v1919_v11, %s7841_s9  ;;  %3454 = vrot.lane.b32.xlu1 %v1950_v40, %s7841_s9  ;;  %v9295_v46 = vpop.permute.xlu1 %3112  ;;  %v1797_v40 = vld [vmem:[#allocation2 + $0x90] sm:$0xff] }
 0x2a2   : > { %12697 = vst [vmem:[#allocation258_spill] sm:$0xff] %v9295_v46 }
 0x2a3   : > { %v9291_v47 = vpop.permute.xlu0 %3114 }
 0x2a4   : > { %12696 = vst [vmem:[#allocation257_spill] sm:$0xff] %v9291_v47  ;;  %v1864_v47 = vld [vmem:[#allocation2 + $0x330] sm:$0xff] }
 0x2a5   : > { %3582 = vrot.lane.b32.xlu0 %v2110_v15, %s7843_s17  ;;  %3456 = vrot.lane.b32.xlu1 %v1951_v5, %s7841_s9  ;;  %v9301_v14 = vpop.permute.xlu1 %3116  ;;  %v1859_v5 = vld [vmem:[#allocation2 + $0x300] sm:$0xff] }
 0x2a6   : > { %12699 = vst [vmem:[#allocation260_spill] sm:$0xff] %v9301_v14  ;;  %v1952_v38 = vpack.c.bf16 %v1859_v5, %v1858_v0  ;;  %v2052_v5 = vld [vmem:[#allocation2 + $0x309] sm:$0xff] }
 0x2a7   : > { %v9297_v11 = vpop.permute.xlu0 %3118 }
 0x2a8   : > { %12698 = vst [vmem:[#allocation259_spill] sm:$0xff] %v9297_v11  ;;  %v1991_v11 = vld [vmem:[#allocation2 + $0xa9] sm:$0xff] }
 0x2a9   : > { %3584 = vrot.lane.b32.xlu0 %v2111_v4, %s7843_s17  ;;  %3646 = vrot.lane.b32.xlu1 %v8989_v19, %s7843_s17  ;;  %v9309_v61 = vpop.permute.xlu1 %3120  ;;  %v1796_v19 = vld [vmem:[#allocation2 + $0x88] sm:$0xff] }
 0x2aa   : > { %12701 = vst [vmem:[#allocation262_spill] sm:$0xff] %v9309_v61  ;;  %v2050_v61 = vld [vmem:[#allocation2 + $0x2f9] sm:$0xff] }
 0x2ab   : > { %v9303_v8 = vpop.permute.xlu0 %3122 }
 0x2ac   : > { %12700 = vst [vmem:[#allocation261_spill] sm:$0xff] %v9303_v8 }
 0x2ad   : > { %3774 = vrot.lane.b32.xlu0 %v9091_v29, %s7844_s19  ;;  %3648 = vrot.lane.b32.xlu1 %v9003_v34, %s7843_s17  ;;  %v9317_v59 = vpop.permute.xlu1 %3124  ;;  %v1921_v29 = vpack.c.bf16 %v1797_v40, %v1796_v19  ;;  %v1986_v34 = vld [vmem:[#allocation2 + $0x79] sm:$0xff]  ;;  %v1989_v19 = vld [vmem:[#allocation2 + $0x91] sm:$0xff] }
 0x2ae   : > { %12703 = vst [vmem:[#allocation264_spill] sm:$0xff] %v9317_v59 }
 0x2af   : > { %v9311_v35 = vpop.permute.xlu0 %3126 }
 0x2b0   : > { %12702 = vst [vmem:[#allocation263_spill] sm:$0xff] %v9311_v35  ;;  %v1987_v35 = vld [vmem:[#allocation2 + $0x81] sm:$0xff] }
 0x2b1   : > { %3776 = vrot.lane.b32.xlu0 %v9107_v43, %s7844_s19  ;;  %3838 = vrot.lane.b32.xlu1 %v9211_v7, %s7844_s19  ;;  %v9324_v4 = vpop.permute.xlu1 %3128  ;;  %v2112_v33 = vpack.c.bf16 %v1987_v35, %v1986_v34  ;;  %v1861_v7 = vld [vmem:[#allocation2 + $0x310] sm:$0xff] }
 0x2b2   : > { %12705 = vst [vmem:[#allocation266_spill] sm:$0xff] %v9324_v4  ;;  %v2053_v34 = vld [vmem:[#allocation2 + $0x311] sm:$0xff] }
 0x2b3   : > { %v9319_v15 = vpop.permute.xlu0 %3130 }
 0x2b4   : > { %12704 = vst [vmem:[#allocation265_spill] sm:$0xff] %v9319_v15  ;;  %v1860_v15 = vld [vmem:[#allocation2 + $0x308] sm:$0xff] }
 0x2b5   : > { %3394 = vrot.lane.b32.xlu0 %v1920_v21, %s7841_s9  ;;  %3840 = vrot.lane.b32.xlu1 %v9227_v60, %s7844_s19  ;;  %v9331_v59 = vpop.permute.xlu1 %3132  ;;  %v1988_v21 = vld [vmem:[#allocation2 + $0x89] sm:$0xff]  ;;  %v1953_v4 = vpack.c.bf16 %v1861_v7, %v1860_v15  ;;  %v2051_v60 = vld [vmem:[#allocation2 + $0x301] sm:$0xff]  ;;  %v2145_v15 = vpack.c.bf16 %v2053_v34, %v2052_v5 }
 0x2b6   : > { %12706 = vst [vmem:[#allocation267_spill] sm:$0xff] %v9331_v59  ;;  %v2113_v8 = vpack.c.bf16 %v1989_v19, %v1988_v21  ;;  %v2144_v35 = vpack.c.bf16 %v2051_v60, %v2050_v61  ;;  %v1798_v7 = vld [vmem:[#allocation2 + $0xa0] sm:$0xff]  ;;  %v1799_v21 = vld [vmem:[#allocation2 + $0xa8] sm:$0xff]  ;;  %v1800_v19 = vld [vmem:[#allocation2 + $0xb0] sm:$0xff] }
 0x2b7   : > { %v9326_v43 = vpop.permute.xlu0 %3198  ;;  %v1801_v60 = vld [vmem:[#allocation2 + $0xb8] sm:$0xff]  ;;  %v1862_v5 = vld [vmem:[#allocation2 + $0x320] sm:$0xff]  ;;  %v1863_v34 = vld [vmem:[#allocation2 + $0x328] sm:$0xff] }
 0x2b9   : > { %3396 = vrot.lane.b32.xlu0 %v1921_v29, %s7841_s9  ;;  %3458 = vrot.lane.b32.xlu1 %v1952_v38, %s7841_s9  ;;  %v9337_v0 = vpop.permute.xlu1 %3200 }
 0x2bb   : > { %v9333_v40 = vpop.permute.xlu0 %3202 }
 0x2bd   : > { %3586 = vrot.lane.b32.xlu0 %v2112_v33, %s7843_s17  ;;  %3460 = vrot.lane.b32.xlu1 %v1953_v4, %s7841_s9  ;;  %v9343_v59 = vpop.permute.xlu1 %3204 }
 0x2bf   : > { %v9339_v29 = vpop.permute.xlu0 %3206 }
 0x2c1   : > { %3588 = vrot.lane.b32.xlu0 %v2113_v8, %s7843_s17  ;;  %3650 = vrot.lane.b32.xlu1 %v2144_v35, %s7843_s17  ;;  %v9350_v33 = vpop.permute.xlu1 %3208  ;;  %v1922_v8 = vpack.c.bf16 %v1799_v21, %v1798_v7  ;;  %v1954_v7 = vpack.c.bf16 %v1863_v34, %v1862_v5  ;;  %v2056_v34 = vld [vmem:[#allocation2 + $0x331] sm:$0xff] }
 0x2c3   : > { %v9345_v38 = vpop.permute.xlu0 %3210 }
 0x2c5   : > { %3778 = vrot.lane.b32.xlu0 %v9100_v56, %s7844_s19  ;;  %3652 = vrot.lane.b32.xlu1 %v2145_v15, %s7843_s17  ;;  %v9357_v61 = vpop.permute.xlu1 %3212  ;;  %v1923_v56 = vpack.c.bf16 %v1801_v60, %v1800_v19  ;;  %v1990_v15 = vld [vmem:[#allocation2 + $0xa1] sm:$0xff]  ;;  %v1993_v19 = vld [vmem:[#allocation2 + $0xb9] sm:$0xff] }
 0x2c6   : > { %v2114_v21 = vpack.c.bf16 %v1991_v11, %v1990_v15  ;;  %v2057_v15 = vld [vmem:[#allocation2 + $0x339] sm:$0xff] }
 0x2c7   : > { %v9352_v4 = vpop.permute.xlu0 %3214 }
 0x2c8   : > { %12707 = vst [vmem:[#allocation268_spill] sm:$0xff] %v9352_v4 }
 0x2c9   : > { %3780 = vrot.lane.b32.xlu0 %v9119_v41, %s7844_s19  ;;  %3842 = vrot.lane.b32.xlu1 %v9220_v50, %s7844_s19  ;;  %v9364_v14 = vpop.permute.xlu1 %3216  ;;  %v1865_v50 = vld [vmem:[#allocation2 + $0x338] sm:$0xff] }
 0x2ca   : > { %12709 = vst [vmem:[#allocation270_spill] sm:$0xff] %v9364_v14  ;;  %v1955_v51 = vpack.c.bf16 %v1865_v50, %v1864_v47  ;;  %v2147_v47 = vpack.c.bf16 %v2057_v15, %v2056_v34  ;;  %v1802_v50 = vld [vmem:[#allocation2 + $0xc8] sm:$0xff]  ;;  %v1867_v15 = vld [vmem:[#allocation2 + $0x350] sm:$0xff] }
 0x2cb   : > { %v9359_v35 = vpop.permute.xlu0 %3218  ;;  %v1866_v34 = vld [vmem:[#allocation2 + $0x348] sm:$0xff]  ;;  %v1877_v14 = vld [vmem:[#allocation2 + $0x3b0] sm:$0xff] }
 0x2cc   : > { %12708 = vst [vmem:[#allocation269_spill] sm:$0xff] %v9359_v35 }
 0x2cd   : > { %3398 = vrot.lane.b32.xlu0 %v1922_v8, %s7841_s9  ;;  %3844 = vrot.lane.b32.xlu1 %v9239_v27, %s7844_s19  ;;  %v9371_v46 = vpop.permute.xlu1 %3220  ;;  %v1992_v8 = vld [vmem:[#allocation2 + $0xb1] sm:$0xff]  ;;  %v2055_v27 = vld [vmem:[#allocation2 + $0x329] sm:$0xff] }
 0x2ce   : > { %12711 = vst [vmem:[#allocation272_spill] sm:$0xff] %v9371_v46  ;;  %v2115_v25 = vpack.c.bf16 %v1993_v19, %v1992_v8  ;;  %v1803_v8 = vld [vmem:[#allocation2 + $0xd0] sm:$0xff]  ;;  %v1804_v19 = vld [vmem:[#allocation2 + $0xd8] sm:$0xff] }
 0x2cf   : > { %v9366_v41 = vpop.permute.xlu0 %3222 }
 0x2d0   : > { %12710 = vst [vmem:[#allocation271_spill] sm:$0xff] %v9366_v41  ;;  %v2054_v41 = vld [vmem:[#allocation2 + $0x321] sm:$0xff] }
 0x2d1   : > { %3400 = vrot.lane.b32.xlu0 %v1923_v56, %s7841_s9  ;;  %3462 = vrot.lane.b32.xlu1 %v1954_v7, %s7841_s9  ;;  %v9377_v5 = vpop.permute.xlu1 %3224  ;;  %v2146_v11 = vpack.c.bf16 %v2055_v27, %v2054_v41  ;;  %v1805_v27 = vld [vmem:[#allocation2 + $0xe0] sm:$0xff] }
 0x2d2   : > { %12713 = vst [vmem:[#allocation274_spill] sm:$0xff] %v9377_v5 }
 0x2d3   : > { %v9373_v60 = vpop.permute.xlu0 %3226 }
 0x2d4   : > { %12712 = vst [vmem:[#allocation273_spill] sm:$0xff] %v9373_v60 }
 0x2d5   : > { %3590 = vrot.lane.b32.xlu0 %v2114_v21, %s7843_s17  ;;  %3464 = vrot.lane.b32.xlu1 %v1955_v51, %s7841_s9  ;;  %v9383_v60 = vpop.permute.xlu1 %3228 }
 0x2d6   : > { %12715 = vst [vmem:[#allocation276_spill] sm:$0xff] %v9383_v60  ;;  %v2064_v60 = vld [vmem:[#allocation2 + $0x381] sm:$0xff] }
 0x2d7   : > { %v9379_v56 = vpop.permute.xlu0 %3230 }
 0x2d8   : > { %12714 = vst [vmem:[#allocation275_spill] sm:$0xff] %v9379_v56 }
 0x2d9   : > { %3592 = vrot.lane.b32.xlu0 %v2115_v25, %s7843_s17  ;;  %3654 = vrot.lane.b32.xlu1 %v2146_v11, %s7843_s17  ;;  %v9390_v21 = vpop.permute.xlu1 %3232  ;;  %v1924_v25 = vpack.c.bf16 %v1803_v8, %v1802_v50  ;;  %v1956_v50 = vpack.c.bf16 %v1867_v15, %v1866_v34  ;;  %v2060_v15 = vld [vmem:[#allocation2 + $0x359] sm:$0xff] }
 0x2da   : > { %12717 = vst [vmem:[#allocation278_spill] sm:$0xff] %v9390_v21  ;;  %v2058_v21 = vld [vmem:[#allocation2 + $0x349] sm:$0xff] }
 0x2db   : > { %v9385_v7 = vpop.permute.xlu0 %3234 }
 0x2dc   : > { %12716 = vst [vmem:[#allocation277_spill] sm:$0xff] %v9385_v7  ;;  %v1995_v7 = vld [vmem:[#allocation2 + $0xd1] sm:$0xff] }
 0x2dd   : > { %3782 = vrot.lane.b32.xlu0 %v9111_v37, %s7844_s19  ;;  %3656 = vrot.lane.b32.xlu1 %v2147_v47, %s7843_s17  ;;  %v9397_v41 = vpop.permute.xlu1 %3236  ;;  %v1925_v37 = vpack.c.bf16 %v1805_v27, %v1804_v19  ;;  %v1994_v47 = vld [vmem:[#allocation2 + $0xc9] sm:$0xff]  ;;  %v1997_v19 = vld [vmem:[#allocation2 + $0xe1] sm:$0xff] }
 0x2de   : > { %12719 = vst [vmem:[#allocation280_spill] sm:$0xff] %v9397_v41  ;;  %v2116_v8 = vpack.c.bf16 %v1995_v7, %v1994_v47  ;;  %v2061_v47 = vld [vmem:[#allocation2 + $0x361] sm:$0xff] }
 0x2df   : > { %v9392_v51 = vpop.permute.xlu0 %3238 }
 0x2e0   : > { %12718 = vst [vmem:[#allocation279_spill] sm:$0xff] %v9392_v51 }
 0x2e1   : > { %3784 = vrot.lane.b32.xlu0 %v9131_v57, %s7844_s19  ;;  %3846 = vrot.lane.b32.xlu1 %v9231_v42, %s7844_s19  ;;  %v9404_v51 = vpop.permute.xlu1 %3240  ;;  %v1869_v42 = vld [vmem:[#allocation2 + $0x360] sm:$0xff] }
 0x2e2   : > { %12721 = vst [vmem:[#allocation282_spill] sm:$0xff] %v9404_v51 }
 0x2e3   : > { %v9399_v11 = vpop.permute.xlu0 %3242 }
 0x2e4   : > { %12720 = vst [vmem:[#allocation281_spill] sm:$0xff] %v9399_v11  ;;  %v1868_v11 = vld [vmem:[#allocation2 + $0x358] sm:$0xff] }
 0x2e5   : > { %3402 = vrot.lane.b32.xlu0 %v1924_v25, %s7841_s9  ;;  %3848 = vrot.lane.b32.xlu1 %v9251_v63, %s7844_s19  ;;  %v9411_v41 = vpop.permute.xlu1 %3244  ;;  %v1996_v25 = vld [vmem:[#allocation2 + $0xd9] sm:$0xff]  ;;  %v1957_v51 = vpack.c.bf16 %v1869_v42, %v1868_v11  ;;  %v2059_v63 = vld [vmem:[#allocation2 + $0x351] sm:$0xff]  ;;  %v2149_v11 = vpack.c.bf16 %v2061_v47, %v2060_v15 }
 0x2e6   : > { %12723 = vst [vmem:[#allocation284_spill] sm:$0xff] %v9411_v41  ;;  %v2148_v7 = vpack.c.bf16 %v2059_v63, %v2058_v21  ;;  %v1806_v42 = vld [vmem:[#allocation2 + $0xf0] sm:$0xff]  ;;  %v1809_v63 = vld [vmem:[#allocation2 + $0x108] sm:$0xff]  ;;  %v1871_v47 = vld [vmem:[#allocation2 + $0x378] sm:$0xff] }
 0x2e7   : > { %v9406_v57 = vpop.permute.xlu0 %3246  ;;  %v1870_v15 = vld [vmem:[#allocation2 + $0x370] sm:$0xff] }
 0x2e8   : > { %12722 = vst [vmem:[#allocation283_spill] sm:$0xff] %v9406_v57  ;;  %v2117_v57 = vpack.c.bf16 %v1997_v19, %v1996_v25  ;;  %v1807_v25 = vld [vmem:[#allocation2 + $0xf8] sm:$0xff]  ;;  %v1808_v19 = vld [vmem:[#allocation2 + $0x100] sm:$0xff] }
 0x2e9   : > { %3404 = vrot.lane.b32.xlu0 %v1925_v37, %s7841_s9  ;;  %3466 = vrot.lane.b32.xlu1 %v1956_v50, %s7841_s9  ;;  %v9417_v34 = vpop.permute.xlu1 %3248  ;;  %v1926_v21 = vpack.c.bf16 %v1807_v25, %v1806_v42  ;;  %v1958_v42 = vpack.c.bf16 %v1871_v47, %v1870_v15  ;;  %v2062_v41 = vld [vmem:[#allocation2 + $0x371] sm:$0xff] }
 0x2ea   : > { %12725 = vst [vmem:[#allocation286_spill] sm:$0xff] %v9417_v34 }
 0x2eb   : > { %v9413_v27 = vpop.permute.xlu0 %3250 }
 0x2ec   : > { %12724 = vst [vmem:[#allocation285_spill] sm:$0xff] %v9413_v27 }
 0x2ed   : > { %3594 = vrot.lane.b32.xlu0 %v2116_v8, %s7843_s17  ;;  %3468 = vrot.lane.b32.xlu1 %v1957_v51, %s7841_s9  ;;  %v9423_v27 = vpop.permute.xlu1 %3252 }
 0x2ee   : > { %12727 = vst [vmem:[#allocation288_spill] sm:$0xff] %v9423_v27 }
 0x2ef   : > { %v9419_v37 = vpop.permute.xlu0 %3254 }
 0x2f0   : > { %12726 = vst [vmem:[#allocation287_spill] sm:$0xff] %v9419_v37 }
 0x2f1   : > { %3596 = vrot.lane.b32.xlu0 %v2117_v57, %s7843_s17  ;;  %3658 = vrot.lane.b32.xlu1 %v2148_v7, %s7843_s17  ;;  %v9430_v8 = vpop.permute.xlu1 %3256 }
 0x2f2   : > { %12729 = vst [vmem:[#allocation290_spill] sm:$0xff] %v9430_v8  ;;  %v1999_v8 = vld [vmem:[#allocation2 + $0xf9] sm:$0xff] }
 0x2f3   : > { %v9425_v50 = vpop.permute.xlu0 %3258 }
 0x2f4   : > { %12728 = vst [vmem:[#allocation289_spill] sm:$0xff] %v9425_v50 }
 0x2f5   : > { %3786 = vrot.lane.b32.xlu0 %v9123_v54, %s7844_s19  ;;  %3660 = vrot.lane.b32.xlu1 %v2149_v11, %s7843_s17  ;;  %v9437_v57 = vpop.permute.xlu1 %3260  ;;  %v1927_v54 = vpack.c.bf16 %v1809_v63, %v1808_v19  ;;  %v1998_v11 = vld [vmem:[#allocation2 + $0xf1] sm:$0xff]  ;;  %v2001_v19 = vld [vmem:[#allocation2 + $0x109] sm:$0xff] }
 0x2f6   : > { %12730 = vst [vmem:[#allocation291_spill] sm:$0xff] %v9437_v57  ;;  %v2118_v25 = vpack.c.bf16 %v1999_v8, %v1998_v11  ;;  %v1872_v57 = vld [vmem:[#allocation2 + $0x380] sm:$0xff] }
 0x2f7   : > { %v9432_v51 = vpop.permute.xlu0 %3262  ;;  %v2191_v8 = vld [vmem:[#allocation2 + $0xfa] sm:$0xff] }
 0x2f9   : > { %3788 = vrot.lane.b32.xlu0 %v9141_v44, %s7844_s19  ;;  %3850 = vrot.lane.b32.xlu1 %v9243_v49, %s7844_s19  ;;  %v9444_v50 = vpop.permute.xlu1 %3264  ;;  %v1873_v49 = vld [vmem:[#allocation2 + $0x388] sm:$0xff] }
 0x2fa   : > { %v1959_v27 = vpack.c.bf16 %v1873_v49, %v1872_v57  ;;  %v2193_v49 = vld [vmem:[#allocation2 + $0x10a] sm:$0xff] }
 0x2fb   : > { %v9439_v7 = vpop.permute.xlu0 %3266 }
 0x2fd   : > { %3406 = vrot.lane.b32.xlu0 %v1926_v21, %s7841_s9  ;;  %3852 = vrot.lane.b32.xlu1 %v9263_v13, %s7844_s19  ;;  %v9451_v37 = vpop.permute.xlu1 %3268  ;;  %v2000_v21 = vld [vmem:[#allocation2 + $0x101] sm:$0xff]  ;;  %v2063_v13 = vld [vmem:[#allocation2 + $0x379] sm:$0xff] }
 0x2fe   : > { %v2119_v34 = vpack.c.bf16 %v2001_v19, %v2000_v21  ;;  %v2150_v11 = vpack.c.bf16 %v2063_v13, %v2062_v41  ;;  %v1810_v41 = vld [vmem:[#allocation2 + $0x118] sm:$0xff]  ;;  %v638_v13 = vld [vmem:[#allocation2 + $0x8] sm:$0xff] }
 0x2ff   : > { %v9446_v44 = vpop.permute.xlu0 %3270 }
 0x301   : > { %3408 = vrot.lane.b32.xlu0 %v1927_v54, %s7841_s9  ;;  %3470 = vrot.lane.b32.xlu1 %v1958_v42, %s7841_s9  ;;  %v9457_v15 = vpop.permute.xlu1 %3272  ;;  %v2190_v54 = vld [vmem:[#allocation2 + $0xf2] sm:$0xff]  ;;  %v2065_v42 = vld [vmem:[#allocation2 + $0x389] sm:$0xff] }
 0x302   : > { %v2310_v56 = vpack.c.bf16 %v2191_v8, %v2190_v54  ;;  %v2151_v19 = vpack.c.bf16 %v2065_v42, %v2064_v60  ;;  %v637_v8 = vld [vmem:[#allocation2] sm:$0xff]  ;;  %v639_v42 = vld [vmem:[#allocation2 + $0x10] sm:$0xff] }
 0x303   : > { %v9453_v63 = vpop.permute.xlu0 %3274 }
 0x304   : > { %12731 = vst [vmem:[#allocation292_spill] sm:$0xff] %v9453_v63  ;;  %v2004_v63 = vld [vmem:[#allocation2 + $0x129] sm:$0xff] }
 0x305   : > { %3598 = vrot.lane.b32.xlu0 %v2118_v25, %s7843_s17  ;;  %3472 = vrot.lane.b32.xlu1 %v1959_v27, %s7841_s9  ;;  %v9463_v57 = vpop.permute.xlu1 %3276  ;;  %v2192_v25 = vld [vmem:[#allocation2 + $0x102] sm:$0xff] }
 0x306   : > { %12733 = vst [vmem:[#allocation294_spill] sm:$0xff] %v9463_v57  ;;  %v2311_v5 = vpack.c.bf16 %v2193_v49, %v2192_v25  ;;  %v1811_v27 = vld [vmem:[#allocation2 + $0x120] sm:$0xff]  ;;  %v1874_v49 = vld [vmem:[#allocation2 + $0x398] sm:$0xff] }
 0x307   : > { %v9459_v47 = vpop.permute.xlu0 %3278  ;;  %v1928_v54 = vpack.c.bf16 %v1811_v27, %v1810_v41  ;;  %v2002_v41 = vld [vmem:[#allocation2 + $0x119] sm:$0xff]  ;;  %v2003_v27 = vld [vmem:[#allocation2 + $0x121] sm:$0xff] }
 0x308   : > { %12732 = vst [vmem:[#allocation293_spill] sm:$0xff] %v9459_v47  ;;  %v701_v47 = vld [vmem:[#allocation2 + $0x280] sm:$0xff] }
 0x309   : > { %3600 = vrot.lane.b32.xlu0 %v2119_v34, %s7843_s17  ;;  %3662 = vrot.lane.b32.xlu1 %v2150_v11, %s7843_s17  ;;  %v9469_v46 = vpop.permute.xlu1 %3280  ;;  %v1813_v11 = vld [vmem:[#allocation2 + $0x130] sm:$0xff] }
 0x30a   : > { %12735 = vst [vmem:[#allocation296_spill] sm:$0xff] %v9469_v46  ;;  %v640_v46 = vld [vmem:[#allocation2 + $0x18] sm:$0xff] }
 0x30b   : > { %v9465_v21 = vpop.permute.xlu0 %3282 }
 0x30c   : > { %12734 = vst [vmem:[#allocation295_spill] sm:$0xff] %v9465_v21  ;;  %v1812_v21 = vld [vmem:[#allocation2 + $0x128] sm:$0xff] }
 0x30d   : > { %3790 = vrot.lane.b32.xlu0 %v2310_v56, %s7844_s19  ;;  %3664 = vrot.lane.b32.xlu1 %v2151_v19, %s7843_s17  ;;  %v9473_v35 = vpop.permute.xlu1 %3284  ;;  %v765_v56 = vpack.c.bf16 %v638_v13, %v637_v8  ;;  %v1929_v25 = vpack.c.bf16 %v1813_v11, %v1812_v21  ;;  %v1875_v19 = vld [vmem:[#allocation2 + $0x3a0] sm:$0xff]  ;;  %v702_v21 = vld [vmem:[#allocation2 + $0x288] sm:$0xff]  ;;  %v2120_v8 = vpack.c.bf16 %v2003_v27, %v2002_v41 }
 0x30e   : > { %12736 = vst [vmem:[#allocation297_spill] sm:$0xff] %v9473_v35  ;;  %v1876_v11 = vld [vmem:[#allocation2 + $0x3a8] sm:$0xff] }
 0x30f   : > { %v3391_v34 = vpop.permute.xlu0 %3390  ;;  %v3904_v13 = vsel %vm239_vm1, %v765_v56, %v8387_v45  ;;  %v2195_v27 = vld [vmem:[#allocation2 + $0x122] sm:$0xff] }
 0x310   : > { %v4096_v4 = vsel %vm4094_vm5, %v3904_v13, %v8578_v26 }
 0x311   : > { %3792 = vrot.lane.b32.xlu0 %v2311_v5, %s7844_s19  ;;  %3854 = vrot.lane.b32.xlu1 %v9255_v55, %s7844_s19  ;;  %v1960_v55 = vpack.c.bf16 %v1875_v19, %v1874_v49  ;;  %v4225_v49 = vsel %vm4223_vm6, %v4096_v4, %v8857_v36  ;;  %v2066_v36 = vld [vmem:[#allocation2 + $0x399] sm:$0xff]  ;;  %v2067_v4 = vld [vmem:[#allocation2 + $0x3a1] sm:$0xff] }
 0x312   : > { %v4354_v56 = vsel %vm4352_vm7, %v4225_v49, %v9069_v28  ;;  %v2197_v49 = vld [vmem:[#allocation2 + $0x132] sm:$0xff] }
 0x313   : > { %v9475_v60 = vpop.permute.xlu0 %3392  ;;  %v9480_v5 = vpop.permute.xlu1 %3454 }
 0x315   : > { %3410 = vrot.lane.b32.xlu0 %v1928_v54, %s7841_s9  ;;  %3856 = vrot.lane.b32.xlu1 %v9276_v3, %s7844_s19  ;;  %v766_v54 = vpack.c.bf16 %v640_v46, %v639_v42  ;;  %v2005_v3 = vld [vmem:[#allocation2 + $0x131] sm:$0xff]  ;;  %v797_v46 = vpack.c.bf16 %v702_v21, %v701_v47  ;;  %v1961_v42 = vpack.c.bf16 %v1877_v14, %v1876_v11  ;;  %v2194_v14 = vld [vmem:[#allocation2 + $0x11a] sm:$0xff] }
 0x316   : > { %v2121_v19 = vpack.c.bf16 %v2005_v3, %v2004_v63  ;;  %v2069_v21 = vld [vmem:[#allocation2 + $0x3b1] sm:$0xff] }
 0x317   : > { %v3583_v35 = vpop.permute.xlu0 %3582  ;;  %v9489_v57 = vpop.permute.xlu1 %3456  ;;  %v3907_v26 = vsel %vm239_vm1, %v766_v54, %v8391_v52  ;;  %v4000_v63 = vsel %vm239_vm1, %v797_v46, %v8481_v12  ;;  %v2068_v12 = vld [vmem:[#allocation2 + $0x3a9] sm:$0xff] }
 0x318   : > { %v4098_v47 = vsel %vm4094_vm5, %v3907_v26, %v8591_v58  ;;  %v4160_v54 = vsel %vm4094_vm5, %v4000_v63, %v8679_v9  ;;  %v2196_v3 = vld [vmem:[#allocation2 + $0x12a] sm:$0xff] }
 0x319   : > { %3412 = vrot.lane.b32.xlu0 %v1929_v25, %s7841_s9  ;;  %3474 = vrot.lane.b32.xlu1 %v1960_v55, %s7841_s9  ;;  %v4483_v25 = vsel %vm4481_vm8, %v4354_v56, %v9326_v43  ;;  %v4227_v52 = vsel %vm4223_vm6, %v4098_v47, %v8877_v2  ;;  %v4003_v56 = vsel %vm239_vm1, %v8707_v32, %v8491_v30  ;;  %v2258_v30 = vld [vmem:[#allocation2 + $0x39a] sm:$0xff]  ;;  %v2259_v32 = vld [vmem:[#allocation2 + $0x3a2] sm:$0xff] }
 0x31a   : > { %v4612_v28 = vsel %vm4610_vm9, %v4483_v25, %v3391_v34  ;;  %v4356_v13 = vsel %vm4352_vm7, %v4227_v52, %v9079_v17  ;;  %v2152_v34 = vpack.c.bf16 %v2067_v4, %v2066_v36  ;;  %v4289_v17 = vsel %vm4223_vm6, %v4160_v54, %v8967_v18  ;;  %v644_v54 = vld [vmem:[#allocation2 + $0x40] sm:$0xff] }
 0x31b   : > { %v3585_v45 = vpop.permute.xlu0 %3584  ;;  %v3647_v41 = vpop.permute.xlu1 %3646  ;;  %v4741_v43 = vsel %vm4739_vm10, %v4612_v28, %v3583_v35  ;;  %v4485_v2 = vsel %vm4481_vm8, %v4356_v13, %v9337_v0  ;;  %v2312_v35 = vpack.c.bf16 %v2195_v27, %v2194_v14  ;;  %v4418_v9 = vsel %vm4352_vm7, %v4289_v17, %v9189_v20  ;;  %v641_v28 = vld [vmem:[#allocation2 + $0x28] sm:$0xff]  ;;  %v2261_v14 = vld [vmem:[#allocation2 + $0x3b2] sm:$0xff] }
 0x31c   : > { %v4162_v26 = vsel %vm4094_vm5, %v4003_v56, %v8689_v53  ;;  %v2344_v47 = vpack.c.bf16 %v2259_v32, %v2258_v30  ;;  %v2007_v56 = vld [vmem:[#allocation2 + $0x149] sm:$0xff]  ;;  %v1881_v30 = vld [vmem:[#allocation2 + $0x3d8] sm:$0xff] }
 0x31d   : > { %3602 = vrot.lane.b32.xlu0 %v2120_v8, %s7843_s17  ;;  %3476 = vrot.lane.b32.xlu1 %v1961_v42, %s7841_s9  ;;  %v4614_v8 = vsel %vm4610_vm9, %v4485_v2, %v9475_v60  ;;  %v4547_v42 = vsel %vm4481_vm8, %v4418_v9, %v9432_v51  ;;  %v2153_v60 = vpack.c.bf16 %v2069_v21, %v2068_v12  ;;  %v1817_v12 = vld [vmem:[#allocation2 + $0x158] sm:$0xff] }
 0x31e   : > { %v4743_v0 = vsel %vm4739_vm10, %v4614_v8, %v3585_v45  ;;  %v4676_v20 = vsel %vm4610_vm9, %v4547_v42, %v9480_v5  ;;  %v2313_v45 = vpack.c.bf16 %v2197_v49, %v2196_v3  ;;  %v4291_v51 = vsel %vm4223_vm6, %v4162_v26, %v8977_v62  ;;  %v1878_v3 = vld [vmem:[#allocation2 + $0x3c0] sm:$0xff]  ;;  %v1879_v49 = vld [vmem:[#allocation2 + $0x3c8] sm:$0xff] }
 0x31f   : > { %v3775_v55 = vpop.permute.xlu0 %3774  ;;  %v3649_v11 = vpop.permute.xlu1 %3648  ;;  %v4805_v25 = vsel %vm4739_vm10, %v4676_v20, %v3647_v41  ;;  %v4420_v36 = vsel %vm4352_vm7, %v4291_v51, %v9199_v16  ;;  %v2260_v41 = vld [vmem:[#allocation2 + $0x3aa] sm:$0xff] }
 0x320   : > { %v4870_v58 = vsel %vm4868_vm11, %v4741_v43, %v3775_v55  ;;  %v4549_v5 = vsel %vm4481_vm8, %v4420_v36, %v9444_v50  ;;  %v642_v16 = vld [vmem:[#allocation2 + $0x30] sm:$0xff]  ;;  %v1814_v43 = vld [vmem:[#allocation2 + $0x140] sm:$0xff]  ;;  %v1815_v55 = vld [vmem:[#allocation2 + $0x148] sm:$0xff]  ;;  %v2345_v13 = vpack.c.bf16 %v2261_v14, %v2260_v41 }
 0x321   : > { %3604 = vrot.lane.b32.xlu0 %v2121_v19, %s7843_s17  ;;  %7496 = vmatprep.mubr.msk.bf16.mxu0 %vm5019_vm12, %v4870_v58  ;;  %v4678_v62 = vsel %vm4610_vm9, %v4549_v5, %v9489_v57  ;;  %v767_v58 = vpack.c.bf16 %v642_v16, %v641_v28  ;;  %v643_v57 = vld [vmem:[#allocation2 + $0x38] sm:$0xff]  ;;  %v12739_v41 = vld [vmem:[#allocation179_spill] sm:$0xff] }
 0x322   : > { %3666 = vrot.lane.b32.xlu1 %v2152_v34, %s7843_s17  ;;  %v4807_v27 = vsel %vm4739_vm10, %v4678_v62, %v3649_v11  ;;  %v1930_v34 = vpack.c.bf16 %v1815_v55, %v1814_v43  ;;  %v768_v8 = vpack.c.bf16 %v644_v54, %v643_v57  ;;  %v2008_v51 = vld [vmem:[#allocation2 + $0x151] sm:$0xff]  ;;  %v12740_v55 = vld [vmem:[#allocation238_spill] sm:$0xff]  ;;  %v12742_v57 = vld [vmem:[#allocation99_spill] sm:$0xff] }
 0x323   : > { %v3777_v46 = vpop.permute.xlu0 %3776  ;;  %v3839_v19 = vpop.permute.xlu1 %3838  ;;  %v3910_v17 = vsel %vm239_vm1, %v767_v58, %v8395_v1  ;;  %v2199_v43 = vld [vmem:[#allocation2 + $0x14a] sm:$0xff] }
 0x324   : > { %v4872_v18 = vsel %vm4868_vm11, %v4743_v0, %v3777_v46  ;;  %v4934_v4 = vsel %vm4868_vm11, %v4805_v25, %v3839_v19  ;;  %v4100_v9 = vsel %vm4094_vm5, %v3910_v17, %v8586_v31  ;;  %v2006_v46 = vld [vmem:[#allocation2 + $0x141] sm:$0xff]  ;;  %v3913_v26 = vsel %vm239_vm1, %v768_v8, %v8401_v10  ;;  %v2009_v25 = vld [vmem:[#allocation2 + $0x159] sm:$0xff] }
 0x325   : > { %3794 = vrot.lane.b32.xlu0 %v2312_v35, %s7844_s19  ;;  %7497 = vmatmul.mubr.msk.bf16.vlgmr.msra.gmra.mrb[0].mxu0 %vm5019_vm12, %v4872_v18  ;;  %v1816_v35 = vld [vmem:[#allocation2 + $0x150] sm:$0xff]  ;;  %v4229_v42 = vsel %vm4223_vm6, %v4100_v9, %v8869_v23  ;;  %v2122_v20 = vpack.c.bf16 %v2007_v56, %v2006_v46  ;;  %v4102_v23 = vsel %vm4094_vm5, %v3913_v26, %v8599_v39  ;;  %v12741_v58 = vld [vmem:[#allocation35_spill] sm:$0xff] }
 0x326   : > { %3668 = vrot.lane.b32.xlu1 %v2153_v60, %s7843_s17  ;;  %7560 = vmatprep.mubr.msk.bf16.mxu1 %vm5019_vm12, %v4934_v4  ;;  %v1931_v11 = vpack.c.bf16 %v1817_v12, %v1816_v35  ;;  %v4358_v1 = vsel %vm4352_vm7, %v4229_v42, %v9075_v48  ;;  %v1962_v60 = vpack.c.bf16 %v1879_v49, %v1878_v3  ;;  %v12737_v4 = vld [vmem:[#allocation210_spill] sm:$0xff]  ;;  %v12744_v49 = vld [vmem:[#allocation181_spill] sm:$0xff] }
 0x327   : > { %v3395_v53 = vpop.permute.xlu0 %3394  ;;  %v3841_v52 = vpop.permute.xlu1 %3840  ;;  %v4487_v31 = vsel %vm4481_vm8, %v4358_v1, %v9333_v40  ;;  %v4231_v19 = vsel %vm4223_vm6, %v4102_v23, %v8886_v22  ;;  %v4006_v40 = vsel %vm239_vm1, %v8699_v6, %v8487_v24  ;;  %v2123_v62 = vpack.c.bf16 %v2009_v25, %v2008_v51  ;;  %v2070_v24 = vld [vmem:[#allocation2 + $0x3c1] sm:$0xff]  ;;  %v2071_v6 = vld [vmem:[#allocation2 + $0x3c9] sm:$0xff]  ;;  %v2073_v3 = vld [vmem:[#allocation2 + $0x3d9] sm:$0xff] }
 0x328   : > { %v4936_v50 = vsel %vm4868_vm11, %v4807_v27, %v3841_v52  ;;  %v4616_v32 = vsel %vm4610_vm9, %v4487_v31, %v3395_v53  ;;  %v4360_v5 = vsel %vm4352_vm7, %v4231_v19, %v12737_v4  ;;  %v2198_v52 = vld [vmem:[#allocation2 + $0x142] sm:$0xff]  ;;  %v2200_v56 = vld [vmem:[#allocation2 + $0x152] sm:$0xff]  ;;  %v2201_v42 = vld [vmem:[#allocation2 + $0x15a] sm:$0xff] }
 0x329   : > { %3796 = vrot.lane.b32.xlu0 %v2313_v45, %s7844_s19  ;;  %7561 = vmatmul.mubr.msk.bf16.vlgmr.msra.gmra.mrb[0].mxu1 %vm5019_vm12, %v4936_v50  ;;  %v1880_v45 = vld [vmem:[#allocation2 + $0x3d0] sm:$0xff]  ;;  %v4489_v22 = vsel %vm4481_vm8, %v4360_v5, %v9343_v59  ;;  %v12743_v12 = vld [vmem:[#allocation94_spill] sm:$0xff]  ;;  %v2314_v8 = vpack.c.bf16 %v2199_v43, %v2198_v52  ;;  %v648_v5 = vld [vmem:[#allocation2 + $0x68] sm:$0xff] }
 0x32a   : > { %3858 = vrot.lane.b32.xlu1 %v2344_v47, %s7844_s19  ;;  %v1963_v53 = vpack.c.bf16 %v1881_v30, %v1880_v45  ;;  %v2315_v45 = vpack.c.bf16 %v2201_v42, %v2200_v56  ;;  %v2262_v30 = vld [vmem:[#allocation2 + $0x3c2] sm:$0xff]  ;;  %v2263_v23 = vld [vmem:[#allocation2 + $0x3ca] sm:$0xff]  ;;  %v2265_v4 = vld [vmem:[#allocation2 + $0x3da] sm:$0xff] }
 0x32b   : > { %v3397_v63 = vpop.permute.xlu0 %3396  ;;  %v3459_v2 = vpop.permute.xlu1 %3458  ;;  %v1820_v52 = vld [vmem:[#allocation2 + $0x178] sm:$0xff]  ;;  %v1821_v43 = vld [vmem:[#allocation2 + $0x180] sm:$0xff] }
 0x32c   : > { %v4618_v16 = vsel %vm4610_vm9, %v4489_v22, %v3397_v63  ;;  %v2154_v63 = vpack.c.bf16 %v2071_v6, %v2070_v24  ;;  %v12754_v42 = vld [vmem:[#allocation97_spill] sm:$0xff] }
 0x32d   : > { %3286 = vrot.lane.b32.xlu0 %v2344_v47, %s7840_s6  ;;  %v12738_v47 = vld [vmem:[#allocation91_spill] sm:$0xff] }
 0x32e   : > { %3860 = vrot.lane.b32.xlu1 %v2345_v13, %s7844_s19  ;;  %v4164_v28 = vsel %vm4094_vm5, %v4006_v40, %v12738_v47  ;;  %v2264_v40 = vld [vmem:[#allocation2 + $0x3d2] sm:$0xff] }
 0x32f   : > { %v3587_v21 = vpop.permute.xlu0 %3586  ;;  %v9563_v0 = vpop.permute.xlu1 %3460  ;;  %v4293_v14 = vsel %vm4223_vm6, %v4164_v28, %v12739_v41  ;;  %v1819_v47 = vld [vmem:[#allocation2 + $0x170] sm:$0xff]  ;;  %v2347_v22 = vpack.c.bf16 %v2265_v4, %v2264_v40 }
 0x330   : > { %v4745_v10 = vsel %vm4739_vm10, %v4616_v32, %v3587_v21  ;;  %v4422_v50 = vsel %vm4352_vm7, %v4293_v14, %v12740_v55  ;;  %v645_v32 = vld [vmem:[#allocation2 + $0x50] sm:$0xff]  ;;  %v12747_v14 = vld [vmem:[#allocation63_spill] sm:$0xff]  ;;  %v12748_v55 = vld [vmem:[#allocation150_spill] sm:$0xff] }
 0x331   : > { %3414 = vrot.lane.b32.xlu0 %v1930_v34, %s7841_s9  ;;  %v4009_v34 = vsel %vm239_vm1, %v12742_v57, %v12741_v58  ;;  %v4551_v54 = vsel %vm4481_vm8, %v4422_v50, %v9439_v7  ;;  %v12750_v57 = vld [vmem:[#allocation8_spill] sm:$0xff] }
 0x332   : > { %3288 = vrot.lane.b32.xlu1 %v2345_v13, %s7840_s6  ;;  %v4166_v21 = vsel %vm4094_vm5, %v4009_v34, %v12743_v12  ;;  %v4680_v17 = vsel %vm4610_vm9, %v4551_v54, %v3459_v2  ;;  %v1883_v12 = vld [vmem:[#allocation2 + $0x3f0] sm:$0xff] }
 0x333   : > { %v3589_v18 = vpop.permute.xlu0 %3588  ;;  %v3651_v48 = vpop.permute.xlu1 %3650  ;;  %v4295_v7 = vsel %vm4223_vm6, %v4166_v21, %v12744_v49  ;;  %v12751_v21 = vld [vmem:[#allocation65_spill] sm:$0xff] }
 0x334   : > { %v4747_v59 = vsel %vm4739_vm10, %v4618_v16, %v3589_v18  ;;  %v4809_v9 = vsel %vm4739_vm10, %v4680_v17, %v3651_v48  ;;  %v12745_v18 = vld [vmem:[#allocation240_spill] sm:$0xff]  ;;  %v646_v48 = vld [vmem:[#allocation2 + $0x58] sm:$0xff] }
 0x335   : > { %3416 = vrot.lane.b32.xlu0 %v1931_v11, %s7841_s9  ;;  %v2072_v11 = vld [vmem:[#allocation2 + $0x3d1] sm:$0xff]  ;;  %v4424_v1 = vsel %vm4352_vm7, %v4295_v7, %v12745_v18 }
 0x336   : > { %3478 = vrot.lane.b32.xlu1 %v1962_v60, %s7841_s9  ;;  %v4553_v26 = vsel %vm4481_vm8, %v4424_v1, %v9451_v37  ;;  %v2155_v31 = vpack.c.bf16 %v2073_v3, %v2072_v11  ;;  %v2010_v3 = vld [vmem:[#allocation2 + $0x169] sm:$0xff]  ;;  %v2011_v49 = vld [vmem:[#allocation2 + $0x171] sm:$0xff] }
 0x337   : > { %v3779_v36 = vpop.permute.xlu0 %3778  ;;  %v3653_v27 = vpop.permute.xlu1 %3652  ;;  %v12752_v7 = vld [vmem:[#allocation153_spill] sm:$0xff]  ;;  %v12755_v1 = vld [vmem:[#allocation212_spill] sm:$0xff] }
 0x338   : > { %v4874_v39 = vsel %vm4868_vm11, %v4745_v10, %v3779_v36  ;;  %v2346_v10 = vpack.c.bf16 %v2263_v23, %v2262_v30  ;;  %v769_v36 = vpack.c.bf16 %v646_v48, %v645_v32  ;;  %v2124_v30 = vpack.c.bf16 %v2011_v49, %v2010_v3  ;;  %v1884_v23 = vld [vmem:[#allocation2 + $0x3f8] sm:$0xff]  ;;  %v1885_v32 = vld [vmem:[#allocation2 + $0x400] sm:$0xff]  ;;  %v12757_v48 = vld [vmem:[#allocation180_spill] sm:$0xff] }
 0x339   : > { %3606 = vrot.lane.b32.xlu0 %v2122_v20, %s7843_s17  ;;  %7500 = vmatprep.mubr.msk.bf16.mxu0 %vm5019_vm12, %v4874_v39  ;;  %v4682_v20 = vsel %vm4610_vm9, %v4553_v26, %v9563_v0  ;;  %v647_v0 = vld [vmem:[#allocation2 + $0x60] sm:$0xff] }
 0x33a   : > { %3480 = vrot.lane.b32.xlu1 %v1963_v53, %s7841_s9  ;;  %v4811_v51 = vsel %vm4739_vm10, %v4682_v20, %v3653_v27  ;;  %v1818_v53 = vld [vmem:[#allocation2 + $0x168] sm:$0xff]  ;;  %v770_v6 = vpack.c.bf16 %v648_v5, %v647_v0  ;;  %v12759_v5 = vld [vmem:[#allocation37_spill] sm:$0xff] }
 0x33b   : > { %v3781_v13 = vpop.permute.xlu0 %3780  ;;  %v3843_v46 = vpop.permute.xlu1 %3842  ;;  %v1932_v41 = vpack.c.bf16 %v1819_v47, %v1818_v53  ;;  %v12758_v0 = vld [vmem:[#allocation239_spill] sm:$0xff]  ;;  %v2204_v49 = vld [vmem:[#allocation2 + $0x17a] sm:$0xff] }
 0x33c   : > { %v4876_v35 = vsel %vm4868_vm11, %v4747_v59, %v3781_v13  ;;  %v4938_v2 = vsel %vm4868_vm11, %v4809_v9, %v3843_v46  ;;  %v12749_v13 = vld [vmem:[#allocation209_spill] sm:$0xff]  ;;  %v3919_v34 = vsel %vm239_vm1, %v770_v6, %v12750_v57  ;;  %v12760_v53 = vld [vmem:[#allocation103_spill] sm:$0xff] }
 0x33d   : > { %3608 = vrot.lane.b32.xlu0 %v2123_v62, %s7843_s17  ;;  %7501 = vmatmul.mubr.msk.bf16.gmra.mrb[4].mxu0 %vm5019_vm12, %v4876_v35  ;;  %v12746_v62 = vld [vmem:[#allocation6_spill] sm:$0xff]  ;;  %v1933_v35 = vpack.c.bf16 %v1821_v43, %v1820_v52  ;;  %v4106_v17 = vsel %vm4094_vm5, %v3919_v34, %v12751_v21  ;;  %v4015_v47 = vsel %vm239_vm1, %v12760_v53, %v12759_v5  ;;  %v12762_v52 = vld [vmem:[#allocation183_spill] sm:$0xff] }
 0x33e   : > { %3670 = vrot.lane.b32.xlu1 %v2154_v63, %s7843_s17  ;;  %7564 = vmatprep.mubr.msk.bf16.mxu1 %vm5019_vm12, %v4938_v2  ;;  %v3916_v24 = vsel %vm239_vm1, %v769_v36, %v12746_v62  ;;  %v1882_v63 = vld [vmem:[#allocation2 + $0x3e8] sm:$0xff]  ;;  %v4235_v9 = vsel %vm4223_vm6, %v4106_v17, %v12752_v7  ;;  %v12761_v62 = vld [vmem:[#allocation96_spill] sm:$0xff]  ;;  %v2076_v21 = vld [vmem:[#allocation2 + $0x3f9] sm:$0xff] }
 0x33f   : > { %v3399_v60 = vpop.permute.xlu0 %3398  ;;  %v3845_v25 = vpop.permute.xlu1 %3844  ;;  %v4104_v16 = vsel %vm4094_vm5, %v3916_v24, %v12747_v14  ;;  %v4364_v2 = vsel %vm4352_vm7, %v4235_v9, %v12755_v1  ;;  %v2013_v36 = vld [vmem:[#allocation2 + $0x181] sm:$0xff]  ;;  %v4170_v24 = vsel %vm4094_vm5, %v4015_v47, %v12761_v62  ;;  %v2074_v14 = vld [vmem:[#allocation2 + $0x3e9] sm:$0xff] }
 0x340   : > { %v4940_v37 = vsel %vm4868_vm11, %v4811_v51, %v3845_v25  ;;  %v4233_v50 = vsel %vm4223_vm6, %v4104_v16, %v12748_v55  ;;  %v2075_v16 = vld [vmem:[#allocation2 + $0x3f1] sm:$0xff]  ;;  %v2077_v17 = vld [vmem:[#allocation2 + $0x401] sm:$0xff] }
 0x341   : > { %3798 = vrot.lane.b32.xlu0 %v2314_v8, %s7844_s19  ;;  %7565 = vmatmul.mubr.msk.bf16.gmra.mrb[4].mxu1 %vm5019_vm12, %v4940_v37  ;;  %v4362_v58 = vsel %vm4352_vm7, %v4233_v50, %v12749_v13  ;;  %v2202_v50 = vld [vmem:[#allocation2 + $0x16a] sm:$0xff]  ;;  %v12763_v13 = vld [vmem:[#allocation242_spill] sm:$0xff] }
 0x342   : > { %3672 = vrot.lane.b32.xlu1 %v2155_v31, %s7843_s17  ;;  %v4491_v54 = vsel %vm4481_vm8, %v4362_v58, %v9339_v29  ;;  %v12753_v29 = vld [vmem:[#allocation34_spill] sm:$0xff]  ;;  %v12756_v31 = vld [vmem:[#allocation92_spill] sm:$0xff] }
 0x343   : > { %v3401_v19 = vpop.permute.xlu0 %3400  ;;  %v3463_v39 = vpop.permute.xlu1 %3462  ;;  %v4620_v8 = vsel %vm4610_vm9, %v4491_v54, %v3399_v60  ;;  %v4012_v18 = vsel %vm239_vm1, %v12754_v42, %v12753_v29  ;;  %v1964_v60 = vpack.c.bf16 %v1883_v12, %v1882_v63  ;;  %v2156_v54 = vpack.c.bf16 %v2075_v16, %v2074_v14  ;;  %v2266_v29 = vld [vmem:[#allocation2 + $0x3ea] sm:$0xff]  ;;  %v2267_v42 = vld [vmem:[#allocation2 + $0x3f2] sm:$0xff]  ;;  %v12768_v5 = vld [vmem:[#allocation10_spill] sm:$0xff] }
 0x344   : > { %v4168_v20 = vsel %vm4094_vm5, %v4012_v18, %v12756_v31  ;;  %v651_v18 = vld [vmem:[#allocation2 + $0x88] sm:$0xff]  ;;  %v652_v1 = vld [vmem:[#allocation2 + $0x90] sm:$0xff] }
 0x345   : > { %3800 = vrot.lane.b32.xlu0 %v2315_v45, %s7844_s19  ;;  %v4493_v45 = vsel %vm4481_vm8, %v4364_v2, %v9350_v33  ;;  %v4297_v51 = vsel %vm4223_vm6, %v4168_v20, %v12757_v48  ;;  %v12764_v31 = vld [vmem:[#allocation7_spill] sm:$0xff] }
 0x346   : > { %3862 = vrot.lane.b32.xlu1 %v2346_v10, %s7844_s19  ;;  %v4622_v25 = vsel %vm4610_vm9, %v4493_v45, %v3401_v19  ;;  %v4426_v40 = vsel %vm4352_vm7, %v4297_v51, %v12758_v0  ;;  %v1965_v19 = vpack.c.bf16 %v1885_v32, %v1884_v23  ;;  %v772_v45 = vpack.c.bf16 %v652_v1, %v651_v18  ;;  %v2269_v23 = vld [vmem:[#allocation2 + $0x402] sm:$0xff]  ;;  %v12765_v32 = vld [vmem:[#allocation64_spill] sm:$0xff] }
 0x347   : > { %v3591_v28 = vpop.permute.xlu0 %3590  ;;  %v9636_v27 = vpop.permute.xlu1 %3464  ;;  %v12770_v14 = vld [vmem:[#allocation155_spill] sm:$0xff]  ;;  %v12780_v18 = vld [vmem:[#allocation100_spill] sm:$0xff] }
 0x348   : > { %v4749_v46 = vsel %vm4739_vm10, %v4620_v8, %v3591_v28  ;;  %v4555_v28 = vsel %vm4481_vm8, %v4426_v40, %v9446_v44  ;;  %v4299_v44 = vsel %vm4223_vm6, %v4170_v24, %v12762_v52  ;;  %v650_v8 = vld [vmem:[#allocation2 + $0x80] sm:$0xff]  ;;  %v12767_v40 = vld [vmem:[#allocation211_spill] sm:$0xff]  ;;  %v3925_v53 = vsel %vm239_vm1, %v772_v45, %v12768_v5  ;;  %v12781_v45 = vld [vmem:[#allocation185_spill] sm:$0xff] }
 0x349   : > { %3290 = vrot.lane.b32.xlu0 %v2346_v10, %s7840_s6  ;;  %v2012_v10 = vld [vmem:[#allocation2 + $0x179] sm:$0xff]  ;;  %v4684_v6 = vsel %vm4610_vm9, %v4555_v28, %v3463_v39  ;;  %v4428_v58 = vsel %vm4352_vm7, %v4299_v44, %v12763_v13 }
 0x34a   : > { %3864 = vrot.lane.b32.xlu1 %v2347_v22, %s7844_s19  ;;  %v4557_v34 = vsel %vm4481_vm8, %v4428_v58, %v9457_v15  ;;  %v2205_v15 = vld [vmem:[#allocation2 + $0x182] sm:$0xff] }
 0x34b   : > { %v3593_v59 = vpop.permute.xlu0 %3592  ;;  %v3655_v11 = vpop.permute.xlu1 %3654  ;;  %v4686_v63 = vsel %vm4610_vm9, %v4557_v34, %v9636_v27  ;;  %v12774_v58 = vld [vmem:[#allocation95_spill] sm:$0xff] }
 0x34c   : > { %v4751_v33 = vsel %vm4739_vm10, %v4622_v25, %v3593_v59  ;;  %v4813_v43 = vsel %vm4739_vm10, %v4684_v6, %v3655_v11  ;;  %v2203_v59 = vld [vmem:[#allocation2 + $0x172] sm:$0xff]  ;;  %v1824_v6 = vld [vmem:[#allocation2 + $0x1a0] sm:$0xff] }
 0x34d   : > { %3418 = vrot.lane.b32.xlu0 %v1932_v41, %s7841_s9  ;;  %v2125_v41 = vpack.c.bf16 %v2013_v36, %v2012_v10  ;;  %v2316_v12 = vpack.c.bf16 %v2203_v59, %v2202_v50  ;;  %v1822_v25 = vld [vmem:[#allocation2 + $0x190] sm:$0xff]  ;;  %v12773_v50 = vld [vmem:[#allocation214_spill] sm:$0xff] }
 0x34e   : > { %3292 = vrot.lane.b32.xlu1 %v2347_v22, %s7840_s6  ;;  %v12766_v10 = vld [vmem:[#allocation152_spill] sm:$0xff] }
 0x34f   : > { %v3783_v56 = vpop.permute.xlu0 %3782  ;;  %v3657_v37 = vpop.permute.xlu1 %3656 }
 0x350   : > { %v4878_v26 = vsel %vm4868_vm11, %v4749_v46, %v3783_v56  ;;  %v4815_v11 = vsel %vm4739_vm10, %v4686_v63, %v3657_v37  ;;  %v2157_v46 = vpack.c.bf16 %v2077_v17, %v2076_v21  ;;  %v2317_v56 = vpack.c.bf16 %v2205_v15, %v2204_v49  ;;  %v1823_v37 = vld [vmem:[#allocation2 + $0x198] sm:$0xff]  ;;  %v12775_v63 = vld [vmem:[#allocation182_spill] sm:$0xff] }
 0x351   : > { %3420 = vrot.lane.b32.xlu0 %v1933_v35, %s7841_s9  ;;  %7504 = vmatprep.mubr.msk.bf16.mxu0 %vm5019_vm12, %v4878_v26  ;;  %v649_v35 = vld [vmem:[#allocation2 + $0x78] sm:$0xff]  ;;  %v1934_v28 = vpack.c.bf16 %v1823_v37, %v1822_v25  ;;  %v2017_v25 = vld [vmem:[#allocation2 + $0x1a9] sm:$0xff] }
 0x352   : > { %3482 = vrot.lane.b32.xlu1 %v1964_v60, %s7841_s9  ;;  %v771_v27 = vpack.c.bf16 %v650_v8, %v649_v35  ;;  %v2348_v60 = vpack.c.bf16 %v2267_v42, %v2266_v29  ;;  %v1887_v35 = vld [vmem:[#allocation2 + $0x418] sm:$0xff]  ;;  %v12782_v37 = vld [vmem:[#allocation244_spill] sm:$0xff] }
 0x353   : > { %v3785_v4 = vpop.permute.xlu0 %3784  ;;  %v3847_v55 = vpop.permute.xlu1 %3846  ;;  %v2014_v8 = vld [vmem:[#allocation2 + $0x191] sm:$0xff] }
 0x354   : > { %v4880_v22 = vsel %vm4868_vm11, %v4751_v33, %v3785_v4  ;;  %v4942_v39 = vsel %vm4868_vm11, %v4813_v43, %v3847_v55  ;;  %v3922_v20 = vsel %vm239_vm1, %v771_v27, %v12764_v31  ;;  %v12771_v43 = vld [vmem:[#allocation36_spill] sm:$0xff]  ;;  %v12772_v55 = vld [vmem:[#allocation101_spill] sm:$0xff]  ;;  %v1888_v31 = vld [vmem:[#allocation2 + $0x420] sm:$0xff] }
 0x355   : > { %3610 = vrot.lane.b32.xlu0 %v2124_v30, %s7843_s17  ;;  %7505 = vmatmul.mubr.msk.bf16.gmra.mrb[8].mxu0 %vm5019_vm12, %v4880_v22  ;;  %v2268_v30 = vld [vmem:[#allocation2 + $0x3fa] sm:$0xff]  ;;  %v4108_v48 = vsel %vm4094_vm5, %v3922_v20, %v12765_v32  ;;  %v12769_v22 = vld [vmem:[#allocation67_spill] sm:$0xff] }
 0x356   : > { %3484 = vrot.lane.b32.xlu1 %v1965_v19, %s7841_s9  ;;  %7568 = vmatprep.mubr.msk.bf16.mxu1 %vm5019_vm12, %v4942_v39  ;;  %v4237_v36 = vsel %vm4223_vm6, %v4108_v48, %v12766_v10  ;;  %v2349_v4 = vpack.c.bf16 %v2269_v23, %v2268_v30  ;;  %v4110_v19 = vsel %vm4094_vm5, %v3925_v53, %v12769_v22  ;;  %v1889_v20 = vld [vmem:[#allocation2 + $0x428] sm:$0xff] }
 0x357   : > { %v3403_v57 = vpop.permute.xlu0 %3402  ;;  %v3849_v3 = vpop.permute.xlu1 %3848  ;;  %v4366_v33 = vsel %vm4352_vm7, %v4237_v36, %v12767_v40  ;;  %v4239_v16 = vsel %vm4223_vm6, %v4110_v19, %v12770_v14  ;;  %v2016_v48 = vld [vmem:[#allocation2 + $0x1a1] sm:$0xff] }
 0x358   : > { %v4944_v7 = vsel %vm4868_vm11, %v4815_v11, %v3849_v3  ;;  %v4495_v47 = vsel %vm4481_vm8, %v4366_v33, %v9345_v38  ;;  %v4018_v38 = vsel %vm239_vm1, %v12772_v55, %v12771_v43  ;;  %v4368_v59 = vsel %vm4352_vm7, %v4239_v16, %v12773_v50  ;;  %v2015_v11 = vld [vmem:[#allocation2 + $0x199] sm:$0xff]  ;;  %v654_v22 = vld [vmem:[#allocation2 + $0xa8] sm:$0xff] }
 0x359   : > { %3612 = vrot.lane.b32.xlu0 %v2125_v41, %s7843_s17  ;;  %7569 = vmatmul.mubr.msk.bf16.gmra.mrb[8].mxu1 %vm5019_vm12, %v4944_v7  ;;  %v4624_v62 = vsel %vm4610_vm9, %v4495_v47, %v3403_v57  ;;  %v1825_v41 = vld [vmem:[#allocation2 + $0x1a8] sm:$0xff]  ;;  %v4172_v39 = vsel %vm4094_vm5, %v4018_v38, %v12774_v58  ;;  %v4497_v57 = vsel %vm4481_vm8, %v4368_v59, %v9357_v61  ;;  %v12776_v3 = vld [vmem:[#allocation241_spill] sm:$0xff] }
 0x35a   : > { %3674 = vrot.lane.b32.xlu1 %v2156_v54, %s7843_s17  ;;  %v1935_v34 = vpack.c.bf16 %v1825_v41, %v1824_v6  ;;  %v1886_v54 = vld [vmem:[#allocation2 + $0x410] sm:$0xff]  ;;  %v12777_v7 = vld [vmem:[#allocation39_spill] sm:$0xff]  ;;  %v1967_v33 = vpack.c.bf16 %v1889_v20, %v1888_v31  ;;  %v2127_v53 = vpack.c.bf16 %v2017_v25, %v2016_v48  ;;  %v2207_v6 = vld [vmem:[#allocation2 + $0x19a] sm:$0xff] }
 0x35b   : > { %v3405_v9 = vpop.permute.xlu0 %3404  ;;  %v3467_v2 = vpop.permute.xlu1 %3466  ;;  %v2078_v47 = vld [vmem:[#allocation2 + $0x411] sm:$0xff]  ;;  %v2080_v43 = vld [vmem:[#allocation2 + $0x421] sm:$0xff]  ;;  %v2081_v55 = vld [vmem:[#allocation2 + $0x429] sm:$0xff] }
 0x35c   : > { %v4626_v21 = vsel %vm4610_vm9, %v4497_v57, %v3405_v9  ;;  %v1966_v9 = vpack.c.bf16 %v1887_v35, %v1886_v54  ;;  %v656_v38 = vld [vmem:[#allocation2 + $0xb8] sm:$0xff]  ;;  %v2208_v59 = vld [vmem:[#allocation2 + $0x1a2] sm:$0xff] }
 0x35d   : > { %3802 = vrot.lane.b32.xlu0 %v2316_v12, %s7844_s19  ;;  %v4301_v12 = vsel %vm4223_vm6, %v4172_v39, %v12775_v63  ;;  %v2159_v39 = vpack.c.bf16 %v2081_v55, %v2080_v43  ;;  %v12784_v57 = vld [vmem:[#allocation9_spill] sm:$0xff]  ;;  %v1827_v20 = vld [vmem:[#allocation2 + $0x1c0] sm:$0xff] }
 0x35e   : > { %3676 = vrot.lane.b32.xlu1 %v2157_v46, %s7843_s17  ;;  %v4430_v49 = vsel %vm4352_vm7, %v4301_v12, %v12776_v3  ;;  %v12778_v46 = vld [vmem:[#allocation107_spill] sm:$0xff]  ;;  %v2270_v63 = vld [vmem:[#allocation2 + $0x412] sm:$0xff]  ;;  %v2271_v12 = vld [vmem:[#allocation2 + $0x41a] sm:$0xff] }
 0x35f   : > { %v3595_v26 = vpop.permute.xlu0 %3594  ;;  %v9709_v51 = vpop.permute.xlu1 %3468  ;;  %v4021_v27 = vsel %vm239_vm1, %v12778_v46, %v12777_v7  ;;  %v2350_v7 = vpack.c.bf16 %v2271_v12, %v2270_v63  ;;  %v12788_v46 = vld [vmem:[#allocation12_spill] sm:$0xff]  ;;  %v1826_v31 = vld [vmem:[#allocation2 + $0x1b8] sm:$0xff]  ;;  %v12792_v48 = vld [vmem:[#allocation38_spill] sm:$0xff] }
 0x360   : > { %v4753_v52 = vsel %vm4739_vm10, %v4624_v62, %v3595_v26  ;;  %v4174_v1 = vsel %vm4094_vm5, %v4021_v27, %v12780_v18  ;;  %v12790_v18 = vld [vmem:[#allocation69_spill] sm:$0xff] }
 0x361   : > { %3804 = vrot.lane.b32.xlu0 %v2317_v56, %s7844_s19  ;;  %v12779_v56 = vld [vmem:[#allocation292_spill] sm:$0xff]  ;;  %v4303_v30 = vsel %vm4223_vm6, %v4174_v1, %v12781_v45  ;;  %v12791_v45 = vld [vmem:[#allocation157_spill] sm:$0xff] }
 0x362   : > { %3866 = vrot.lane.b32.xlu1 %v2348_v60, %s7844_s19  ;;  %v4559_v29 = vsel %vm4481_vm8, %v4430_v49, %v12779_v56  ;;  %v4432_v10 = vsel %vm4352_vm7, %v4303_v30, %v12782_v37  ;;  %v12789_v56 = vld [vmem:[#allocation268_spill] sm:$0xff]  ;;  %v12793_v25 = vld [vmem:[#allocation105_spill] sm:$0xff] }
 0x363   : > { %v3597_v0 = vpop.permute.xlu0 %3596  ;;  %v3659_v24 = vpop.permute.xlu1 %3658  ;;  %v4688_v26 = vsel %vm4610_vm9, %v4559_v29, %v3467_v2  ;;  %v4024_v37 = vsel %vm239_vm1, %v12793_v25, %v12792_v48  ;;  %v12801_v55 = vld [vmem:[#allocation293_spill] sm:$0xff]  ;;  %v2083_v48 = vld [vmem:[#allocation2 + $0x441] sm:$0xff] }
 0x364   : > { %v4755_v61 = vsel %vm4739_vm10, %v4626_v21, %v3597_v0  ;;  %v4817_v23 = vsel %vm4739_vm10, %v4688_v26, %v3659_v24  ;;  %v12783_v0 = vld [vmem:[#allocation294_spill] sm:$0xff]  ;;  %v2206_v24 = vld [vmem:[#allocation2 + $0x192] sm:$0xff] }
 0x365   : > { %3294 = vrot.lane.b32.xlu0 %v2348_v60, %s7840_s6  ;;  %v2126_v60 = vpack.c.bf16 %v2015_v11, %v2014_v8  ;;  %v4561_v40 = vsel %vm4481_vm8, %v4432_v10, %v12783_v0  ;;  %v12785_v21 = vld [vmem:[#allocation66_spill] sm:$0xff]  ;;  %v12794_v10 = vld [vmem:[#allocation216_spill] sm:$0xff] }
 0x366   : > { %3868 = vrot.lane.b32.xlu1 %v2349_v4, %s7844_s19  ;;  %v4690_v5 = vsel %vm4610_vm9, %v4561_v40, %v9709_v51  ;;  %v12786_v11 = vld [vmem:[#allocation154_spill] sm:$0xff] }
 0x367   : > { %v3787_v44 = vpop.permute.xlu0 %3786  ;;  %v3661_v17 = vpop.permute.xlu1 %3660  ;;  %v12795_v40 = vld [vmem:[#allocation98_spill] sm:$0xff] }
 0x368   : > { %v4882_v13 = vsel %vm4868_vm11, %v4753_v52, %v3787_v44  ;;  %v4819_v19 = vsel %vm4739_vm10, %v4690_v5, %v3661_v17  ;;  %v655_v52 = vld [vmem:[#allocation2 + $0xb0] sm:$0xff]  ;;  %v2318_v44 = vpack.c.bf16 %v2207_v6, %v2206_v24  ;;  %v12798_v6 = vld [vmem:[#allocation243_spill] sm:$0xff]  ;;  %v660_v25 = vld [vmem:[#allocation2 + $0xe0] sm:$0xff] }
 0x369   : > { %3422 = vrot.lane.b32.xlu0 %v1934_v28, %s7841_s9  ;;  %7508 = vmatprep.mubr.msk.bf16.mxu0 %vm5019_vm12, %v4882_v13  ;;  %v2079_v28 = vld [vmem:[#allocation2 + $0x419] sm:$0xff]  ;;  %v2209_v13 = vld [vmem:[#allocation2 + $0x1aa] sm:$0xff]  ;;  %v774_v54 = vpack.c.bf16 %v656_v38, %v655_v52 }
 0x36a   : > { %3296 = vrot.lane.b32.xlu1 %v2349_v4, %s7840_s6  ;;  %v653_v4 = vld [vmem:[#allocation2 + $0xa0] sm:$0xff]  ;;  %v2158_v16 = vpack.c.bf16 %v2079_v28, %v2078_v47  ;;  %v2319_v35 = vpack.c.bf16 %v2209_v13, %v2208_v59  ;;  %v12797_v47 = vld [vmem:[#allocation184_spill] sm:$0xff]  ;;  %v12799_v52 = vld [vmem:[#allocation41_spill] sm:$0xff] }
 0x36b   : > { %v3789_v15 = vpop.permute.xlu0 %3788  ;;  %v3851_v32 = vpop.permute.xlu1 %3850  ;;  %v773_v51 = vpack.c.bf16 %v654_v22, %v653_v4  ;;  %v3931_v27 = vsel %vm239_vm1, %v774_v54, %v12788_v46  ;;  %v12796_v4 = vld [vmem:[#allocation270_spill] sm:$0xff]  ;;  %v1829_v24 = vld [vmem:[#allocation2 + $0x1d0] sm:$0xff]  ;;  %v12803_v54 = vld [vmem:[#allocation187_spill] sm:$0xff] }
 0x36c   : > { %v4884_v42 = vsel %vm4868_vm11, %v4755_v61, %v3789_v15  ;;  %v4946_v2 = vsel %vm4868_vm11, %v4817_v23, %v3851_v32  ;;  %v12787_v61 = vld [vmem:[#allocation213_spill] sm:$0xff]  ;;  %v4114_v1 = vsel %vm4094_vm5, %v3931_v27, %v12790_v18  ;;  %v657_v46 = vld [vmem:[#allocation2 + $0xc8] sm:$0xff] }
 0x36d   : > { %3424 = vrot.lane.b32.xlu0 %v1935_v34, %s7841_s9  ;;  %7509 = vmatmul.mubr.msk.bf16.gmra.mrb[12].mxu0 %vm5019_vm12, %v4884_v42  ;;  %v3928_v34 = vsel %vm239_vm1, %v773_v51, %v12784_v57  ;;  %v2272_v42 = vld [vmem:[#allocation2 + $0x422] sm:$0xff]  ;;  %v4243_v30 = vsel %vm4223_vm6, %v4114_v1, %v12791_v45  ;;  %v1890_v57 = vld [vmem:[#allocation2 + $0x438] sm:$0xff] }
 0x36e   : > { %3486 = vrot.lane.b32.xlu1 %v1966_v9, %s7841_s9  ;;  %7572 = vmatprep.mubr.msk.bf16.mxu1 %vm5019_vm12, %v4946_v2  ;;  %v4112_v17 = vsel %vm4094_vm5, %v3928_v34, %v12785_v21  ;;  %v2273_v9 = vld [vmem:[#allocation2 + $0x42a] sm:$0xff]  ;;  %v4372_v2 = vsel %vm4352_vm7, %v4243_v30, %v12794_v10  ;;  %v1891_v34 = vld [vmem:[#allocation2 + $0x440] sm:$0xff]  ;;  %v659_v30 = vld [vmem:[#allocation2 + $0xd8] sm:$0xff] }
 0x36f   : > { %v3407_v36 = vpop.permute.xlu0 %3406  ;;  %v3853_v62 = vpop.permute.xlu1 %3852  ;;  %v4241_v3 = vsel %vm4223_vm6, %v4112_v17, %v12786_v11  ;;  %v4501_v5 = vsel %vm4481_vm8, %v4372_v2, %v12796_v4  ;;  %v2018_v21 = vld [vmem:[#allocation2 + $0x1b9] sm:$0xff]  ;;  %v2019_v17 = vld [vmem:[#allocation2 + $0x1c1] sm:$0xff]  ;;  %v776_v4 = vpack.c.bf16 %v660_v25, %v659_v30 }
 0x370   : > { %v4948_v41 = vsel %vm4868_vm11, %v4819_v19, %v3853_v62  ;;  %v4370_v15 = vsel %vm4352_vm7, %v4241_v3, %v12787_v61  ;;  %v1828_v62 = vld [vmem:[#allocation2 + $0x1c8] sm:$0xff]  ;;  %v12804_v11 = vld [vmem:[#allocation246_spill] sm:$0xff]  ;;  %v12805_v61 = vld [vmem:[#allocation296_spill] sm:$0xff] }
 0x371   : > { %3614 = vrot.lane.b32.xlu0 %v2126_v60, %s7843_s17  ;;  %7573 = vmatmul.mubr.msk.bf16.gmra.mrb[12].mxu1 %vm5019_vm12, %v4948_v41  ;;  %v4499_v29 = vsel %vm4481_vm8, %v4370_v15, %v12789_v56  ;;  %v2128_v56 = vpack.c.bf16 %v2019_v17, %v2018_v21  ;;  %v2210_v10 = vld [vmem:[#allocation2 + $0x1ba] sm:$0xff]  ;;  %v2211_v2 = vld [vmem:[#allocation2 + $0x1c2] sm:$0xff]  ;;  %v12814_v17 = vld [vmem:[#allocation40_spill] sm:$0xff] }
 0x372   : > { %3488 = vrot.lane.b32.xlu1 %v1967_v33, %s7841_s9  ;;  %v4628_v26 = vsel %vm4610_vm9, %v4499_v29, %v3407_v36  ;;  %v2351_v36 = vpack.c.bf16 %v2273_v9, %v2272_v42  ;;  %v4176_v33 = vsel %vm4094_vm5, %v4024_v37, %v12795_v40  ;;  %v1892_v29 = vld [vmem:[#allocation2 + $0x448] sm:$0xff]  ;;  %v1893_v42 = vld [vmem:[#allocation2 + $0x450] sm:$0xff] }
 0x373   : > { %v3409_v14 = vpop.permute.xlu0 %3408  ;;  %v3471_v50 = vpop.permute.xlu1 %3470  ;;  %v4305_v28 = vsel %vm4223_vm6, %v4176_v33, %v12797_v47  ;;  %v658_v9 = vld [vmem:[#allocation2 + $0xd0] sm:$0xff]  ;;  %v1969_v45 = vpack.c.bf16 %v1893_v42, %v1892_v29  ;;  %v12806_v40 = vld [vmem:[#allocation11_spill] sm:$0xff] }
 0x374   : > { %v4630_v22 = vsel %vm4610_vm9, %v4501_v5, %v3409_v14  ;;  %v4434_v41 = vsel %vm4352_vm7, %v4305_v28, %v12798_v6  ;;  %v12802_v14 = vld [vmem:[#allocation104_spill] sm:$0xff]  ;;  %v2320_v5 = vpack.c.bf16 %v2211_v2, %v2210_v10  ;;  %v12823_v10 = vld [vmem:[#allocation295_spill] sm:$0xff] }
 0x375   : > { %3616 = vrot.lane.b32.xlu0 %v2127_v53, %s7843_s17  ;;  %v1936_v53 = vpack.c.bf16 %v1827_v20, %v1826_v31  ;;  %v4563_v38 = vsel %vm4481_vm8, %v4434_v41, %v12801_v55  ;;  %v2085_v47 = vld [vmem:[#allocation2 + $0x451] sm:$0xff] }
 0x376   : > { %3678 = vrot.lane.b32.xlu1 %v2158_v16, %s7843_s17  ;;  %v12807_v28 = vld [vmem:[#allocation68_spill] sm:$0xff] }
 0x377   : > { %v3599_v58 = vpop.permute.xlu0 %3598  ;;  %v3473_v8 = vpop.permute.xlu1 %3472  ;;  %v12808_v6 = vld [vmem:[#allocation156_spill] sm:$0xff] }
 0x378   : > { %v4757_v23 = vsel %vm4739_vm10, %v4628_v26, %v3599_v58  ;;  %v4692_v58 = vsel %vm4610_vm9, %v4563_v38, %v3471_v50  ;;  %v2020_v26 = vld [vmem:[#allocation2 + $0x1c9] sm:$0xff]  ;;  %v12811_v38 = vld [vmem:[#allocation269_spill] sm:$0xff] }
 0x379   : > { %3806 = vrot.lane.b32.xlu0 %v2318_v44, %s7844_s19  ;;  %v12800_v44 = vld [vmem:[#allocation111_spill] sm:$0xff]  ;;  %v2277_v42 = vld [vmem:[#allocation2 + $0x452] sm:$0xff] }
 0x37a   : > { %3680 = vrot.lane.b32.xlu1 %v2159_v39, %s7843_s17  ;;  %v4027_v43 = vsel %vm239_vm1, %v12800_v44, %v12799_v52  ;;  %v1937_v39 = vpack.c.bf16 %v1829_v24, %v1828_v62  ;;  %v2212_v62 = vld [vmem:[#allocation2 + $0x1ca] sm:$0xff]  ;;  %v2213_v24 = vld [vmem:[#allocation2 + $0x1d2] sm:$0xff] }
 0x37b   : > { %v3601_v49 = vpop.permute.xlu0 %3600  ;;  %v3663_v60 = vpop.permute.xlu1 %3662  ;;  %v4178_v13 = vsel %vm4094_vm5, %v4027_v43, %v12802_v14  ;;  %v12810_v43 = vld [vmem:[#allocation14_spill] sm:$0xff]  ;;  %v2321_v14 = vpack.c.bf16 %v2213_v24, %v2212_v62  ;;  %v2276_v29 = vld [vmem:[#allocation2 + $0x44a] sm:$0xff]  ;;  %v1833_v62 = vld [vmem:[#allocation2 + $0x1f8] sm:$0xff] }
 0x37c   : > { %v4759_v16 = vsel %vm4739_vm10, %v4630_v22, %v3601_v49  ;;  %v4821_v63 = vsel %vm4739_vm10, %v4692_v58, %v3663_v60  ;;  %v2021_v60 = vld [vmem:[#allocation2 + $0x1d1] sm:$0xff]  ;;  %v3937_v55 = vsel %vm239_vm1, %v776_v4, %v12810_v43  ;;  %v2275_v58 = vld [vmem:[#allocation2 + $0x442] sm:$0xff] }
 0x37d   : > { %3808 = vrot.lane.b32.xlu0 %v2319_v35, %s7844_s19  ;;  %v4307_v35 = vsel %vm4223_vm6, %v4178_v13, %v12803_v54  ;;  %v2274_v13 = vld [vmem:[#allocation2 + $0x43a] sm:$0xff]  ;;  %v12826_v24 = vld [vmem:[#allocation248_spill] sm:$0xff] }
 0x37e   : > { %3870 = vrot.lane.b32.xlu1 %v2350_v7, %s7844_s19  ;;  %v4436_v3 = vsel %vm4352_vm7, %v4307_v35, %v12804_v11  ;;  %v12813_v35 = vld [vmem:[#allocation159_spill] sm:$0xff]  ;;  %v12815_v11 = vld [vmem:[#allocation109_spill] sm:$0xff]  ;;  %v1894_v43 = vld [vmem:[#allocation2 + $0x460] sm:$0xff] }
 0x37f   : > { %v3791_v32 = vpop.permute.xlu0 %3790  ;;  %v3665_v19 = vpop.permute.xlu1 %3664  ;;  %v4565_v15 = vsel %vm4481_vm8, %v4436_v3, %v12805_v61  ;;  %v4030_v3 = vsel %vm239_vm1, %v12815_v11, %v12814_v17  ;;  %v2025_v17 = vld [vmem:[#allocation2 + $0x1f9] sm:$0xff] }
 0x380   : > { %v4886_v0 = vsel %vm4868_vm11, %v4757_v23, %v3791_v32  ;;  %v4694_v27 = vsel %vm4610_vm9, %v4565_v15, %v3473_v8  ;;  %v775_v8 = vpack.c.bf16 %v658_v9, %v657_v46  ;;  %v2129_v23 = vpack.c.bf16 %v2021_v60, %v2020_v26  ;;  %v2082_v32 = vld [vmem:[#allocation2 + $0x439] sm:$0xff] }
 0x381   : > { %3298 = vrot.lane.b32.xlu0 %v2350_v7, %s7840_s6  ;;  %7512 = vmatprep.mubr.msk.bf16.mxu0 %vm5019_vm12, %v4886_v0  ;;  %v1968_v7 = vpack.c.bf16 %v1891_v34, %v1890_v57  ;;  %v4823_v18 = vsel %vm4739_vm10, %v4694_v27, %v3665_v19  ;;  %v12818_v27 = vld [vmem:[#allocation272_spill] sm:$0xff]  ;;  %v12819_v9 = vld [vmem:[#allocation186_spill] sm:$0xff] }
 0x382   : > { %3872 = vrot.lane.b32.xlu1 %v2351_v36, %s7844_s19  ;;  %v3934_v33 = vsel %vm239_vm1, %v775_v8, %v12806_v40  ;;  %v1830_v60 = vld [vmem:[#allocation2 + $0x1e0] sm:$0xff] }
 0x383   : > { %v3793_v51 = vpop.permute.xlu0 %3792  ;;  %v3855_v12 = vpop.permute.xlu1 %3854  ;;  %v4116_v22 = vsel %vm4094_vm5, %v3934_v33, %v12807_v28 }
 0x384   : > { %v4888_v59 = vsel %vm4868_vm11, %v4759_v16, %v3793_v51  ;;  %v4950_v50 = vsel %vm4868_vm11, %v4821_v63, %v3855_v12  ;;  %v4245_v41 = vsel %vm4223_vm6, %v4116_v22, %v12808_v6  ;;  %v12809_v51 = vld [vmem:[#allocation215_spill] sm:$0xff]  ;;  %v1832_v22 = vld [vmem:[#allocation2 + $0x1f0] sm:$0xff] }
 0x385   : > { %3426 = vrot.lane.b32.xlu0 %v1936_v53, %s7841_s9  ;;  %7513 = vmatmul.mubr.msk.bf16.gmra.mrb[16].mxu0 %vm5019_vm12, %v4888_v59  ;;  %v2084_v53 = vld [vmem:[#allocation2 + $0x449] sm:$0xff]  ;;  %v4374_v52 = vsel %vm4352_vm7, %v4245_v41, %v12809_v51 }
 0x386   : > { %3300 = vrot.lane.b32.xlu1 %v2351_v36, %s7840_s6  ;;  %7576 = vmatprep.mubr.msk.bf16.mxu1 %vm5019_vm12, %v4950_v50  ;;  %v2160_v36 = vpack.c.bf16 %v2083_v48, %v2082_v32  ;;  %v2161_v44 = vpack.c.bf16 %v2085_v47, %v2084_v53  ;;  %v4503_v59 = vsel %vm4481_vm8, %v4374_v52, %v12811_v38  ;;  %v12816_v50 = vld [vmem:[#allocation218_spill] sm:$0xff]  ;;  %v12821_v32 = vld [vmem:[#allocation43_spill] sm:$0xff] }
 0x387   : > { %v3411_v49 = vpop.permute.xlu0 %3410  ;;  %v3857_v1 = vpop.permute.xlu1 %3856  ;;  %v12822_v48 = vld [vmem:[#allocation115_spill] sm:$0xff] }
 0x388   : > { %v4952_v31 = vsel %vm4868_vm11, %v4823_v18, %v3857_v1  ;;  %v4632_v34 = vsel %vm4610_vm9, %v4503_v59, %v3411_v49  ;;  %v12817_v49 = vld [vmem:[#allocation102_spill] sm:$0xff]  ;;  %v4033_v25 = vsel %vm239_vm1, %v12822_v48, %v12821_v32  ;;  %v2216_v32 = vld [vmem:[#allocation2 + $0x1f2] sm:$0xff] }
 0x389   : > { %3428 = vrot.lane.b32.xlu0 %v1937_v39, %s7841_s9  ;;  %7577 = vmatmul.mubr.msk.bf16.gmra.mrb[16].mxu1 %vm5019_vm12, %v4952_v31  ;;  %v12812_v39 = vld [vmem:[#allocation71_spill] sm:$0xff]  ;;  %v4180_v46 = vsel %vm4094_vm5, %v4030_v3, %v12817_v49  ;;  %v2217_v48 = vld [vmem:[#allocation2 + $0x1fa] sm:$0xff] }
 0x38a   : > { %3490 = vrot.lane.b32.xlu1 %v1968_v7, %s7841_s9  ;;  %v4118_v57 = vsel %vm4094_vm5, %v3937_v55, %v12812_v39  ;;  %v2352_v7 = vpack.c.bf16 %v2275_v58, %v2274_v13  ;;  %v4309_v18 = vsel %vm4223_vm6, %v4180_v46, %v12819_v9  ;;  %v1831_v31 = vld [vmem:[#allocation2 + $0x1e8] sm:$0xff] }
 0x38b   : > { %v3413_v20 = vpop.permute.xlu0 %3412  ;;  %v3475_v37 = vpop.permute.xlu1 %3474  ;;  %v4247_v63 = vsel %vm4223_vm6, %v4118_v57, %v12813_v35  ;;  %v1938_v4 = vpack.c.bf16 %v1831_v31, %v1830_v60  ;;  %v1895_v55 = vld [vmem:[#allocation2 + $0x468] sm:$0xff]  ;;  %v1897_v35 = vld [vmem:[#allocation2 + $0x478] sm:$0xff] }
 0x38c   : > { %v4376_v61 = vsel %vm4352_vm7, %v4247_v63, %v12816_v50  ;;  %v2023_v13 = vld [vmem:[#allocation2 + $0x1e9] sm:$0xff]  ;;  %v1970_v57 = vpack.c.bf16 %v1895_v55, %v1894_v43  ;;  %v662_v63 = vld [vmem:[#allocation2 + $0xf8] sm:$0xff] }
 0x38d   : > { %3618 = vrot.lane.b32.xlu0 %v2128_v56, %s7843_s17  ;;  %v4505_v56 = vsel %vm4481_vm8, %v4376_v61, %v12818_v27  ;;  %v663_v61 = vld [vmem:[#allocation2 + $0x100] sm:$0xff]  ;;  %v2087_v49 = vld [vmem:[#allocation2 + $0x469] sm:$0xff]  ;;  %v2088_v31 = vld [vmem:[#allocation2 + $0x471] sm:$0xff] }
 0x38e   : > { %3492 = vrot.lane.b32.xlu1 %v1969_v45, %s7841_s9  ;;  %v4634_v1 = vsel %vm4610_vm9, %v4505_v56, %v3413_v20  ;;  %v12820_v45 = vld [vmem:[#allocation245_spill] sm:$0xff]  ;;  %v2353_v20 = vpack.c.bf16 %v2277_v42, %v2276_v29  ;;  %v664_v46 = vld [vmem:[#allocation2 + $0x108] sm:$0xff] }
 0x38f   : > { %v3603_v0 = vpop.permute.xlu0 %3602  ;;  %v3477_v19 = vpop.permute.xlu1 %3476  ;;  %v4438_v8 = vsel %vm4352_vm7, %v4309_v18, %v12820_v45  ;;  %v2214_v56 = vld [vmem:[#allocation2 + $0x1e2] sm:$0xff]  ;;  %v2215_v29 = vld [vmem:[#allocation2 + $0x1ea] sm:$0xff]  ;;  %v12828_v18 = vld [vmem:[#allocation13_spill] sm:$0xff] }
 0x390   : > { %v4761_v12 = vsel %vm4739_vm10, %v4632_v34, %v3603_v0  ;;  %v4567_v2 = vsel %vm4481_vm8, %v4438_v8, %v12823_v10  ;;  %v661_v34 = vld [vmem:[#allocation2 + $0xf0] sm:$0xff]  ;;  %v2322_v60 = vpack.c.bf16 %v2215_v29, %v2214_v56  ;;  %v2089_v45 = vld [vmem:[#allocation2 + $0x479] sm:$0xff]  ;;  %v12844_v56 = vld [vmem:[#allocation119_spill] sm:$0xff] }
 0x391   : > { %3620 = vrot.lane.b32.xlu0 %v2129_v23, %s7843_s17  ;;  %v4696_v33 = vsel %vm4610_vm9, %v4567_v2, %v3475_v37  ;;  %v12827_v37 = vld [vmem:[#allocation297_spill] sm:$0xff]  ;;  %v777_v50 = vpack.c.bf16 %v662_v63, %v661_v34  ;;  %v12829_v8 = vld [vmem:[#allocation70_spill] sm:$0xff] }
 0x392   : > { %3682 = vrot.lane.b32.xlu1 %v2160_v36, %s7843_s17  ;;  %v12824_v36 = vld [vmem:[#allocation108_spill] sm:$0xff]  ;;  %v12837_v43 = vld [vmem:[#allocation113_spill] sm:$0xff] }
 0x393   : > { %v3605_v16 = vpop.permute.xlu0 %3604  ;;  %v4182_v40 = vsel %vm4094_vm5, %v4033_v25, %v12824_v36  ;;  %v12830_v25 = vld [vmem:[#allocation158_spill] sm:$0xff]  ;;  %v2163_v36 = vpack.c.bf16 %v2089_v45, %v2088_v31  ;;  %v12846_v31 = vld [vmem:[#allocation191_spill] sm:$0xff] }
 0x394   : > { %v3667_v54 = vpop.permute.xlu1 %3666  ;;  %v4763_v30 = vsel %vm4739_vm10, %v4634_v1, %v3605_v16  ;;  %v3940_v1 = vsel %vm239_vm1, %v777_v50, %v12828_v18  ;;  %v1835_v50 = vld [vmem:[#allocation2 + $0x210] sm:$0xff] }
 0x395   : > { %3810 = vrot.lane.b32.xlu0 %v2320_v5, %s7844_s19  ;;  %v12825_v5 = vld [vmem:[#allocation189_spill] sm:$0xff]  ;;  %v4825_v47 = vsel %vm4739_vm10, %v4696_v33, %v3667_v54  ;;  %v1896_v54 = vld [vmem:[#allocation2 + $0x470] sm:$0xff] }
 0x396   : > { %3684 = vrot.lane.b32.xlu1 %v2161_v44, %s7843_s17  ;;  %v4311_v53 = vsel %vm4223_vm6, %v4182_v40, %v12825_v5  ;;  %v1939_v44 = vpack.c.bf16 %v1833_v62, %v1832_v22  ;;  %v1971_v3 = vpack.c.bf16 %v1897_v35, %v1896_v54  ;;  %v12832_v40 = vld [vmem:[#allocation16_spill] sm:$0xff]  ;;  %v12834_v22 = vld [vmem:[#allocation73_spill] sm:$0xff] }
 0x397   : > { %v3795_v21 = vpop.permute.xlu0 %3794  ;;  %v4440_v6 = vsel %vm4352_vm7, %v4311_v53, %v12826_v24  ;;  %v2323_v53 = vpack.c.bf16 %v2217_v48, %v2216_v32  ;;  %v2281_v54 = vld [vmem:[#allocation2 + $0x47a] sm:$0xff]  ;;  %v12841_v35 = vld [vmem:[#allocation188_spill] sm:$0xff] }
 0x398   : > { %v4890_v15 = vsel %vm4868_vm11, %v4761_v12, %v3795_v21  ;;  %v3669_v26 = vpop.permute.xlu1 %3668  ;;  %v4569_v51 = vsel %vm4481_vm8, %v4440_v6, %v12827_v37  ;;  %v2024_v21 = vld [vmem:[#allocation2 + $0x1f1] sm:$0xff]  ;;  %v1837_v32 = vld [vmem:[#allocation2 + $0x220] sm:$0xff] }
 0x399   : > { %3812 = vrot.lane.b32.xlu0 %v2321_v14, %s7844_s19  ;;  %7516 = vmatprep.mubr.msk.bf16.mxu0 %vm5019_vm12, %v4890_v15  ;;  %v4698_v52 = vsel %vm4610_vm9, %v4569_v51, %v3477_v19  ;;  %v2022_v14 = vld [vmem:[#allocation2 + $0x1e1] sm:$0xff]  ;;  %v2131_v15 = vpack.c.bf16 %v2025_v17, %v2024_v21  ;;  %v12845_v18 = vld [vmem:[#allocation112_spill] sm:$0xff] }
 0x39a   : > { %3874 = vrot.lane.b32.xlu1 %v2352_v7, %s7844_s19  ;;  %v4827_v38 = vsel %vm4739_vm10, %v4698_v52, %v3669_v26  ;;  %v2130_v19 = vpack.c.bf16 %v2023_v13, %v2022_v14  ;;  %v778_v26 = vpack.c.bf16 %v664_v46, %v663_v61  ;;  %v12842_v61 = vld [vmem:[#allocation247_spill] sm:$0xff]  ;;  %v12843_v46 = vld [vmem:[#allocation45_spill] sm:$0xff]  ;;  %v12847_v48 = vld [vmem:[#allocation250_spill] sm:$0xff] }
 0x39b   : > { %v3797_v23 = vpop.permute.xlu0 %3796  ;;  %v4039_v29 = vsel %vm239_vm1, %v12844_v56, %v12843_v46  ;;  %v12850_v46 = vld [vmem:[#allocation160_spill] sm:$0xff] }
 0x39c   : > { %v4892_v0 = vsel %vm4868_vm11, %v4763_v30, %v3797_v23  ;;  %v3859_v28 = vpop.permute.xlu1 %3858  ;;  %v4120_v30 = vsel %vm4094_vm5, %v3940_v1, %v12829_v8  ;;  %v3943_v33 = vsel %vm239_vm1, %v778_v26, %v12832_v40  ;;  %v4186_v1 = vsel %vm4094_vm5, %v4039_v29, %v12845_v18  ;;  %v1899_v40 = vld [vmem:[#allocation2 + $0x490] sm:$0xff]  ;;  %v12852_v18 = vld [vmem:[#allocation18_spill] sm:$0xff] }
 0x39d   : > { %3302 = vrot.lane.b32.xlu0 %v2352_v7, %s7840_s6  ;;  %7517 = vmatmul.mubr.msk.bf16.gmra.mrb[20].mxu0 %vm5019_vm12, %v4892_v0  ;;  %v4954_v41 = vsel %vm4868_vm11, %v4825_v47, %v3859_v28  ;;  %v2086_v7 = vld [vmem:[#allocation2 + $0x461] sm:$0xff]  ;;  %v4249_v10 = vsel %vm4223_vm6, %v4120_v30, %v12830_v25  ;;  %v12831_v0 = vld [vmem:[#allocation217_spill] sm:$0xff]  ;;  %v2279_v28 = vld [vmem:[#allocation2 + $0x46a] sm:$0xff]  ;;  %v4122_v62 = vsel %vm4094_vm5, %v3943_v33, %v12834_v22 }
 0x39e   : > { %3876 = vrot.lane.b32.xlu1 %v2353_v20, %s7844_s19  ;;  %7580 = vmatprep.mubr.msk.bf16.mxu1 %vm5019_vm12, %v4954_v41  ;;  %v2162_v9 = vpack.c.bf16 %v2087_v49, %v2086_v7  ;;  %v2278_v47 = vld [vmem:[#allocation2 + $0x462] sm:$0xff]  ;;  %v12835_v41 = vld [vmem:[#allocation161_spill] sm:$0xff]  ;;  %v4315_v45 = vsel %vm4223_vm6, %v4186_v1, %v12846_v31 }
 0x39f   : > { %v9905_v16 = vpop.permute.xlu0 %3286  ;;  %v4251_v37 = vsel %vm4223_vm6, %v4122_v62, %v12835_v41  ;;  %v2354_v13 = vpack.c.bf16 %v2279_v28, %v2278_v47  ;;  %v1836_v30 = vld [vmem:[#allocation2 + $0x218] sm:$0xff]  ;;  %v4444_v25 = vsel %vm4352_vm7, %v4315_v45, %v12847_v48  ;;  %v2282_v45 = vld [vmem:[#allocation2 + $0x48a] sm:$0xff] }
 0x3a0   : > { %v3861_v59 = vpop.permute.xlu1 %3860  ;;  %v665_v22 = vld [vmem:[#allocation2 + $0x118] sm:$0xff] }
 0x3a1   : > { %3430 = vrot.lane.b32.xlu0 %v1938_v4, %s7841_s9  ;;  %v4956_v58 = vsel %vm4868_vm11, %v4827_v38, %v3861_v59  ;;  %v12833_v4 = vld [vmem:[#allocation271_spill] sm:$0xff]  ;;  %v12838_v38 = vld [vmem:[#allocation220_spill] sm:$0xff]  ;;  %v1900_v62 = vld [vmem:[#allocation2 + $0x498] sm:$0xff] }
 0x3a2   : > { %3304 = vrot.lane.b32.xlu1 %v2353_v20, %s7840_s6  ;;  %7581 = vmatmul.mubr.msk.bf16.gmra.mrb[20].mxu1 %vm5019_vm12, %v4956_v58  ;;  %v4378_v20 = vsel %vm4352_vm7, %v4249_v10, %v12831_v0  ;;  %v4380_v59 = vsel %vm4352_vm7, %v4251_v37, %v12838_v38  ;;  %v12839_v58 = vld [vmem:[#allocation106_spill] sm:$0xff] }
 0x3a3   : > { %v3415_v39 = vpop.permute.xlu0 %3414  ;;  %v4507_v5 = vsel %vm4481_vm8, %v4378_v20, %v12833_v4  ;;  %v1941_v20 = vpack.c.bf16 %v1837_v32, %v1836_v30  ;;  %v2028_v37 = vld [vmem:[#allocation2 + $0x219] sm:$0xff] }
 0x3a4   : > { %v9918_v12 = vpop.permute.xlu1 %3288  ;;  %v4636_v24 = vsel %vm4610_vm9, %v4507_v5, %v3415_v39  ;;  %v2026_v5 = vld [vmem:[#allocation2 + $0x209] sm:$0xff] }
 0x3a5   : > { %3432 = vrot.lane.b32.xlu0 %v1939_v44, %s7841_s9  ;;  %v12836_v44 = vld [vmem:[#allocation42_spill] sm:$0xff] }
 0x3a6   : > { %3494 = vrot.lane.b32.xlu1 %v1970_v57, %s7841_s9  ;;  %v4036_v55 = vsel %vm239_vm1, %v12837_v43, %v12836_v44  ;;  %v12840_v57 = vld [vmem:[#allocation274_spill] sm:$0xff] }
 0x3a7   : > { %v3417_v11 = vpop.permute.xlu0 %3416  ;;  %v4184_v39 = vsel %vm4094_vm5, %v4036_v55, %v12839_v58  ;;  %v4509_v34 = vsel %vm4481_vm8, %v4380_v59, %v12840_v57  ;;  %v667_v55 = vld [vmem:[#allocation2 + $0x128] sm:$0xff]  ;;  %v2219_v57 = vld [vmem:[#allocation2 + $0x212] sm:$0xff] }
 0x3a8   : > { %v3479_v27 = vpop.permute.xlu1 %3478  ;;  %v4313_v63 = vsel %vm4223_vm6, %v4184_v39, %v12841_v35  ;;  %v4638_v21 = vsel %vm4610_vm9, %v4509_v34, %v3417_v11  ;;  %v2090_v59 = vld [vmem:[#allocation2 + $0x489] sm:$0xff] }
 0x3a9   : > { %3622 = vrot.lane.b32.xlu0 %v2130_v19, %s7843_s17  ;;  %v2280_v19 = vld [vmem:[#allocation2 + $0x472] sm:$0xff]  ;;  %v2218_v39 = vld [vmem:[#allocation2 + $0x20a] sm:$0xff] }
 0x3aa   : > { %3496 = vrot.lane.b32.xlu1 %v1971_v3, %s7841_s9  ;;  %v1834_v3 = vld [vmem:[#allocation2 + $0x208] sm:$0xff]  ;;  %v2355_v11 = vpack.c.bf16 %v2281_v54, %v2280_v19 }
 0x3ab   : > { %v3607_v42 = vpop.permute.xlu0 %3606  ;;  %v12848_v54 = vld [vmem:[#allocation15_spill] sm:$0xff] }
 0x3ac   : > { %v3481_v23 = vpop.permute.xlu1 %3480  ;;  %v4765_v51 = vsel %vm4739_vm10, %v4636_v24, %v3607_v42  ;;  %v1901_v24 = vld [vmem:[#allocation2 + $0x4a0] sm:$0xff] }
 0x3ad   : > { %3624 = vrot.lane.b32.xlu0 %v2131_v15, %s7843_s17  ;;  %v4442_v15 = vsel %vm4352_vm7, %v4313_v63, %v12842_v61  ;;  %v1973_v44 = vpack.c.bf16 %v1901_v24, %v1900_v62  ;;  %v2285_v62 = vld [vmem:[#allocation2 + $0x4a2] sm:$0xff] }
 0x3ae   : > { %3686 = vrot.lane.b32.xlu1 %v2162_v9, %s7843_s17  ;;  %v4571_v42 = vsel %vm4481_vm8, %v4442_v15, %v9905_v16  ;;  %v12861_v24 = vld [vmem:[#allocation190_spill] sm:$0xff] }
 0x3af   : > { %v3609_v2 = vpop.permute.xlu0 %3608  ;;  %v4700_v26 = vsel %vm4610_vm9, %v4571_v42, %v3479_v27  ;;  %v4573_v27 = vsel %vm4481_vm8, %v4444_v25, %v9918_v12  ;;  %v12851_v42 = vld [vmem:[#allocation219_spill] sm:$0xff] }
 0x3b0   : > { %v3671_v6 = vpop.permute.xlu1 %3670  ;;  %v4767_v7 = vsel %vm4739_vm10, %v4638_v21, %v3609_v2  ;;  %v4702_v0 = vsel %vm4610_vm9, %v4573_v27, %v3481_v23  ;;  %v2324_v21 = vpack.c.bf16 %v2219_v57, %v2218_v39  ;;  %v12855_v25 = vld [vmem:[#allocation163_spill] sm:$0xff] }
 0x3b1   : > { %3814 = vrot.lane.b32.xlu0 %v2322_v60, %s7844_s19  ;;  %v1940_v60 = vpack.c.bf16 %v1835_v50, %v1834_v3  ;;  %v4829_v16 = vsel %vm4739_vm10, %v4700_v26, %v3671_v6  ;;  %v666_v6 = vld [vmem:[#allocation2 + $0x120] sm:$0xff]  ;;  %v12849_v50 = vld [vmem:[#allocation72_spill] sm:$0xff]  ;;  %v12853_v26 = vld [vmem:[#allocation273_spill] sm:$0xff] }
 0x3b2   : > { %3688 = vrot.lane.b32.xlu1 %v2163_v36, %s7843_s17  ;;  %v1898_v36 = vld [vmem:[#allocation2 + $0x488] sm:$0xff]  ;;  %v779_v43 = vpack.c.bf16 %v666_v6, %v665_v22 }
 0x3b3   : > { %v3799_v52 = vpop.permute.xlu0 %3798  ;;  %v1972_v12 = vpack.c.bf16 %v1899_v40, %v1898_v36  ;;  %v2093_v3 = vld [vmem:[#allocation2 + $0x4a1] sm:$0xff]  ;;  %v12857_v36 = vld [vmem:[#allocation117_spill] sm:$0xff] }
 0x3b4   : > { %v4894_v14 = vsel %vm4868_vm11, %v4765_v51, %v3799_v52  ;;  %v3673_v17 = vpop.permute.xlu1 %3672  ;;  %v2029_v51 = vld [vmem:[#allocation2 + $0x221] sm:$0xff]  ;;  %v3946_v35 = vsel %vm239_vm1, %v779_v43, %v12848_v54  ;;  %v1839_v43 = vld [vmem:[#allocation2 + $0x238] sm:$0xff]  ;;  %v12865_v54 = vld [vmem:[#allocation116_spill] sm:$0xff] }
 0x3b5   : > { %3816 = vrot.lane.b32.xlu0 %v2323_v53, %s7844_s19  ;;  %7520 = vmatprep.mubr.msk.bf16.mxu0 %vm5019_vm12, %v4894_v14  ;;  %v4831_v33 = vsel %vm4739_vm10, %v4702_v0, %v3673_v17  ;;  %v2027_v53 = vld [vmem:[#allocation2 + $0x211] sm:$0xff]  ;;  %v2133_v38 = vpack.c.bf16 %v2029_v51, %v2028_v37  ;;  %v2092_v17 = vld [vmem:[#allocation2 + $0x499] sm:$0xff]  ;;  %v4124_v61 = vsel %vm4094_vm5, %v3946_v35, %v12849_v50  ;;  %v12864_v39 = vld [vmem:[#allocation123_spill] sm:$0xff] }
 0x3b6   : > { %3878 = vrot.lane.b32.xlu1 %v2354_v13, %s7844_s19  ;;  %v2132_v23 = vpack.c.bf16 %v2027_v53, %v2026_v5  ;;  %v2091_v14 = vld [vmem:[#allocation2 + $0x491] sm:$0xff]  ;;  %v4253_v56 = vsel %vm4223_vm6, %v4124_v61, %v12850_v46  ;;  %v1840_v61 = vld [vmem:[#allocation2 + $0x240] sm:$0xff] }
 0x3b7   : > { %v3801_v49 = vpop.permute.xlu0 %3800  ;;  %v2164_v19 = vpack.c.bf16 %v2091_v14, %v2090_v59 }
 0x3b8   : > { %v4896_v9 = vsel %vm4868_vm11, %v4767_v7, %v3801_v49  ;;  %v3863_v8 = vpop.permute.xlu1 %3862  ;;  %v2220_v7 = vld [vmem:[#allocation2 + $0x21a] sm:$0xff]  ;;  %v2221_v49 = vld [vmem:[#allocation2 + $0x222] sm:$0xff] }
 0x3b9   : > { %3306 = vrot.lane.b32.xlu0 %v2354_v13, %s7840_s6  ;;  %7521 = vmatmul.mubr.msk.bf16.gmra.mrb[24].mxu0 %vm5019_vm12, %v4896_v9  ;;  %v4958_v10 = vsel %vm4868_vm11, %v4829_v16, %v3863_v8  ;;  %v668_v13 = vld [vmem:[#allocation2 + $0x130] sm:$0xff]  ;;  %v4382_v9 = vsel %vm4352_vm7, %v4253_v56, %v12851_v42  ;;  %v2325_v31 = vpack.c.bf16 %v2221_v49, %v2220_v7  ;;  %v12854_v8 = vld [vmem:[#allocation75_spill] sm:$0xff] }
 0x3ba   : > { %3880 = vrot.lane.b32.xlu1 %v2355_v11, %s7844_s19  ;;  %7584 = vmatprep.mubr.msk.bf16.mxu1 %vm5019_vm12, %v4958_v10  ;;  %v780_v63 = vpack.c.bf16 %v668_v13, %v667_v55  ;;  %v2283_v16 = vld [vmem:[#allocation2 + $0x492] sm:$0xff]  ;;  %v12863_v13 = vld [vmem:[#allocation47_spill] sm:$0xff] }
 0x3bb   : > { %v9981_v2 = vpop.permute.xlu0 %3290  ;;  %v2356_v53 = vpack.c.bf16 %v2283_v16, %v2282_v45  ;;  %v12862_v55 = vld [vmem:[#allocation249_spill] sm:$0xff]  ;;  %v4045_v57 = vsel %vm239_vm1, %v12864_v39, %v12863_v13  ;;  %v1841_v7 = vld [vmem:[#allocation2 + $0x248] sm:$0xff]  ;;  %v12867_v49 = vld [vmem:[#allocation252_spill] sm:$0xff] }
 0x3bc   : > { %v3865_v4 = vpop.permute.xlu1 %3864  ;;  %v3949_v1 = vsel %vm239_vm1, %v780_v63, %v12852_v18  ;;  %v4190_v35 = vsel %vm4094_vm5, %v4045_v57, %v12865_v54  ;;  %v1903_v18 = vld [vmem:[#allocation2 + $0x4b8] sm:$0xff]  ;;  %v12870_v13 = vld [vmem:[#allocation162_spill] sm:$0xff]  ;;  %v12872_v54 = vld [vmem:[#allocation20_spill] sm:$0xff] }
 0x3bd   : > { %3434 = vrot.lane.b32.xlu0 %v1940_v60, %s7841_s9  ;;  %v4960_v47 = vsel %vm4868_vm11, %v4831_v33, %v3865_v4  ;;  %v4511_v60 = vsel %vm4481_vm8, %v4382_v9, %v12853_v26  ;;  %v4126_v30 = vsel %vm4094_vm5, %v3949_v1, %v12854_v8  ;;  %v12858_v33 = vld [vmem:[#allocation222_spill] sm:$0xff]  ;;  %v1943_v9 = vpack.c.bf16 %v1841_v7, %v1840_v61 }
 0x3be   : > { %3308 = vrot.lane.b32.xlu1 %v2355_v11, %s7840_s6  ;;  %7585 = vmatmul.mubr.msk.bf16.gmra.mrb[24].mxu1 %vm5019_vm12, %v4960_v47  ;;  %v2165_v11 = vpack.c.bf16 %v2093_v3, %v2092_v17  ;;  %v4255_v10 = vsel %vm4223_vm6, %v4126_v30, %v12855_v25  ;;  %v12859_v47 = vld [vmem:[#allocation110_spill] sm:$0xff]  ;;  %v12866_v17 = vld [vmem:[#allocation193_spill] sm:$0xff] }
 0x3bf   : > { %v3419_v28 = vpop.permute.xlu0 %3418  ;;  %v4384_v4 = vsel %vm4352_vm7, %v4255_v10, %v12858_v33  ;;  %v4319_v3 = vsel %vm4223_vm6, %v4190_v35, %v12866_v17  ;;  %v669_v8 = vld [vmem:[#allocation2 + $0x140] sm:$0xff] }
 0x3c0   : > { %v9994_v41 = vpop.permute.xlu1 %3292  ;;  %v4640_v32 = vsel %vm4610_vm9, %v4511_v60, %v3419_v28  ;;  %v4448_v46 = vsel %vm4352_vm7, %v4319_v3, %v12867_v49  ;;  %v2030_v60 = vld [vmem:[#allocation2 + $0x231] sm:$0xff]  ;;  %v1904_v30 = vld [vmem:[#allocation2 + $0x4c0] sm:$0xff] }
 0x3c1   : > { %3436 = vrot.lane.b32.xlu0 %v1941_v20, %s7841_s9  ;;  %v12856_v20 = vld [vmem:[#allocation44_spill] sm:$0xff]  ;;  %v2032_v10 = vld [vmem:[#allocation2 + $0x241] sm:$0xff] }
 0x3c2   : > { %3498 = vrot.lane.b32.xlu1 %v1972_v12, %s7841_s9  ;;  %v4042_v40 = vsel %vm239_vm1, %v12857_v36, %v12856_v20  ;;  %v12860_v12 = vld [vmem:[#allocation276_spill] sm:$0xff] }
 0x3c3   : > { %v3421_v52 = vpop.permute.xlu0 %3420  ;;  %v4188_v28 = vsel %vm4094_vm5, %v4042_v40, %v12859_v47  ;;  %v4513_v22 = vsel %vm4481_vm8, %v4384_v4, %v12860_v12  ;;  %v671_v40 = vld [vmem:[#allocation2 + $0x150] sm:$0xff]  ;;  %v2223_v12 = vld [vmem:[#allocation2 + $0x23a] sm:$0xff] }
 0x3c4   : > { %v3483_v58 = vpop.permute.xlu1 %3482  ;;  %v4317_v6 = vsel %vm4223_vm6, %v4188_v28, %v12861_v24  ;;  %v4642_v37 = vsel %vm4610_vm9, %v4513_v22, %v3421_v52  ;;  %v2094_v4 = vld [vmem:[#allocation2 + $0x4b1] sm:$0xff] }
 0x3c5   : > { %3626 = vrot.lane.b32.xlu0 %v2132_v23, %s7843_s17  ;;  %v2284_v23 = vld [vmem:[#allocation2 + $0x49a] sm:$0xff]  ;;  %v2222_v28 = vld [vmem:[#allocation2 + $0x232] sm:$0xff] }
 0x3c6   : > { %3500 = vrot.lane.b32.xlu1 %v1973_v44, %s7841_s9  ;;  %v1838_v44 = vld [vmem:[#allocation2 + $0x230] sm:$0xff]  ;;  %v2357_v52 = vpack.c.bf16 %v2285_v62, %v2284_v23  ;;  %v12868_v62 = vld [vmem:[#allocation17_spill] sm:$0xff] }
 0x3c7   : > { %v3611_v34 = vpop.permute.xlu0 %3610  ;;  %v2286_v3 = vld [vmem:[#allocation2 + $0x4b2] sm:$0xff] }
 0x3c8   : > { %v3485_v15 = vpop.permute.xlu1 %3484  ;;  %v4769_v27 = vsel %vm4739_vm10, %v4640_v32, %v3611_v34  ;;  %v1905_v32 = vld [vmem:[#allocation2 + $0x4c8] sm:$0xff] }
 0x3c9   : > { %3628 = vrot.lane.b32.xlu0 %v2133_v38, %s7843_s17  ;;  %v4446_v38 = vsel %vm4352_vm7, %v4317_v6, %v12862_v55  ;;  %v1975_v20 = vpack.c.bf16 %v1905_v32, %v1904_v30  ;;  %v2289_v30 = vld [vmem:[#allocation2 + $0x4ca] sm:$0xff] }
 0x3ca   : > { %3690 = vrot.lane.b32.xlu1 %v2164_v19, %s7843_s17  ;;  %v4575_v34 = vsel %vm4481_vm8, %v4446_v38, %v9981_v2  ;;  %v12881_v32 = vld [vmem:[#allocation192_spill] sm:$0xff] }
 0x3cb   : > { %v3613_v29 = vpop.permute.xlu0 %3612  ;;  %v4704_v63 = vsel %vm4610_vm9, %v4575_v34, %v3483_v58  ;;  %v4577_v58 = vsel %vm4481_vm8, %v4448_v46, %v9994_v41  ;;  %v12871_v34 = vld [vmem:[#allocation221_spill] sm:$0xff] }
 0x3cc   : > { %v3675_v48 = vpop.permute.xlu1 %3674  ;;  %v4771_v59 = vsel %vm4739_vm10, %v4642_v37, %v3613_v29  ;;  %v4706_v42 = vsel %vm4610_vm9, %v4577_v58, %v3485_v15  ;;  %v2326_v37 = vpack.c.bf16 %v2223_v12, %v2222_v28  ;;  %v12875_v46 = vld [vmem:[#allocation165_spill] sm:$0xff]  ;;  %v12884_v28 = vld [vmem:[#allocation127_spill] sm:$0xff] }
 0x3cd   : > { %3818 = vrot.lane.b32.xlu0 %v2324_v21, %s7844_s19  ;;  %v1942_v21 = vpack.c.bf16 %v1839_v43, %v1838_v44  ;;  %v4833_v2 = vsel %vm4739_vm10, %v4704_v63, %v3675_v48  ;;  %v670_v48 = vld [vmem:[#allocation2 + $0x148] sm:$0xff]  ;;  %v12869_v43 = vld [vmem:[#allocation74_spill] sm:$0xff] }
 0x3ce   : > { %3692 = vrot.lane.b32.xlu1 %v2165_v11, %s7843_s17  ;;  %v1902_v11 = vld [vmem:[#allocation2 + $0x4b0] sm:$0xff]  ;;  %v781_v36 = vpack.c.bf16 %v670_v48, %v669_v8  ;;  %v12873_v63 = vld [vmem:[#allocation275_spill] sm:$0xff] }
 0x3cf   : > { %v3803_v0 = vpop.permute.xlu0 %3802  ;;  %v1974_v41 = vpack.c.bf16 %v1903_v18, %v1902_v11  ;;  %v2097_v44 = vld [vmem:[#allocation2 + $0x4c9] sm:$0xff]  ;;  %v12877_v11 = vld [vmem:[#allocation121_spill] sm:$0xff] }
 0x3d0   : > { %v4898_v5 = vsel %vm4868_vm11, %v4769_v27, %v3803_v0  ;;  %v3677_v51 = vpop.permute.xlu1 %3676  ;;  %v2033_v27 = vld [vmem:[#allocation2 + $0x249] sm:$0xff]  ;;  %v3952_v24 = vsel %vm239_vm1, %v781_v36, %v12868_v62  ;;  %v1843_v36 = vld [vmem:[#allocation2 + $0x260] sm:$0xff] }
 0x3d1   : > { %3820 = vrot.lane.b32.xlu0 %v2325_v31, %s7844_s19  ;;  %7524 = vmatprep.mubr.msk.bf16.mxu0 %vm5019_vm12, %v4898_v5  ;;  %v4835_v1 = vsel %vm4739_vm10, %v4706_v42, %v3677_v51  ;;  %v2031_v31 = vld [vmem:[#allocation2 + $0x239] sm:$0xff]  ;;  %v2135_v33 = vpack.c.bf16 %v2033_v27, %v2032_v10  ;;  %v2096_v51 = vld [vmem:[#allocation2 + $0x4c1] sm:$0xff]  ;;  %v4128_v55 = vsel %vm4094_vm5, %v3952_v24, %v12869_v43  ;;  %v12885_v62 = vld [vmem:[#allocation120_spill] sm:$0xff] }
 0x3d2   : > { %3882 = vrot.lane.b32.xlu1 %v2356_v53, %s7844_s19  ;;  %v2134_v15 = vpack.c.bf16 %v2031_v31, %v2030_v60  ;;  %v2095_v5 = vld [vmem:[#allocation2 + $0x4b9] sm:$0xff]  ;;  %v4257_v39 = vsel %vm4223_vm6, %v4128_v55, %v12870_v13  ;;  %v1844_v55 = vld [vmem:[#allocation2 + $0x268] sm:$0xff] }
 0x3d3   : > { %v3805_v14 = vpop.permute.xlu0 %3804  ;;  %v2166_v23 = vpack.c.bf16 %v2095_v5, %v2094_v4 }
 0x3d4   : > { %v4900_v19 = vsel %vm4868_vm11, %v4771_v59, %v3805_v14  ;;  %v3867_v50 = vpop.permute.xlu1 %3866  ;;  %v2224_v59 = vld [vmem:[#allocation2 + $0x242] sm:$0xff]  ;;  %v2225_v14 = vld [vmem:[#allocation2 + $0x24a] sm:$0xff] }
 0x3d5   : > { %3310 = vrot.lane.b32.xlu0 %v2356_v53, %s7840_s6  ;;  %7525 = vmatmul.mubr.msk.bf16.gmra.mrb[28].mxu0 %vm5019_vm12, %v4900_v19  ;;  %v4962_v56 = vsel %vm4868_vm11, %v4833_v2, %v3867_v50  ;;  %v672_v53 = vld [vmem:[#allocation2 + $0x158] sm:$0xff]  ;;  %v4386_v19 = vsel %vm4352_vm7, %v4257_v39, %v12871_v34  ;;  %v2327_v17 = vpack.c.bf16 %v2225_v14, %v2224_v59  ;;  %v1845_v59 = vld [vmem:[#allocation2 + $0x270] sm:$0xff]  ;;  %v12887_v14 = vld [vmem:[#allocation254_spill] sm:$0xff] }
 0x3d6   : > { %3884 = vrot.lane.b32.xlu1 %v2357_v52, %s7844_s19  ;;  %7588 = vmatprep.mubr.msk.bf16.mxu1 %vm5019_vm12, %v4962_v56  ;;  %v782_v6 = vpack.c.bf16 %v672_v53, %v671_v40  ;;  %v2287_v2 = vld [vmem:[#allocation2 + $0x4ba] sm:$0xff]  ;;  %v12882_v40 = vld [vmem:[#allocation251_spill] sm:$0xff] }
 0x3d7   : > { %v10057_v29 = vpop.permute.xlu0 %3294  ;;  %v12874_v50 = vld [vmem:[#allocation77_spill] sm:$0xff]  ;;  %v2358_v31 = vpack.c.bf16 %v2287_v2, %v2286_v3 }
 0x3d8   : > { %v3869_v26 = vpop.permute.xlu1 %3868  ;;  %v3955_v35 = vsel %vm239_vm1, %v782_v6, %v12872_v54  ;;  %v12883_v53 = vld [vmem:[#allocation49_spill] sm:$0xff]  ;;  %v1907_v54 = vld [vmem:[#allocation2 + $0x4e0] sm:$0xff] }
 0x3d9   : > { %3438 = vrot.lane.b32.xlu0 %v1942_v21, %s7841_s9  ;;  %v4964_v45 = vsel %vm4868_vm11, %v4835_v1, %v3869_v26  ;;  %v4515_v21 = vsel %vm4481_vm8, %v4386_v19, %v12873_v63  ;;  %v4130_v61 = vsel %vm4094_vm5, %v3955_v35, %v12874_v50  ;;  %v12878_v1 = vld [vmem:[#allocation224_spill] sm:$0xff]  ;;  %v4051_v12 = vsel %vm239_vm1, %v12884_v28, %v12883_v53  ;;  %v673_v50 = vld [vmem:[#allocation2 + $0x168] sm:$0xff] }
 0x3da   : > { %3312 = vrot.lane.b32.xlu1 %v2357_v52, %s7840_s6  ;;  %7589 = vmatmul.mubr.msk.bf16.gmra.mrb[28].mxu1 %vm5019_vm12, %v4964_v45  ;;  %v2167_v52 = vpack.c.bf16 %v2097_v44, %v2096_v51  ;;  %v4259_v56 = vsel %vm4223_vm6, %v4130_v61, %v12875_v46  ;;  %v12879_v45 = vld [vmem:[#allocation114_spill] sm:$0xff]  ;;  %v4194_v24 = vsel %vm4094_vm5, %v4051_v12, %v12885_v62  ;;  %v12886_v51 = vld [vmem:[#allocation195_spill] sm:$0xff]  ;;  %v1909_v46 = vld [vmem:[#allocation2 + $0x4f0] sm:$0xff] }
 0x3db   : > { %v3423_v16 = vpop.permute.xlu0 %3422  ;;  %v4388_v26 = vsel %vm4352_vm7, %v4259_v56, %v12878_v1  ;;  %v4323_v44 = vsel %vm4223_vm6, %v4194_v24, %v12886_v51  ;;  %v1945_v19 = vpack.c.bf16 %v1845_v59, %v1844_v55  ;;  %v674_v56 = vld [vmem:[#allocation2 + $0x170] sm:$0xff]  ;;  %v10184_v51 = vld [vmem:[#allocation2 + $0x1b8] sm:$0xff] }
 0x3dc   : > { %v10070_v25 = vpop.permute.xlu1 %3296  ;;  %v4644_v7 = vsel %vm4610_vm9, %v4515_v21, %v3423_v16  ;;  %v4452_v13 = vsel %vm4352_vm7, %v4323_v44, %v12887_v14  ;;  %v2034_v21 = vld [vmem:[#allocation2 + $0x259] sm:$0xff]  ;;  %v2100_v28 = vld [vmem:[#allocation2 + $0x4e9] sm:$0xff]  ;;  %v2101_v12 = vld [vmem:[#allocation2 + $0x4f1] sm:$0xff] }
 0x3dd   : > { %3440 = vrot.lane.b32.xlu0 %v1943_v9, %s7841_s9  ;;  %v12876_v9 = vld [vmem:[#allocation46_spill] sm:$0xff]  ;;  %v10192_v14 = vld [vmem:[#allocation2 + $0x1a8] sm:$0xff] }
 0x3de   : > { %3502 = vrot.lane.b32.xlu1 %v1974_v41, %s7841_s9  ;;  %v4048_v18 = vsel %vm239_vm1, %v12877_v11, %v12876_v9  ;;  %v12880_v41 = vld [vmem:[#allocation278_spill] sm:$0xff]  ;;  %v2036_v9 = vld [vmem:[#allocation2 + $0x269] sm:$0xff]  ;;  %v2037_v11 = vld [vmem:[#allocation2 + $0x271] sm:$0xff] }
 0x3df   : > { %v3425_v0 = vpop.permute.xlu0 %3424  ;;  %v4192_v16 = vsel %vm4094_vm5, %v4048_v18, %v12879_v45  ;;  %v4517_v8 = vsel %vm4481_vm8, %v4388_v26, %v12880_v41  ;;  %v2137_v45 = vpack.c.bf16 %v2037_v11, %v2036_v9  ;;  %v2099_v41 = vld [vmem:[#allocation2 + $0x4e1] sm:$0xff] }
 0x3e0   : > { %v3487_v47 = vpop.permute.xlu1 %3486  ;;  %v4321_v48 = vsel %vm4223_vm6, %v4192_v16, %v12881_v32  ;;  %v4646_v10 = vsel %vm4610_vm9, %v4517_v8, %v3425_v0  ;;  %v2098_v16 = vld [vmem:[#allocation2 + $0x4d9] sm:$0xff]  ;;  %v2227_v32 = vld [vmem:[#allocation2 + $0x262] sm:$0xff] }
 0x3e1   : > { %3630 = vrot.lane.b32.xlu0 %v2134_v15, %s7843_s17  ;;  %v2288_v15 = vld [vmem:[#allocation2 + $0x4c2] sm:$0xff] }
 0x3e2   : > { %3504 = vrot.lane.b32.xlu1 %v1975_v20, %s7841_s9  ;;  %v1842_v20 = vld [vmem:[#allocation2 + $0x258] sm:$0xff]  ;;  %v2359_v0 = vpack.c.bf16 %v2289_v30, %v2288_v15  ;;  %v676_v8 = vld [vmem:[#allocation2 + $0x180] sm:$0xff] }
 0x3e3   : > { %v3615_v22 = vpop.permute.xlu0 %3614  ;;  %v2226_v30 = vld [vmem:[#allocation2 + $0x25a] sm:$0xff] }
 0x3e4   : > { %v3489_v38 = vpop.permute.xlu1 %3488  ;;  %v4773_v58 = vsel %vm4739_vm10, %v4644_v7, %v3615_v22  ;;  %v2328_v53 = vpack.c.bf16 %v2227_v32, %v2226_v30  ;;  %v10186_v44 = vld [vmem:[#allocation2 + $0x1c0] sm:$0xff]  ;;  %v10229_v32 = vld [vmem:[#allocation2 + $0x1f0] sm:$0xff] }
 0x3e5   : > { %3632 = vrot.lane.b32.xlu0 %v2135_v33, %s7843_s17  ;;  %v4450_v33 = vsel %vm4352_vm7, %v4321_v48, %v12882_v40 }
 0x3e6   : > { %3694 = vrot.lane.b32.xlu1 %v2166_v23, %s7843_s17  ;;  %v4579_v22 = vsel %vm4481_vm8, %v4450_v33, %v10057_v29  ;;  %v10171_v33 = vld [vmem:[#allocation2 + $0x190] sm:$0xff] }
 0x3e7   : > { %v3617_v57 = vpop.permute.xlu0 %3616  ;;  %v4708_v6 = vsel %vm4610_vm9, %v4579_v22, %v3487_v47  ;;  %v4581_v47 = vsel %vm4481_vm8, %v4452_v13, %v10070_v25  ;;  %v10176_v22 = vld [vmem:[#allocation2 + $0x198] sm:$0xff]  ;;  %v10194_v13 = vld [vmem:[#allocation2 + $0x1e0] sm:$0xff] }
 0x3e8   : > { %v3679_v49 = vpop.permute.xlu1 %3678  ;;  %v4775_v4 = vsel %vm4739_vm10, %v4646_v10, %v3617_v57  ;;  %v4710_v34 = vsel %vm4610_vm9, %v4581_v47, %v3489_v38  ;;  %v12891_v47 = vld [vmem:[#allocation223_spill] sm:$0xff] }
 0x3e9   : > { %3822 = vrot.lane.b32.xlu0 %v2326_v37, %s7844_s19  ;;  %v1944_v37 = vpack.c.bf16 %v1843_v36, %v1842_v20  ;;  %v4837_v29 = vsel %vm4739_vm10, %v4708_v6, %v3679_v49  ;;  %v1908_v49 = vld [vmem:[#allocation2 + $0x4e8] sm:$0xff]  ;;  %v2168_v20 = vpack.c.bf16 %v2099_v41, %v2098_v16 }
 0x3ea   : > { %3696 = vrot.lane.b32.xlu1 %v2167_v52, %s7843_s17  ;;  %v1906_v52 = vld [vmem:[#allocation2 + $0x4d8] sm:$0xff]  ;;  %v1977_v26 = vpack.c.bf16 %v1909_v46, %v1908_v49  ;;  %v12888_v36 = vld [vmem:[#allocation19_spill] sm:$0xff]  ;;  %v10212_v49 = vld [vmem:[#allocation2 + $0x1d0] sm:$0xff] }
 0x3eb   : > { %v3807_v42 = vpop.permute.xlu0 %3806  ;;  %v1976_v38 = vpack.c.bf16 %v1907_v54, %v1906_v52  ;;  %v2228_v6 = vld [vmem:[#allocation2 + $0x26a] sm:$0xff]  ;;  %v12892_v52 = vld [vmem:[#allocation22_spill] sm:$0xff] }
 0x3ec   : > { %v4902_v60 = vsel %vm4868_vm11, %v4773_v58, %v3807_v42  ;;  %v3681_v27 = vpop.permute.xlu1 %3680  ;;  %v12894_v46 = vld [vmem:[#allocation79_spill] sm:$0xff] }
 0x3ed   : > { %3824 = vrot.lane.b32.xlu0 %v2327_v17, %s7844_s19  ;;  %7528 = vmatprep.mubr.msk.bf16.mxu0 %vm5019_vm12, %v4902_v60  ;;  %v4839_v35 = vsel %vm4739_vm10, %v4710_v34, %v3681_v27  ;;  %v2035_v17 = vld [vmem:[#allocation2 + $0x261] sm:$0xff]  ;;  %v783_v60 = vpack.c.bf16 %v674_v56, %v673_v50  ;;  %v787_v50 = vpack.c.bf16 %v10186_v44, %v10184_v51 }
 0x3ee   : > { %3886 = vrot.lane.b32.xlu1 %v2358_v31, %s7844_s19  ;;  %v2136_v7 = vpack.c.bf16 %v2035_v17, %v2034_v21  ;;  %v2290_v17 = vld [vmem:[#allocation2 + $0x4da] sm:$0xff]  ;;  %v12895_v16 = vld [vmem:[#allocation167_spill] sm:$0xff] }
 0x3ef   : > { %v3809_v5 = vpop.permute.xlu0 %3808  ;;  %v3958_v40 = vsel %vm239_vm1, %v783_v60, %v12888_v36  ;;  %v12897_v36 = vld [vmem:[#allocation125_spill] sm:$0xff]  ;;  %v12916_v44 = vld [vmem:[#allocation26_spill] sm:$0xff] }
 0x3f0   : > { %v4904_v23 = vsel %vm4868_vm11, %v4775_v4, %v3809_v5  ;;  %v3871_v43 = vpop.permute.xlu1 %3870 }
 0x3f1   : > { %3314 = vrot.lane.b32.xlu0 %v2358_v31, %s7840_s6  ;;  %7529 = vmatmul.mubr.msk.bf16.gmra.mrb[32].mxu0 %vm5019_vm12, %v4904_v23  ;;  %v4966_v39 = vsel %vm4868_vm11, %v4837_v29, %v3871_v43  ;;  %v675_v31 = vld [vmem:[#allocation2 + $0x178] sm:$0xff]  ;;  %v12889_v23 = vld [vmem:[#allocation76_spill] sm:$0xff]  ;;  %v10188_v29 = vld [vmem:[#allocation2 + $0x1a0] sm:$0xff] }
 0x3f2   : > { %3888 = vrot.lane.b32.xlu1 %v2359_v0, %s7844_s19  ;;  %7592 = vmatprep.mubr.msk.bf16.mxu1 %vm5019_vm12, %v4966_v39  ;;  %v784_v4 = vpack.c.bf16 %v676_v8, %v675_v31  ;;  %v12890_v43 = vld [vmem:[#allocation164_spill] sm:$0xff]  ;;  %v10196_v39 = vld [vmem:[#allocation2 + $0x1e8] sm:$0xff] }
 0x3f3   : > { %v10133_v57 = vpop.permute.xlu0 %3298  ;;  %v789_v60 = vpack.c.bf16 %v10196_v39, %v10194_v13  ;;  %v10222_v31 = vld [vmem:[#allocation2 + $0x208] sm:$0xff]  ;;  %v2104_v13 = vld [vmem:[#allocation2 + $0x511] sm:$0xff]  ;;  %v2105_v39 = vld [vmem:[#allocation2 + $0x519] sm:$0xff] }
 0x3f4   : > { %v3873_v63 = vpop.permute.xlu1 %3872  ;;  %v3961_v54 = vsel %vm239_vm1, %v784_v4, %v12892_v52  ;;  %v12898_v4 = vld [vmem:[#allocation226_spill] sm:$0xff]  ;;  %v10250_v52 = vld [vmem:[#allocation2 + $0x230] sm:$0xff] }
 0x3f5   : > { %3442 = vrot.lane.b32.xlu0 %v1944_v37, %s7841_s9  ;;  %v4968_v3 = vsel %vm4868_vm11, %v4839_v35, %v3873_v63  ;;  %v2229_v37 = vld [vmem:[#allocation2 + $0x272] sm:$0xff]  ;;  %v4134_v56 = vsel %vm4094_vm5, %v3961_v54, %v12894_v46  ;;  %12901 = vst [vmem:[#allocation210_spill] sm:$0xff] %v10250_v52  ;;  %v12902_v54 = vld [vmem:[#allocation51_spill] sm:$0xff] }
 0x3f6   : > { %3316 = vrot.lane.b32.xlu1 %v2359_v0, %s7840_s6  ;;  %7593 = vmatmul.mubr.msk.bf16.gmra.mrb[32].mxu1 %vm5019_vm12, %v4968_v3  ;;  %v4132_v0 = vsel %vm4094_vm5, %v3958_v40, %v12889_v23  ;;  %v12893_v35 = vld [vmem:[#allocation277_spill] sm:$0xff]  ;;  %v2329_v21 = vpack.c.bf16 %v2229_v37, %v2228_v6  ;;  %v2291_v3 = vld [vmem:[#allocation2 + $0x4e2] sm:$0xff]  ;;  %v4263_v41 = vsel %vm4223_vm6, %v4134_v56, %v12895_v16  ;;  %v2292_v23 = vld [vmem:[#allocation2 + $0x4ea] sm:$0xff] }
 0x3f7   : > { %v10143_v2 = vpop.permute.xlu0 %3426  ;;  %v4261_v55 = vsel %vm4223_vm6, %v4132_v0, %v12890_v43  ;;  %v12899_v0 = vld [vmem:[#allocation118_spill] sm:$0xff]  ;;  %v12900_v37 = vld [vmem:[#allocation280_spill] sm:$0xff]  ;;  %v10266_v16 = vld [vmem:[#allocation2 + $0x238] sm:$0xff] }
 0x3f8   : > { %v10145_v25 = vpop.f32.mrb[0].mxu0  ;;  %v10154_v42 = vpop.permute.xlu1 %3300  ;;  %v4390_v34 = vsel %vm4352_vm7, %v4261_v55, %v12891_v47  ;;  %v2293_v55 = vld [vmem:[#allocation2 + $0x4f2] sm:$0xff]  ;;  %v1846_v47 = vld [vmem:[#allocation2 + $0x280] sm:$0xff]  ;;  %12905 = vst [vmem:[#allocation91_spill] sm:$0xff] %v10266_v16 }
 0x3f9   : > { %3444 = vrot.lane.b32.xlu0 %v1945_v19, %s7841_s9  ;;  %v10150_v61 = vpop.f32.mrb[1].mxu0  ;;  %v2169_v19 = vpack.c.bf16 %v2101_v12, %v2100_v28  ;;  %v4519_v63 = vsel %vm4481_vm8, %v4390_v34, %v12893_v35  ;;  %v2360_v12 = vpack.c.bf16 %v2291_v3, %v2290_v17  ;;  %v1847_v34 = vld [vmem:[#allocation2 + $0x288] sm:$0xff]  ;;  %v12904_v17 = vld [vmem:[#allocation194_spill] sm:$0xff] }
 0x3fa   : > { %v10152_v58 = vpop.f32.mrb[2].mxu0  ;;  %3506 = vrot.lane.b32.xlu1 %v1976_v38, %s7841_s9  ;;  %v785_v38 = vpack.c.bf16 %v10176_v22, %v10171_v33  ;;  %v4648_v9 = vsel %vm4610_vm9, %v4519_v63, %v10143_v2  ;;  %v10231_v2 = vld [vmem:[#allocation2 + $0x1f8] sm:$0xff]  ;;  %v12903_v35 = vld [vmem:[#allocation131_spill] sm:$0xff] }
 0x3fb   : > { %v10156_v18 = vpop.permute.xlu0 %3428  ;;  %v10158_v1 = vpop.f32.mrb[3].mxu0  ;;  %v4057_v63 = vsel %vm239_vm1, %v12903_v35, %v12902_v54  ;;  %v12915_v22 = vld [vmem:[#allocation25_spill] sm:$0xff] }
 0x3fc   : > { %v10162_v15 = vpop.permute.xlu1 %3490  ;;  %v10164_v10 = vpop.f32.mrb[0].mxu1  ;;  %v10383_v51 = vsel %vm239_vm1, %v789_v60, %v12915_v22  ;;  %v12917_v60 = vld [vmem:[#allocation27_spill] sm:$0xff] }
 0x3fd   : > { %3634 = vrot.lane.b32.xlu0 %v2136_v7, %s7843_s17  ;;  %v10166_v27 = vpop.f32.mrb[1].mxu1  ;;  %v10210_v7 = vld [vmem:[#allocation2 + $0x1c8] sm:$0xff] }
 0x3fe   : > { %3508 = vrot.lane.b32.xlu1 %v1977_v26, %s7841_s9  ;;  %v10174_v5 = vpop.f32.mrb[2].mxu1  ;;  %v786_v26 = vpack.c.bf16 %v10192_v14, %v10188_v29 }
 0x3ff   : > { %v3619_v48 = vpop.permute.xlu0 %3618  ;;  %v10180_v62 = vpop.f32.mrb[3].mxu1 }
 0x400   : > { %v10182_v24 = vpop.permute.xlu1 %3492  ;;  %v4777_v8 = vsel %vm4739_vm10, %v4648_v9, %v3619_v48  ;;  %v788_v48 = vpack.c.bf16 %v10212_v49, %v10210_v7  ;;  %v790_v9 = vpack.c.bf16 %v10231_v2, %v10229_v32  ;;  %v12918_v49 = vld [vmem:[#allocation78_spill] sm:$0xff]  ;;  %v12931_v2 = vld [vmem:[#allocation196_spill] sm:$0xff] }
 0x401   : > { %3636 = vrot.lane.b32.xlu0 %v2137_v45, %s7843_s17  ;;  %v10224_v45 = vld [vmem:[#allocation2 + $0x210] sm:$0xff] }
 0x402   : > { %3698 = vrot.lane.b32.xlu1 %v2168_v20, %s7843_s17  ;;  %v12896_v20 = vld [vmem:[#allocation48_spill] sm:$0xff] }
 0x403   : > { %v3621_v59 = vpop.permute.xlu0 %3620  ;;  %v4054_v40 = vsel %vm239_vm1, %v12897_v36, %v12896_v20  ;;  %v12907_v36 = vld [vmem:[#allocation253_spill] sm:$0xff] }
 0x404   : > { %v3683_v11 = vpop.permute.xlu1 %3682  ;;  %v4196_v6 = vsel %vm4094_vm5, %v4054_v40, %v12899_v0 }
 0x405   : > { %3826 = vrot.lane.b32.xlu0 %v2328_v53, %s7844_s19  ;;  %v4392_v53 = vsel %vm4352_vm7, %v4263_v41, %v12898_v4  ;;  %v4325_v3 = vsel %vm4223_vm6, %v4196_v6, %v12904_v17  ;;  %v10268_v41 = vld [vmem:[#allocation2 + $0x218] sm:$0xff] }
 0x406   : > { %3700 = vrot.lane.b32.xlu1 %v2169_v19, %s7843_s17  ;;  %v4521_v43 = vsel %vm4481_vm8, %v4392_v53, %v12900_v37  ;;  %v791_v19 = vpack.c.bf16 %v10224_v45, %v10222_v31  ;;  %v4454_v40 = vsel %vm4352_vm7, %v4325_v3, %v12907_v36  ;;  %v2361_v37 = vpack.c.bf16 %v2293_v55, %v2292_v23  ;;  %v12910_v55 = vld [vmem:[#allocation197_spill] sm:$0xff]  ;;  %v1910_v36 = vld [vmem:[#allocation2 + $0x500] sm:$0xff] }
 0x407   : > { %v3811_v30 = vpop.permute.xlu0 %3810  ;;  %v4650_v46 = vsel %vm4610_vm9, %v4521_v43, %v10156_v18  ;;  %v10277_v18 = vld [vmem:[#allocation2 + $0x240] sm:$0xff]  ;;  %v4583_v0 = vsel %vm4481_vm8, %v4454_v40, %v10133_v57  ;;  %v1946_v43 = vpack.c.bf16 %v1847_v34, %v1846_v47  ;;  %v1848_v57 = vld [vmem:[#allocation2 + $0x290] sm:$0xff]  ;;  %v1911_v40 = vld [vmem:[#allocation2 + $0x508] sm:$0xff] }
 0x408   : > { %v4906_v28 = vsel %vm4868_vm11, %v4777_v8, %v3811_v30  ;;  %v3685_v56 = vpop.permute.xlu1 %3684  ;;  %v10270_v8 = vld [vmem:[#allocation2 + $0x220] sm:$0xff]  ;;  %v12906_v30 = vld [vmem:[#allocation124_spill] sm:$0xff]  ;;  %v4779_v4 = vsel %vm4739_vm10, %v4650_v46, %v3621_v59  ;;  %12908 = vst [vmem:[#allocation179_spill] sm:$0xff] %v10277_v18  ;;  %v4712_v35 = vsel %vm4610_vm9, %v4583_v0, %v10162_v15  ;;  %v10399_v7 = vsel %vm239_vm1, %v791_v19, %v12917_v60  ;;  %v12924_v60 = vld [vmem:[#allocation129_spill] sm:$0xff] }
 0x409   : > { %3828 = vrot.lane.b32.xlu0 %v2329_v21, %s7844_s19  ;;  %7532 = vmatprep.mubr.msk.bf16.mxu0 %vm5019_vm12, %v4906_v28  ;;  %v10260_v21 = vld [vmem:[%s12407_s2] ss:$0 sm:$0xff]  ;;  %v4198_v20 = vsel %vm4094_vm5, %v4057_v63, %v12906_v30  ;;  %v10279_v28 = vld [vmem:[#allocation2 + $0x248] sm:$0xff]  ;;  %v1849_v63 = vld [vmem:[#allocation2 + $0x298] sm:$0xff]  ;;  %v792_v23 = vpack.c.bf16 %v10270_v8, %v10268_v41 }
 0x40a   : > { %12909 = vst [vmem:[#allocation238_spill] sm:$0xff] %v10279_v28  ;;  %3890 = vrot.lane.b32.xlu1 %v2360_v12, %s7844_s19  ;;  %v5198_v54 = vadd.f32 %v10145_v25, %v10260_v21  ;;  %v5190_v59 = vadd.f32 %v10260_v21, %v10150_v61  ;;  %v4327_v25 = vsel %vm4223_vm6, %v4198_v20, %v12910_v55  ;;  %v2232_v19 = vld [vmem:[#allocation2 + $0x292] sm:$0xff]  ;;  %v12935_v41 = vld [vmem:[#allocation135_spill] sm:$0xff] }
 0x40b   : > { %v3813_v53 = vpop.permute.xlu0 %3812  ;;  %v4841_v61 = vsel %vm4739_vm10, %v4712_v35, %v3683_v11  ;;  %v5201_v3 = vadd.f32 %v10152_v58, %v10260_v21  ;;  %v5193_v11 = vadd.f32 %v10260_v21, %v10158_v1  ;;  %v10655_v18 = vld [vmem:[#allocation2 + $0x542] sm:$0xff] }
 0x40c   : > { %v4908_v6 = vsel %vm4868_vm11, %v4779_v4, %v3813_v53  ;;  %v3875_v47 = vpop.permute.xlu1 %3874  ;;  %v1947_v53 = vpack.c.bf16 %v1849_v63, %v1848_v57  ;;  %v5702_v0 = vmax.f32 %v5198_v54, 0.0  ;;  %v5700_v58 = vmax.f32 %v5190_v59, 0.0 }
 0x40d   : > { %3318 = vrot.lane.b32.xlu0 %v2360_v12, %s7840_s6  ;;  %7533 = vmatmul.mubr.msk.bf16.gmra.mrb[36].mxu0 %vm5019_vm12, %v4908_v6  ;;  %v12911_v12 = vld [vmem:[#allocation256_spill] sm:$0xff]  ;;  %v4970_v46 = vsel %vm4868_vm11, %v4841_v61, %v3875_v47  ;;  %v1978_v57 = vpack.c.bf16 %v1911_v40, %v1910_v36  ;;  %v5703_v54 = vmax.f32 %v5201_v3, 0.0  ;;  %v1913_v36 = vld [vmem:[#allocation2 + $0x518] sm:$0xff] }
 0x40e   : > { %v4456_v34 = vsel %vm4352_vm7, %v4327_v25, %v12911_v12  ;;  %3892 = vrot.lane.b32.xlu1 %v2361_v37, %s7844_s19  ;;  %7596 = vmatprep.mubr.msk.bf16.mxu1 %vm5019_vm12, %v4970_v46  ;;  %v2039_v25 = vld [vmem:[#allocation2 + $0x289] sm:$0xff]  ;;  %v5701_v46 = vmax.f32 %v5193_v11, 0.0  ;;  %v5835_v3 = vsel %vm5828_vm13, %v5702_v0, -inf  ;;  %v5829_v40 = vsel %vm5828_vm13, %v5700_v58, -inf }
 0x40f   : > { %v10307_v30 = vpop.permute.xlu0 %3302  ;;  %v4585_v20 = vsel %vm4481_vm8, %v4456_v34, %v10154_v42  ;;  %v2038_v42 = vld [vmem:[#allocation2 + $0x281] sm:$0xff]  ;;  %v5454_v11 = vadd.f32 %v10164_v10, %v10260_v21  ;;  %v5838_v0 = vsel %vm5828_vm13, %v5703_v54, -inf }
 0x410   : > { %v7502_v4 = vpop.f32.mrb[4].mxu0  ;;  %v4714_v6 = vsel %vm4610_vm9, %v4585_v20, %v10182_v24  ;;  %v3877_v47 = vpop.permute.xlu1 %3876  ;;  %v5832_v10 = vsel %vm5828_vm13, %v5701_v46, -inf }
 0x411   : > { %v5214_v35 = vadd.f32 %v7502_v4, %v10260_v21  ;;  %3446 = vrot.lane.b32.xlu0 %v1946_v43, %s7841_s9  ;;  %v5205_v55 = vpop.f32.mrb[5].mxu0  ;;  %v4843_v1 = vsel %vm4739_vm10, %v4714_v6, %v3685_v56  ;;  %v2138_v56 = vpack.c.bf16 %v2039_v25, %v2038_v42  ;;  %v1912_v6 = vld [vmem:[#allocation2 + $0x510] sm:$0xff] }
 0x412   : > { %v5206_v61 = vadd.f32 %v10260_v21, %v5205_v55  ;;  %v7503_v12 = vpop.f32.mrb[6].mxu0  ;;  %v4972_v63 = vsel %vm4868_vm11, %v4843_v1, %v3877_v47  ;;  %3320 = vrot.lane.b32.xlu1 %v2361_v37, %s7840_s6  ;;  %v2040_v25 = vld [vmem:[#allocation2 + $0x291] sm:$0xff]  ;;  %v2041_v47 = vld [vmem:[#allocation2 + $0x299] sm:$0xff] }
 0x413   : > { %v5706_v59 = vmax.f32 %v5214_v35, 0.0  ;;  %v5217_v24 = vadd.f32 %v7503_v12, %v10260_v21  ;;  %v10323_v34 = vpop.permute.xlu0 %3430  ;;  %v5208_v43 = vpop.f32.mrb[7].mxu0  ;;  %7597 = vmatmul.mubr.msk.bf16.gmra.mrb[36].mxu1 %vm5019_vm12, %v4972_v63  ;;  %v1979_v63 = vpack.c.bf16 %v1913_v36, %v1912_v6  ;;  %v2139_v46 = vpack.c.bf16 %v2041_v47, %v2040_v25  ;;  %v2102_v36 = vld [vmem:[#allocation2 + $0x501] sm:$0xff] }
 0x414   : > { %v5704_v20 = vmax.f32 %v5206_v61, 0.0  ;;  %v5209_v4 = vadd.f32 %v10260_v21, %v5208_v43  ;;  %v10337_v42 = vpop.permute.xlu1 %3304 }
 0x415   : > { %v5836_v35 = vsel %vm5828_vm13, %v5706_v59, -inf  ;;  %v5707_v55 = vmax.f32 %v5217_v24, 0.0  ;;  %3448 = vrot.lane.b32.xlu0 %v1947_v53, %s7841_s9  ;;  %v7566_v53 = vpop.f32.mrb[4].mxu1  ;;  %v5446_v24 = vadd.f32 %v10260_v21, %v10166_v27  ;;  %v12912_v27 = vld [vmem:[#allocation21_spill] sm:$0xff] }
 0x416   : > { %v10334_v1 = vmax.f32 %v5835_v3, %v5836_v35  ;;  %v5830_v37 = vsel %vm5828_vm13, %v5704_v20, -inf  ;;  %v5705_v61 = vmax.f32 %v5209_v4, 0.0  ;;  %v5461_v4 = vpop.f32.mrb[5].mxu1  ;;  %3510 = vrot.lane.b32.xlu1 %v1978_v57, %s7841_s9  ;;  %v5470_v3 = vadd.f32 %v7566_v53, %v10260_v21  ;;  %v2103_v35 = vld [vmem:[#allocation2 + $0x509] sm:$0xff] }
 0x417   : > { %v10340_v58 = vmax.f32 %v5829_v40, %v5830_v37  ;;  %v5839_v12 = vsel %vm5828_vm13, %v5707_v55, -inf  ;;  %v10343_v59 = vpop.permute.xlu0 %3432  ;;  %v5462_v40 = vadd.f32 %v10260_v21, %v5461_v4  ;;  %v7567_v6 = vpop.f32.mrb[6].mxu1  ;;  %v3964_v55 = vsel %vm239_vm1, %v785_v38, %v12912_v27  ;;  %v12913_v37 = vld [vmem:[#allocation23_spill] sm:$0xff]  ;;  %v12914_v53 = vld [vmem:[#allocation24_spill] sm:$0xff] }
 0x418   : > { %v10348_v43 = vmax.f32 %v5838_v0, %v5839_v12  ;;  %v5833_v20 = vsel %vm5828_vm13, %v5705_v61, -inf  ;;  %v10367_v57 = vsel %vm239_vm1, %v787_v50, %v12913_v37  ;;  %v5766_v61 = vmax.f32 %v5454_v11, 0.0  ;;  %v5464_v25 = vpop.f32.mrb[7].mxu1  ;;  %v10371_v47 = vpop.permute.xlu1 %3494  ;;  %v2230_v0 = vld [vmem:[#allocation2 + $0x282] sm:$0xff]  ;;  %v2231_v12 = vld [vmem:[#allocation2 + $0x28a] sm:$0xff] }
 0x419   : > { %v10352_v54 = vmax.f32 %v5832_v10, %v5833_v20  ;;  %3638 = vrot.lane.b32.xlu0 %v2138_v56, %s7843_s17  ;;  %v5457_v56 = vadd.f32 %v10174_v5, %v10260_v21  ;;  %v3967_v33 = vsel %vm239_vm1, %v786_v26, %v12914_v53  ;;  %v10390_v5 = vsel %vm239_vm1, %v788_v48, %v12916_v44 }
 0x41a   : > { %v5770_v38 = vmax.f32 %v5470_v3, 0.0  ;;  %v5764_v11 = vmax.f32 %v5446_v24, 0.0  ;;  %v5768_v29 = vmax.f32 %v5462_v40, 0.0  ;;  %v5473_v14 = vadd.f32 %v7567_v6, %v10260_v21  ;;  %3512 = vrot.lane.b32.xlu1 %v1979_v63, %s7841_s9  ;;  %v12919_v63 = vld [vmem:[#allocation166_spill] sm:$0xff]  ;;  %v12920_v6 = vld [vmem:[#allocation81_spill] sm:$0xff] }
 0x41b   : > { %v3623_v50 = vpop.permute.xlu0 %3622  ;;  %v2170_v26 = vpack.c.bf16 %v2103_v35, %v2102_v36  ;;  %v4136_v48 = vsel %vm4094_vm5, %v3964_v55, %v12918_v49  ;;  %v5449_v10 = vadd.f32 %v10260_v21, %v10180_v62  ;;  %v2330_v24 = vpack.c.bf16 %v2231_v12, %v2230_v0  ;;  %v2233_v40 = vld [vmem:[#allocation2 + $0x29a] sm:$0xff]  ;;  %v12922_v12 = vld [vmem:[#allocation279_spill] sm:$0xff] }
 0x41c   : > { %v4265_v20 = vsel %vm4223_vm6, %v4136_v48, %v12919_v63  ;;  %v5931_v4 = vsel %vm5828_vm13, %v5766_v61, -inf  ;;  %v5767_v3 = vmax.f32 %v5457_v56, 0.0  ;;  %v5932_v31 = vsel %vm5828_vm13, %v5770_v38, -inf  ;;  %v10410_v45 = vpop.permute.xlu1 %3496  ;;  %v12921_v35 = vld [vmem:[#allocation225_spill] sm:$0xff]  ;;  %v2294_v38 = vld [vmem:[#allocation2 + $0x502] sm:$0xff] }
 0x41d   : > { %3640 = vrot.lane.b32.xlu0 %v2139_v46, %s7843_s17  ;;  %v4138_v36 = vsel %vm4094_vm5, %v3967_v33, %v12920_v6  ;;  %v4394_v62 = vsel %vm4352_vm7, %v4265_v20, %v12921_v35  ;;  %v10416_v46 = vmax.f32 %v5931_v4, %v5932_v31  ;;  %v2171_v55 = vpack.c.bf16 %v2105_v39, %v2104_v13  ;;  %v2295_v13 = vld [vmem:[#allocation2 + $0x50a] sm:$0xff]  ;;  %v12923_v39 = vld [vmem:[#allocation50_spill] sm:$0xff]  ;;  %v12925_v48 = vld [vmem:[#allocation169_spill] sm:$0xff] }
 0x41e   : > { %v5925_v37 = vsel %vm5828_vm13, %v5764_v11, -inf  ;;  %v5926_v61 = vsel %vm5828_vm13, %v5768_v29, -inf  ;;  %v5771_v56 = vmax.f32 %v5473_v14, 0.0  ;;  %v5465_v0 = vadd.f32 %v10260_v21, %v5464_v25  ;;  %3702 = vrot.lane.b32.xlu1 %v2170_v26, %s7843_s17  ;;  %v12926_v4 = vld [vmem:[#allocation228_spill] sm:$0xff]  ;;  %v12929_v35 = vld [vmem:[#allocation282_spill] sm:$0xff] }
 0x41f   : > { %v3625_v27 = vpop.permute.xlu0 %3624  ;;  %v4523_v53 = vsel %vm4481_vm8, %v4394_v62, %v12922_v12  ;;  %v5765_v33 = vmax.f32 %v5449_v10, 0.0  ;;  %v10424_v22 = vmax.f32 %v5925_v37, %v5926_v61  ;;  %v2331_v44 = vpack.c.bf16 %v2233_v40, %v2232_v19  ;;  %v12927_v40 = vld [vmem:[#allocation28_spill] sm:$0xff]  ;;  %v2297_v61 = vld [vmem:[#allocation2 + $0x51a] sm:$0xff] }
 0x420   : > { %v5934_v11 = vsel %vm5828_vm13, %v5767_v3, -inf  ;;  %v4652_v29 = vsel %vm4610_vm9, %v4523_v53, %v10323_v34  ;;  %v5935_v25 = vsel %vm5828_vm13, %v5771_v56, -inf  ;;  %v5769_v14 = vmax.f32 %v5465_v0, 0.0  ;;  %v3687_v26 = vpop.permute.xlu1 %3686  ;;  %v12930_v56 = vld [vmem:[#allocation30_spill] sm:$0xff] }
 0x421   : > { %3830 = vrot.lane.b32.xlu0 %v2330_v24, %s7844_s19  ;;  %v4060_v49 = vsel %vm239_vm1, %v12924_v60, %v12923_v39  ;;  %v4267_v10 = vsel %vm4223_vm6, %v4138_v36, %v12925_v48  ;;  %v10436_v24 = vmax.f32 %v5934_v11, %v5935_v25  ;;  %v4781_v63 = vsel %vm4739_vm10, %v4652_v29, %v3623_v50  ;;  %v12928_v36 = vld [vmem:[#allocation122_spill] sm:$0xff]  ;;  %v12934_v29 = vld [vmem:[#allocation53_spill] sm:$0xff] }
 0x422   : > { %v4396_v3 = vsel %vm4352_vm7, %v4267_v10, %v12926_v4  ;;  %v5929_v34 = vsel %vm5828_vm13, %v5769_v14, -inf  ;;  %3704 = vrot.lane.b32.xlu1 %v2171_v55, %s7843_s17  ;;  %v2362_v19 = vpack.c.bf16 %v2295_v13, %v2294_v38  ;;  %v3979_v6 = vsel %vm239_vm1, %v790_v9, %v12927_v40  ;;  %v2296_v55 = vld [vmem:[#allocation2 + $0x512] sm:$0xff]  ;;  %v12941_v40 = vld [vmem:[#allocation139_spill] sm:$0xff] }
 0x423   : > { %v3815_v20 = vpop.permute.xlu0 %3814  ;;  %v4200_v50 = vsel %vm4094_vm5, %v4060_v49, %v12928_v36  ;;  %v4525_v62 = vsel %vm4481_vm8, %v4396_v3, %v12929_v35  ;;  %v5928_v37 = vsel %vm5828_vm13, %v5765_v33, -inf  ;;  %v10461_v32 = vsel %vm239_vm1, %v792_v23, %v12930_v56  ;;  %v1850_v33 = vld [vmem:[#allocation2 + $0x2a8] sm:$0xff]  ;;  %v12932_v38 = vld [vmem:[#allocation52_spill] sm:$0xff]  ;;  %v12933_v13 = vld [vmem:[#allocation133_spill] sm:$0xff] }
 0x424   : > { %v4910_v31 = vsel %vm4868_vm11, %v4781_v63, %v3815_v20  ;;  %v4329_v9 = vsel %vm4223_vm6, %v4200_v50, %v12931_v2  ;;  %v4654_v0 = vsel %vm4610_vm9, %v4525_v62, %v10343_v59  ;;  %v10467_v12 = vmax.f32 %v5928_v37, %v5929_v34  ;;  %v3689_v53 = vpop.permute.xlu1 %3688  ;;  %v12936_v23 = vld [vmem:[#allocation255_spill] sm:$0xff]  ;;  %v12937_v59 = vld [vmem:[#allocation54_spill] sm:$0xff]  ;;  %v12938_v60 = vld [vmem:[#allocation137_spill] sm:$0xff] }
 0x425   : > { %3832 = vrot.lane.b32.xlu0 %v2331_v44, %s7844_s19  ;;  %7536 = vmatprep.mubr.msk.bf16.mxu0 %vm5019_vm12, %v4910_v31  ;;  %v1851_v44 = vld [vmem:[#allocation2 + $0x2b0] sm:$0xff]  ;;  %v4066_v11 = vsel %vm239_vm1, %v12933_v13, %v12932_v38  ;;  %v4063_v8 = vsel %vm239_vm1, %v12935_v41, %v12934_v29  ;;  %v4458_v25 = vsel %vm4352_vm7, %v4329_v9, %v12936_v23  ;;  %v12940_v31 = vld [vmem:[#allocation55_spill] sm:$0xff]  ;;  %v12943_v35 = vld [vmem:[#allocation141_spill] sm:$0xff] }
 0x426   : > { %v4783_v14 = vsel %vm4739_vm10, %v4654_v0, %v3625_v27  ;;  %v4072_v49 = vsel %vm239_vm1, %v12938_v60, %v12937_v59  ;;  %v4587_v48 = vsel %vm4481_vm8, %v4458_v25, %v10307_v30  ;;  %3894 = vrot.lane.b32.xlu1 %v2362_v19, %s7844_s19  ;;  %v2363_v20 = vpack.c.bf16 %v2297_v61, %v2296_v55  ;;  %v12939_v4 = vld [vmem:[#allocation128_spill] sm:$0xff]  ;;  %v12944_v37 = vld [vmem:[#allocation199_spill] sm:$0xff]  ;;  %v1852_v56 = vld [vmem:[#allocation2 + $0x2b8] sm:$0xff] }
 0x427   : > { %v3817_v39 = vpop.permute.xlu0 %3816  ;;  %v4202_v3 = vsel %vm4094_vm5, %v4063_v8, %v12939_v4  ;;  %v4716_v27 = vsel %vm4610_vm9, %v4587_v48, %v10371_v47  ;;  %v1948_v30 = vpack.c.bf16 %v1851_v44, %v1850_v33  ;;  %v4069_v36 = vsel %vm239_vm1, %v12941_v40, %v12940_v31  ;;  %v12942_v50 = vld [vmem:[#allocation56_spill] sm:$0xff]  ;;  %v1853_v2 = vld [vmem:[#allocation2 + $0x2c0] sm:$0xff]  ;;  %v12945_v9 = vld [vmem:[#allocation57_spill] sm:$0xff] }
 0x428   : > { %v4912_v10 = vsel %vm4868_vm11, %v4783_v14, %v3817_v39  ;;  %v10485_v63 = vpop.f32.mrb[8].mxu0  ;;  %v10501_v62 = vsel %vm239_vm1, %v12943_v35, %v12942_v50  ;;  %v4331_v55 = vsel %vm4223_vm6, %v4202_v3, %v12944_v37  ;;  %v4845_v47 = vsel %vm4739_vm10, %v4716_v27, %v3687_v26  ;;  %v12946_v0 = vld [vmem:[#allocation143_spill] sm:$0xff]  ;;  %v12948_v38 = vld [vmem:[#allocation146_spill] sm:$0xff]  ;;  %v12950_v25 = vld [vmem:[#allocation80_spill] sm:$0xff] }
 0x429   : > { %3322 = vrot.lane.b32.xlu0 %v2362_v19, %s7840_s6  ;;  %v10492_v34 = vpop.f32.mrb[9].mxu0  ;;  %7537 = vmatmul.mubr.msk.bf16.gmra.mrb[40].mxu0 %vm5019_vm12, %v4912_v10  ;;  %v3879_v19 = vpop.permute.xlu1 %3878  ;;  %v4075_v33 = vsel %vm239_vm1, %v12946_v0, %v12945_v9  ;;  %v12947_v44 = vld [vmem:[#allocation59_spill] sm:$0xff]  ;;  %v12949_v29 = vld [vmem:[#allocation258_spill] sm:$0xff]  ;;  %v4140_v14 = vsel %vm4094_vm5, %v10367_v57, %v12950_v25  ;;  %v12953_v4 = vld [vmem:[#allocation84_spill] sm:$0xff] }
 0x42a   : > { %v10506_v61 = vpop.f32.mrb[10].mxu0  ;;  %v10514_v13 = vsel %vm239_vm1, %v12948_v38, %v12947_v44  ;;  %v4460_v41 = vsel %vm4352_vm7, %v4331_v55, %v12949_v29  ;;  %v4974_v8 = vsel %vm4868_vm11, %v4845_v47, %v3879_v19  ;;  %v12951_v39 = vld [vmem:[#allocation82_spill] sm:$0xff]  ;;  %3896 = vrot.lane.b32.xlu1 %v2363_v20, %s7844_s19  ;;  %v12952_v48 = vld [vmem:[#allocation83_spill] sm:$0xff]  ;;  %v10539_v3 = vsel %vm4094_vm5, %v10399_v7, %v12953_v4  ;;  %v1915_v27 = vld [vmem:[#allocation2 + $0x530] sm:$0xff] }
 0x42b   : > { %v10519_v26 = vpop.permute.xlu0 %3306  ;;  %v10521_v23 = vpop.f32.mrb[11].mxu0  ;;  %v4144_v59 = vsel %vm4094_vm5, %v10383_v51, %v12951_v39  ;;  %v4589_v60 = vsel %vm4481_vm8, %v4460_v41, %v10337_v42  ;;  %7600 = vmatprep.mubr.msk.bf16.mxu1 %vm5019_vm12, %v4974_v8  ;;  %v4142_v10 = vsel %vm4094_vm5, %v10390_v5, %v12952_v48  ;;  %v1949_v51 = vpack.c.bf16 %v1853_v2, %v1852_v56  ;;  %v1914_v42 = vld [vmem:[#allocation2 + $0x528] sm:$0xff]  ;;  %v12954_v31 = vld [vmem:[#allocation85_spill] sm:$0xff]  ;;  %v12955_v50 = vld [vmem:[#allocation126_spill] sm:$0xff] }
 0x42c   : > { %v4718_v57 = vsel %vm4610_vm9, %v4589_v60, %v10410_v45  ;;  %v4146_v40 = vsel %vm4094_vm5, %v3979_v6, %v12954_v31  ;;  %v4204_v35 = vsel %vm4094_vm5, %v4066_v11, %v12955_v50  ;;  %v12956_v5 = vld [vmem:[#allocation130_spill] sm:$0xff]  ;;  %v2042_v47 = vld [vmem:[#allocation2 + $0x2a9] sm:$0xff]  ;;  %v2043_v19 = vld [vmem:[#allocation2 + $0x2b1] sm:$0xff]  ;;  %v10560_v44 = vpop.f32.mrb[8].mxu1  ;;  %v6165_v50 = vrot.slane %v10334_v1, 1 }
 0x42d   : > { %3450 = vrot.lane.b32.xlu0 %v1948_v30, %s7841_s9  ;;  %v4208_v37 = vsel %vm4094_vm5, %v4072_v49, %v12956_v5  ;;  %v4847_v7 = vsel %vm4739_vm10, %v4718_v57, %v3689_v53  ;;  %v3881_v55 = vpop.permute.xlu1 %3880  ;;  %v12957_v45 = vld [vmem:[#allocation132_spill] sm:$0xff]  ;;  %v12960_v49 = vld [vmem:[#allocation170_spill] sm:$0xff]  ;;  %v12961_v38 = vld [vmem:[#allocation171_spill] sm:$0xff]  ;;  %v10566_v41 = vpop.f32.mrb[9].mxu1  ;;  %v2140_v48 = vpack.c.bf16 %v2043_v19, %v2042_v47 }
 0x42e   : > { %v4206_v30 = vsel %vm4094_vm5, %v4069_v36, %v12957_v45  ;;  %v12958_v56 = vld [vmem:[#allocation136_spill] sm:$0xff]  ;;  %v4976_v0 = vsel %vm4868_vm11, %v4847_v7, %v3881_v55  ;;  %v4273_v53 = vsel %vm4223_vm6, %v4144_v59, %v12960_v49  ;;  %v4271_v29 = vsel %vm4223_vm6, %v4142_v10, %v12961_v38  ;;  %3324 = vrot.lane.b32.xlu1 %v2363_v20, %s7840_s6  ;;  %v12963_v25 = vld [vmem:[#allocation198_spill] sm:$0xff]  ;;  %v10577_v59 = vpop.f32.mrb[10].mxu1  ;;  %v1916_v10 = vld [vmem:[#allocation2 + $0x538] sm:$0xff]  ;;  %s7849_s6 = smov 48  }
 0x42f   : > { %v4210_v2 = vsel %vm4094_vm5, %v4075_v33, %v12958_v56  ;;  %v12959_v9 = vld [vmem:[#allocation168_spill] sm:$0xff]  ;;  %v10558_v11 = vpop.permute.xlu0 %3434  ;;  %7601 = vmatmul.mubr.msk.bf16.gmra.mrb[40].mxu1 %vm5019_vm12, %v4976_v0  ;;  %v1980_v36 = vpack.c.bf16 %v1915_v27, %v1914_v42  ;;  %v12962_v33 = vld [vmem:[#allocation173_spill] sm:$0xff]  ;;  %v1917_v4 = vld [vmem:[#allocation2 + $0x540] sm:$0xff] }
 0x430   : > { %v4269_v6 = vsel %vm4223_vm6, %v4140_v14, %v12959_v9  ;;  %v4275_v8 = vsel %vm4223_vm6, %v4146_v40, %v12962_v33  ;;  %v4333_v14 = vsel %vm4223_vm6, %v4204_v35, %v12963_v25  ;;  %v12964_v39 = vld [vmem:[#allocation200_spill] sm:$0xff]  ;;  %v12965_v20 = vld [vmem:[#allocation201_spill] sm:$0xff]  ;;  %v12966_v42 = vld [vmem:[#allocation203_spill] sm:$0xff]  ;;  %v10586_v35 = vpop.f32.mrb[11].mxu1 }
 0x431   : > { %v4337_v60 = vsel %vm4223_vm6, %v4208_v37, %v12964_v39  ;;  %3452 = vrot.lane.b32.xlu0 %v1949_v51, %s7841_s9  ;;  %v4335_v57 = vsel %vm4223_vm6, %v4206_v30, %v12965_v20  ;;  %v4339_v27 = vsel %vm4223_vm6, %v4210_v2, %v12966_v42  ;;  %v12967_v31 = vld [vmem:[#allocation227_spill] sm:$0xff]  ;;  %v10588_v5 = vpop.permute.xlu1 %3308  ;;  %v2044_v51 = vld [vmem:[#allocation2 + $0x2b9] sm:$0xff]  ;;  %v12970_v30 = vld [vmem:[#allocation232_spill] sm:$0xff]  ;;  %v6037_v2 = vrot.slane %v10340_v58, 1 }
 0x432   : > { %v4398_v40 = vsel %vm4352_vm7, %v4269_v6, %v12967_v31  ;;  %v2045_v37 = vld [vmem:[#allocation2 + $0x2c1] sm:$0xff]  ;;  %v2106_v7 = vld [vmem:[#allocation2 + $0x529] sm:$0xff]  ;;  %v12968_v55 = vld [vmem:[#allocation229_spill] sm:$0xff]  ;;  %v4404_v56 = vsel %vm4352_vm7, %v4275_v8, %v12970_v30  ;;  %3514 = vrot.lane.b32.xlu1 %v1980_v36, %s7841_s9  ;;  %v1981_v8 = vpack.c.bf16 %v1917_v4, %v1916_v10 }
 0x433   : > { %v4402_v47 = vsel %vm4352_vm7, %v4273_v53, %v12968_v55  ;;  %v12969_v19 = vld [vmem:[#allocation230_spill] sm:$0xff]  ;;  %v10597_v9 = vpop.permute.xlu0 %3436  ;;  %v2107_v6 = vld [vmem:[#allocation2 + $0x531] sm:$0xff]  ;;  %v12972_v25 = vld [vmem:[#allocation259_spill] sm:$0xff]  ;;  %v2141_v36 = vpack.c.bf16 %v2045_v37, %v2044_v51  ;;  %v10651_v17 = vmax.f32 %v10340_v58, %v6037_v2  ;;  %v5233_v2 = vadd.f32 %v10506_v61, %v10260_v21 }
 0x434   : > { %v4400_v45 = vsel %vm4352_vm7, %v4271_v29, %v12969_v19  ;;  %v2234_v0 = vld [vmem:[#allocation2 + $0x2aa] sm:$0xff]  ;;  %v2235_v49 = vld [vmem:[#allocation2 + $0x2b2] sm:$0xff]  ;;  %v10605_v53 = vsel %vm4352_vm7, %v4337_v60, %v12972_v25  ;;  %v6229_v29 = vrot.slane %v10348_v43, 1  ;;  %v10611_v20 = vld [vmem:[#allocation2 + $0x541] sm:$0xff]  ;;  %v6101_v60 = vrot.slane %v10352_v54, 1 }
 0x435   : > { %v12971_v38 = vld [vmem:[#allocation257_spill] sm:$0xff]  ;;  %v12973_v31 = vld [vmem:[#allocation260_spill] sm:$0xff]  ;;  %3642 = vrot.lane.b32.xlu0 %v2140_v48, %s7843_s17  ;;  %v10625_v10 = vld [vmem:[#allocation2 + $0x2c2] sm:$0xff]  ;;  %v10642_v48 = vmax.f32 %v10334_v1, %v6165_v50  ;;  %v10644_v51 = vpop.permute.xlu1 %3498  ;;  %v6364_v61 = vrot.slane %v10651_v17, 4 }
 0x436   : > { %v10601_v33 = vsel %vm4352_vm7, %v4333_v14, %v12971_v38  ;;  %v10609_v39 = vld [vmem:[#allocation2 + $0x539] sm:$0xff]  ;;  %v10617_v55 = vsel %vm4352_vm7, %v4335_v57, %v12973_v31  ;;  %v10627_v4 = vld [vmem:[#allocation2 + $0x52a] sm:$0xff]  ;;  %3516 = vrot.lane.b32.xlu1 %v1981_v8, %s7841_s9  ;;  %v6173_v8 = vrot.slane %v10416_v46, 1  ;;  %s7852_s9 = smov 72  }
 0x437   : > { %v10613_v42 = vld [vmem:[#allocation2 + $0x2ba] sm:$0xff]  ;;  %v10629_v30 = vld [vmem:[#allocation2 + $0x532] sm:$0xff]  ;;  %v12976_v57 = vld [vmem:[#allocation283_spill] sm:$0xff]  ;;  %v2173_v1 = vpack.c.bf16 %v10611_v20, %v10609_v39 }
 0x438   : > { %v12974_v14 = vld [vmem:[#allocation262_spill] sm:$0xff]  ;;  %v12975_v38 = vld [vmem:[#allocation281_spill] sm:$0xff]  ;;  %v10635_v31 = vsel %vm4481_vm8, %v4402_v47, %v12976_v57  ;;  %v2332_v47 = vpack.c.bf16 %v2235_v49, %v2234_v0  ;;  %v2333_v50 = vpack.c.bf16 %v10625_v10, %v10613_v42  ;;  %v2364_v58 = vpack.c.bf16 %v10629_v30, %v10627_v4 }
 0x439   : > { %v10621_v19 = vsel %vm4352_vm7, %v4339_v27, %v12974_v14  ;;  %v4527_v25 = vsel %vm4481_vm8, %v4398_v40, %v12975_v38  ;;  %v12977_v27 = vld [vmem:[#allocation284_spill] sm:$0xff]  ;;  %v12978_v37 = vld [vmem:[#allocation286_spill] sm:$0xff]  ;;  %v3627_v40 = vpop.permute.xlu0 %3626  ;;  %v2172_v38 = vpack.c.bf16 %v2107_v6, %v2106_v7  ;;  %v10668_v7 = vmax.f32 %v10352_v54, %v6101_v60  ;;  %3644 = vrot.lane.b32.xlu0 %v2141_v36, %s7843_s17  ;;  %v10681_v54 = vpop.permute.xlu1 %3500 }
 0x43a   : > { %v10639_v14 = vsel %vm4481_vm8, %v4400_v45, %v12977_v27  ;;  %v10648_v15 = vsel %vm4481_vm8, %v4404_v56, %v12978_v37  ;;  %v10653_v57 = vld [vmem:[#allocation2 + $0x53a] sm:$0xff]  ;;  %v10658_v45 = vmax.f32 %v10348_v43, %v6229_v29  ;;  %v5230_v56 = vadd.f32 %v10485_v63, %v10260_v21 }
 0x43b   : > { %v5222_v43 = vadd.f32 %v10260_v21, %v10492_v34  ;;  %v6668_v0 = vrot.slane %v10642_v48, 4  ;;  %v5225_v49 = vadd.f32 %v10260_v21, %v10521_v23  ;;  %v2365_v63 = vpack.c.bf16 %v10655_v18, %v10653_v57  ;;  %3706 = vrot.lane.b32.xlu1 %v2172_v38, %s7843_s17 }
 0x43c   : > { %v6702_v29 = vrot.slane %v10642_v48, 6  ;;  %v6516_v36 = vrot.slane %v10668_v7, 4  ;;  %v5710_v10 = vmax.f32 %v5230_v56, 0.0  ;;  %v5711_v37 = vmax.f32 %v5233_v2, 0.0 }
 0x43d   : > { %v3629_v39 = vpop.permute.xlu0 %3628  ;;  %v5708_v27 = vmax.f32 %v5222_v43, 0.0  ;;  %3834 = vrot.lane.b32.xlu0 %v2332_v47, %s7844_s19  ;;  %v6550_v34 = vrot.slane %v10668_v7, 6  ;;  %v5709_v6 = vmax.f32 %v5225_v49, 0.0  ;;  %v4656_v20 = vsel %vm4610_vm9, %v4527_v25, %v10558_v11  ;;  %v3691_v23 = vpop.permute.xlu1 %3690 }
 0x43e   : > { %v5486_v42 = vadd.f32 %v10560_v44, %v10260_v21  ;;  %v10702_v60 = vmax.f32 %v10416_v46, %v6173_v8  ;;  %v6045_v38 = vrot.slane %v10424_v22, 1  ;;  %v4785_v43 = vsel %vm4739_vm10, %v4656_v20, %v3627_v40 }
 0x43f   : > { %v4591_v11 = vsel %vm4481_vm8, %v10601_v33, %v10519_v26  ;;  %v5478_v44 = vadd.f32 %v10260_v21, %v10566_v41  ;;  %3708 = vrot.lane.b32.xlu1 %v2173_v1, %s7843_s17  ;;  %v5847_v49 = vsel %vm5828_vm13, %v5710_v10, -inf  ;;  %v5841_v8 = vsel %vm5828_vm13, %v5708_v27, -inf  ;;  %s7855_s17 = smov 96  }
 0x440   : > { %v7510_v46 = vpop.f32.mrb[12].mxu0  ;;  %v5850_v40 = vsel %vm5828_vm13, %v5711_v37, -inf  ;;  %v5844_v26 = vsel %vm5828_vm13, %v5709_v6, -inf  ;;  %v5774_v41 = vmax.f32 %v5486_v42, 0.0  ;;  %v4658_v33 = vsel %vm4610_vm9, %v10639_v14, %v10597_v9 }
 0x441   : > { %v3819_v47 = vpop.permute.xlu0 %3818  ;;  %v5246_v20 = vadd.f32 %v7510_v46, %v10260_v21  ;;  %3836 = vrot.lane.b32.xlu0 %v2333_v50, %s7844_s19  ;;  %v5237_v2 = vpop.f32.mrb[13].mxu0  ;;  %v10728_v37 = vadd.f32 %v10577_v59, %v10260_v21  ;;  %v4787_v50 = vsel %vm4739_vm10, %v4658_v33, %v3629_v39  ;;  %v10740_v59 = vadd.f32 %v10260_v21, %v10586_v35 }
 0x442   : > { %v4914_v25 = vsel %vm4868_vm11, %v4785_v43, %v3819_v47  ;;  %v5238_v1 = vadd.f32 %v10260_v21, %v5237_v2  ;;  %v3693_v10 = vpop.permute.xlu1 %3692  ;;  %v7511_v27 = vpop.f32.mrb[14].mxu0  ;;  %v4720_v39 = vsel %vm4610_vm9, %v4591_v11, %v10644_v51  ;;  %v4593_v35 = vsel %vm4481_vm8, %v10617_v55, %v10588_v5 }
 0x443   : > { %7540 = vmatprep.mubr.msk.bf16.mxu0 %vm5019_vm12, %v4914_v25  ;;  %v5714_v43 = vmax.f32 %v5246_v20, 0.0  ;;  %v5249_v47 = vadd.f32 %v7511_v27, %v10260_v21  ;;  %v5240_v42 = vpop.f32.mrb[15].mxu0  ;;  %v5772_v25 = vmax.f32 %v5478_v44, 0.0  ;;  %3898 = vrot.lane.b32.xlu1 %v2364_v58, %s7844_s19  ;;  %v4849_v20 = vsel %vm4739_vm10, %v4720_v39, %v3691_v23 }
 0x444   : > { %v5712_v46 = vmax.f32 %v5238_v1, 0.0  ;;  %v5241_v14 = vadd.f32 %v10260_v21, %v5240_v42  ;;  %v5775_v5 = vmax.f32 %v10728_v37, 0.0 }
 0x445   : > { %v3821_v6 = vpop.permute.xlu0 %3820  ;;  %v5848_v2 = vsel %vm5828_vm13, %v5714_v43, -inf  ;;  %v5715_v44 = vmax.f32 %v5249_v47, 0.0  ;;  %v5943_v43 = vsel %vm5828_vm13, %v5774_v41, -inf  ;;  %v5937_v41 = vsel %vm5828_vm13, %v5772_v25, -inf }
 0x446   : > { %v4916_v9 = vsel %vm4868_vm11, %v4787_v50, %v3821_v6  ;;  %v5849_v33 = vmax.f32 %v5847_v49, %v5848_v2  ;;  %v5842_v1 = vsel %vm5828_vm13, %v5712_v46, -inf  ;;  %v5713_v27 = vmax.f32 %v5241_v14, 0.0  ;;  %v3883_v4 = vpop.permute.xlu1 %3882  ;;  %v7574_v50 = vpop.f32.mrb[12].mxu1 }
 0x447   : > { %7541 = vmatmul.mubr.msk.bf16.gmra.mrb[44].mxu0 %vm5019_vm12, %v4916_v9  ;;  %v5843_v30 = vmax.f32 %v5841_v8, %v5842_v1  ;;  %v5851_v58 = vsel %vm5828_vm13, %v5715_v44, -inf  ;;  %v4978_v51 = vsel %vm4868_vm11, %v4849_v20, %v3883_v4  ;;  %v5493_v6 = vpop.f32.mrb[13].mxu1  ;;  %3900 = vrot.lane.b32.xlu1 %v2365_v63, %s7844_s19  ;;  %v5502_v42 = vadd.f32 %v7574_v50, %v10260_v21 }
 0x448   : > { %v6166_v23 = vrot.slane %v5849_v33, 1  ;;  %v5852_v49 = vmax.f32 %v5850_v40, %v5851_v58  ;;  %v5845_v47 = vsel %vm5828_vm13, %v5713_v27, -inf  ;;  %7604 = vmatprep.mubr.msk.bf16.mxu1 %vm5019_vm12, %v4978_v51  ;;  %v7575_v46 = vpop.f32.mrb[14].mxu1  ;;  %v4722_v40 = vsel %vm4610_vm9, %v4593_v35, %v10681_v54 }
 0x449   : > { %v10753_v11 = vpop.permute.xlu0 %3310  ;;  %v6038_v55 = vrot.slane %v5843_v30, 1  ;;  %v5846_v8 = vmax.f32 %v5844_v26, %v5845_v47  ;;  %v5496_v39 = vpop.f32.mrb[15].mxu1  ;;  %v4851_v63 = vsel %vm4739_vm10, %v4722_v40, %v3693_v10  ;;  %v5494_v26 = vadd.f32 %v10260_v21, %v5493_v6 }
 0x44a   : > { %v10767_v9 = vmax.f32 %v5849_v33, %v6166_v23  ;;  %v6230_v14 = vrot.slane %v5852_v49, 1  ;;  %v3885_v18 = vpop.permute.xlu1 %3884  ;;  %v5505_v20 = vadd.f32 %v7575_v46, %v10260_v21  ;;  %v5778_v10 = vmax.f32 %v5502_v42, 0.0 }
 0x44b   : > { %v10769_v57 = vmax.f32 %v5843_v30, %v6038_v55  ;;  %v6102_v37 = vrot.slane %v5846_v8, 1  ;;  %v5776_v46 = vmax.f32 %v5494_v26, 0.0 }
 0x44c   : > { %v6600_v44 = vrot.slane %v10767_v9, 7  ;;  %v6669_v25 = vrot.slane %v10767_v9, 3  ;;  %v6703_v54 = vrot.slane %v10767_v9, 5  ;;  %v10796_v58 = vmax.f32 %v5852_v49, %v6230_v14 }
 0x44d   : > { %v10773_v2 = vpop.permute.xlu0 %3438  ;;  %v6293_v33 = vrot.slane %v10769_v57, 7  ;;  %v6365_v1 = vrot.slane %v10769_v57, 3  ;;  %v6399_v27 = vrot.slane %v10769_v57, 5  ;;  %v6635_v40 = vrot.slane %v10767_v9, 1 }
 0x44e   : > { %v10784_v4 = vsel %vm6294_vm14, %v6600_v44, %v10642_v48  ;;  %v10789_v35 = vsel %vm6294_vm14, %v6669_v25, %v6668_v0  ;;  %v10794_v30 = vsel %vm6294_vm14, %v6703_v54, %v6702_v29  ;;  %v10798_v51 = vpop.permute.xlu1 %3312  ;;  %v12981_v0 = vrot.slane %v10651_v17, 6 }
 0x44f   : > { %12979 = vst [vmem:[#allocation35_spill] sm:$0xff] %v10789_v35  ;;  %v10802_v50 = vsel %vm6294_vm14, %v6293_v33, %v10651_v17  ;;  %v10807_v23 = vsel %vm6294_vm14, %v6365_v1, %v6364_v61  ;;  %v10814_v29 = vmax.f32 %v5846_v8, %v6102_v37  ;;  %v6752_v6 = vrot.slane %v10796_v58, 7 }
 0x450   : > { %12980 = vst [vmem:[#allocation99_spill] sm:$0xff] %v10807_v23  ;;  %v10812_v47 = vsel %vm6294_vm14, %v6399_v27, %v12981_v0  ;;  %v6821_v55 = vrot.slane %v10796_v58, 3  ;;  %v6855_v42 = vrot.slane %v10796_v58, 5  ;;  %v12982_v37 = vrot.slane %v10658_v45, 4 }
 0x451   : > { %v10816_v49 = vpop.permute.xlu0 %3440  ;;  %v6448_v61 = vrot.slane %v10814_v29, 7  ;;  %v6517_v14 = vrot.slane %v10814_v29, 3  ;;  %v6551_v44 = vrot.slane %v10814_v29, 5  ;;  %v10827_v8 = vsel %vm6294_vm14, %v6752_v6, %v10658_v45 }
 0x452   : > { %v10832_v25 = vsel %vm6294_vm14, %v6821_v55, %v12982_v37  ;;  %v12984_v54 = vrot.slane %v10658_v45, 6  ;;  %v5944_v9 = vsel %vm5828_vm13, %v5778_v10, -inf  ;;  %v10840_v33 = vpop.permute.xlu1 %3502  ;;  %v5938_v10 = vsel %vm5828_vm13, %v5776_v46, -inf }
 0x453   : > { %12983 = vst [vmem:[#allocation94_spill] sm:$0xff] %v10832_v25  ;;  %v10844_v1 = vsel %vm6294_vm14, %v6448_v61, %v10668_v7  ;;  %v10849_v27 = vsel %vm6294_vm14, %v6517_v14, %v6516_v36  ;;  %v10854_v0 = vsel %vm6294_vm14, %v6551_v44, %v6550_v34  ;;  %v5945_v6 = vmax.f32 %v5943_v43, %v5944_v9 }
 0x454   : > { %v10837_v26 = vsel %vm6294_vm14, %v6855_v42, %v12984_v54  ;;  %12985 = vst [vmem:[#allocation181_spill] sm:$0xff] %v10849_v27  ;;  %v5779_v42 = vmax.f32 %v5505_v20, 0.0  ;;  %v5497_v37 = vadd.f32 %v10260_v21, %v5496_v39  ;;  %v4980_v61 = vsel %vm4868_vm11, %v4851_v63, %v3885_v18 }
 0x455   : > { %v10856_v55 = vpop.permute.xlu0 %3630  ;;  %v6682_v54 = vrot.slane %v10702_v60, 4  ;;  %v5773_v36 = vmax.f32 %v10740_v59, 0.0  ;;  %v6174_v14 = vrot.slane %v5945_v6, 1  ;;  %v5939_v56 = vmax.f32 %v5937_v41, %v5938_v10  ;;  %7605 = vmatmul.mubr.msk.bf16.gmra.mrb[44].mxu1 %vm5019_vm12, %v4980_v61 }
 0x456   : > { %v10867_v34 = vmax.f32 %v10424_v22, %v6045_v38  ;;  %v5946_v43 = vsel %vm5828_vm13, %v5775_v5, -inf  ;;  %v5947_v20 = vsel %vm5828_vm13, %v5779_v42, -inf  ;;  %v5777_v21 = vmax.f32 %v5497_v37, 0.0  ;;  %v10871_v39 = vpop.permute.xlu1 %3504 }
 0x457   : > { %v6716_v18 = vrot.slane %v10702_v60, 6  ;;  %v10874_v63 = vmax.f32 %v5945_v6, %v6174_v14  ;;  %v6046_v59 = vrot.slane %v5939_v56, 1  ;;  %v5948_v41 = vmax.f32 %v5946_v43, %v5947_v20 }
 0x458   : > { %v12986_v44 = vrot.slane %v10436_v24, 1  ;;  %v12987_v22 = vrot.slane %v10467_v12, 1  ;;  %v5941_v5 = vsel %vm5828_vm13, %v5777_v21, -inf  ;;  %v10887_v10 = vpop.f32.mrb[16].mxu0  ;;  %v12988_v6 = vrot.slane %v10642_v48, 2 }
 0x459   : > { %v3633_v46 = vpop.permute.xlu0 %3632  ;;  %v5940_v37 = vsel %vm5828_vm13, %v5773_v36, -inf  ;;  %v6614_v61 = vrot.slane %v10874_v63, 7  ;;  %v6717_v14 = vrot.slane %v10874_v63, 5  ;;  %v10898_v43 = vpop.f32.mrb[17].mxu0  ;;  %v10901_v20 = vmax.f32 %v5939_v56, %v6046_v59 }
 0x45a   : > { %v10879_v9 = vmax.f32 %v10436_v24, %v12986_v44  ;;  %v10884_v38 = vmax.f32 %v10467_v12, %v12987_v22  ;;  %v10892_v42 = vsel %vm6294_vm14, %v6635_v40, %v12988_v6  ;;  %v6683_v24 = vrot.slane %v10874_v63, 3  ;;  %v3695_v48 = vpop.permute.xlu1 %3694  ;;  %v10903_v22 = vpop.f32.mrb[18].mxu0 }
 0x45b   : > { %v6378_v12 = vrot.slane %v10867_v34, 4  ;;  %v6238_v21 = vrot.slane %v5948_v41, 1  ;;  %v5942_v44 = vmax.f32 %v5940_v37, %v5941_v5  ;;  %v6412_v40 = vrot.slane %v10867_v34, 6  ;;  %v10916_v56 = vpop.f32.mrb[19].mxu0 }
 0x45c   : > { %v10908_v36 = vsel %vm6294_vm14, %v6614_v61, %v10702_v60  ;;  %v10911_v6 = vsel %vm6294_vm14, %v6683_v24, %v6682_v54  ;;  %v10914_v27 = vsel %vm6294_vm14, %v6717_v14, %v6716_v18  ;;  %v6834_v59 = vrot.slane %v10879_v9, 4 }
 0x45d   : > { %12989 = vst [vmem:[#allocation240_spill] sm:$0xff] %v10908_v36  ;;  %12990 = vst [vmem:[#allocation6_spill] sm:$0xff] %v10911_v6  ;;  %v3823_v25 = vpop.permute.xlu0 %3822  ;;  %v6314_v5 = vrot.slane %v10901_v20, 7  ;;  %v6379_v37 = vrot.slane %v10901_v20, 3  ;;  %v6413_v23 = vrot.slane %v10901_v20, 5  ;;  %v6868_v61 = vrot.slane %v10879_v9, 6 }
 0x45e   : > { %12991 = vst [vmem:[#allocation63_spill] sm:$0xff] %v10914_v27  ;;  %v6530_v28 = vrot.slane %v10884_v38, 4  ;;  %v10924_v54 = vmax.f32 %v5948_v41, %v6238_v21  ;;  %v6110_v24 = vrot.slane %v5942_v44, 1  ;;  %v6564_v18 = vrot.slane %v10884_v38, 6  ;;  %v3697_v16 = vpop.permute.xlu1 %3696 }
 0x45f   : > { %v10929_v14 = vsel %vm6294_vm14, %v6314_v5, %v10867_v34  ;;  %v10932_v6 = vsel %vm6294_vm14, %v6379_v37, %v6378_v12  ;;  %v10935_v52 = vsel %vm6294_vm14, %v6413_v23, %v6412_v40  ;;  %v4660_v21 = vsel %vm4610_vm9, %v10635_v31, %v10773_v2  ;;  %v10943_v5 = vpop.f32.mrb[16].mxu1 }
 0x460   : > { %12992 = vst [vmem:[#allocation150_spill] sm:$0xff] %v10932_v6  ;;  %12993 = vst [vmem:[#allocation209_spill] sm:$0xff] %v10935_v52  ;;  %v6766_v27 = vrot.slane %v10924_v54, 7  ;;  %v6835_v36 = vrot.slane %v10924_v54, 3  ;;  %v6869_v41 = vrot.slane %v10924_v54, 5  ;;  %v4595_v12 = vsel %vm4481_vm8, %v10605_v53, %v10753_v11  ;;  %v10953_v6 = vpop.f32.mrb[17].mxu1 }
 0x461   : > { %v3825_v35 = vpop.permute.xlu0 %3824  ;;  %v6142_v23 = vmax.f32 %v5942_v44, %v6110_v24  ;;  %v4662_v40 = vsel %vm4610_vm9, %v10648_v15, %v10816_v49  ;;  %v4789_v37 = vsel %vm4739_vm10, %v4660_v21, %v10856_v55  ;;  %v7579_v11 = vpop.f32.mrb[18].mxu1 }
 0x462   : > { %v10957_v31 = vsel %vm6294_vm14, %v6766_v27, %v10879_v9  ;;  %v10960_v2 = vsel %vm6294_vm14, %v6835_v36, %v6834_v59  ;;  %v10963_v52 = vsel %vm6294_vm14, %v6869_v41, %v6868_v61  ;;  %v4918_v53 = vsel %vm4868_vm11, %v4789_v37, %v3823_v25  ;;  %v5512_v24 = vpop.f32.mrb[19].mxu1  ;;  %v3887_v21 = vpop.permute.xlu1 %3886 }
 0x463   : > { %v6462_v44 = vrot.slane %v6142_v23, 7  ;;  %v6531_v15 = vrot.slane %v6142_v23, 3  ;;  %v6565_v49 = vrot.slane %v6142_v23, 5  ;;  %v4791_v55 = vsel %vm4739_vm10, %v4662_v40, %v3633_v46  ;;  %7544 = vmatprep.mubr.msk.bf16.mxu0 %vm5019_vm12, %v4918_v53 }
 0x464   : > { %v6331_v27 = vrot.slane %v10769_v57, 1  ;;  %v6787_v36 = vrot.slane %v10796_v58, 1  ;;  %v4597_v59 = vsel %vm4481_vm8, %v10621_v19, %v10798_v51  ;;  %v4920_v25 = vsel %vm4868_vm11, %v4791_v55, %v3825_v35 }
 0x465   : > { %v10974_v61 = vpop.permute.xlu0 %3314  ;;  %v10978_v41 = vsel %vm6294_vm14, %v6462_v44, %v10884_v38  ;;  %v10981_v46 = vsel %vm6294_vm14, %v6531_v15, %v6530_v28  ;;  %v10984_v40 = vsel %vm6294_vm14, %v6565_v49, %v6564_v18  ;;  %v4724_v57 = vsel %vm4610_vm9, %v4595_v12, %v10840_v33  ;;  %7545 = vmatmul.mubr.msk.bf16.gmra.mrb[48].mxu0 %vm5019_vm12, %v4920_v25 }
 0x466   : > { %v6483_v19 = vrot.slane %v10814_v29, 1  ;;  %v6649_v35 = vrot.slane %v10874_v63, 1  ;;  %v4726_v58 = vsel %vm4610_vm9, %v4597_v59, %v10871_v39  ;;  %v4853_v51 = vsel %vm4739_vm10, %v4724_v57, %v3695_v48  ;;  %v3889_v33 = vpop.permute.xlu1 %3888  ;;  %v12998_v57 = vld [vmem:[#allocation140_spill] sm:$0xff] }
 0x467   : > { %v6345_v28 = vrot.slane %v10901_v20, 1  ;;  %v6801_v37 = vrot.slane %v10924_v54, 1  ;;  %v4855_v18 = vsel %vm4739_vm10, %v4726_v58, %v3697_v16  ;;  %v4982_v53 = vsel %vm4868_vm11, %v4853_v51, %v3887_v21  ;;  %v13000_v58 = vld [vmem:[#allocation175_spill] sm:$0xff] }
 0x468   : > { %v6482_v12 = vrot.slane %v10668_v7, 2  ;;  %v6648_v29 = vrot.slane %v10702_v60, 2  ;;  %v6497_v44 = vrot.slane %v6142_v23, 1  ;;  %7608 = vmatprep.mubr.msk.bf16.mxu1 %vm5019_vm12, %v4982_v53  ;;  %v4984_v39 = vsel %vm4868_vm11, %v4855_v18, %v3889_v33  ;;  %v11016_v60 = vld [vmem:[%s12407_s2] ss:$0 sm:$0xff] }
 0x469   : > { %v11002_v63 = vpop.permute.xlu0 %3442  ;;  %v6344_v20 = vrot.slane %v10867_v34, 2  ;;  %v6800_v48 = vrot.slane %v10879_v9, 2  ;;  %v6496_v16 = vrot.slane %v10884_v38, 2  ;;  %7609 = vmatmul.mubr.msk.bf16.gmra.mrb[48].mxu1 %vm5019_vm12, %v4984_v39  ;;  %v12994_v54 = vrot.slane %v10651_v17, 2  ;;  %v13003_v39 = vld [vmem:[#allocation231_spill] sm:$0xff] }
 0x46a   : > { %v5262_v23 = vadd.f32 %v11016_v60, %v10887_v10  ;;  %v5254_v34 = vadd.f32 %v11016_v60, %v10898_v43  ;;  %v12995_v9 = vrot.slane %v10658_v45, 2  ;;  %v11028_v17 = vsel %vm6294_vm14, %v6483_v19, %v6482_v12  ;;  %v11032_v49 = vpop.permute.xlu1 %3316  ;;  %v12996_v45 = vld [vmem:[#allocation87_spill] sm:$0xff] }
 0x46b   : > { %v11011_v7 = vsel %vm6294_vm14, %v6331_v27, %v12994_v54  ;;  %v5265_v15 = vadd.f32 %v11016_v60, %v10903_v22  ;;  %v11035_v55 = vsel %vm6294_vm14, %v6649_v35, %v6648_v29  ;;  %v11038_v10 = vsel %vm6294_vm14, %v6345_v28, %v6344_v20  ;;  %v12997_v27 = vld [vmem:[#allocation134_spill] sm:$0xff]  ;;  %v12999_v35 = vld [vmem:[#allocation172_spill] sm:$0xff] }
 0x46c   : > { %v11025_v38 = vsel %vm6294_vm14, %v6787_v36, %v12995_v9  ;;  %v11041_v43 = vsel %vm6294_vm14, %v6801_v37, %v6800_v48  ;;  %v4150_v21 = vsel %vm4094_vm5, %v10461_v32, %v12996_v45  ;;  %v4212_v36 = vsel %vm4094_vm5, %v10501_v62, %v12997_v27  ;;  %v13004_v20 = vld [vmem:[#allocation234_spill] sm:$0xff]  ;;  %v13007_v45 = vld [vmem:[#allocation285_spill] sm:$0xff] }
 0x46d   : > { %v5257_v22 = vadd.f32 %v11016_v60, %v10916_v56  ;;  %v11051_v59 = vpop.permute.xlu0 %3444  ;;  %v11054_v25 = vsel %vm6294_vm14, %v6497_v44, %v6496_v16  ;;  %v4214_v19 = vsel %vm4094_vm5, %v10514_v13, %v12998_v57  ;;  %v4277_v32 = vsel %vm4223_vm6, %v10539_v3, %v12999_v35  ;;  %v13001_v56 = vld [vmem:[#allocation202_spill] sm:$0xff]  ;;  %v13002_v13 = vld [vmem:[#allocation205_spill] sm:$0xff] }
 0x46e   : > { %v4279_v51 = vsel %vm4223_vm6, %v4150_v21, %v13000_v58  ;;  %v5518_v62 = vadd.f32 %v11016_v60, %v10943_v5  ;;  %v4341_v28 = vsel %vm4223_vm6, %v4212_v36, %v13001_v56  ;;  %v5718_v37 = vmax.f32 %v5262_v23, 0.0  ;;  %v3507_v44 = vpop.permute.xlu1 %3506  ;;  %v13005_v16 = vld [vmem:[#allocation261_spill] sm:$0xff] }
 0x46f   : > { %v5510_v18 = vadd.f32 %v11016_v60, %v10953_v6  ;;  %v5521_v53 = vadd.f32 %v11016_v60, %v7579_v11  ;;  %v4343_v33 = vsel %vm4223_vm6, %v4214_v19, %v13002_v13  ;;  %v5716_v12 = vmax.f32 %v5254_v34, 0.0  ;;  %v13006_v11 = vld [vmem:[#allocation264_spill] sm:$0xff] }
 0x470   : > { %v5719_v3 = vmax.f32 %v5265_v15, 0.0  ;;  %v5513_v29 = vadd.f32 %v11016_v60, %v5512_v24  ;;  %v4406_v5 = vsel %vm4352_vm7, %v4277_v32, %v13003_v39  ;;  %v4408_v48 = vsel %vm4352_vm7, %v4279_v51, %v13004_v20  ;;  %v13008_v15 = vld [vmem:[#allocation288_spill] sm:$0xff]  ;;  %v7518_v27 = vpop.f32.mrb[20].mxu0 }
 0x471   : > { %v4470_v54 = vsel %vm4352_vm7, %v4341_v28, %v13005_v16  ;;  %v5717_v6 = vmax.f32 %v5257_v22, 0.0  ;;  %v3635_v23 = vpop.permute.xlu0 %3634  ;;  %v4472_v9 = vsel %vm4352_vm7, %v4343_v33, %v13006_v11  ;;  %v4535_v34 = vsel %vm4481_vm8, %v4406_v5, %v13007_v45  ;;  %v5269_v22 = vpop.f32.mrb[21].mxu0 }
 0x472   : > { %v4537_v24 = vsel %vm4481_vm8, %v4408_v48, %v13008_v15  ;;  %v5782_v21 = vmax.f32 %v5518_v62, 0.0  ;;  %v5859_v36 = vsel %vm5828_vm13, %v5718_v37, -inf  ;;  %v5780_v57 = vmax.f32 %v5510_v18, 0.0  ;;  %v3509_v28 = vpop.permute.xlu1 %3508  ;;  %v7519_v13 = vpop.f32.mrb[22].mxu0 }
 0x473   : > { %v5783_v19 = vmax.f32 %v5521_v53, 0.0  ;;  %v5278_v35 = vadd.f32 %v11016_v60, %v7518_v27  ;;  %v5853_v32 = vsel %vm5828_vm13, %v5716_v12, -inf  ;;  %v5862_v58 = vsel %vm5828_vm13, %v5719_v3, -inf  ;;  %v5272_v39 = vpop.f32.mrb[23].mxu0 }
 0x474   : > { %v5781_v51 = vmax.f32 %v5513_v29, 0.0  ;;  %v5270_v56 = vadd.f32 %v11016_v60, %v5269_v22  ;;  %v5856_v62 = vsel %vm5828_vm13, %v5717_v6, -inf  ;;  %v4599_v37 = vsel %vm4481_vm8, %v4470_v54, %v10974_v61 }
 0x475   : > { %v5722_v18 = vmax.f32 %v5278_v35, 0.0  ;;  %v5281_v53 = vadd.f32 %v11016_v60, %v7519_v13  ;;  %v11095_v33 = vpop.permute.xlu0 %3636  ;;  %v11098_v12 = vsel %vm5828_vm13, %v5782_v21, -inf  ;;  %v4664_v3 = vsel %vm4610_vm9, %v4535_v34, %v11002_v63 }
 0x476   : > { %v5720_v29 = vmax.f32 %v5270_v56, 0.0  ;;  %v5273_v5 = vadd.f32 %v11016_v60, %v5272_v39  ;;  %v11104_v20 = vsel %vm5828_vm13, %v5780_v57, -inf  ;;  %v11107_v61 = vsel %vm5828_vm13, %v5783_v19, -inf  ;;  %v11114_v63 = vpop.permute.xlu1 %3698  ;;  %v7582_v19 = vpop.f32.mrb[20].mxu1 }
 0x477   : > { %v5860_v48 = vsel %vm5828_vm13, %v5722_v18, -inf  ;;  %v5723_v16 = vmax.f32 %v5281_v53, 0.0  ;;  %v11111_v54 = vsel %vm5828_vm13, %v5781_v51, -inf  ;;  %v4601_v34 = vsel %vm4481_vm8, %v4472_v9, %v11032_v49  ;;  %v5525_v56 = vpop.f32.mrb[21].mxu1 }
 0x478   : > { %v5861_v6 = vmax.f32 %v5859_v36, %v5860_v48  ;;  %v5854_v11 = vsel %vm5828_vm13, %v5720_v29, -inf  ;;  %v5721_v45 = vmax.f32 %v5273_v5, 0.0  ;;  %v4793_v15 = vsel %vm4739_vm10, %v4664_v3, %v3635_v23  ;;  %v7583_v23 = vpop.f32.mrb[22].mxu1 }
 0x479   : > { %v5855_v21 = vmax.f32 %v5853_v32, %v5854_v11  ;;  %v5863_v27 = vsel %vm5828_vm13, %v5723_v16, -inf  ;;  %v3827_v57 = vpop.permute.xlu0 %3826  ;;  %v5534_v53 = vadd.f32 %v11016_v60, %v7582_v19  ;;  %v5526_v49 = vadd.f32 %v11016_v60, %v5525_v56  ;;  %v5528_v3 = vpop.f32.mrb[23].mxu1 }
 0x47a   : > { %v6167_v35 = vrot.slane %v5861_v6, 1  ;;  %v5864_v22 = vmax.f32 %v5862_v58, %v5863_v27  ;;  %v5857_v51 = vsel %vm5828_vm13, %v5721_v45, -inf  ;;  %v4922_v36 = vsel %vm4868_vm11, %v4793_v15, %v3827_v57  ;;  %v3701_v29 = vpop.permute.xlu1 %3700 }
 0x47b   : > { %v6039_v13 = vrot.slane %v5855_v21, 1  ;;  %v5858_v18 = vmax.f32 %v5856_v62, %v5857_v51  ;;  %7548 = vmatprep.mubr.msk.bf16.mxu0 %vm5019_vm12, %v4922_v36  ;;  %v4666_v9 = vsel %vm4610_vm9, %v4537_v24, %v11051_v59  ;;  %v4728_v32 = vsel %vm4610_vm9, %v4599_v37, %v3507_v44 }
 0x47c   : > { %v11128_v58 = vmax.f32 %v5861_v6, %v6167_v35  ;;  %v6231_v39 = vrot.slane %v5864_v22, 1  ;;  %v5786_v48 = vmax.f32 %v5534_v53, 0.0  ;;  %v5784_v16 = vmax.f32 %v5526_v49, 0.0 }
 0x47d   : > { %v11130_v5 = vmax.f32 %v5855_v21, %v6039_v13  ;;  %v6103_v62 = vrot.slane %v5858_v18, 1  ;;  %v3829_v11 = vpop.permute.xlu0 %3828  ;;  %v4730_v44 = vsel %vm4610_vm9, %v4601_v34, %v3509_v28  ;;  %v5537_v21 = vadd.f32 %v11016_v60, %v7583_v23 }
 0x47e   : > { %v6602_v45 = vrot.slane %v11128_v58, 6  ;;  %v11136_v15 = vsel %vm6297_vm15, %v11128_v58, %v10892_v42  ;;  %v6705_v59 = vrot.slane %v11128_v58, 4  ;;  %v11156_v28 = vmax.f32 %v5864_v22, %v6231_v39  ;;  %v3891_v57 = vpop.permute.xlu1 %3890 }
 0x47f   : > { %v6296_v24 = vrot.slane %v11130_v5, 6  ;;  %v11144_v37 = vsel %vm6297_vm15, %v11130_v5, %v11011_v7  ;;  %v6401_v6 = vrot.slane %v11130_v5, 4  ;;  %v11158_v34 = vmax.f32 %v5858_v18, %v6103_v62 }
 0x480   : > { %v11150_v27 = vsel %vm6297_vm15, %v6602_v45, %v10784_v4  ;;  %v11154_v42 = vsel %vm6297_vm15, %v6705_v59, %v10794_v30  ;;  %v5956_v4 = vsel %vm5828_vm13, %v5786_v48, -inf  ;;  %v5950_v35 = vsel %vm5828_vm13, %v5784_v16, -inf }
 0x481   : > { %13009 = vst [vmem:[#allocation8_spill] sm:$0xff] %v11154_v42  ;;  %v11162_v7 = vsel %vm6297_vm15, %v6296_v24, %v10802_v50  ;;  %v11166_v19 = vsel %vm6297_vm15, %v6401_v6, %v10812_v47  ;;  %v11170_v51 = vpop.permute.xlu0 %3318  ;;  %v6754_v30 = vrot.slane %v11156_v28, 6  ;;  %v11176_v22 = vsel %vm6297_vm15, %v11156_v28, %v11025_v38  ;;  %v13013_v6 = vld [vmem:[#allocation35_spill] sm:$0xff] }
 0x482   : > { %13010 = vst [vmem:[#allocation65_spill] sm:$0xff] %v11162_v7  ;;  %13011 = vst [vmem:[#allocation153_spill] sm:$0xff] %v11176_v22  ;;  %v6857_v50 = vrot.slane %v11156_v28, 4  ;;  %v4795_v36 = vsel %vm4739_vm10, %v4666_v9, %v11095_v33  ;;  %v6671_v47 = vrot.slane %v11128_v58, 2  ;;  %v6450_v56 = vrot.slane %v11158_v34, 6  ;;  %v3893_v23 = vpop.permute.xlu1 %3892  ;;  %v13072_v7 = vld [vmem:[#allocation291_spill] sm:$0xff] }
 0x483   : > { %v11186_v13 = vsel %vm6297_vm15, %v11158_v34, %v11028_v17  ;;  %v6553_v18 = vrot.slane %v11158_v34, 4  ;;  %v11191_v38 = vsel %vm6297_vm15, %v6754_v30, %v10827_v8  ;;  %v5957_v33 = vmax.f32 %v11098_v12, %v5956_v4 }
 0x484   : > { %v11195_v53 = vsel %vm6297_vm15, %v6857_v50, %v10837_v26  ;;  %v5951_v49 = vmax.f32 %v11104_v20, %v5950_v35  ;;  %v11201_v9 = vsel %vm6297_vm15, %v6450_v56, %v10844_v1  ;;  %v5787_v58 = vmax.f32 %v5537_v21, 0.0 }
 0x485   : > { %13012 = vst [vmem:[#allocation34_spill] sm:$0xff] %v11195_v53  ;;  %v11205_v17 = vsel %vm6297_vm15, %v6553_v18, %v10854_v0  ;;  %v5529_v8 = vadd.f32 %v11016_v60, %v5528_v3  ;;  %v11208_v39 = vpop.permute.xlu0 %3446  ;;  %v4857_v26 = vsel %vm4739_vm10, %v4728_v32, %v11114_v63  ;;  %v6175_v12 = vrot.slane %v5957_v33, 1 }
 0x486   : > { %v6047_v62 = vrot.slane %v5951_v49, 1  ;;  %v4924_v20 = vsel %vm4868_vm11, %v4795_v36, %v3829_v11  ;;  %v5959_v48 = vsel %vm5828_vm13, %v5787_v58, -inf  ;;  %v4859_v16 = vsel %vm4739_vm10, %v4730_v44, %v3701_v29  ;;  %v11222_v32 = vpop.permute.xlu1 %3320  ;;  %v13014_v36 = vld [vmem:[#allocation240_spill] sm:$0xff]  ;;  %v13019_v58 = vld [vmem:[#allocation210_spill] sm:$0xff] }
 0x487   : > { %v5785_v1 = vmax.f32 %v5529_v8, 0.0  ;;  %7549 = vmatmul.mubr.msk.bf16.gmra.mrb[52].mxu0 %vm5019_vm12, %v4924_v20  ;;  %v4986_v0 = vsel %vm4868_vm11, %v4857_v26, %v3891_v57  ;;  %v6207_v45 = vmax.f32 %v5957_v33, %v6175_v12  ;;  %v5960_v59 = vmax.f32 %v11107_v61, %v5959_v48  ;;  %v13022_v12 = vld [vmem:[#allocation209_spill] sm:$0xff]  ;;  %v13023_v48 = vld [vmem:[#allocation32_spill] sm:$0xff] }
 0x488   : > { %v11217_v3 = vmax.f32 %v5951_v49, %v6047_v62  ;;  %7612 = vmatprep.mubr.msk.bf16.mxu1 %vm5019_vm12, %v4986_v0  ;;  %v4988_v63 = vsel %vm4868_vm11, %v4859_v16, %v3893_v23  ;;  %v6367_v11 = vrot.slane %v11130_v5, 2  ;;  %v6823_v24 = vrot.slane %v11156_v28, 2  ;;  %v13017_v49 = vld [vmem:[#allocation29_spill] sm:$0xff]  ;;  %v13018_v23 = vld [vmem:[#allocation91_spill] sm:$0xff] }
 0x489   : > { %v5953_v29 = vsel %vm5828_vm13, %v5785_v1, -inf  ;;  %7613 = vmatmul.mubr.msk.bf16.gmra.mrb[52].mxu1 %vm5019_vm12, %v4988_v63  ;;  %v11228_v44 = vpop.permute.xlu0 %3448  ;;  %v11232_v21 = vsel %vm6297_vm15, %v6671_v47, %v13013_v6  ;;  %v6519_v61 = vrot.slane %v11158_v34, 2  ;;  %v6616_v57 = vrot.slane %v6207_v45, 6  ;;  %v13015_v34 = vld [vmem:[#allocation63_spill] sm:$0xff]  ;;  %v13024_v1 = vld [vmem:[#allocation238_spill] sm:$0xff] }
 0x48a   : > { %v11237_v4 = vsel %vm6297_vm15, %v6207_v45, %v11035_v55  ;;  %v6719_v5 = vrot.slane %v6207_v45, 4  ;;  %v6685_v35 = vrot.slane %v6207_v45, 2  ;;  %v6316_v28 = vrot.slane %v11217_v3, 6  ;;  %v11255_v33 = vpop.permute.xlu1 %3510  ;;  %v13027_v6 = vld [vmem:[#allocation99_spill] sm:$0xff] }
 0x48b   : > { %v11243_v30 = vsel %vm6297_vm15, %v11217_v3, %v11038_v10  ;;  %v6415_v50 = vrot.slane %v11217_v3, 4  ;;  %v11248_v47 = vsel %vm6297_vm15, %v6616_v57, %v13014_v36  ;;  %v6239_v55 = vrot.slane %v5960_v59, 1 }
 0x48c   : > { %v11252_v56 = vsel %vm6297_vm15, %v6719_v5, %v13015_v34  ;;  %v5954_v18 = vmax.f32 %v11111_v54, %v5953_v29  ;;  %v13020_v10 = vpack.c.bf16 %v13018_v23, %v13019_v58  ;;  %v11264_v26 = vsel %vm6297_vm15, %v6316_v28, %v10929_v14  ;;  %v13025_v54 = vld [vmem:[#allocation179_spill] sm:$0xff]  ;;  %v11275_v29 = vpop.f32.mrb[24].mxu0  ;;  %v13028_v14 = vld [vmem:[#allocation86_spill] sm:$0xff]  ;;  %v13030_v34 = vld [vmem:[#allocation181_spill] sm:$0xff] }
 0x48d   : > { %13016 = vst [vmem:[#allocation97_spill] sm:$0xff] %v11252_v56  ;;  %13021 = vst [vmem:[#allocation212_spill] sm:$0xff] %v11264_v26  ;;  %v11268_v62 = vsel %vm6297_vm15, %v6415_v50, %v13022_v12  ;;  %v3639_v20 = vpop.permute.xlu0 %3638  ;;  %v13026_v16 = vpack.c.bf16 %v13024_v1, %v13025_v54  ;;  %v6271_v45 = vmax.f32 %v5960_v59, %v6239_v55  ;;  %v11283_v28 = vpop.f32.mrb[25].mxu0  ;;  %v13029_v50 = vld [vmem:[#allocation94_spill] sm:$0xff]  ;;  %v13035_v1 = vld [vmem:[#allocation233_spill] sm:$0xff]  ;;  %vm6919_vm14 = vcmask 785408  }
 0x48e   : > { %v3988_v8 = vsel %vm239_vm1, %v13020_v10, %v13017_v49  ;;  %v6111_v63 = vrot.slane %v5954_v18, 1  ;;  %v11279_v57 = vsel %vm6297_vm15, %v6367_v11, %v13027_v6  ;;  %v11287_v36 = vsel %vm6297_vm15, %v6823_v24, %v13029_v50  ;;  %v13031_v59 = vld [vmem:[#allocation6_spill] sm:$0xff]  ;;  %v3513_v12 = vpop.permute.xlu1 %3512  ;;  %v11303_v24 = vpop.f32.mrb[26].mxu0 }
 0x48f   : > { %v3991_v0 = vsel %vm239_vm1, %v13026_v16, %v13023_v48  ;;  %v4152_v5 = vsel %vm4094_vm5, %v3988_v8, %v13028_v14  ;;  %v11291_v49 = vsel %vm6297_vm15, %v6519_v61, %v13030_v34  ;;  %v11295_v55 = vsel %vm6297_vm15, %v6685_v35, %v13031_v59  ;;  %v13032_v23 = vld [vmem:[#allocation174_spill] sm:$0xff]  ;;  %v13034_v48 = vld [vmem:[#allocation89_spill] sm:$0xff]  ;;  %v11310_v14 = vpop.f32.mrb[27].mxu0 }
 0x490   : > { %v4281_v11 = vsel %vm4223_vm6, %v4152_v5, %v13032_v23  ;;  %v6768_v58 = vrot.slane %v6271_v45, 6  ;;  %v11301_v10 = vsel %vm6297_vm15, %v6271_v45, %v11041_v43  ;;  %v6871_v8 = vrot.slane %v6271_v45, 4  ;;  %v13036_v5 = vld [vmem:[#allocation287_spill] sm:$0xff]  ;;  %v13038_v23 = vld [vmem:[#allocation177_spill] sm:$0xff] }
 0x491   : > { %13033 = vst [vmem:[#allocation92_spill] sm:$0xff] %v11301_v10  ;;  %v4154_v61 = vsel %vm4094_vm5, %v3991_v0, %v13034_v48  ;;  %v4410_v54 = vsel %vm4352_vm7, %v4281_v11, %v13035_v1  ;;  %v6381_v35 = vrot.slane %v11217_v3, 2  ;;  %v6143_v16 = vmax.f32 %v5954_v18, %v6111_v63  ;;  %v3641_v6 = vpop.permute.xlu0 %3640  ;;  %v13039_v1 = vld [vmem:[#allocation150_spill] sm:$0xff] }
 0x492   : > { %v4539_v43 = vsel %vm4481_vm8, %v4410_v54, %v13036_v5  ;;  %v11316_v50 = vsel %vm6297_vm15, %v6768_v58, %v10957_v31  ;;  %v6837_v34 = vrot.slane %v6271_v45, 2  ;;  %v11320_v0 = vsel %vm6297_vm15, %v6871_v8, %v10963_v52  ;;  %v3703_v31 = vpop.permute.xlu1 %3702  ;;  %v7586_v8 = vpop.f32.mrb[24].mxu1  ;;  %v13042_v5 = vld [vmem:[#allocation236_spill] sm:$0xff] }
 0x493   : > { %13037 = vst [vmem:[#allocation180_spill] sm:$0xff] %v11320_v0  ;;  %v6464_v59 = vrot.slane %v6143_v16, 6  ;;  %v11324_v3 = vsel %vm6297_vm15, %v6143_v16, %v11054_v25  ;;  %v6533_v18 = vrot.slane %v6143_v16, 2  ;;  %v6567_v63 = vrot.slane %v6143_v16, 4  ;;  %v13041_v16 = vld [vmem:[#allocation145_spill] sm:$0xff] }
 0x494   : > { %v4283_v11 = vsel %vm4223_vm6, %v4154_v61, %v13038_v23  ;;  %v4668_v48 = vsel %vm4610_vm9, %v4539_v43, %v11208_v39  ;;  %v11341_v54 = vsel %vm6297_vm15, %v6381_v35, %v13039_v1  ;;  %v13040_v61 = vld [vmem:[#allocation58_spill] sm:$0xff] }
 0x495   : > { %v11332_v45 = vsel %vm6297_vm15, %v6464_v59, %v10978_v41  ;;  %v11336_v52 = vsel %vm6297_vm15, %v6567_v63, %v10984_v40  ;;  %v4797_v25 = vsel %vm4739_vm10, %v4668_v48, %v3639_v20  ;;  %v3831_v58 = vpop.permute.xlu0 %3830  ;;  %v4084_v39 = vsel %vm239_vm1, %v13041_v16, %v13040_v61  ;;  %v5541_v59 = vpop.f32.mrb[25].mxu1  ;;  %v13043_v40 = vld [vmem:[#allocation138_spill] sm:$0xff] }
 0x496   : > { %v4412_v41 = vsel %vm4352_vm7, %v4283_v11, %v13042_v5  ;;  %v4926_v43 = vsel %vm4868_vm11, %v4797_v25, %v3831_v58  ;;  %v4216_v63 = vsel %vm4094_vm5, %v4084_v39, %v13043_v40  ;;  %v13044_v20 = vld [vmem:[#allocation290_spill] sm:$0xff]  ;;  %v11354_v35 = vpop.f32.mrb[26].mxu1  ;;  %v11358_v48 = vsel %vm6297_vm15, %v6837_v34, %v10960_v2  ;;  %v13045_v25 = vld [vmem:[#allocation204_spill] sm:$0xff]  ;;  %v3705_v16 = vpop.permute.xlu1 %3704  ;;  %v13046_v39 = vld [vmem:[#allocation263_spill] sm:$0xff] }
 0x497   : > { %v4541_v23 = vsel %vm4481_vm8, %v4412_v41, %v13044_v20  ;;  %7552 = vmatprep.mubr.msk.bf16.mxu0 %vm5019_vm12, %v4926_v43  ;;  %v11362_v11 = vsel %vm6297_vm15, %v6533_v18, %v10981_v46  ;;  %v4345_v58 = vsel %vm4223_vm6, %v4216_v63, %v13045_v25  ;;  %v5544_v61 = vpop.f32.mrb[27].mxu1  ;;  %v13047_v2 = vld [vmem:[#allocation61_spill] sm:$0xff]  ;;  %v13049_v63 = vld [vmem:[#allocation144_spill] sm:$0xff]  ;;  %vm6922_vm15 = vcmask 850944  }
 0x498   : > { %v4670_v1 = vsel %vm4610_vm9, %v4541_v23, %v11228_v44  ;;  %v4474_v5 = vsel %vm4352_vm7, %v4345_v58, %v13046_v39  ;;  %v13048_v34 = vld [vmem:[#allocation149_spill] sm:$0xff]  ;;  %v13050_v23 = vld [vmem:[#allocation207_spill] sm:$0xff]  ;;  %v698_v39 = vld [vmem:[#allocation2 + $0x260] sm:$0xff] }
 0x499   : > { %v4799_v41 = vsel %vm4739_vm10, %v4670_v1, %v3641_v6  ;;  %v3833_v43 = vpop.permute.xlu0 %3832  ;;  %v4087_v40 = vsel %vm239_vm1, %v13048_v34, %v13047_v2  ;;  %v4603_v46 = vsel %vm4481_vm8, %v4474_v5, %v11170_v51  ;;  %v697_v1 = vld [vmem:[#allocation2 + $0x258] sm:$0xff]  ;;  %v13051_v2 = vld [vmem:[#allocation266_spill] sm:$0xff] }
 0x49a   : > { %v4928_v18 = vsel %vm4868_vm11, %v4799_v41, %v3833_v43  ;;  %v4218_v44 = vsel %vm4094_vm5, %v4087_v40, %v13049_v63  ;;  %v4732_v20 = vsel %vm4610_vm9, %v4603_v46, %v11255_v33  ;;  %v3895_v58 = vpop.permute.xlu1 %3894  ;;  %v795_v34 = vpack.c.bf16 %v698_v39, %v697_v1  ;;  %v13052_v63 = vld [vmem:[#allocation31_spill] sm:$0xff]  ;;  %v13057_v39 = vld [vmem:[#allocation62_spill] sm:$0xff] }
 0x49b   : > { %7553 = vmatmul.mubr.msk.bf16.gmra.mrb[56].mxu0 %vm5019_vm12, %v4928_v18  ;;  %v4347_v6 = vsel %vm4223_vm6, %v4218_v44, %v13050_v23  ;;  %v4861_v25 = vsel %vm4739_vm10, %v4732_v20, %v3703_v31  ;;  %v5294_v20 = vadd.f32 %v11016_v60, %v11275_v29  ;;  %v5297_v29 = vadd.f32 %v11016_v60, %v11303_v24 }
 0x49c   : > { %v4476_v51 = vsel %vm4352_vm7, %v4347_v6, %v13051_v2  ;;  %v4990_v5 = vsel %vm4868_vm11, %v4861_v25, %v3895_v58  ;;  %v3994_v44 = vsel %vm239_vm1, %v795_v34, %v13052_v63  ;;  %v13054_v6 = vld [vmem:[#allocation93_spill] sm:$0xff]  ;;  %v13055_v25 = vld [vmem:[#allocation60_spill] sm:$0xff]  ;;  %v13058_v2 = vld [vmem:[#allocation151_spill] sm:$0xff] }
 0x49d   : > { %v11388_v41 = vpop.permute.xlu0 %3322  ;;  %v4605_v33 = vsel %vm4481_vm8, %v4476_v51, %v11222_v32  ;;  %7616 = vmatprep.mubr.msk.bf16.mxu1 %vm5019_vm12, %v4990_v5  ;;  %v5286_v32 = vadd.f32 %v11016_v60, %v11283_v28  ;;  %v13056_v58 = vld [vmem:[#allocation148_spill] sm:$0xff]  ;;  %v4093_v51 = vsel %vm239_vm1, %v13058_v2, %v13057_v39  ;;  %v13062_v63 = vld [vmem:[#allocation147_spill] sm:$0xff]  ;;  %v13065_v39 = vld [vmem:[#allocation206_spill] sm:$0xff] }
 0x49e   : > { %v4734_v43 = vsel %vm4610_vm9, %v4605_v33, %v3513_v12  ;;  %v3897_v40 = vpop.permute.xlu1 %3896  ;;  %v13053_v12 = vld [vmem:[#allocation33_spill] sm:$0xff]  ;;  %v4090_v1 = vsel %vm239_vm1, %v13056_v58, %v13055_v25  ;;  %v13059_v28 = vld [vmem:[#allocation88_spill] sm:$0xff]  ;;  %v13064_v25 = vld [vmem:[#allocation178_spill] sm:$0xff] }
 0x49f   : > { %v4863_v31 = vsel %vm4739_vm10, %v4734_v43, %v3705_v16  ;;  %v3997_v16 = vsel %vm239_vm1, %v13054_v6, %v13053_v12  ;;  %v4156_v33 = vsel %vm4094_vm5, %v3994_v44, %v13059_v28  ;;  %v13060_v43 = vld [vmem:[#allocation90_spill] sm:$0xff]  ;;  %v4222_v12 = vsel %vm4094_vm5, %v4093_v51, %v13062_v63  ;;  %v13063_v6 = vld [vmem:[#allocation176_spill] sm:$0xff]  ;;  %v13068_v63 = vld [vmem:[#allocation237_spill] sm:$0xff] }
 0x4a0   : > { %v4992_v46 = vsel %vm4868_vm11, %v4863_v31, %v3897_v40  ;;  %v4158_v34 = vsel %vm4094_vm5, %v3997_v16, %v13060_v43  ;;  %v13061_v31 = vld [vmem:[#allocation142_spill] sm:$0xff]  ;;  %v4285_v24 = vsel %vm4223_vm6, %v4156_v33, %v13063_v6  ;;  %v5550_v44 = vadd.f32 %v11016_v60, %v7586_v8  ;;  %v13066_v2 = vld [vmem:[#allocation208_spill] sm:$0xff] }
 0x4a1   : > { %v3451_v18 = vpop.permute.xlu0 %3450  ;;  %7617 = vmatmul.mubr.msk.bf16.gmra.mrb[56].mxu1 %vm5019_vm12, %v4992_v46  ;;  %v4220_v40 = vsel %vm4094_vm5, %v4090_v1, %v13061_v31  ;;  %v5289_v46 = vadd.f32 %v11016_v60, %v11310_v14  ;;  %v4287_v58 = vsel %vm4223_vm6, %v4158_v34, %v13064_v25  ;;  %v4351_v1 = vsel %vm4223_vm6, %v4222_v12, %v13066_v2  ;;  %v13067_v31 = vld [vmem:[#allocation235_spill] sm:$0xff]  ;;  %v13069_v25 = vld [vmem:[#allocation265_spill] sm:$0xff] }
 0x4a2   : > { %v11403_v23 = vpop.permute.xlu1 %3324  ;;  %v4349_v16 = vsel %vm4223_vm6, %v4220_v40, %v13065_v39  ;;  %v5726_v28 = vmax.f32 %v5294_v20, 0.0  ;;  %v5724_v43 = vmax.f32 %v5286_v32, 0.0  ;;  %v4414_v51 = vsel %vm4352_vm7, %v4285_v24, %v13067_v31  ;;  %v13070_v39 = vld [vmem:[#allocation267_spill] sm:$0xff]  ;;  %v13071_v24 = vld [vmem:[#allocation289_spill] sm:$0xff] }
 0x4a3   : > { %v4416_v33 = vsel %vm4352_vm7, %v4287_v58, %v13068_v63  ;;  %v5727_v6 = vmax.f32 %v5297_v29, 0.0  ;;  %v5542_v34 = vadd.f32 %v11016_v60, %v5541_v59  ;;  %v4478_v40 = vsel %vm4352_vm7, %v4349_v16, %v13069_v25 }
 0x4a4   : > { %v11448_v12 = vsel %vm4352_vm7, %v4351_v1, %v13070_v39  ;;  %v5725_v20 = vmax.f32 %v5289_v46, 0.0  ;;  %v5553_v32 = vadd.f32 %v11016_v60, %v11354_v35  ;;  %v4543_v31 = vsel %vm4481_vm8, %v4414_v51, %v13071_v24 }
 0x4a5   : > { %v11416_v5 = vpop.permute.xlu0 %3452  ;;  %v5790_v58 = vmax.f32 %v5550_v44, 0.0  ;;  %v5545_v29 = vadd.f32 %v11016_v60, %v5544_v61  ;;  %v4545_v16 = vsel %vm4481_vm8, %v4416_v33, %v13072_v7  ;;  %v5871_v1 = vsel %vm5828_vm13, %v5726_v28, -inf }
 0x4a6   : > { %v11437_v14 = vpop.permute.xlu1 %3514  ;;  %v5865_v46 = vsel %vm5828_vm13, %v5724_v43, -inf  ;;  %v5874_v26 = vsel %vm5828_vm13, %v5727_v6, -inf  ;;  %v5788_v51 = vmax.f32 %v5542_v34, 0.0  ;;  %v5868_v0 = vsel %vm5828_vm13, %v5725_v20, -inf }
 0x4a7   : > { %v5791_v53 = vmax.f32 %v5553_v32, 0.0  ;;  %v5967_v43 = vsel %vm5828_vm13, %v5790_v58, -inf  ;;  %v5789_v33 = vmax.f32 %v5545_v29, 0.0  ;;  %v4672_v6 = vsel %vm4610_vm9, %v4543_v31, %v3451_v18 }
 0x4a8   : > { %v7526_v2 = vpop.f32.mrb[28].mxu0  ;;  %v5961_v56 = vsel %vm5828_vm13, %v5788_v51, -inf  ;;  %vm6303_vm1 = vcmask 1044484   ;;  %vm6890_vm5 = vcmask 130048   ;;  %vm6895_vm6 = vcmask 261120  }
 0x4a9   : > { %v3643_v8 = vpop.permute.xlu0 %3642  ;;  %v5310_v59 = vadd.f32 %v11016_v60, %v7526_v2  ;;  %v5301_v63 = vpop.f32.mrb[29].mxu0  ;;  %vm6898_vm7 = vcmask 326656  }
 0x4aa   : > { %v5302_v25 = vadd.f32 %v11016_v60, %v5301_v63  ;;  %v3517_v35 = vpop.permute.xlu1 %3516  ;;  %v7527_v39 = vpop.f32.mrb[30].mxu0  ;;  %v4801_v20 = vsel %vm4739_vm10, %v4672_v6, %v3643_v8 }
 0x4ab   : > { %v5730_v44 = vmax.f32 %v5310_v59, 0.0  ;;  %v5313_v61 = vadd.f32 %v11016_v60, %v7527_v39  ;;  %v5304_v2 = vpop.f32.mrb[31].mxu0 }
 0x4ac   : > { %v5728_v7 = vmax.f32 %v5302_v25, 0.0  ;;  %v5305_v28 = vadd.f32 %v11016_v60, %v5304_v2 }
 0x4ad   : > { %v3645_v24 = vpop.permute.xlu0 %3644  ;;  %v5872_v63 = vsel %vm5828_vm13, %v5730_v44, -inf  ;;  %v5731_v10 = vmax.f32 %v5313_v61, 0.0  ;;  %v7590_v58 = vpop.f32.mrb[28].mxu1 }
 0x4ae   : > { %v5873_v34 = vmax.f32 %v5871_v1, %v5872_v63  ;;  %v5866_v59 = vsel %vm5828_vm13, %v5728_v7, -inf  ;;  %v5729_v39 = vmax.f32 %v5305_v28, 0.0  ;;  %v3707_v22 = vpop.permute.xlu1 %3706  ;;  %v5557_v31 = vpop.f32.mrb[29].mxu1  ;;  %v5566_v7 = vadd.f32 %v11016_v60, %v7590_v58 }
 0x4af   : > { %v5867_v32 = vmax.f32 %v5865_v46, %v5866_v59  ;;  %v5875_v25 = vsel %vm5828_vm13, %v5731_v10, -inf  ;;  %v5558_v51 = vadd.f32 %v11016_v60, %v5557_v31  ;;  %v7591_v8 = vpop.f32.mrb[30].mxu1  ;;  %v5970_v10 = vsel %vm5828_vm13, %v5791_v53, -inf }
 0x4b0   : > { %v6168_v29 = vrot.slane %v5873_v34, 1  ;;  %v5876_v42 = vmax.f32 %v5874_v26, %v5875_v25  ;;  %v5869_v44 = vsel %vm5828_vm13, %v5729_v39, -inf  ;;  %v5964_v46 = vsel %vm5828_vm13, %v5789_v33, -inf  ;;  %v5560_v63 = vpop.f32.mrb[31].mxu1 }
 0x4b1   : > { %v3835_v2 = vpop.permute.xlu0 %3834  ;;  %v6040_v1 = vrot.slane %v5867_v32, 1  ;;  %v5870_v61 = vmax.f32 %v5868_v0, %v5869_v44  ;;  %v4607_v26 = vsel %vm4481_vm8, %v4478_v40, %v11388_v41  ;;  %v5794_v0 = vmax.f32 %v5566_v7, 0.0 }
 0x4b2   : > { %v4930_v18 = vsel %vm4868_vm11, %v4801_v20, %v3835_v2  ;;  %v6232_v28 = vrot.slane %v5876_v42, 1  ;;  %v3709_v6 = vpop.permute.xlu1 %3708  ;;  %v5792_v39 = vmax.f32 %v5558_v51, 0.0  ;;  %v5569_v20 = vadd.f32 %v11016_v60, %v7591_v8 }
 0x4b3   : > { %7556 = vmatprep.mubr.msk.bf16.mxu0 %vm5019_vm12, %v4930_v18  ;;  %v6104_v59 = vrot.slane %v5870_v61, 1  ;;  %v4609_v25 = vsel %vm4481_vm8, %v11448_v12, %v11403_v23  ;;  %v4674_v53 = vsel %vm4610_vm9, %v4545_v16, %v11416_v5  ;;  %v4736_v33 = vsel %vm4610_vm9, %v4607_v26, %v11437_v14 }
 0x4b4   : > { %v11489_v41 = vmax.f32 %v5873_v34, %v6168_v29  ;;  %v11491_v40 = vmax.f32 %v5867_v32, %v6040_v1  ;;  %v4738_v2 = vsel %vm4610_vm9, %v4609_v25, %v3517_v35  ;;  %v4803_v58 = vsel %vm4739_vm10, %v4674_v53, %v3645_v24 }
 0x4b5   : > { %v4865_v44 = vsel %vm4739_vm10, %v4736_v33, %v3707_v22  ;;  %v11496_v18 = vmax.f32 %v5876_v42, %v6232_v28  ;;  %v11498_v31 = vmax.f32 %v5870_v61, %v6104_v59  ;;  %v5968_v23 = vsel %vm5828_vm13, %v5794_v0, -inf  ;;  %v3837_v29 = vpop.permute.xlu0 %3836 }
 0x4b6   : > { %v5962_v5 = vsel %vm5828_vm13, %v5792_v39, -inf  ;;  %v3899_v12 = vpop.permute.xlu1 %3898  ;;  %v5969_v14 = vmax.f32 %v5967_v43, %v5968_v23  ;;  %v5795_v34 = vmax.f32 %v5569_v20, 0.0  ;;  %v5561_v32 = vadd.f32 %v11016_v60, %v5560_v63 }
 0x4b7   : > { %v5963_v16 = vmax.f32 %v5961_v56, %v5962_v5  ;;  %v6604_v35 = vrot.slane %v11489_v41, 5  ;;  %v6638_v24 = vrot.slane %v11489_v41, 7  ;;  %v6673_v22 = vrot.slane %v11489_v41, 1 }
 0x4b8   : > { %v6707_v42 = vrot.slane %v11489_v41, 3  ;;  %v6334_v1 = vrot.slane %v11491_v40, 7  ;;  %v6369_v61 = vrot.slane %v11491_v40, 1  ;;  %v6825_v7 = vrot.slane %v11496_v18, 1 }
 0x4b9   : > { %v6521_v56 = vrot.slane %v11498_v31, 1  ;;  %v6176_v43 = vrot.slane %v5969_v14, 1  ;;  %v6048_v51 = vrot.slane %v5963_v16, 1  ;;  %v5971_v8 = vsel %vm5828_vm13, %v5795_v34, -inf }
 0x4ba   : > { %v5793_v26 = vmax.f32 %v5561_v32, 0.0  ;;  %v3901_v28 = vpop.permute.xlu1 %3900  ;;  %v5972_v63 = vmax.f32 %v5970_v10, %v5971_v8  ;;  %v4867_v59 = vsel %vm4739_vm10, %v4738_v2, %v3709_v6  ;;  %v4932_v0 = vsel %vm4868_vm11, %v4803_v58, %v3837_v29 }
 0x4bb   : > { %v4994_v39 = vsel %vm4868_vm11, %v4865_v44, %v3899_v12  ;;  %v11515_v20 = vmax.f32 %v5969_v14, %v6176_v43  ;;  %v11517_v25 = vmax.f32 %v5963_v16, %v6048_v51  ;;  %7557 = vmatmul.mubr.msk.bf16.gmra.mrb[60].mxu0 %vm5019_vm12, %v4932_v0  ;;  %v4996_v33 = vsel %vm4868_vm11, %v4867_v59, %v3901_v28 }
 0x4bc   : > { %v5965_v53 = vsel %vm5828_vm13, %v5793_v26, -inf  ;;  %7620 = vmatprep.mubr.msk.bf16.mxu1 %vm5019_vm12, %v4994_v39  ;;  %v6240_v23 = vrot.slane %v5972_v63, 1  ;;  %v11526_v6 = vsel %vm6300_vm0, %v6673_v22, %v11232_v21  ;;  %v11530_v2 = vsel %vm6300_vm0, %v6369_v61, %v11279_v57 }
 0x4bd   : > { %v5966_v10 = vmax.f32 %v5964_v46, %v5965_v53  ;;  %7621 = vmatmul.mubr.msk.bf16.gmra.mrb[60].mxu1 %vm5019_vm12, %v4996_v33  ;;  %v6299_v58 = vrot.slane %v11491_v40, 5  ;;  %v6403_v44 = vrot.slane %v11491_v40, 3  ;;  %v6452_v5 = vrot.slane %v11498_v31, 5 }
 0x4be   : > { %v6687_v12 = vrot.slane %v11515_v20, 1  ;;  %v6486_v46 = vrot.slane %v11498_v31, 7  ;;  %v6348_v14 = vrot.slane %v11517_v25, 7  ;;  %v6383_v16 = vrot.slane %v11517_v25, 1 }
 0x4bf   : > { %v6417_v21 = vrot.slane %v11517_v25, 3  ;;  %v6272_v34 = vmax.f32 %v5972_v63, %v6240_v23  ;;  %v6112_v32 = vrot.slane %v5966_v10, 1  ;;  %v11542_v57 = vsel %vm6300_vm0, %v6825_v7, %v11287_v36 }
 0x4c0   : > { %v11546_v22 = vsel %vm6300_vm0, %v6521_v56, %v11291_v49  ;;  %v6756_v29 = vrot.slane %v11496_v18, 5  ;;  %v11551_v61 = vsel %vm6300_vm0, %v6687_v12, %v11295_v55  ;;  %v11555_v43 = vsel %vm6300_vm0, %v6383_v16, %v11341_v54  ;;  %v13077_v16 = vld [vmem:[#allocation34_spill] sm:$0xff] }
 0x4c1   : > { %v11559_v51 = vsel %vm6300_vm0, %v6334_v1, %v11144_v37  ;;  %v6555_v36 = vrot.slane %v11498_v31, 3  ;;  %v6618_v7 = vrot.slane %v11515_v20, 5  ;;  %v6652_v49 = vrot.slane %v11515_v20, 7 }
 0x4c2   : > { %v6839_v56 = vrot.slane %v6272_v34, 1  ;;  %v6144_v8 = vmax.f32 %v5966_v10, %v6112_v32  ;;  %v11566_v55 = vsel %vm6300_vm0, %v6348_v14, %v11243_v30  ;;  %v11570_v54 = vsel %vm6300_vm0, %v6452_v5, %v11201_v9  ;;  %v13076_v14 = vld [vmem:[#allocation92_spill] sm:$0xff] }
 0x4c3   : > { %v11574_v37 = vsel %vm6300_vm0, %v6403_v44, %v11166_v19  ;;  %v11582_v26 = vsel %vm6300_vm0, %v6417_v21, %v11268_v62  ;;  %v11586_v30 = vsel %vm6300_vm0, %v6486_v46, %v11186_v13  ;;  %v11590_v9 = vsel %vm6300_vm0, %v6604_v35, %v11150_v27  ;;  %v13079_v32 = vld [vmem:[#allocation212_spill] sm:$0xff] }
 0x4c4   : > { %v7530_v1 = vpop.f32.mrb[32].mxu0  ;;  %v11578_v31 = vsel %vm6300_vm0, %v6839_v56, %v11358_v48  ;;  %v6466_v28 = vrot.slane %v6144_v8, 5  ;;  %v6500_v19 = vrot.slane %v6144_v8, 7  ;;  %v6535_v63 = vrot.slane %v6144_v8, 1 }
 0x4c5   : > { %v6569_v59 = vrot.slane %v6144_v8, 3  ;;  %v5317_v0 = vpop.f32.mrb[33].mxu0  ;;  %v6790_v48 = vrot.slane %v11496_v18, 7  ;;  %v6770_v39 = vrot.slane %v6272_v34, 5  ;;  %v11595_v62 = vsel %vm6300_vm0, %v6618_v7, %v11248_v47 }
 0x4c6   : > { %v7531_v53 = vpop.f32.mrb[34].mxu0  ;;  %v11599_v13 = vsel %vm6300_vm0, %v6555_v36, %v11205_v17  ;;  %v6721_v27 = vrot.slane %v11515_v20, 3  ;;  %v11604_v33 = vsel %vm6300_vm0, %v6535_v63, %v11362_v11  ;;  %v11608_v23 = vsel %vm6300_vm0, %v6466_v28, %v11332_v45  ;;  %v13080_v36 = vld [vmem:[#allocation65_spill] sm:$0xff] }
 0x4c7   : > { %v5320_v35 = vpop.f32.mrb[35].mxu0  ;;  %v11612_v10 = vsel %vm6300_vm0, %v6500_v19, %v11324_v3  ;;  %v6859_v47 = vrot.slane %v11496_v18, 3  ;;  %v6318_v17 = vrot.slane %v11517_v25, 5  ;;  %v6804_v44 = vrot.slane %v6272_v34, 7  ;;  %v13073_v25 = vld [vmem:[#allocation8_spill] sm:$0xff] }
 0x4c8   : > { %v11618_v20 = vsel %vm6300_vm0, %v6569_v59, %v11336_v52  ;;  %v6873_v5 = vrot.slane %v6272_v34, 3  ;;  %v11624_v45 = vsel %vm6300_vm0, %v6638_v24, %v11136_v15  ;;  %v11628_v3 = vsel %vm6300_vm0, %v6652_v49, %v11237_v4  ;;  %v13074_v15 = vld [vmem:[#allocation97_spill] sm:$0xff] }
 0x4c9   : > { %v11632_v11 = vsel %vm6300_vm0, %v6756_v29, %v11191_v38  ;;  %v11636_v18 = vsel %vm6300_vm0, %v6770_v39, %v11316_v50  ;;  %v7594_v52 = vpop.f32.mrb[32].mxu1  ;;  %v11642_v12 = vsel %vm6300_vm0, %v6707_v42, %v13073_v25  ;;  %v11646_v24 = vsel %vm6300_vm0, %v6721_v27, %v13074_v15  ;;  %v13075_v4 = vld [vmem:[#allocation153_spill] sm:$0xff]  ;;  %v13078_v42 = vld [vmem:[#allocation180_spill] sm:$0xff] }
 0x4ca   : > { %v11650_v46 = vsel %vm6300_vm0, %v6790_v48, %v13075_v4  ;;  %v5573_v38 = vpop.f32.mrb[33].mxu1  ;;  %v11654_v50 = vsel %vm6300_vm0, %v6804_v44, %v13076_v14  ;;  %v11658_v21 = vsel %vm6300_vm0, %v6859_v47, %v13077_v16  ;;  %v11662_v34 = vsel %vm6300_vm0, %v6873_v5, %v13078_v42 }
 0x4cb   : > { %v7595_v41 = vpop.f32.mrb[34].mxu1  ;;  %v11666_v29 = vsel %vm6300_vm0, %v6318_v17, %v13079_v32  ;;  %v11672_v7 = vsel %vm6300_vm0, %v6299_v58, %v13080_v36  ;;  %v5326_v56 = vadd.f32 %v11016_v60, %v7530_v1  ;;  %v5318_v8 = vadd.f32 %v11016_v60, %v5317_v0 }
 0x4cc   : > { %v5576_v49 = vpop.f32.mrb[35].mxu1  ;;  %v5329_v28 = vadd.f32 %v11016_v60, %v7531_v53  ;;  %v5321_v19 = vadd.f32 %v11016_v60, %v5320_v35  ;;  %v5582_v59 = vadd.f32 %v11016_v60, %v7594_v52  ;;  %v5574_v48 = vadd.f32 %v11016_v60, %v5573_v38 }
 0x4cd   : > { %v5734_v63 = vmax.f32 %v5326_v56, 0.0  ;;  %v5732_v39 = vmax.f32 %v5318_v8, 0.0  ;;  %v5585_v58 = vadd.f32 %v11016_v60, %v7595_v41  ;;  %v5577_v52 = vadd.f32 %v11016_v60, %v5576_v49 }
 0x4ce   : > { %v5735_v27 = vmax.f32 %v5329_v28, 0.0  ;;  %v5733_v47 = vmax.f32 %v5321_v19, 0.0  ;;  %v5798_v44 = vmax.f32 %v5582_v59, 0.0  ;;  %v5796_v5 = vmax.f32 %v5574_v48, 0.0 }
 0x4cf   : > { %v5883_v0 = vsel %vm5828_vm13, %v5734_v63, -inf  ;;  %v5877_v38 = vsel %vm5828_vm13, %v5732_v39, -inf  ;;  %v5799_v32 = vmax.f32 %v5585_v58, 0.0  ;;  %v5797_v59 = vmax.f32 %v5577_v52, 0.0 }
 0x4d0   : > { %v5886_v14 = vsel %vm5828_vm13, %v5735_v27, -inf  ;;  %v5880_v42 = vsel %vm5828_vm13, %v5733_v47, -inf  ;;  %v5979_v8 = vsel %vm5828_vm13, %v5798_v44, -inf  ;;  %v5973_v63 = vsel %vm5828_vm13, %v5796_v5, -inf }
 0x4d1   : > { %v5982_v44 = vsel %vm5828_vm13, %v5799_v32, -inf  ;;  %v5976_v32 = vsel %vm5828_vm13, %v5797_v59, -inf  ;;  %vm6901_vm8 = vcmask 392192   ;;  %vm6904_vm9 = vcmask 457728  }
 0x4d2   : > { %vm6907_vm10 = vcmask 523264   ;;  %vm6913_vm12 = vcmask 654336   ;;  %vm6925_vm0 = vcmask 916480  }
 0x4e0   : > { %v7534_v40 = vpop.f32.mrb[36].mxu0 }
 0x4e1   : > { %v5342_v17 = vadd.f32 %v11016_v60, %v7534_v40  ;;  %v5333_v1 = vpop.f32.mrb[37].mxu0 }
 0x4e2   : > { %v5334_v53 = vadd.f32 %v11016_v60, %v5333_v1  ;;  %v7535_v35 = vpop.f32.mrb[38].mxu0 }
 0x4e3   : > { %v5738_v25 = vmax.f32 %v5342_v17, 0.0  ;;  %v5345_v15 = vadd.f32 %v11016_v60, %v7535_v35  ;;  %v5336_v4 = vpop.f32.mrb[39].mxu0 }
 0x4e4   : > { %v5736_v16 = vmax.f32 %v5334_v53, 0.0  ;;  %v5337_v41 = vadd.f32 %v11016_v60, %v5336_v4 }
 0x4e5   : > { %v5884_v36 = vsel %vm5828_vm13, %v5738_v25, -inf  ;;  %v5739_v56 = vmax.f32 %v5345_v15, 0.0 }
 0x4e6   : > { %v5885_v49 = vmax.f32 %v5883_v0, %v5884_v36  ;;  %v5878_v28 = vsel %vm5828_vm13, %v5736_v16, -inf  ;;  %v5737_v19 = vmax.f32 %v5337_v41, 0.0  ;;  %v7598_v27 = vpop.f32.mrb[36].mxu1 }
 0x4e7   : > { %v5879_v48 = vmax.f32 %v5877_v38, %v5878_v28  ;;  %v5887_v39 = vsel %vm5828_vm13, %v5739_v56, -inf  ;;  %v5598_v58 = vadd.f32 %v11016_v60, %v7598_v27  ;;  %v5589_v1 = vpop.f32.mrb[37].mxu1 }
 0x4e8   : > { %v6169_v40 = vrot.slane %v5885_v49, 1  ;;  %v5888_v17 = vmax.f32 %v5886_v14, %v5887_v39  ;;  %v5881_v47 = vsel %vm5828_vm13, %v5737_v19, -inf  ;;  %v5590_v35 = vadd.f32 %v11016_v60, %v5589_v1  ;;  %v7599_v25 = vpop.f32.mrb[38].mxu1 }
 0x4e9   : > { %v6041_v0 = vrot.slane %v5879_v48, 1  ;;  %v5882_v53 = vmax.f32 %v5880_v42, %v5881_v47  ;;  %v5802_v15 = vmax.f32 %v5598_v58, 0.0  ;;  %v5601_v4 = vadd.f32 %v11016_v60, %v7599_v25  ;;  %v5592_v38 = vpop.f32.mrb[39].mxu1 }
 0x4ea   : > { %v11699_v5 = vmax.f32 %v5885_v49, %v6169_v40  ;;  %v6233_v52 = vrot.slane %v5888_v17, 1  ;;  %v5800_v41 = vmax.f32 %v5590_v35, 0.0  ;;  %v5593_v36 = vadd.f32 %v11016_v60, %v5592_v38 }
 0x4eb   : > { %v11702_v14 = vmax.f32 %v5879_v48, %v6041_v0  ;;  %v6105_v16 = vrot.slane %v5882_v53, 1  ;;  %v5980_v27 = vsel %vm5828_vm13, %v5802_v15, -inf  ;;  %v5803_v58 = vmax.f32 %v5601_v4, 0.0 }
 0x4ec   : > { %v6606_v42 = vrot.slane %v11699_v5, 4  ;;  %v6640_v56 = vrot.slane %v11699_v5, 6  ;;  %v11711_v49 = vsel %vm6303_vm1, %v11699_v5, %v11526_v6  ;;  %v6709_v28 = vrot.slane %v11699_v5, 2 }
 0x4ed   : > { %v6336_v48 = vrot.slane %v11702_v14, 6  ;;  %v11719_v60 = vsel %vm6303_vm1, %v11702_v14, %v11530_v2  ;;  %v11721_v59 = vmax.f32 %v5888_v17, %v6233_v52  ;;  %v6137_v39 = vmax.f32 %v5882_v53, %v6105_v16 }
 0x4ee   : > { %v5974_v40 = vsel %vm5828_vm13, %v5800_v41, -inf  ;;  %v5981_v6 = vmax.f32 %v5979_v8, %v5980_v27  ;;  %v5801_v1 = vmax.f32 %v5593_v36, 0.0  ;;  %v6405_v0 = vrot.slane %v11702_v14, 2 }
 0x4ef   : > { %v5975_v47 = vmax.f32 %v5973_v63, %v5974_v40  ;;  %v6758_v35 = vrot.slane %v11721_v59, 4  ;;  %v6792_v25 = vrot.slane %v11721_v59, 6  ;;  %v11731_v2 = vsel %vm6303_vm1, %v11721_v59, %v11542_v57 }
 0x4f0   : > { %v6861_v17 = vrot.slane %v11721_v59, 2  ;;  %v6454_v53 = vrot.slane %v6137_v39, 4  ;;  %v6488_v52 = vrot.slane %v6137_v39, 6  ;;  %v11736_v8 = vsel %vm6303_vm1, %v6137_v39, %v11546_v22 }
 0x4f1   : > { %v6177_v63 = vrot.slane %v5981_v6, 1  ;;  %v6049_v15 = vrot.slane %v5975_v47, 1  ;;  %v5983_v4 = vsel %vm5828_vm13, %v5803_v58, -inf  ;;  %v5977_v38 = vsel %vm5828_vm13, %v5801_v1, -inf }
 0x4f2   : > { %v5984_v16 = vmax.f32 %v5982_v44, %v5983_v4  ;;  %v5978_v41 = vmax.f32 %v5976_v32, %v5977_v38  ;;  %v11742_v57 = vsel %vm6303_vm1, %v6336_v48, %v11559_v51  ;;  %v11746_v36 = vsel %vm6303_vm1, %v6454_v53, %v11570_v54 }
 0x4f3   : > { %v6557_v59 = vrot.slane %v6137_v39, 2  ;;  %v6209_v27 = vmax.f32 %v5981_v6, %v6177_v63  ;;  %v6081_v22 = vmax.f32 %v5975_v47, %v6049_v15  ;;  %v11750_v40 = vsel %vm6303_vm1, %v6405_v0, %v11574_v37 }
 0x4f4   : > { %v6241_v58 = vrot.slane %v5984_v16, 1  ;;  %v6113_v19 = vrot.slane %v5978_v41, 1  ;;  %v11754_v44 = vsel %vm6303_vm1, %v6488_v52, %v11586_v30  ;;  %v11758_v51 = vsel %vm6303_vm1, %v6606_v42, %v11590_v9 }
 0x4f5   : > { %v6620_v32 = vrot.slane %v6209_v27, 4  ;;  %v6654_v54 = vrot.slane %v6209_v27, 6  ;;  %v11762_v48 = vsel %vm6303_vm1, %v6209_v27, %v11551_v61  ;;  %v6723_v39 = vrot.slane %v6209_v27, 2 }
 0x4f6   : > { %v6320_v6 = vrot.slane %v6081_v22, 4  ;;  %v6350_v37 = vrot.slane %v6081_v22, 6  ;;  %v11766_v47 = vsel %vm6303_vm1, %v6081_v22, %v11555_v43  ;;  %v6419_v1 = vrot.slane %v6081_v22, 2 }
 0x4f7   : > { %v6273_v30 = vmax.f32 %v5984_v16, %v6241_v58  ;;  %v6145_v0 = vmax.f32 %v5978_v41, %v6113_v19  ;;  %v11770_v9 = vsel %vm6303_vm1, %v6620_v32, %v11595_v62  ;;  %v11774_v42 = vsel %vm6303_vm1, %v6557_v59, %v11599_v13 }
 0x4f8   : > { %v11778_v61 = vsel %vm6303_vm1, %v6350_v37, %v11566_v55  ;;  %v11782_v53 = vsel %vm6303_vm1, %v6419_v1, %v11582_v26  ;;  %v11786_v43 = vsel %vm6303_vm1, %v6640_v56, %v11624_v45  ;;  %v11790_v62 = vsel %vm6303_vm1, %v6654_v54, %v11628_v3 }
 0x4f9   : > { %v6772_v19 = vrot.slane %v6273_v30, 4  ;;  %v6806_v52 = vrot.slane %v6273_v30, 6  ;;  %v11794_v13 = vsel %vm6303_vm1, %v6273_v30, %v11578_v31  ;;  %v6875_v55 = vrot.slane %v6273_v30, 2 }
 0x4fa   : > { %v6468_v63 = vrot.slane %v6145_v0, 4  ;;  %v6502_v15 = vrot.slane %v6145_v0, 6  ;;  %v11798_v26 = vsel %vm6303_vm1, %v6145_v0, %v11604_v33  ;;  %v6571_v4 = vrot.slane %v6145_v0, 2 }
 0x4fb   : > { %v11802_v56 = vsel %vm6303_vm1, %v6758_v35, %v11632_v11  ;;  %v11806_v3 = vsel %vm6303_vm1, %v6772_v19, %v11636_v18  ;;  %v11812_v31 = vsel %vm6303_vm1, %v6709_v28, %v11642_v12  ;;  %v11816_v33 = vsel %vm6303_vm1, %v6723_v39, %v11646_v24 }
 0x4fc   : > { %v7538_v45 = vpop.f32.mrb[40].mxu0  ;;  %v11820_v16 = vsel %vm6303_vm1, %v6468_v63, %v11608_v23  ;;  %v11824_v11 = vsel %vm6303_vm1, %v6502_v15, %v11612_v10  ;;  %v11828_v18 = vsel %vm6303_vm1, %v6571_v4, %v11618_v20  ;;  %v11832_v12 = vsel %vm6303_vm1, %v6792_v25, %v11650_v46 }
 0x4fd   : > { %v5349_v38 = vpop.f32.mrb[41].mxu0  ;;  %v11836_v24 = vsel %vm6303_vm1, %v6806_v52, %v11654_v50  ;;  %v11840_v23 = vsel %vm6303_vm1, %v6861_v17, %v11658_v21  ;;  %v11844_v10 = vsel %vm6303_vm1, %v6875_v55, %v11662_v34  ;;  %v11848_v20 = vsel %vm6303_vm1, %v6320_v6, %v11666_v29  ;;  %v11859_v17 = vld [vmem:[%s12407_s2] ss:$0 sm:$0xff] }
 0x4fe   : > { %v7539_v5 = vpop.f32.mrb[42].mxu0  ;;  %v13081_v46 = vrot.slane %v11702_v14, 4  ;;  %v5358_v34 = vadd.f32 %v11859_v17, %v7538_v45  ;;  %v5350_v29 = vadd.f32 %v11859_v17, %v5349_v38 }
 0x4ff   : > { %v5352_v28 = vpop.f32.mrb[43].mxu0  ;;  %v5361_v59 = vadd.f32 %v11859_v17, %v7539_v5 }
 0x500   : > { %v11854_v35 = vsel %vm6303_vm1, %v13081_v46, %v11672_v7  ;;  %v5742_v27 = vmax.f32 %v5358_v34, 0.0  ;;  %v5740_v14 = vmax.f32 %v5350_v29, 0.0  ;;  %v5353_v7 = vadd.f32 %v11859_v17, %v5352_v28 }
 0x501   : > { %v5743_v58 = vmax.f32 %v5361_v59, 0.0  ;;  %vm6928_vm1 = vcmask 982016  }
 0x502   : > { %v7602_v50 = vpop.f32.mrb[40].mxu1  ;;  %v5895_v1 = vsel %vm5828_vm13, %v5742_v27, -inf  ;;  %v5889_v55 = vsel %vm5828_vm13, %v5740_v14, -inf  ;;  %v5741_v63 = vmax.f32 %v5353_v7, 0.0 }
 0x503   : > { %v5605_v25 = vpop.f32.mrb[41].mxu1  ;;  %v5614_v32 = vadd.f32 %v11859_v17, %v7602_v50  ;;  %v5898_v45 = vsel %vm5828_vm13, %v5743_v58, -inf }
 0x504   : > { %v7603_v41 = vpop.f32.mrb[42].mxu1  ;;  %v5606_v30 = vadd.f32 %v11859_v17, %v5605_v25  ;;  %v5892_v7 = vsel %vm5828_vm13, %v5741_v63, -inf }
 0x505   : > { %v5608_v21 = vpop.f32.mrb[43].mxu1  ;;  %v5806_v38 = vmax.f32 %v5614_v32, 0.0  ;;  %v11876_v46 = vadd.f32 %v11859_v17, %v7603_v41 }
 0x506   : > { %v5804_v29 = vmax.f32 %v5606_v30, 0.0  ;;  %v11880_v59 = vadd.f32 %v11859_v17, %v5608_v21 }
 0x508   : > { %v5985_v21 = vsel %vm5828_vm13, %v5804_v29, -inf  ;;  %v5805_v30 = vmax.f32 %v11880_v59, 0.0 }
 0x51a   : > { %v7542_v22 = vpop.f32.mrb[44].mxu0 }
 0x51b   : > { %v5374_v54 = vadd.f32 %v11859_v17, %v7542_v22  ;;  %v5365_v39 = vpop.f32.mrb[45].mxu0 }
 0x51c   : > { %v5366_v6 = vadd.f32 %v11859_v17, %v5365_v39  ;;  %v7543_v37 = vpop.f32.mrb[46].mxu0  ;;  %v5991_v39 = vsel %vm5828_vm13, %v5806_v38, -inf }
 0x51d   : > { %v5746_v0 = vmax.f32 %v5374_v54, 0.0  ;;  %v5377_v19 = vadd.f32 %v11859_v17, %v7543_v37  ;;  %v5368_v52 = vpop.f32.mrb[47].mxu0 }
 0x51e   : > { %v5744_v15 = vmax.f32 %v5366_v6, 0.0  ;;  %v5369_v4 = vadd.f32 %v11859_v17, %v5368_v52  ;;  %v5807_v6 = vmax.f32 %v11876_v46, 0.0 }
 0x51f   : > { %v5896_v5 = vsel %vm5828_vm13, %v5746_v0, -inf  ;;  %v5747_v28 = vmax.f32 %v5377_v19, 0.0 }
 0x520   : > { %v5897_v50 = vmax.f32 %v5895_v1, %v5896_v5  ;;  %v5890_v25 = vsel %vm5828_vm13, %v5744_v15, -inf  ;;  %v5745_v34 = vmax.f32 %v5369_v4, 0.0 }
 0x521   : > { %v5891_v27 = vmax.f32 %v5889_v55, %v5890_v25  ;;  %v5899_v14 = vsel %vm5828_vm13, %v5747_v28, -inf }
 0x522   : > { %v6170_v22 = vrot.slane %v5897_v50, 1  ;;  %v5900_v58 = vmax.f32 %v5898_v45, %v5899_v14  ;;  %v5893_v32 = vsel %vm5828_vm13, %v5745_v34, -inf }
 0x523   : > { %v6042_v54 = vrot.slane %v5891_v27, 1  ;;  %v5894_v41 = vmax.f32 %v5892_v7, %v5893_v32 }
 0x524   : > { %v6202_v37 = vmax.f32 %v5897_v50, %v6170_v22  ;;  %v6234_v1 = vrot.slane %v5900_v58, 1 }
 0x525   : > { %v6074_v0 = vmax.f32 %v5891_v27, %v6042_v54  ;;  %v6106_v19 = vrot.slane %v5894_v41, 1 }
 0x526   : > { %v6608_v52 = vrot.slane %v6202_v37, 3  ;;  %v6642_v55 = vrot.slane %v6202_v37, 5  ;;  %v6676_v63 = vrot.slane %v6202_v37, 7  ;;  %v6711_v15 = vrot.slane %v6202_v37, 1 }
 0x527   : > { %v6305_v4 = vrot.slane %v6074_v0, 3  ;;  %v6338_v45 = vrot.slane %v6074_v0, 5  ;;  %v6372_v5 = vrot.slane %v6074_v0, 7  ;;  %v6407_v28 = vrot.slane %v6074_v0, 1 }
 0x528   : > { %v6266_v25 = vmax.f32 %v5900_v58, %v6234_v1  ;;  %v6138_v38 = vmax.f32 %v5894_v41, %v6106_v19  ;;  %v11891_v46 = vsel %vm6306_vm2, %v6608_v52, %v11758_v51  ;;  %v11895_v50 = vsel %vm6306_vm2, %v6676_v63, %v11711_v49  ;;  %v7606_v22 = vpop.f32.mrb[44].mxu1 }
 0x529   : > { %v11899_v34 = vsel %vm6306_vm2, %v6372_v5, %v11719_v60  ;;  %v11903_v29 = vsel %vm6306_vm2, %v6338_v45, %v11742_v57  ;;  %v11907_v59 = vsel %vm6306_vm2, %v6407_v28, %v11750_v40  ;;  %v11911_v51 = vsel %vm6306_vm2, %v6642_v55, %v11786_v43  ;;  %v5621_v41 = vpop.f32.mrb[45].mxu1 }
 0x52a   : > { %v6760_v27 = vrot.slane %v6266_v25, 3  ;;  %v6794_v14 = vrot.slane %v6266_v25, 5  ;;  %v6828_v49 = vrot.slane %v6266_v25, 7  ;;  %v6863_v7 = vrot.slane %v6266_v25, 1  ;;  %v7607_v40 = vpop.f32.mrb[46].mxu1 }
 0x52b   : > { %v6456_v58 = vrot.slane %v6138_v38, 3  ;;  %v6490_v60 = vrot.slane %v6138_v38, 5  ;;  %v6524_v32 = vrot.slane %v6138_v38, 7  ;;  %v6559_v54 = vrot.slane %v6138_v38, 1  ;;  %v5624_v19 = vpop.f32.mrb[47].mxu1 }
 0x52c   : > { %v5630_v57 = vadd.f32 %v11859_v17, %v7606_v22  ;;  %v5622_v37 = vadd.f32 %v11859_v17, %v5621_v41  ;;  %v11917_v1 = vsel %vm6306_vm2, %v6760_v27, %v11802_v56  ;;  %v11921_v43 = vsel %vm6306_vm2, %v6711_v15, %v11812_v31 }
 0x52d   : > { %v5633_v0 = vadd.f32 %v11859_v17, %v7607_v40  ;;  %v11926_v52 = vsel %vm6306_vm2, %v6456_v58, %v11746_v36  ;;  %v11930_v55 = vsel %vm6306_vm2, %v6524_v32, %v11736_v8  ;;  %v11934_v63 = vsel %vm6306_vm2, %v6490_v60, %v11754_v44 }
 0x52e   : > { %v5810_v56 = vmax.f32 %v5630_v57, 0.0  ;;  %v5808_v45 = vmax.f32 %v5622_v37, 0.0  ;;  %v5625_v31 = vadd.f32 %v11859_v17, %v5624_v19  ;;  %v11939_v15 = vsel %vm6306_vm2, %v6559_v54, %v11774_v42 }
 0x52f   : > { %v5811_v5 = vmax.f32 %v5633_v0, 0.0  ;;  %v11943_v36 = vsel %vm6306_vm2, %v6828_v49, %v11731_v2  ;;  %v11947_v8 = vsel %vm6306_vm2, %v6794_v14, %v11832_v12  ;;  %v11951_v44 = vsel %vm6306_vm2, %v6863_v7, %v11840_v23 }
 0x530   : > { %v5992_v28 = vsel %vm5828_vm13, %v5810_v56, -inf  ;;  %v5986_v25 = vsel %vm5828_vm13, %v5808_v45, -inf  ;;  %v5809_v38 = vmax.f32 %v5625_v31, 0.0  ;;  %v11957_v42 = vsel %vm6306_vm2, %v6305_v4, %v11854_v35 }
 0x531   : > { %v5994_v2 = vsel %vm5828_vm13, %v5807_v6, -inf  ;;  %v5993_v27 = vmax.f32 %v5991_v39, %v5992_v28  ;;  %v5987_v49 = vmax.f32 %v5985_v21, %v5986_v25  ;;  %v5995_v12 = vsel %vm5828_vm13, %v5811_v5, -inf }
 0x532   : > { %v5988_v14 = vsel %vm5828_vm13, %v5805_v30, -inf  ;;  %v5996_v22 = vmax.f32 %v5994_v2, %v5995_v12  ;;  %v5989_v23 = vsel %vm5828_vm13, %v5809_v38, -inf }
 0x533   : > { %v6178_v7 = vrot.slane %v5993_v27, 1  ;;  %v6050_v58 = vrot.slane %v5987_v49, 1  ;;  %v5990_v60 = vmax.f32 %v5988_v14, %v5989_v23 }
 0x534   : > { %v6242_v41 = vrot.slane %v5996_v22, 1 }
 0x535   : > { %v6210_v32 = vmax.f32 %v5993_v27, %v6178_v7  ;;  %v6082_v54 = vmax.f32 %v5987_v49, %v6050_v58  ;;  %v6114_v57 = vrot.slane %v5990_v60, 1 }
 0x536   : > { %v6274_v40 = vmax.f32 %v5996_v22, %v6242_v41 }
 0x537   : > { %v6622_v35 = vrot.slane %v6210_v32, 3  ;;  %v6690_v4 = vrot.slane %v6210_v32, 7  ;;  %v6352_v37 = vrot.slane %v6082_v54, 5  ;;  %v6386_v6 = vrot.slane %v6082_v54, 7 }
 0x538   : > { %v6421_v39 = vrot.slane %v6082_v54, 1  ;;  %v7546_v21 = vpop.f32.mrb[48].mxu0  ;;  %v6146_v0 = vmax.f32 %v5990_v60, %v6114_v57  ;;  %v6774_v12 = vrot.slane %v6274_v40, 3  ;;  %v6725_v22 = vrot.slane %v6210_v32, 1 }
 0x539   : > { %v5381_v19 = vpop.f32.mrb[49].mxu0  ;;  %v11965_v30 = vsel %vm6306_vm2, %v6386_v6, %v11766_v47  ;;  %v11969_v56 = vsel %vm6306_vm2, %v6352_v37, %v11778_v61  ;;  %v11977_v5 = vsel %vm6306_vm2, %v6622_v35, %v11770_v9  ;;  %v11981_v28 = vsel %vm6306_vm2, %v6690_v4, %v11762_v48 }
 0x53a   : > { %v7547_v45 = vpop.f32.mrb[50].mxu0  ;;  %v11973_v31 = vsel %vm6306_vm2, %v6421_v39, %v11782_v53  ;;  %v6470_v25 = vrot.slane %v6146_v0, 3  ;;  %v6504_v47 = vrot.slane %v6146_v0, 5  ;;  %v6538_v38 = vrot.slane %v6146_v0, 7 }
 0x53b   : > { %v6573_v2 = vrot.slane %v6146_v0, 1  ;;  %v5384_v27 = vpop.f32.mrb[51].mxu0  ;;  %v6656_v61 = vrot.slane %v6210_v32, 5  ;;  %v6808_v23 = vrot.slane %v6274_v40, 5  ;;  %v6842_v7 = vrot.slane %v6274_v40, 7 }
 0x53c   : > { %v7610_v49 = vpop.f32.mrb[48].mxu1  ;;  %v11985_v53 = vsel %vm6306_vm2, %v6470_v25, %v11820_v16  ;;  %v11989_v9 = vsel %vm6306_vm2, %v6538_v38, %v11798_v26  ;;  %v11993_v48 = vsel %vm6306_vm2, %v6504_v47, %v11824_v11  ;;  %v6322_v60 = vrot.slane %v6082_v54, 3 }
 0x53d   : > { %v5637_v14 = vpop.f32.mrb[49].mxu1  ;;  %v6877_v41 = vrot.slane %v6274_v40, 1  ;;  %v11997_v35 = vsel %vm6306_vm2, %v6573_v2, %v11828_v18  ;;  %v12001_v16 = vsel %vm6306_vm2, %v6656_v61, %v11790_v62  ;;  %v12005_v26 = vsel %vm6306_vm2, %v6774_v12, %v11806_v3 }
 0x53e   : > { %v7611_v58 = vpop.f32.mrb[50].mxu1  ;;  %v12009_v11 = vsel %vm6306_vm2, %v6725_v22, %v11816_v33  ;;  %v12013_v32 = vsel %vm6306_vm2, %v6842_v7, %v11794_v13  ;;  %v12017_v18 = vsel %vm6306_vm2, %v6808_v23, %v11836_v24  ;;  %v12025_v3 = vsel %vm6306_vm2, %v6322_v60, %v11848_v20 }
 0x53f   : > { %v5640_v57 = vpop.f32.mrb[51].mxu1  ;;  %v12021_v62 = vsel %vm6306_vm2, %v6877_v41, %v11844_v10  ;;  %v5390_v54 = vadd.f32 %v11859_v17, %v7546_v21  ;;  %v5382_v33 = vadd.f32 %v11859_v17, %v5381_v19  ;;  %v5393_v4 = vadd.f32 %v11859_v17, %v7547_v45 }
 0x540   : > { %v5385_v13 = vadd.f32 %v11859_v17, %v5384_v27  ;;  %v5646_v37 = vadd.f32 %v11859_v17, %v7610_v49  ;;  %v5638_v24 = vadd.f32 %v11859_v17, %v5637_v14  ;;  %v5649_v20 = vadd.f32 %v11859_v17, %v7611_v58 }
 0x541   : > { %v5750_v6 = vmax.f32 %v5390_v54, 0.0  ;;  %v5748_v39 = vmax.f32 %v5382_v33, 0.0  ;;  %v5751_v10 = vmax.f32 %v5393_v4, 0.0  ;;  %v5641_v49 = vadd.f32 %v11859_v17, %v5640_v57 }
 0x542   : > { %v5749_v40 = vmax.f32 %v5385_v13, 0.0  ;;  %v5814_v0 = vmax.f32 %v5646_v37, 0.0  ;;  %v5812_v25 = vmax.f32 %v5638_v24, 0.0  ;;  %v5815_v23 = vmax.f32 %v5649_v20, 0.0 }
 0x543   : > { %v5907_v21 = vsel %vm5828_vm13, %v5750_v6, -inf  ;;  %v5901_v19 = vsel %vm5828_vm13, %v5748_v39, -inf  ;;  %v5910_v45 = vsel %vm5828_vm13, %v5751_v10, -inf }
 0x544   : > { %v5904_v27 = vsel %vm5828_vm13, %v5749_v40, -inf  ;;  %v6003_v61 = vsel %vm5828_vm13, %v5814_v0, -inf  ;;  %v5997_v33 = vsel %vm5828_vm13, %v5812_v25, -inf }
 0x55a   : > { %v7550_v47 = vpop.f32.mrb[52].mxu0 }
 0x55b   : > { %v5406_v38 = vadd.f32 %v11859_v17, %v7550_v47  ;;  %v5397_v2 = vpop.f32.mrb[53].mxu0 }
 0x55c   : > { %v5398_v12 = vadd.f32 %v11859_v17, %v5397_v2  ;;  %v7551_v14 = vpop.f32.mrb[54].mxu0  ;;  %v7614_v22 = vpop.f32.mrb[52].mxu1 }
 0x55d   : > { %v5754_v7 = vmax.f32 %v5406_v38, 0.0  ;;  %v5409_v58 = vadd.f32 %v11859_v17, %v7551_v14  ;;  %v5400_v60 = vpop.f32.mrb[55].mxu0  ;;  %v5662_v41 = vadd.f32 %v11859_v17, %v7614_v22  ;;  %v5653_v54 = vpop.f32.mrb[53].mxu1 }
 0x55e   : > { %v5752_v4 = vmax.f32 %v5398_v12, 0.0  ;;  %v5401_v13 = vadd.f32 %v11859_v17, %v5400_v60  ;;  %v5654_v37 = vadd.f32 %v11859_v17, %v5653_v54  ;;  %v7615_v57 = vpop.f32.mrb[54].mxu1 }
 0x55f   : > { %v5908_v24 = vsel %vm5828_vm13, %v5754_v7, -inf  ;;  %v5755_v6 = vmax.f32 %v5409_v58, 0.0  ;;  %v5818_v39 = vmax.f32 %v5662_v41, 0.0  ;;  %v5665_v10 = vadd.f32 %v11859_v17, %v7615_v57  ;;  %v5656_v40 = vpop.f32.mrb[55].mxu1 }
 0x560   : > { %v5909_v0 = vmax.f32 %v5907_v21, %v5908_v24  ;;  %v5902_v20 = vsel %vm5828_vm13, %v5752_v4, -inf  ;;  %v5753_v47 = vmax.f32 %v5401_v13, 0.0  ;;  %v5816_v38 = vmax.f32 %v5654_v37, 0.0 }
 0x561   : > { %v5903_v2 = vmax.f32 %v5901_v19, %v5902_v20  ;;  %v5911_v25 = vsel %vm5828_vm13, %v5755_v6, -inf  ;;  %v6004_v12 = vsel %vm5828_vm13, %v5818_v39, -inf  ;;  %v5819_v14 = vmax.f32 %v5665_v10, 0.0 }
 0x562   : > { %v6171_v22 = vrot.slane %v5909_v0, 1  ;;  %v5912_v60 = vmax.f32 %v5910_v45, %v5911_v25  ;;  %v5905_v7 = vsel %vm5828_vm13, %v5753_v47, -inf  ;;  %v6005_v58 = vmax.f32 %v6003_v61, %v6004_v12 }
 0x563   : > { %v6043_v41 = vrot.slane %v5903_v2, 1  ;;  %v5906_v54 = vmax.f32 %v5904_v27, %v5905_v7  ;;  %v5998_v57 = vsel %vm5828_vm13, %v5816_v38, -inf  ;;  %v6007_v21 = vsel %vm5828_vm13, %v5819_v14, -inf }
 0x564   : > { %v6006_v4 = vsel %vm5828_vm13, %v5815_v23, -inf  ;;  %v5813_v13 = vmax.f32 %v5641_v49, 0.0  ;;  %v5999_v19 = vmax.f32 %v5997_v33, %v5998_v57  ;;  %v6179_v6 = vrot.slane %v6005_v58, 1 }
 0x565   : > { %v12056_v37 = vmax.f32 %v5903_v2, %v6043_v41  ;;  %v6107_v24 = vrot.slane %v5906_v54, 1  ;;  %v6008_v39 = vmax.f32 %v6006_v4, %v6007_v21  ;;  %v12058_v10 = vmax.f32 %v5909_v0, %v6171_v22 }
 0x566   : > { %v5657_v20 = vadd.f32 %v11859_v17, %v5656_v40  ;;  %v6000_v47 = vsel %vm5828_vm13, %v5813_v13, -inf  ;;  %v12064_v33 = vmax.f32 %v6005_v58, %v6179_v6  ;;  %v6051_v38 = vrot.slane %v5999_v19, 1 }
 0x567   : > { %v6340_v45 = vrot.slane %v12056_v37, 4  ;;  %v6374_v61 = vrot.slane %v12056_v37, 6  ;;  %v6139_v27 = vmax.f32 %v5906_v54, %v6107_v24  ;;  %v6610_v2 = vrot.slane %v12058_v10, 2 }
 0x568   : > { %v6644_v0 = vrot.slane %v12058_v10, 4  ;;  %v6235_v25 = vrot.slane %v5912_v60, 1  ;;  %v6243_v12 = vrot.slane %v6008_v39, 1  ;;  %v12068_v14 = vmax.f32 %v5999_v19, %v6051_v38 }
 0x569   : > { %v6458_v23 = vrot.slane %v6139_v27, 2  ;;  %v6526_v49 = vrot.slane %v6139_v27, 6  ;;  %v5817_v22 = vmax.f32 %v5657_v20, 0.0  ;;  %v12072_v40 = vsel %vm6309_vm3, %v6374_v61, %v11899_v34 }
 0x56a   : > { %v12076_v7 = vsel %vm6309_vm3, %v6340_v45, %v11903_v29  ;;  %v6492_v58 = vrot.slane %v6139_v27, 4  ;;  %v12085_v54 = vsel %vm6309_vm3, %v12056_v37, %v11907_v59  ;;  %v6624_v34 = vrot.slane %v12064_v33, 2 }
 0x56b   : > { %v12080_v41 = vsel %vm6309_vm3, %v6458_v23, %v11926_v52  ;;  %v12089_v57 = vsel %vm6309_vm3, %v6526_v49, %v11930_v55  ;;  %v6354_v21 = vrot.slane %v12068_v14, 4  ;;  %v6388_v29 = vrot.slane %v12068_v14, 6 }
 0x56c   : > { %v6001_v4 = vsel %vm5828_vm13, %v5817_v22, -inf  ;;  %v6678_v52 = vrot.slane %v12058_v10, 6  ;;  %v6267_v13 = vmax.f32 %v5912_v60, %v6235_v25  ;;  %v6692_v19 = vrot.slane %v12064_v33, 6 }
 0x56d   : > { %v6002_v24 = vmax.f32 %v6000_v47, %v6001_v4  ;;  %v6275_v6 = vmax.f32 %v6008_v39, %v6243_v12  ;;  %v12099_v55 = vsel %vm6309_vm3, %v6388_v29, %v11965_v30  ;;  %v12103_v61 = vsel %vm6309_vm3, %v6354_v21, %v11969_v56 }
 0x56e   : > { %v7554_v59 = vpop.f32.mrb[56].mxu0  ;;  %v12108_v20 = vsel %vm6309_vm3, %v12068_v14, %v11973_v31  ;;  %v12112_v47 = vsel %vm6309_vm3, %v6492_v58, %v11934_v63  ;;  %v12116_v39 = vsel %vm6309_vm3, %v6610_v2, %v11891_v46  ;;  %v6658_v30 = vrot.slane %v12064_v33, 4 }
 0x56f   : > { %v5413_v45 = vpop.f32.mrb[57].mxu0  ;;  %v6115_v60 = vrot.slane %v6002_v24, 1  ;;  %v12121_v56 = vsel %vm6309_vm3, %v6624_v34, %v11977_v5  ;;  %v12125_v31 = vsel %vm6309_vm3, %v6139_v27, %v11939_v15  ;;  %v12129_v63 = vsel %vm6309_vm3, %v6678_v52, %v11895_v50 }
 0x570   : > { %v7555_v23 = vpop.f32.mrb[58].mxu0  ;;  %v6762_v25 = vrot.slane %v6267_v13, 2  ;;  %v6776_v12 = vrot.slane %v6275_v6, 2  ;;  %v12133_v46 = vsel %vm6309_vm3, %v6692_v19, %v11981_v28  ;;  %v12137_v2 = vsel %vm6309_vm3, %v6644_v0, %v11911_v51 }
 0x571   : > { %v5416_v49 = vpop.f32.mrb[59].mxu0  ;;  %v6147_v38 = vmax.f32 %v6002_v24, %v6115_v60  ;;  %v6796_v5 = vrot.slane %v6267_v13, 4  ;;  %v6830_v27 = vrot.slane %v6267_v13, 6  ;;  %v6844_v34 = vrot.slane %v6275_v6, 6 }
 0x572   : > { %v12145_v29 = vsel %vm6309_vm3, %v6658_v30, %v12001_v16  ;;  %v6810_v28 = vrot.slane %v6275_v6, 4  ;;  %v12161_v19 = vsel %vm6309_vm3, %v6762_v25, %v11917_v1  ;;  %v12165_v16 = vsel %vm6309_vm3, %v6776_v12, %v12005_v26 }
 0x573   : > { %v6472_v22 = vrot.slane %v6147_v38, 2  ;;  %v6506_v58 = vrot.slane %v6147_v38, 4  ;;  %v6540_v15 = vrot.slane %v6147_v38, 6  ;;  %v12141_v50 = vsel %vm6309_vm3, %v6147_v38, %v11997_v35 }
 0x574   : > { %v7618_v21 = vpop.f32.mrb[56].mxu1  ;;  %v6324_v24 = vrot.slane %v12068_v14, 2  ;;  %v12181_v1 = vsel %vm6309_vm3, %v6830_v27, %v11943_v36  ;;  %v12185_v26 = vsel %vm6309_vm3, %v6844_v34, %v12013_v32  ;;  %v12201_v36 = vsel %vm6309_vm3, %v6275_v6, %v12021_v62 }
 0x575   : > { %v5669_v4 = vpop.f32.mrb[57].mxu1  ;;  %v12149_v51 = vsel %vm6309_vm3, %v6472_v22, %v11985_v53  ;;  %v12153_v0 = vsel %vm6309_vm3, %v6540_v15, %v11989_v9  ;;  %v12157_v52 = vsel %vm6309_vm3, %v6506_v58, %v11993_v48  ;;  %v6308_v53 = vrot.slane %v12056_v37, 2 }
 0x576   : > { %v7619_v35 = vpop.f32.mrb[58].mxu1  ;;  %v12172_v9 = vsel %vm6309_vm3, %v12058_v10, %v11921_v43  ;;  %v12177_v48 = vsel %vm6309_vm3, %v12064_v33, %v12009_v11  ;;  %v12189_v37 = vsel %vm6309_vm3, %v6796_v5, %v11947_v8  ;;  %v12193_v43 = vsel %vm6309_vm3, %v6810_v28, %v12017_v18 }
 0x577   : > { %v5672_v60 = vpop.f32.mrb[59].mxu1  ;;  %v12197_v11 = vsel %vm6309_vm3, %v6267_v13, %v11951_v44  ;;  %v12205_v32 = vsel %vm6309_vm3, %v6324_v24, %v12025_v3  ;;  %v12209_v8 = vsel %vm6309_vm3, %v6308_v53, %v11957_v42  ;;  %v5422_v10 = vadd.f32 %v11859_v17, %v7554_v59 }
 0x578   : > { %v5414_v18 = vadd.f32 %v11859_v17, %v5413_v45  ;;  %v5425_v33 = vadd.f32 %v11859_v17, %v7555_v23  ;;  %v5417_v44 = vadd.f32 %v11859_v17, %v5416_v49  ;;  %v5678_v14 = vadd.f32 %v11859_v17, %v7618_v21 }
 0x579   : > { %v5670_v62 = vadd.f32 %v11859_v17, %v5669_v4  ;;  %v5681_v13 = vadd.f32 %v11859_v17, %v7619_v35  ;;  %v5673_v3 = vadd.f32 %v11859_v17, %v5672_v60  ;;  %v5758_v6 = vmax.f32 %v5422_v10, 0.0 }
 0x57a   : > { %v5756_v30 = vmax.f32 %v5414_v18, 0.0  ;;  %v5759_v42 = vmax.f32 %v5425_v33, 0.0  ;;  %v5757_v38 = vmax.f32 %v5417_v44, 0.0  ;;  %v5822_v25 = vmax.f32 %v5678_v14, 0.0 }
 0x57b   : > { %v5820_v59 = vmax.f32 %v5670_v62, 0.0  ;;  %v5823_v12 = vmax.f32 %v5681_v13, 0.0  ;;  %v5821_v45 = vmax.f32 %v5673_v3, 0.0  ;;  %v5919_v23 = vsel %vm5828_vm13, %v5758_v6, -inf }
 0x57c   : > { %v5913_v49 = vsel %vm5828_vm13, %v5756_v30, -inf  ;;  %v5922_v22 = vsel %vm5828_vm13, %v5759_v42, -inf  ;;  %v5916_v58 = vsel %vm5828_vm13, %v5757_v38, -inf  ;;  %v6015_v15 = vsel %vm5828_vm13, %v5822_v25, -inf }
 0x57d   : > { %v6009_v28 = vsel %vm5828_vm13, %v5820_v59, -inf  ;;  %v6018_v4 = vsel %vm5828_vm13, %v5823_v12, -inf  ;;  %v6012_v10 = vsel %vm5828_vm13, %v5821_v45, -inf }
 0x58e   : > { %v7558_v5 = vpop.f32.mrb[60].mxu0 }
 0x58f   : > { %v5438_v27 = vadd.f32 %v11859_v17, %v7558_v5  ;;  %v5429_v34 = vpop.f32.mrb[61].mxu0 }
 0x590   : > { %v7622_v21 = vpop.f32.mrb[60].mxu1  ;;  %v5430_v35 = vadd.f32 %v11859_v17, %v5429_v34  ;;  %v7559_v53 = vpop.f32.mrb[62].mxu0 }
 0x591   : > { %v5694_v24 = vadd.f32 %v11859_v17, %v7622_v21  ;;  %v5685_v60 = vpop.f32.mrb[61].mxu1  ;;  %v5762_v18 = vmax.f32 %v5438_v27, 0.0  ;;  %v5441_v33 = vadd.f32 %v11859_v17, %v7559_v53  ;;  %v5432_v44 = vpop.f32.mrb[63].mxu0 }
 0x592   : > { %v5686_v14 = vadd.f32 %v11859_v17, %v5685_v60  ;;  %v7623_v62 = vpop.f32.mrb[62].mxu1  ;;  %v5760_v13 = vmax.f32 %v5430_v35, 0.0  ;;  %v5433_v3 = vadd.f32 %v11859_v17, %v5432_v44 }
 0x593   : > { %v5826_v6 = vmax.f32 %v5694_v24, 0.0  ;;  %v5697_v30 = vadd.f32 %v11859_v17, %v7623_v62  ;;  %v5688_v42 = vpop.f32.mrb[63].mxu1  ;;  %v5920_v38 = vsel %vm5828_vm13, %v5762_v18, -inf  ;;  %v5763_v25 = vmax.f32 %v5441_v33, 0.0 }
 0x594   : > { %v5824_v59 = vmax.f32 %v5686_v14, 0.0  ;;  %v5689_v12 = vadd.f32 %v11859_v17, %v5688_v42  ;;  %v5921_v45 = vmax.f32 %v5919_v23, %v5920_v38  ;;  %v5914_v5 = vsel %vm5828_vm13, %v5760_v13, -inf }
 0x595   : > { %v5761_v27 = vmax.f32 %v5433_v3, 0.0  ;;  %v6016_v34 = vsel %vm5828_vm13, %v5826_v6, -inf  ;;  %v5915_v21 = vmax.f32 %v5913_v49, %v5914_v5  ;;  %v5923_v35 = vsel %vm5828_vm13, %v5763_v25, -inf }
 0x596   : > { %v6017_v53 = vmax.f32 %v6015_v15, %v6016_v34  ;;  %v6010_v24 = vsel %vm5828_vm13, %v5824_v59, -inf  ;;  %v6172_v60 = vrot.slane %v5921_v45, 1  ;;  %v5924_v44 = vmax.f32 %v5922_v22, %v5923_v35 }
 0x597   : > { %v5917_v18 = vsel %vm5828_vm13, %v5761_v27, -inf  ;;  %v6011_v33 = vmax.f32 %v6009_v28, %v6010_v24  ;;  %v6044_v14 = vrot.slane %v5915_v21, 1  ;;  %v5827_v23 = vmax.f32 %v5697_v30, 0.0 }
 0x598   : > { %v5918_v62 = vmax.f32 %v5916_v58, %v5917_v18  ;;  %v6180_v17 = vrot.slane %v6017_v53, 1  ;;  %v12241_v42 = vmax.f32 %v5921_v45, %v6172_v60  ;;  %v6236_v13 = vrot.slane %v5924_v44, 1 }
 0x599   : > { %v6052_v3 = vrot.slane %v6011_v33, 1  ;;  %v5825_v6 = vmax.f32 %v5689_v12, 0.0  ;;  %v12243_v49 = vmax.f32 %v5915_v21, %v6044_v14  ;;  %v6019_v25 = vsel %vm5828_vm13, %v5827_v23, -inf }
 0x59a   : > { %v6108_v38 = vrot.slane %v5918_v62, 1  ;;  %v12245_v15 = vmax.f32 %v6017_v53, %v6180_v17  ;;  %v12248_v22 = vmax.f32 %v5924_v44, %v6236_v13  ;;  %v6020_v28 = vmax.f32 %v6018_v4, %v6019_v25 }
 0x59b   : > { %v12250_v59 = vmax.f32 %v6011_v33, %v6052_v3  ;;  %v6013_v58 = vsel %vm5828_vm13, %v5825_v6, -inf  ;;  %v6376_v5 = vrot.slane %v12243_v49, 5  ;;  %v6342_v12 = vrot.slane %v12243_v49, 3 }
 0x59c   : > { %v6140_v30 = vmax.f32 %v5918_v62, %v6108_v38  ;;  %v6014_v45 = vmax.f32 %v6012_v10, %v6013_v58  ;;  %v6244_v27 = vrot.slane %v6020_v28, 1  ;;  %v6410_v35 = vrot.slane %v12243_v49, 7 }
 0x59d   : > { %v6390_v34 = vrot.slane %v12250_v59, 5  ;;  %v6356_v21 = vrot.slane %v12250_v59, 3  ;;  %v6377_v24 = vsel %vm6312_vm4, %v6376_v5, %v12072_v40  ;;  %v6343_v4 = vsel %vm6312_vm4, %v6342_v12, %v12076_v7 }
 0x59e   : > { %v6116_v53 = vrot.slane %v6014_v45, 1  ;;  %v6460_v60 = vrot.slane %v6140_v30, 1  ;;  %v12262_v10 = vmax.f32 %v6020_v28, %v6244_v27  ;;  %v6411_v33 = vsel %vm6312_vm4, %v6410_v35, %v12085_v54 }
 0x59f   : > { %v6391_v44 = vsel %vm6312_vm4, %v6390_v34, %v12099_v55  ;;  %v6357_v18 = vsel %vm6312_vm4, %v6356_v21, %v12103_v61  ;;  %v6424_v7 = vrot.slane %v12250_v59, 7  ;;  %v6528_v23 = vrot.slane %v6140_v30, 5 }
 0x5a0   : > { %v6148_v14 = vmax.f32 %v6014_v45, %v6116_v53  ;;  %v7697_v62 = vpack.i.bf16 %v6391_v44, %v6377_v24  ;;  %v7692_v17 = vpack.i.bf16 %v6357_v18, %v6343_v4  ;;  %v6461_v40 = vsel %vm6312_vm4, %v6460_v60, %v12080_v41 }
 0x5a1   : > { %v6494_v13 = vrot.slane %v6140_v30, 3  ;;  %v6612_v3 = vrot.slane %v12241_v42, 1  ;;  %v6626_v54 = vrot.slane %v12245_v15, 1  ;;  %v6425_v38 = vsel %vm6312_vm4, %v6424_v7, %v12108_v20 }
 0x5a2   : > { %7698 = vrot.lane.b32.xlu1 %v7697_v62, %s7845_s29  ;;  %7693 = vrot.lane.b32.xlu0 %v7692_v17, %s7846_s30  ;;  %v6474_v55 = vrot.slane %v6148_v14, 1  ;;  %v6542_v61 = vrot.slane %v6148_v14, 5  ;;  %v6508_v6 = vrot.slane %v6148_v14, 3  ;;  %v6529_v41 = vsel %vm6312_vm4, %v6528_v23, %v12089_v57  ;;  %s6955_s29 = sshll.u32 %s163_s28, 4  ;;  %s12358_s29 = int_to_ptr.vmem [resolvable:$true] %s6955_s29 }
 0x5a3   : > { %v6495_v25 = vsel %vm6312_vm4, %v6494_v13, %v12112_v47  ;;  %v6613_v28 = vsel %vm6312_vm4, %v6612_v3, %v12116_v39  ;;  %v7702_v45 = vpack.i.bf16 %v6425_v38, %v6411_v33  ;;  %v6627_v57 = vsel %vm6312_vm4, %v6626_v54, %v12121_v56 }
 0x5a4   : > { %v6475_v58 = vsel %vm6312_vm4, %v6474_v55, %v12149_v51  ;;  %v6543_v5 = vsel %vm6312_vm4, %v6542_v61, %v12153_v0  ;;  %v6509_v12 = vsel %vm6312_vm4, %v6508_v6, %v12157_v52  ;;  %v7727_v47 = vpack.i.bf16 %v6627_v57, %v6613_v28 }
 0x5a5   : > { %v7707_v20 = vpack.i.bf16 %v6475_v58, %v6461_v40  ;;  %v7717_v27 = vpack.i.bf16 %v6543_v5, %v6529_v41  ;;  %v7712_v34 = vpack.i.bf16 %v6509_v12, %v6495_v25  ;;  %v6562_v39 = vrot.slane %v6140_v30, 7 }
 0x5a6   : > { %7703 = vrot.lane.b32.xlu0 %v7702_v45, %s7844_s19  ;;  %v6576_v21 = vrot.slane %v6148_v14, 7  ;;  %v6680_v51 = vrot.slane %v12241_v42, 5  ;;  %v6694_v0 = vrot.slane %v12245_v15, 5  ;;  %v6646_v35 = vrot.slane %v12241_v42, 3  ;;  %s7856_s19 = smov 104  }
 0x5a7   : > { %7708 = vrot.lane.b32.xlu1 %v7707_v20, %s7847_s4  ;;  %v6660_v52 = vrot.slane %v12245_v15, 3  ;;  %v6764_v53 = vrot.slane %v12248_v22, 1  ;;  %v6563_v56 = vsel %vm6312_vm4, %v6562_v39, %v12125_v31  ;;  %v6778_v4 = vrot.slane %v12262_v10, 1 }
 0x5a8   : > { %v6577_v24 = vsel %vm6312_vm4, %v6576_v21, %v12141_v50  ;;  %v6681_v30 = vsel %vm6312_vm4, %v6680_v51, %v12129_v63  ;;  %v6695_v44 = vsel %vm6312_vm4, %v6694_v0, %v12133_v46  ;;  %v6647_v18 = vsel %vm6312_vm4, %v6646_v35, %v12137_v2 }
 0x5a9   : > { %v7722_v60 = vpack.i.bf16 %v6577_v24, %v6563_v56  ;;  %v6661_v33 = vsel %vm6312_vm4, %v6660_v52, %v12145_v29  ;;  %v7737_v31 = vpack.i.bf16 %v6695_v44, %v6681_v30  ;;  %v6765_v50 = vsel %vm6312_vm4, %v6764_v53, %v12161_v19 }
 0x5aa   : > { %7713 = vrot.lane.b32.xlu0 %v7712_v34, %s7848_s5  ;;  %v7732_v14 = vpack.i.bf16 %v6661_v33, %v6647_v18  ;;  %v6779_v63 = vsel %vm6312_vm4, %v6778_v4, %v12165_v16  ;;  %v6714_v46 = vrot.slane %v12241_v42, 7  ;;  %v6728_v2 = vrot.slane %v12245_v15, 7  ;;  %s12356_s5 = scalar_lea.hbm %s12408_s3, %s7101_s27 }
 0x5ab   : > { %7718 = vrot.lane.b32.xlu1 %v7717_v27, %s7849_s6  ;;  %v7747_v62 = vpack.i.bf16 %v6779_v63, %v6765_v50  ;;  %v6832_v17 = vrot.slane %v12248_v22, 5  ;;  %v6846_v29 = vrot.slane %v12262_v10, 5  ;;  %v6798_v40 = vrot.slane %v12248_v22, 3  ;;  %s7771_s6 = scalar_lea.vmem %s12358_s29, 128 }
 0x5ac   : > { %v6812_v7 = vrot.slane %v12262_v10, 3  ;;  %v6866_v19 = vrot.slane %v12248_v22, 7  ;;  %v6715_v16 = vsel %vm6312_vm4, %v6714_v46, %v12172_v9  ;;  %v6729_v23 = vsel %vm6312_vm4, %v6728_v2, %v12177_v48  ;;  %p7772_p11 = scmp.ne.s32.totalorder %s12358_s29, %s7771_s6 }
 0x5ad   : > { %v6833_v42 = vsel %vm6312_vm4, %v6832_v17, %v12181_v1  ;;  %v6880_v15 = vrot.slane %v12262_v10, 7  ;;  %v7742_v13 = vpack.i.bf16 %v6729_v23, %v6715_v16  ;;  %v6847_v3 = vsel %vm6312_vm4, %v6846_v29, %v12185_v26 }
 0x5ae   : > { %7723 = vrot.lane.b32.xlu0 %v7722_v60, %s7850_s7  ;;  %v6799_v22 = vsel %vm6312_vm4, %v6798_v40, %v12189_v37  ;;  %v6813_v9 = vsel %vm6312_vm4, %v6812_v7, %v12193_v43  ;;  %v7757_v48 = vpack.i.bf16 %v6847_v3, %v6833_v42  ;;  %v6867_v1 = vsel %vm6312_vm4, %v6866_v19, %v12197_v11  ;;  %p7773_p12 = pnand %p7772_p11, %p7919_p5  ;;  %s7859_s7 = smov [#allocation3]  }
 0x5af   : > { %7728 = vrot.lane.b32.xlu1 %v7727_v47, %s7851_s8  ;;  %v7752_v55 = vpack.i.bf16 %v6813_v9, %v6799_v22  ;;  %v6881_v10 = vsel %vm6312_vm4, %v6880_v15, %v12201_v36  ;;  %v6311_v26 = vrot.slane %v12243_v49, 1  ;;  %v6326_v6 = vrot.slane %v12250_v59, 1 }
 0x5b0   : > { %v7762_v61 = vpack.i.bf16 %v6881_v10, %v6867_v1  ;;  %p7774_p13 = pneg %p7773_p12 }
 0x5b1   : > { %v6327_v37 = vsel %vm6312_vm4, %v6326_v6, %v12205_v32  ;;  %v6313_v43 = vsel %vm6312_vm4, %v6311_v26, %v12209_v8 }
 0x5b2   : > { %7733 = vrot.lane.b32.xlu0 %v7732_v14, %s7852_s9  ;;  %s7775_s9 = sshll.u32 %s7859_s7, 4  ;;  %s7776_s9 = int_to_ptr.vmem [resolvable:$false] %s7775_s9 }
 0x5b3   : > { %7738 = vrot.lane.b32.xlu1 %v7737_v31, %s7853_s10  ;;  %s7777_s10 = scalar_lea.vmem %s7776_s9, 256  ;;  %p7778_p0 = scmp.lt.s32.totalorder %s12358_s29, %s7776_s9 }
 0x5b4   : > { %p7779_p1 = scmp.lt.s32.totalorder %s7777_s10, %s7771_s6 }
 0x5b6   : > { %7743 = vrot.lane.b32.xlu0 %v7742_v13, %s7854_s11  ;;  %p7780_p2 = por %p7779_p1, %p7778_p0 }
 0x5b7   : > { %7748 = vrot.lane.b32.xlu1 %v7747_v62, %s7855_s17 }
 0x5b8   : > { %p7781_p3 = pnand %p7780_p2, %p7774_p13 }
 0x5ba   : > { %7753 = vrot.lane.b32.xlu0 %v7752_v55, %s7856_s19 }
 0x5bb   : > { %7758 = vrot.lane.b32.xlu1 %v7757_v48, %s7857_s20 }
 0x5be   : > { %7763 = vrot.lane.b32.xlu0 %v7762_v61, %s7858_s24 }
 0x614   : > { %v7699_v11 = vpop.permute.xlu1 %7698  ;;  %v7694_v36 = vpop.permute.xlu0 %7693 }
 0x615   : > { %v7696_v49 = vunpack.i.h.bf16 %v7694_v36  ;;  %v7695_v59 = vunpack.i.l.bf16 %v7694_v36  ;;  %v7701_v32 = vunpack.i.h.bf16 %v7699_v11  ;;  %v7700_v54 = vunpack.i.l.bf16 %v7699_v11 }
 0x617   : > { %v6889_v8 = vsel %vm5828_vm13, %v6327_v37, %v7696_v49  ;;  %v6888_v38 = vsel %vm5828_vm13, %v6313_v43, %v7695_v59  ;;  %vm6916_vm13 = vcmask 719872  }
 0x618   : > { %v7704_v41 = vpop.permute.xlu0 %7703  ;;  %v6891_v12 = vsel %vm6890_vm5, %v6888_v38, %v7700_v54  ;;  %v6892_v20 = vsel %vm6890_vm5, %v6889_v8, %v7701_v32 }
 0x619   : > { %v7709_v25 = vpop.permute.xlu1 %7708  ;;  %v7706_v28 = vunpack.i.h.bf16 %v7704_v41  ;;  %v7705_v58 = vunpack.i.l.bf16 %v7704_v41 }
 0x61a   : > { %v7711_v45 = vunpack.i.h.bf16 %v7709_v25  ;;  %v7710_v5 = vunpack.i.l.bf16 %v7709_v25 }
 0x61b   : > { %v6893_v27 = vsel %vm4868_vm11, %v6891_v12, %v7705_v58  ;;  %v6894_v34 = vsel %vm4868_vm11, %v6892_v20, %v7706_v28  ;;  %vm6910_vm11 = vcmask 588800  }
 0x61c   : > { %v7714_v57 = vpop.permute.xlu0 %7713  ;;  %v6896_v35 = vsel %vm6895_vm6, %v6893_v27, %v7710_v5  ;;  %v6897_v52 = vsel %vm6895_vm6, %v6894_v34, %v7711_v45 }
 0x61d   : > { %v7719_v47 = vpop.permute.xlu1 %7718  ;;  %v7716_v39 = vunpack.i.h.bf16 %v7714_v57  ;;  %v7715_v21 = vunpack.i.l.bf16 %v7714_v57 }
 0x61e   : > { %v7721_v51 = vunpack.i.h.bf16 %v7719_v47  ;;  %v7720_v0 = vunpack.i.l.bf16 %v7719_v47 }
 0x61f   : > { %v6899_v53 = vsel %vm6898_vm7, %v6896_v35, %v7715_v21  ;;  %v6900_v56 = vsel %vm6898_vm7, %v6897_v52, %v7716_v39 }
 0x620   : > { %v7724_v24 = vpop.permute.xlu0 %7723  ;;  %v6902_v33 = vsel %vm6901_vm8, %v6899_v53, %v7720_v0  ;;  %v6903_v31 = vsel %vm6901_vm8, %v6900_v56, %v7721_v51 }
 0x621   : > { %v7729_v30 = vpop.permute.xlu1 %7728  ;;  %v7726_v4 = vunpack.i.h.bf16 %v7724_v24  ;;  %v7725_v60 = vunpack.i.l.bf16 %v7724_v24 }
 0x622   : > { %v7731_v44 = vunpack.i.h.bf16 %v7729_v30  ;;  %v7730_v18 = vunpack.i.l.bf16 %v7729_v30 }
 0x623   : > { %v6905_v14 = vsel %vm6904_vm9, %v6902_v33, %v7725_v60  ;;  %v6906_v50 = vsel %vm6904_vm9, %v6903_v31, %v7726_v4 }
 0x624   : > { %v7734_v63 = vpop.permute.xlu0 %7733  ;;  %v6908_v40 = vsel %vm6907_vm10, %v6905_v14, %v7730_v18  ;;  %v6909_v7 = vsel %vm6907_vm10, %v6906_v50, %v7731_v44 }
 0x625   : > { %v7739_v62 = vpop.permute.xlu1 %7738  ;;  %v7736_v46 = vunpack.i.h.bf16 %v7734_v63  ;;  %v7735_v2 = vunpack.i.l.bf16 %v7734_v63 }
 0x626   : > { %v7741_v17 = vunpack.i.h.bf16 %v7739_v62  ;;  %v7740_v29 = vunpack.i.l.bf16 %v7739_v62 }
 0x627   : > { %v6911_v19 = vsel %vm6910_vm11, %v6908_v40, %v7735_v2  ;;  %v6912_v16 = vsel %vm6910_vm11, %v6909_v7, %v7736_v46 }
 0x628   : > { %v7744_v23 = vpop.permute.xlu0 %7743  ;;  %v6914_v9 = vsel %vm6913_vm12, %v6911_v19, %v7740_v29  ;;  %v6915_v48 = vsel %vm6913_vm12, %v6912_v16, %v7741_v17 }
 0x629   : > { %v7749_v42 = vpop.permute.xlu1 %7748  ;;  %v7746_v15 = vunpack.i.h.bf16 %v7744_v23  ;;  %v7745_v13 = vunpack.i.l.bf16 %v7744_v23 }
 0x62a   : > { %v7751_v3 = vunpack.i.h.bf16 %v7749_v42  ;;  %v7750_v22 = vunpack.i.l.bf16 %v7749_v42 }
 0x62b   : > { %v6917_v55 = vsel %vm6916_vm13, %v6914_v9, %v7745_v13  ;;  %v6918_v1 = vsel %vm6916_vm13, %v6915_v48, %v7746_v15 }
 0x62c   : > { %v7754_v10 = vpop.permute.xlu0 %7753  ;;  %v6920_v11 = vsel %vm6919_vm14, %v6917_v55, %v7750_v22  ;;  %v6921_v36 = vsel %vm6919_vm14, %v6918_v1, %v7751_v3 }
 0x62d   : > { %v7759_v61 = vpop.permute.xlu1 %7758  ;;  %v7756_v26 = vunpack.i.h.bf16 %v7754_v10  ;;  %v7755_v6 = vunpack.i.l.bf16 %v7754_v10 }
 0x62e   : > { %v7761_v37 = vunpack.i.h.bf16 %v7759_v61  ;;  %v7760_v43 = vunpack.i.l.bf16 %v7759_v61 }
 0x62f   : > { %v6923_v49 = vsel %vm6922_vm15, %v6920_v11, %v7755_v6  ;;  %v6924_v59 = vsel %vm6922_vm15, %v6921_v36, %v7756_v26 }
 0x630   : > { %v7764_v32 = vpop.permute.xlu0 %7763  ;;  %v6926_v38 = vsel %vm6925_vm0, %v6923_v49, %v7760_v43  ;;  %v6927_v41 = vsel %vm6925_vm0, %v6924_v59, %v7761_v37 }
 0x631   : > { %v7766_v54 = vunpack.i.h.bf16 %v7764_v32  ;;  %v7765_v8 = vunpack.i.l.bf16 %v7764_v32 }
 0x633   : > { %v6929_v25 = vsel %vm6928_vm1, %v6926_v38, %v7765_v8  ;;  %v6930_v28 = vsel %vm6928_vm1, %v6927_v41, %v7766_v54 }
 0x634   : > { %v7361_v58 = vpack.c.bf16 %v6930_v28, %v6929_v25 }
 0x636   : > { %7362 = vst [vmem:[%s163_s28] sm:$0xff] %v7361_v58  }
 0x637   : > { %7784 = shalt.err (!%p7781_p3)
}
 0x638   : > { %s7785_s11 = scalar_lea.hbm %s12356_s5, 128  ;;  %s7789_s20 = scalar_lea.hbm %s12408_s3, 256 }
 0x639   : > { %p7786_p4 = scmp.ne.s32.totalorder %s12356_s5, %s7785_s11  ;;  %p7790_p9 = scmp.lt.u32.totalorder %s12356_s5, %s12408_s3 }
 0x63a   : > { %p7791_p10 = scmp.lt.u32.totalorder %s7789_s20, %s7785_s11  ;;  %p7793_p12 = scmp.lt.u32.totalorder %s7785_s11, %s12356_s5 }
 0x63b   : > { %p7787_p7 = pnand %p7786_p4, %p7919_p5 }
 0x63c   : > { %p7792_p11 = por %p7791_p10, %p7790_p9 }
 0x63d   : > { %p7788_p8 = pneg %p7787_p7 }
 0x63e   : > { %p7794_p13 = por %p7793_p12, %p7792_p11 }
 0x640   : > { %p7795_p0 = pnand %p7794_p13, %p7788_p8 }
 0x642   : > { %7798 = shalt.err (!%p7795_p0)
}
 0x643   : > { %s7860_s26 = smov 4  }
 0x644   : > { %7628 = dma.vmem_to_hbm [thread:$0]  (%p7919_p5), %s12358_s29, 128, %s12356_s5, %s12362_s16, %s7851_s8, %s7851_s8, %s7860_s26  }
 0x645 PF: > { %p7634_p1 = scmp.ge.s32.totalorder %s7833_s15, 2  ;;  %s6970_s27 = sand.u32 1, %s7821_s12  }
 0x646   : > { %s6971_s28 = scalar_lea.sflag [#allocation4], %s6970_s27 }
 0x647   : > { %p7631_p2 = pnand %p7634_p1, %p7923_p6 }
 0x649   : > { %7816 = dma.done.wait (!%p7631_p2), %s6971_s28, 128  }
 0x64a   : > { %7818 = vsyncadd (!%p7631_p2), %s6971_s28, 4294967168  ;;  %p13_p3 = scmp.ge.s32.totalorder %s7906_s18, 4   ;;  %s13082_s12 = smov %s7825_s13 }
 0x64b   : > { %s13083_s13 = smov %s7829_s14  ;;  %s13084_s14 = smov %s7917_s21 }
 0x64c   : > { %s13085_s15 = smov %s7906_s18  ;;  %15 = sbr.rel (!%p13_p3) target bundleno = 3 (0x3), region = 70 }
 0x653   :  { %6976 = vsyncpa [#allocation4], 1 }
 0x654   :  { %6978 = vsyncpa [#allocation4 + $0x1], 1 }

</bundles_post_ra>
